<compile_context>
chip_gen: v7x
topology: tpu7x:2x2x1
jax: 0.10.0
libtpu: 0.0.40
codegen_flags: <defaults>
</compile_context>

<pallas_src>
import functools

import jax
import jax.numpy as jnp
from jax import lax
from jax.experimental import pallas as pl
from jax.experimental.pallas import tpu as pltpu

_NEG_SLOPE = 0.1
_BN_EPS = 1e-5
_MXU_DTYPE = jnp.bfloat16      # MXU-native operand dtype; accumulation is f32.


def _round_up(v, m):
    return ((v + m - 1) // m) * m


# ----------------------------- kernel ---------------------------------------


def _resblock_kernel(f_ref, sc1_ref, sh1_ref, w1_ref,
                     sc2_ref, sh2_ref, w2_ref,
                     sc3_ref, sh3_ref, o_ref, pad_ref, *, h, w, wa):
    """Fused ResBlock body for one batch element.

    f_ref  : (1, P, C)    reflection-padded raw input, flattened at width wa
                          (P = (h+3)*wa; 1 garbage tail row, garbage cols >= w+2)
    sc*/sh*: (1, C)       BN affine terms (conv biases folded into sh2 / sh3)
    w*_ref : (3, 3C, C)   conv taps, dx stacked along the contraction dim
    o_ref  : (1, L, C)    output rows, L = h*wa (cols >= w are garbage)
    pad_ref: (h+3, wa, C) f32 VMEM scratch for the stage-2 reflection pad
    """
    c = sc1_ref.shape[-1]
    l = h * wa                       # output rows (incl. garbage width cols)
    pk = (h + 2) * wa                # rows of the lane-concatenated slabs

    def bn_lrelu(t, sc_ref, sh_ref):
        t = t * sc_ref[...] + sh_ref[...]
        return jnp.where(t >= 0.0, t, _NEG_SLOPE * t)

    def conv3x3(slab, w_k):
        # slab: (>= pk+2, C) f32.  Lane-concat the three dx shifts once (bf16),
        # then one deep (K = 3C) MXU matmul per dy with f32 accumulation.
        yk = jnp.concatenate(
            [slab[d:d + pk].astype(_MXU_DTYPE) for d in range(3)], axis=-1)
        acc = jnp.dot(yk[0:l], w_k[0], preferred_element_type=jnp.float32)
        for dy in (1, 2):
            acc = acc + jnp.dot(yk[dy * wa:dy * wa + l], w_k[dy],
                                preferred_element_type=jnp.float32)
        return acc

    # ---- stage 1: BN1 + LeakyReLU + conv1 (bias folded into BN2 shift) -----
    x = f_ref[0].astype(jnp.float32)                  # (P, C) raw padded input
    mid = conv3x3(bn_lrelu(x, sc1_ref, sh1_ref), w1_ref)      # (l, C) f32

    # ---- stage 2: BN2' + LeakyReLU, in-VMEM reflection pad, conv2 ----------
    a2 = bn_lrelu(mid, sc2_ref, sh2_ref).reshape(h, wa, c)
    # Reflection pad (1,1).  Garbage columns / the tail row of pad_ref never
    # feed valid output positions, so they may stay uninitialised.
    for dst, src in ((slice(1, h + 1), slice(0, h)),               # interior
                     (slice(0, 1), slice(1, 2)),                   # top  <- row 1
                     (slice(h + 1, h + 2), slice(h - 2, h - 1))):  # bot  <- row h-2
        rows = a2[src]
        pad_ref[dst, 1:w + 1, :] = rows[:, 0:w, :]                 # interior cols
        pad_ref[dst, 0:1, :] = rows[:, 1:2, :]                     # left  <- col 1
        pad_ref[dst, w + 1:w + 2, :] = rows[:, w - 2:w - 1, :]     # right <- col w-2
    p2 = pad_ref[...].reshape((h + 3) * wa, c)
    out = conv3x3(p2, w2_ref)                          # (l, C) f32

    # ---- epilogue: BN3' (b2 folded) + identity residual ---------------------
    # The residual rows are the interior of the padded input slab already in
    # VMEM: raw x[i, j] lives at flat row (i+1)*wa + (j+1).
    res = x[wa + 1:wa + 1 + l, :]
    o_ref[0] = (res + out * sc3_ref[...] + sh3_ref[...]).astype(o_ref.dtype)


# ----------------------------- wrappers --------------------------------------


def _resblock_call(n, p, l, c, h, w, wa, dtype):
    kern = functools.partial(_resblock_kernel, h=h, w=w, wa=wa)
    vec_spec = pl.BlockSpec((1, c), lambda i: (0, 0))
    tap_spec = pl.BlockSpec((3, 3 * c, c), lambda i: (0, 0, 0))

    itemsize = jnp.dtype(dtype).itemsize
    bytes_accessed = ((n * p * c + n * l * c) * itemsize
                      + 2 * 9 * c * c * jnp.dtype(_MXU_DTYPE).itemsize
                      + 6 * c * 4)
    cost = pl.CostEstimate(flops=2 * 2 * 9 * n * l * c * c,
                           transcendentals=0,
                           bytes_accessed=int(bytes_accessed))

    return pl.pallas_call(
        kern,
        out_shape=jax.ShapeDtypeStruct((n, l, c), dtype),
        grid_spec=pltpu.PrefetchScalarGridSpec(
            num_scalar_prefetch=0,
            grid=(n,),
            in_specs=[
                pl.BlockSpec((1, p, c), lambda i: (i, 0, 0)),  # padded input slab
                vec_spec, vec_spec, tap_spec,                  # BN1, conv1 taps
                vec_spec, vec_spec, tap_spec,                  # BN2'(+b1), conv2 taps
                vec_spec, vec_spec,                            # BN3'(+b2)
            ],
            out_specs=pl.BlockSpec((1, l, c), lambda i: (i, 0, 0)),
            scratch_shapes=[pltpu.VMEM((h + 3, wa, c), jnp.float32)],
        ),
        compiler_params=pltpu.CompilerParams(
            dimension_semantics=("parallel",)),
        cost_estimate=cost,
    )


def _bn_affine(gamma, beta, mean, var):
    scale = (gamma / jnp.sqrt(var + _BN_EPS)).astype(jnp.float32)
    shift = (beta.astype(jnp.float32) - mean.astype(jnp.float32) * scale)
    return scale[None, :], shift[None, :]


def resblock_forward_nhwc(x_nhwc, params):
    """NHWC -> NHWC ResBlock forward (identity residual, stride=1, eval BN)."""
    n, h, w, c = x_nhwc.shape
    assert h >= 2 and w >= 2, "ReflectionPad2d(1) needs H, W >= 2"
    wa = _round_up(w + 2, 8)          # sublane-aligned padded width
    p = (h + 3) * wa                  # flattened padded slab (+1 garbage row)
    l = h * wa
    dtype = x_nhwc.dtype

    sc1, sh1 = _bn_affine(*params["bn1"])
    sc2, sh2 = _bn_affine(*params["bn2"])
    sc3, sh3 = _bn_affine(*params["bn3"])
    # Fold the conv biases into the downstream affine shifts.
    sh2 = sh2 + sc2 * params["b1"].astype(jnp.float32)[None, :]
    sh3 = sh3 + sc3 * params["b2"].astype(jnp.float32)[None, :]

    # (3, 3, Cin, Cout) HWIO -> (dy, dx*Cin + ci, Cout), bf16 for the MXU.
    w1 = params["w1"].reshape(3, 3 * c, c).astype(_MXU_DTYPE)
    w2 = params["w2"].reshape(3, 3 * c, c).astype(_MXU_DTYPE)

    # Reflection-pad (1,1), zero-pad width to wa and add one garbage tail row,
    # flatten HW so every conv tap is a contiguous, sublane-aligned row slice.
    xp = jnp.pad(x_nhwc, ((0, 0), (1, 1), (1, 1), (0, 0)), mode="reflect")
    xp = jnp.pad(xp, ((0, 0), (0, 1), (0, wa - (w + 2)), (0, 0)))
    f1 = xp.reshape(n, p, c)

    out_flat = _resblock_call(n, p, l, c, h, w, wa, dtype)(
        f1, sc1, sh1, w1, sc2, sh2, w2, sc3, sh3)
    return out_flat.reshape(n, h, wa, c)[:, :, :w, :]


@jax.jit
def resblock_forward(x_nchw, params):
    """x: (N, C, H, W) NCHW, same as PyTorch.  Identity residual (stride=1)."""
    # NOTE: for stacks of ResBlocks keep activations NHWC and call
    #       resblock_forward_nhwc directly so these transposes cancel.
    x = jnp.transpose(x_nchw, (0, 2, 3, 1))
    out = resblock_forward_nhwc(x, params)
    return jnp.transpose(out, (0, 3, 1, 2))


# ----------------------------- reference --------------------------------------


def _reference_resblock(x, params):
    """Pure-JAX reference matching the PyTorch semantics (eval-mode BN)."""
    def bn(t, gamma, beta, mean, var):
        inv = gamma / jnp.sqrt(var + _BN_EPS)
        return ((t - mean[None, :, None, None]) * inv[None, :, None, None]
                + beta[None, :, None, None])

    def lrelu(t):
        return jnp.where(t >= 0.0, t, _NEG_SLOPE * t)

    def conv(t, w_hwio, b):
        tp = jnp.pad(t, ((0, 0), (0, 0), (1, 1), (1, 1)), mode="reflect")
        y = lax.conv_general_dilated(
            tp, w_hwio, window_strides=(1, 1), padding="VALID",
            dimension_numbers=("NCHW", "HWIO", "NCHW"),
            precision=lax.Precision.HIGHEST)
        return y + b[None, :, None, None]

    hdd = conv(lrelu(bn(x, *params["bn1"])), params["w1"], params["b1"])
    hdd = conv(lrelu(bn(hdd, *params["bn2"])), params["w2"], params["b2"])
    hdd = bn(hdd, *params["bn3"])
    return x + hdd


if __name__ == "__main__":
    key = jax.random.PRNGKey(0)
    keys = jax.random.split(key, 8)

    N, C, H, W = 2, 128, 16, 16     # small, but lane-dense (C == 128)

    x = 0.5 * jax.random.normal(keys[0], (N, C, H, W), dtype=jnp.float32)

    def bn_params(k):
        k1, k2, k3, k4 = jax.random.split(k, 4)
        gamma = jax.random.uniform(k1, (C,), minval=0.8, maxval=1.2)
        beta = 0.05 * jax.random.normal(k2, (C,))
        mean = 0.05 * jax.random.normal(k3, (C,))
        var = jax.random.uniform(k4, (C,), minval=0.8, maxval=1.2)
        return (gamma, beta, mean, var)

    params = {
        "bn1": bn_params(keys[1]),
        "bn2": bn_params(keys[2]),
        "bn3": bn_params(keys[3]),
        "w1": 0.05 * jax.random.normal(keys[4], (3, 3, C, C), dtype=jnp.float32),
        "b1": 0.05 * jax.random.normal(keys[5], (C,), dtype=jnp.float32),
        "w2": 0.05 * jax.random.normal(keys[6], (3, 3, C, C), dtype=jnp.float32),
        "b2": 0.05 * jax.random.normal(keys[7], (C,), dtype=jnp.float32),
    }

    out = resblock_forward(x, params)
    out = jax.block_until_ready(out)

    ref = _reference_resblock(x, params)
    assert out.shape == x.shape
    assert jnp.allclose(out, ref, atol=2e-2, rtol=2e-2), (
        "mismatch vs reference: max abs diff "
        f"{float(jnp.max(jnp.abs(out - ref)))}")

    print("KERNEL_OK")
</pallas_src>

<mosaic_0001>
module attributes {stable_mosaic.version = 11 : i64} {
  func.func @_resblock_kernel(%arg0: i32, %arg1: memref<1x456x128xf32, #tpu.memory_space<vmem>>, %arg2: memref<1x128xf32, #tpu.memory_space<vmem>>, %arg3: memref<1x128xf32, #tpu.memory_space<vmem>>, %arg4: memref<3x384x128xbf16, #tpu.memory_space<vmem>>, %arg5: memref<1x128xf32, #tpu.memory_space<vmem>>, %arg6: memref<1x128xf32, #tpu.memory_space<vmem>>, %arg7: memref<3x384x128xbf16, #tpu.memory_space<vmem>>, %arg8: memref<1x128xf32, #tpu.memory_space<vmem>>, %arg9: memref<1x128xf32, #tpu.memory_space<vmem>>, %arg10: memref<1x384x128xf32, #tpu.memory_space<vmem>>, %arg11: memref<19x24x128xf32, #tpu.memory_space<vmem>>) attributes {dimension_semantics = [#tpu.dimension_semantics<parallel>], iteration_bounds = array<i64: 2>, scalar_prefetch = 0 : i64, scratch_operands = 1 : i64, tpu.core_type = #tpu.core_type<tc>, window_params = [{transform_indices = @transform_0, window_bounds = array<i64: 1, 456, 128>}, {pipeline_mode = #tpu.pipeline_mode<synchronous>, transform_indices = @transform_1, window_bounds = array<i64: 1, 128>}, {pipeline_mode = #tpu.pipeline_mode<synchronous>, transform_indices = @transform_2, window_bounds = array<i64: 1, 128>}, {pipeline_mode = #tpu.pipeline_mode<synchronous>, transform_indices = @transform_3, window_bounds = array<i64: 3, 384, 128>}, {pipeline_mode = #tpu.pipeline_mode<synchronous>, transform_indices = @transform_4, window_bounds = array<i64: 1, 128>}, {pipeline_mode = #tpu.pipeline_mode<synchronous>, transform_indices = @transform_5, window_bounds = array<i64: 1, 128>}, {pipeline_mode = #tpu.pipeline_mode<synchronous>, transform_indices = @transform_6, window_bounds = array<i64: 3, 384, 128>}, {pipeline_mode = #tpu.pipeline_mode<synchronous>, transform_indices = @transform_7, window_bounds = array<i64: 1, 128>}, {pipeline_mode = #tpu.pipeline_mode<synchronous>, transform_indices = @transform_8, window_bounds = array<i64: 1, 128>}, {transform_indices = @transform_9, window_bounds = array<i64: 1, 384, 128>}]} {
    %c0 = arith.constant 0 : index
    %c0_0 = arith.constant 0 : index
    %c0_1 = arith.constant 0 : index
    %0 = vector.load %arg1[%c0, %c0_0, %c0_1] : memref<1x456x128xf32, #tpu.memory_space<vmem>>, vector<1x456x128xf32>
    %1 = vector.shape_cast %0 : vector<1x456x128xf32> to vector<456x128xf32>
    %c0_2 = arith.constant 0 : index
    %c0_3 = arith.constant 0 : index
    %2 = vector.load %arg2[%c0_2, %c0_3] : memref<1x128xf32, #tpu.memory_space<vmem>>, vector<1x128xf32>
    %3 = vector.broadcast %2 : vector<1x128xf32> to vector<456x128xf32>
    %4 = arith.mulf %1, %3 : vector<456x128xf32>
    %c0_4 = arith.constant 0 : index
    %c0_5 = arith.constant 0 : index
    %5 = vector.load %arg3[%c0_4, %c0_5] : memref<1x128xf32, #tpu.memory_space<vmem>>, vector<1x128xf32>
    %6 = vector.broadcast %5 : vector<1x128xf32> to vector<456x128xf32>
    %7 = arith.addf %4, %6 : vector<456x128xf32>
    %cst = arith.constant 0.000000e+00 : f32
    %8 = vector.broadcast %cst : f32 to vector<456x128xf32>
    %9 = arith.cmpf oge, %7, %8 : vector<456x128xf32>
    %cst_6 = arith.constant 1.000000e-01 : f32
    %10 = vector.broadcast %cst_6 : f32 to vector<456x128xf32>
    %11 = arith.mulf %10, %7 : vector<456x128xf32>
    %12 = arith.select %9, %7, %11 : vector<456x128xi1>, vector<456x128xf32>
    %13 = vector.extract_strided_slice %12 {offsets = [0, 0], sizes = [432, 128], strides = [1, 1]} : vector<456x128xf32> to vector<432x128xf32>
    %14 = arith.truncf %13 : vector<432x128xf32> to vector<432x128xbf16>
    %15 = vector.extract_strided_slice %12 {offsets = [1, 0], sizes = [432, 128], strides = [1, 1]} : vector<456x128xf32> to vector<432x128xf32>
    %16 = arith.truncf %15 : vector<432x128xf32> to vector<432x128xbf16>
    %17 = vector.extract_strided_slice %12 {offsets = [2, 0], sizes = [432, 128], strides = [1, 1]} : vector<456x128xf32> to vector<432x128xf32>
    %18 = arith.truncf %17 : vector<432x128xf32> to vector<432x128xbf16>
    %19 = tpu.concatenate %14, %16, %18 in 1 : vector<432x128xbf16>, vector<432x128xbf16>, vector<432x128xbf16> -> vector<432x384xbf16>
    %20 = vector.extract_strided_slice %19 {offsets = [0, 0], sizes = [384, 384], strides = [1, 1]} : vector<432x384xbf16> to vector<384x384xbf16>
    %c0_7 = arith.constant 0 : index
    %c0_8 = arith.constant 0 : index
    %c0_9 = arith.constant 0 : index
    %21 = vector.load %arg4[%c0_7, %c0_8, %c0_9] : memref<3x384x128xbf16, #tpu.memory_space<vmem>>, vector<1x384x128xbf16>
    %22 = vector.shape_cast %21 : vector<1x384x128xbf16> to vector<384x128xbf16>
    %cst_10 = arith.constant dense<0.000000e+00> : vector<384x128xf32>
    %23 = tpu.matmul %20, %22, %cst_10 {dimension_numbers = #tpu.dot_dimension_numbers<[1], [0], [0], [1], [0, 0, 1, 1], [], []>} : vector<384x384xbf16>, vector<384x128xbf16>, vector<384x128xf32> -> vector<384x128xf32>
    %24 = vector.extract_strided_slice %19 {offsets = [24, 0], sizes = [384, 384], strides = [1, 1]} : vector<432x384xbf16> to vector<384x384xbf16>
    %c1 = arith.constant 1 : index
    %c0_11 = arith.constant 0 : index
    %c0_12 = arith.constant 0 : index
    %25 = vector.load %arg4[%c1, %c0_11, %c0_12] : memref<3x384x128xbf16, #tpu.memory_space<vmem>>, vector<1x384x128xbf16>
    %26 = vector.shape_cast %25 : vector<1x384x128xbf16> to vector<384x128xbf16>
    %cst_13 = arith.constant dense<0.000000e+00> : vector<384x128xf32>
    %27 = tpu.matmul %24, %26, %cst_13 {dimension_numbers = #tpu.dot_dimension_numbers<[1], [0], [0], [1], [0, 0, 1, 1], [], []>} : vector<384x384xbf16>, vector<384x128xbf16>, vector<384x128xf32> -> vector<384x128xf32>
    %28 = arith.addf %23, %27 : vector<384x128xf32>
    %29 = vector.extract_strided_slice %19 {offsets = [48, 0], sizes = [384, 384], strides = [1, 1]} : vector<432x384xbf16> to vector<384x384xbf16>
    %c2 = arith.constant 2 : index
    %c0_14 = arith.constant 0 : index
    %c0_15 = arith.constant 0 : index
    %30 = vector.load %arg4[%c2, %c0_14, %c0_15] : memref<3x384x128xbf16, #tpu.memory_space<vmem>>, vector<1x384x128xbf16>
    %31 = vector.shape_cast %30 : vector<1x384x128xbf16> to vector<384x128xbf16>
    %cst_16 = arith.constant dense<0.000000e+00> : vector<384x128xf32>
    %32 = tpu.matmul %29, %31, %cst_16 {dimension_numbers = #tpu.dot_dimension_numbers<[1], [0], [0], [1], [0, 0, 1, 1], [], []>} : vector<384x384xbf16>, vector<384x128xbf16>, vector<384x128xf32> -> vector<384x128xf32>
    %33 = arith.addf %28, %32 : vector<384x128xf32>
    %c0_17 = arith.constant 0 : index
    %c0_18 = arith.constant 0 : index
    %34 = vector.load %arg5[%c0_17, %c0_18] : memref<1x128xf32, #tpu.memory_space<vmem>>, vector<1x128xf32>
    %35 = vector.broadcast %34 : vector<1x128xf32> to vector<384x128xf32>
    %36 = arith.mulf %33, %35 : vector<384x128xf32>
    %c0_19 = arith.constant 0 : index
    %c0_20 = arith.constant 0 : index
    %37 = vector.load %arg6[%c0_19, %c0_20] : memref<1x128xf32, #tpu.memory_space<vmem>>, vector<1x128xf32>
    %38 = vector.broadcast %37 : vector<1x128xf32> to vector<384x128xf32>
    %39 = arith.addf %36, %38 : vector<384x128xf32>
    %cst_21 = arith.constant 0.000000e+00 : f32
    %40 = vector.broadcast %cst_21 : f32 to vector<384x128xf32>
    %41 = arith.cmpf oge, %39, %40 : vector<384x128xf32>
    %cst_22 = arith.constant 1.000000e-01 : f32
    %42 = vector.broadcast %cst_22 : f32 to vector<384x128xf32>
    %43 = arith.mulf %42, %39 : vector<384x128xf32>
    %44 = arith.select %41, %39, %43 : vector<384x128xi1>, vector<384x128xf32>
    %45 = vector.shape_cast %44 : vector<384x128xf32> to vector<16x24x128xf32>
    %46 = vector.extract_strided_slice %45 {offsets = [0, 0, 0], sizes = [16, 16, 128], strides = [1, 1, 1]} : vector<16x24x128xf32> to vector<16x16x128xf32>
    %c1_23 = arith.constant 1 : index
    %c1_24 = arith.constant 1 : index
    %c0_25 = arith.constant 0 : index
    %47 = vector.load %arg11[%c1_23, %c1_24, %c0_25] : memref<19x24x128xf32, #tpu.memory_space<vmem>>, vector<16x16x128xf32>
    tpu.vector_store %arg11[%c1_23, %c1_24, %c0_25], %46 {strides = array<i32>} : memref<19x24x128xf32, #tpu.memory_space<vmem>>, vector<16x16x128xf32>,
    %48 = vector.extract_strided_slice %45 {offsets = [0, 1, 0], sizes = [16, 1, 128], strides = [1, 1, 1]} : vector<16x24x128xf32> to vector<16x1x128xf32>
    %c1_26 = arith.constant 1 : index
    %c0_27 = arith.constant 0 : index
    %c0_28 = arith.constant 0 : index
    %49 = vector.load %arg11[%c1_26, %c0_27, %c0_28] : memref<19x24x128xf32, #tpu.memory_space<vmem>>, vector<16x1x128xf32>
    tpu.vector_store %arg11[%c1_26, %c0_27, %c0_28], %48 {strides = array<i32>} : memref<19x24x128xf32, #tpu.memory_space<vmem>>, vector<16x1x128xf32>,
    %50 = vector.extract_strided_slice %45 {offsets = [0, 14, 0], sizes = [16, 1, 128], strides = [1, 1, 1]} : vector<16x24x128xf32> to vector<16x1x128xf32>
    %c1_29 = arith.constant 1 : index
    %c17 = arith.constant 17 : index
    %c0_30 = arith.constant 0 : index
    %51 = vector.load %arg11[%c1_29, %c17, %c0_30] : memref<19x24x128xf32, #tpu.memory_space<vmem>>, vector<16x1x128xf32>
    tpu.vector_store %arg11[%c1_29, %c17, %c0_30], %50 {strides = array<i32>} : memref<19x24x128xf32, #tpu.memory_space<vmem>>, vector<16x1x128xf32>,
    %52 = vector.extract_strided_slice %45 {offsets = [1, 0, 0], sizes = [1, 24, 128], strides = [1, 1, 1]} : vector<16x24x128xf32> to vector<1x24x128xf32>
    %53 = vector.extract_strided_slice %52 {offsets = [0, 0, 0], sizes = [1, 16, 128], strides = [1, 1, 1]} : vector<1x24x128xf32> to vector<1x16x128xf32>
    %c0_31 = arith.constant 0 : index
    %c1_32 = arith.constant 1 : index
    %c0_33 = arith.constant 0 : index
    %54 = vector.load %arg11[%c0_31, %c1_32, %c0_33] : memref<19x24x128xf32, #tpu.memory_space<vmem>>, vector<1x16x128xf32>
    tpu.vector_store %arg11[%c0_31, %c1_32, %c0_33], %53 {strides = array<i32>} : memref<19x24x128xf32, #tpu.memory_space<vmem>>, vector<1x16x128xf32>,
    %55 = vector.extract_strided_slice %52 {offsets = [0, 1, 0], sizes = [1, 1, 128], strides = [1, 1, 1]} : vector<1x24x128xf32> to vector<1x1x128xf32>
    %c0_34 = arith.constant 0 : index
    %c0_35 = arith.constant 0 : index
    %c0_36 = arith.constant 0 : index
    %56 = vector.load %arg11[%c0_34, %c0_35, %c0_36] : memref<19x24x128xf32, #tpu.memory_space<vmem>>, vector<1x1x128xf32>
    tpu.vector_store %arg11[%c0_34, %c0_35, %c0_36], %55 {strides = array<i32>} : memref<19x24x128xf32, #tpu.memory_space<vmem>>, vector<1x1x128xf32>,
    %57 = vector.extract_strided_slice %52 {offsets = [0, 14, 0], sizes = [1, 1, 128], strides = [1, 1, 1]} : vector<1x24x128xf32> to vector<1x1x128xf32>
    %c0_37 = arith.constant 0 : index
    %c17_38 = arith.constant 17 : index
    %c0_39 = arith.constant 0 : index
    %58 = vector.load %arg11[%c0_37, %c17_38, %c0_39] : memref<19x24x128xf32, #tpu.memory_space<vmem>>, vector<1x1x128xf32>
    tpu.vector_store %arg11[%c0_37, %c17_38, %c0_39], %57 {strides = array<i32>} : memref<19x24x128xf32, #tpu.memory_space<vmem>>, vector<1x1x128xf32>,
    %59 = vector.extract_strided_slice %45 {offsets = [14, 0, 0], sizes = [1, 24, 128], strides = [1, 1, 1]} : vector<16x24x128xf32> to vector<1x24x128xf32>
    %60 = vector.extract_strided_slice %59 {offsets = [0, 0, 0], sizes = [1, 16, 128], strides = [1, 1, 1]} : vector<1x24x128xf32> to vector<1x16x128xf32>
    %c17_40 = arith.constant 17 : index
    %c1_41 = arith.constant 1 : index
    %c0_42 = arith.constant 0 : index
    %61 = vector.load %arg11[%c17_40, %c1_41, %c0_42] : memref<19x24x128xf32, #tpu.memory_space<vmem>>, vector<1x16x128xf32>
    tpu.vector_store %arg11[%c17_40, %c1_41, %c0_42], %60 {strides = array<i32>} : memref<19x24x128xf32, #tpu.memory_space<vmem>>, vector<1x16x128xf32>,
    %62 = vector.extract_strided_slice %59 {offsets = [0, 1, 0], sizes = [1, 1, 128], strides = [1, 1, 1]} : vector<1x24x128xf32> to vector<1x1x128xf32>
    %c17_43 = arith.constant 17 : index
    %c0_44 = arith.constant 0 : index
    %c0_45 = arith.constant 0 : index
    %63 = vector.load %arg11[%c17_43, %c0_44, %c0_45] : memref<19x24x128xf32, #tpu.memory_space<vmem>>, vector<1x1x128xf32>
    tpu.vector_store %arg11[%c17_43, %c0_44, %c0_45], %62 {strides = array<i32>} : memref<19x24x128xf32, #tpu.memory_space<vmem>>, vector<1x1x128xf32>,
    %64 = vector.extract_strided_slice %59 {offsets = [0, 14, 0], sizes = [1, 1, 128], strides = [1, 1, 1]} : vector<1x24x128xf32> to vector<1x1x128xf32>
    %c17_46 = arith.constant 17 : index
    %c17_47 = arith.constant 17 : index
    %c0_48 = arith.constant 0 : index
    %65 = vector.load %arg11[%c17_46, %c17_47, %c0_48] : memref<19x24x128xf32, #tpu.memory_space<vmem>>, vector<1x1x128xf32>
    tpu.vector_store %arg11[%c17_46, %c17_47, %c0_48], %64 {strides = array<i32>} : memref<19x24x128xf32, #tpu.memory_space<vmem>>, vector<1x1x128xf32>,
    %c0_49 = arith.constant 0 : index
    %c0_50 = arith.constant 0 : index
    %c0_51 = arith.constant 0 : index
    %66 = vector.load %arg11[%c0_49, %c0_50, %c0_51] : memref<19x24x128xf32, #tpu.memory_space<vmem>>, vector<19x24x128xf32>
    %67 = vector.shape_cast %66 : vector<19x24x128xf32> to vector<456x128xf32>
    %68 = vector.extract_strided_slice %67 {offsets = [0, 0], sizes = [432, 128], strides = [1, 1]} : vector<456x128xf32> to vector<432x128xf32>
    %69 = arith.truncf %68 : vector<432x128xf32> to vector<432x128xbf16>
    %70 = vector.extract_strided_slice %67 {offsets = [1, 0], sizes = [432, 128], strides = [1, 1]} : vector<456x128xf32> to vector<432x128xf32>
    %71 = arith.truncf %70 : vector<432x128xf32> to vector<432x128xbf16>
    %72 = vector.extract_strided_slice %67 {offsets = [2, 0], sizes = [432, 128], strides = [1, 1]} : vector<456x128xf32> to vector<432x128xf32>
    %73 = arith.truncf %72 : vector<432x128xf32> to vector<432x128xbf16>
    %74 = tpu.concatenate %69, %71, %73 in 1 : vector<432x128xbf16>, vector<432x128xbf16>, vector<432x128xbf16> -> vector<432x384xbf16>
    %75 = vector.extract_strided_slice %74 {offsets = [0, 0], sizes = [384, 384], strides = [1, 1]} : vector<432x384xbf16> to vector<384x384xbf16>
    %c0_52 = arith.constant 0 : index
    %c0_53 = arith.constant 0 : index
    %c0_54 = arith.constant 0 : index
    %76 = vector.load %arg7[%c0_52, %c0_53, %c0_54] : memref<3x384x128xbf16, #tpu.memory_space<vmem>>, vector<1x384x128xbf16>
    %77 = vector.shape_cast %76 : vector<1x384x128xbf16> to vector<384x128xbf16>
    %cst_55 = arith.constant dense<0.000000e+00> : vector<384x128xf32>
    %78 = tpu.matmul %75, %77, %cst_55 {dimension_numbers = #tpu.dot_dimension_numbers<[1], [0], [0], [1], [0, 0, 1, 1], [], []>} : vector<384x384xbf16>, vector<384x128xbf16>, vector<384x128xf32> -> vector<384x128xf32>
    %79 = vector.extract_strided_slice %74 {offsets = [24, 0], sizes = [384, 384], strides = [1, 1]} : vector<432x384xbf16> to vector<384x384xbf16>
    %c1_56 = arith.constant 1 : index
    %c0_57 = arith.constant 0 : index
    %c0_58 = arith.constant 0 : index
    %80 = vector.load %arg7[%c1_56, %c0_57, %c0_58] : memref<3x384x128xbf16, #tpu.memory_space<vmem>>, vector<1x384x128xbf16>
    %81 = vector.shape_cast %80 : vector<1x384x128xbf16> to vector<384x128xbf16>
    %cst_59 = arith.constant dense<0.000000e+00> : vector<384x128xf32>
    %82 = tpu.matmul %79, %81, %cst_59 {dimension_numbers = #tpu.dot_dimension_numbers<[1], [0], [0], [1], [0, 0, 1, 1], [], []>} : vector<384x384xbf16>, vector<384x128xbf16>, vector<384x128xf32> -> vector<384x128xf32>
    %83 = arith.addf %78, %82 : vector<384x128xf32>
    %84 = vector.extract_strided_slice %74 {offsets = [48, 0], sizes = [384, 384], strides = [1, 1]} : vector<432x384xbf16> to vector<384x384xbf16>
    %c2_60 = arith.constant 2 : index
    %c0_61 = arith.constant 0 : index
    %c0_62 = arith.constant 0 : index
    %85 = vector.load %arg7[%c2_60, %c0_61, %c0_62] : memref<3x384x128xbf16, #tpu.memory_space<vmem>>, vector<1x384x128xbf16>
    %86 = vector.shape_cast %85 : vector<1x384x128xbf16> to vector<384x128xbf16>
    %cst_63 = arith.constant dense<0.000000e+00> : vector<384x128xf32>
    %87 = tpu.matmul %84, %86, %cst_63 {dimension_numbers = #tpu.dot_dimension_numbers<[1], [0], [0], [1], [0, 0, 1, 1], [], []>} : vector<384x384xbf16>, vector<384x128xbf16>, vector<384x128xf32> -> vector<384x128xf32>
    %88 = arith.addf %83, %87 : vector<384x128xf32>
    %89 = vector.extract_strided_slice %1 {offsets = [25, 0], sizes = [384, 128], strides = [1, 1]} : vector<456x128xf32> to vector<384x128xf32>
    %c0_64 = arith.constant 0 : index
    %c0_65 = arith.constant 0 : index
    %90 = vector.load %arg8[%c0_64, %c0_65] : memref<1x128xf32, #tpu.memory_space<vmem>>, vector<1x128xf32>
    %91 = vector.broadcast %90 : vector<1x128xf32> to vector<384x128xf32>
    %92 = arith.mulf %88, %91 : vector<384x128xf32>
    %93 = arith.addf %89, %92 : vector<384x128xf32>
    %c0_66 = arith.constant 0 : index
    %c0_67 = arith.constant 0 : index
    %94 = vector.load %arg9[%c0_66, %c0_67] : memref<1x128xf32, #tpu.memory_space<vmem>>, vector<1x128xf32>
    %95 = vector.broadcast %94 : vector<1x128xf32> to vector<384x128xf32>
    %96 = arith.addf %93, %95 : vector<384x128xf32>
    %c0_68 = arith.constant 0 : index
    %c0_69 = arith.constant 0 : index
    %c0_70 = arith.constant 0 : index
    %97 = vector.load %arg10[%c0_68, %c0_69, %c0_70] : memref<1x384x128xf32, #tpu.memory_space<vmem>>, vector<1x384x128xf32>
    %98 = vector.shape_cast %97 : vector<1x384x128xf32> to vector<384x128xf32>
    %99 = vector.shape_cast %96 : vector<384x128xf32> to vector<1x384x128xf32>
    tpu.vector_store %arg10[%c0_68, %c0_69, %c0_70], %99 {strides = array<i32>} : memref<1x384x128xf32, #tpu.memory_space<vmem>>, vector<1x384x128xf32>,
    return
  }
  func.func @transform_0(%arg0: i32) -> (i32, i32, i32) {
    %c0_i32 = arith.constant 0 : i32
    %c0_i32_0 = arith.constant 0 : i32
    %c0_i32_1 = arith.constant 0 : i32
    return %arg0, %c0_i32, %c0_i32_0 : i32, i32, i32
  }
  func.func @transform_1(%arg0: i32) -> (i32, i32) {
    %c0_i32 = arith.constant 0 : i32
    %c0_i32_0 = arith.constant 0 : i32
    %c0_i32_1 = arith.constant 0 : i32
    return %c0_i32, %c0_i32_0 : i32, i32
  }
  func.func @transform_2(%arg0: i32) -> (i32, i32) {
    %c0_i32 = arith.constant 0 : i32
    %c0_i32_0 = arith.constant 0 : i32
    %c0_i32_1 = arith.constant 0 : i32
    return %c0_i32, %c0_i32_0 : i32, i32
  }
  func.func @transform_3(%arg0: i32) -> (i32, i32, i32) {
    %c0_i32 = arith.constant 0 : i32
    %c0_i32_0 = arith.constant 0 : i32
    %c0_i32_1 = arith.constant 0 : i32
    %c0_i32_2 = arith.constant 0 : i32
    return %c0_i32, %c0_i32_0, %c0_i32_1 : i32, i32, i32
  }
  func.func @transform_4(%arg0: i32) -> (i32, i32) {
    %c0_i32 = arith.constant 0 : i32
    %c0_i32_0 = arith.constant 0 : i32
    %c0_i32_1 = arith.constant 0 : i32
    return %c0_i32, %c0_i32_0 : i32, i32
  }
  func.func @transform_5(%arg0: i32) -> (i32, i32) {
    %c0_i32 = arith.constant 0 : i32
    %c0_i32_0 = arith.constant 0 : i32
    %c0_i32_1 = arith.constant 0 : i32
    return %c0_i32, %c0_i32_0 : i32, i32
  }
  func.func @transform_6(%arg0: i32) -> (i32, i32, i32) {
    %c0_i32 = arith.constant 0 : i32
    %c0_i32_0 = arith.constant 0 : i32
    %c0_i32_1 = arith.constant 0 : i32
    %c0_i32_2 = arith.constant 0 : i32
    return %c0_i32, %c0_i32_0, %c0_i32_1 : i32, i32, i32
  }
  func.func @transform_7(%arg0: i32) -> (i32, i32) {
    %c0_i32 = arith.constant 0 : i32
    %c0_i32_0 = arith.constant 0 : i32
    %c0_i32_1 = arith.constant 0 : i32
    return %c0_i32, %c0_i32_0 : i32, i32
  }
  func.func @transform_8(%arg0: i32) -> (i32, i32) {
    %c0_i32 = arith.constant 0 : i32
    %c0_i32_0 = arith.constant 0 : i32
    %c0_i32_1 = arith.constant 0 : i32
    return %c0_i32, %c0_i32_0 : i32, i32
  }
  func.func @transform_9(%arg0: i32) -> (i32, i32, i32) {
    %c0_i32 = arith.constant 0 : i32
    %c0_i32_0 = arith.constant 0 : i32
    %c0_i32_1 = arith.constant 0 : i32
    return %arg0, %c0_i32, %c0_i32_0 : i32, i32, i32
  }
}

</mosaic_0001>

<bundles_post_ra>
// kernel: resblock_forward.1
= control target key start
LH: loop header
LB: loop body
LE: loop exit
PB: predicated region body
PF: predicated region fallthrough
CT: control target
= control target key end

     0   :  { %s7685_s30 = smov 0   ;;  %s11025_s0 = inlined_call_operand.vmem [shape: f32[2,456,128], index: 0, kind: input, shape index: {}]   ;;  %s11026_s1 = inlined_call_operand.vmem [shape: f32[1,128], index: 1, kind: input, shape index: {}]   ;;  %s11027_s2 = inlined_call_operand.vmem [shape: f32[1,128], index: 2, kind: input, shape index: {}]   ;;  %s11028_s3 = inlined_call_operand.vmem [shape: bf16[3,384,128], index: 3, kind: input, shape index: {}]   ;;  %s11029_s4 = inlined_call_operand.vmem [shape: f32[1,128], index: 4, kind: input, shape index: {}]   ;;  %s11030_s5 = inlined_call_operand.vmem [shape: f32[1,128], index: 5, kind: input, shape index: {}]   ;;  %s11031_s6 = inlined_call_operand.vmem [shape: bf16[3,384,128], index: 6, kind: input, shape index: {}]   ;;  %s11032_s7 = inlined_call_operand.vmem [shape: f32[1,128], index: 7, kind: input, shape index: {}]   ;;  %s11033_s8 = inlined_call_operand.vmem [shape: f32[1,128], index: 8, kind: input, shape index: {}]   ;;  %s11034_s9 = inlined_call_operand.vmem [shape: f32[2,384,128], index: 9, kind: output, shape index: {}]  }
   0x1 LB: > { %s6489_s10 = sadd.s32 4294967295, %s7632_s30   ;;  %p6493_p0 = scmp.ge.s32.totalorder %s7632_s30, 1  ;;  %s7632_s30 = sphi %s7685_s30, %s19_s30  }
   0x2   : > { %p287_p1 = scmp.lt.s32.totalorder %s7632_s30, 3 }
   0x4   : > { %p288_p2 = pnand %p6493_p0, %p287_p1 }
   0x6   : > { %291 = sbr.rel (%p288_p2) target bundleno = 1336 (0x538), region = 56 }
   0xd   : > { %v7427_v0 = vld [vmem:[%s11028_s3 + $0xc0] sm:$0xff]   ;;  %v11041_v1 = vmov 0   ;;  %p323_p3 = scmp.lt.s32.totalorder %s6489_s10, 1  ;;  %v7429_v3 = vld [vmem:[%s11028_s3 + $0xc8] sm:$0xff]   ;;  %v7432_v5 = vld [vmem:[%s11028_s3 + $0x150] sm:$0xff]   ;;  %vm982_vm0 = vcmask 1046528  }
   0xe   : > { %1526 = vmatprep.subr.bf16.mxu0 %v11041_v1  ;;  %v7428_v2 = vld [vmem:[%s11028_s3 + $0x140] sm:$0xff]   ;;  %v7430_v4 = vld [vmem:[%s11028_s3 + $0x148] sm:$0xff]   ;;  %v7431_v6 = vld [vmem:[%s11028_s3 + $0xd0] sm:$0xff]   ;;  %vm1162_vm7 = vcmask 1043456  }
   0xf   : > { %1527 = vmatpush1.bf16.msra.mxu0 %v7427_v0  ;;  %7032 = vmatprep.subr.bf16.mxu1 %v7428_v2  ;;  %s11585_s10 = smov (!%p323_p3, %s6489_s10), 1  ;;  %v7434_v7 = vld [vmem:[%s11028_s3 + $0x158] sm:$0xff]   ;;  %v7436_v9 = vld [vmem:[%s11028_s3 + $0x160] sm:$0xff]   ;;  %v7438_v11 = vld [vmem:[%s11028_s3 + $0x168] sm:$0xff]  }
  0x10   : > { %1528 = vmatprep.subr.bf16.mxu0 %v11041_v1  ;;  %7033 = vmatpush3.bf16.msra.mxu1 %v7428_v2  ;;  %s7416_s25 = smul.u32 456, %s11585_s10  ;;  %v7433_v8 = vld [vmem:[%s11028_s3 + $0xd8] sm:$0xff]   ;;  %v7435_v10 = vld [vmem:[%s11028_s3 + $0xe0] sm:$0xff]   ;;  %v7437_v12 = vld [vmem:[%s11028_s3 + $0xe8] sm:$0xff]  }
  0x11   : > { %7034 = vmatprep.subr.bf16.mxu1 %v7430_v4  ;;  %v7751_v19 = vld [vmem:[%s11026_s1] ss:$0 sm:$0xff]  ;;  %v7440_v30 = vld [vmem:[%s11028_s3 + $0x170] sm:$0xff]   ;;  %v7442_v40 = vld [vmem:[%s11028_s3 + $0x178] sm:$0xff]   ;;  %s7417_s18 = smul.u32 384, %s11585_s10 }
  0x12   : > { %s7730_s13 = scalar_lea.vmem %s11025_s0, %s7416_s25  ;;  %v7756_v20 = vld [vmem:[%s11027_s2] ss:$0 sm:$0xff]  ;;  %v7439_v35 = vld [vmem:[%s11028_s3 + $0xf0] sm:$0xff]   ;;  %v7441_v41 = vld [vmem:[%s11028_s3 + $0xf8] sm:$0xff]  }
  0x13   : > { %1529 = vmatpush1.bf16.msra.mxu0 %v7429_v3  ;;  %v336_v13 = vld [vmem:[%s7730_s13 + $0x10] sm:$0xff]  ;;  %v337_v14 = vld [vmem:[%s7730_s13 + $0x18] sm:$0xff]  ;;  %v338_v15 = vld [vmem:[%s7730_s13 + $0x20] sm:$0xff]  ;;  %s10681_s22 = scalar_lea.vmem %s11034_s9, %s7417_s18 }
  0x14   : > { %1530 = vmatprep.subr.bf16.mxu0 %v11041_v1  ;;  %7035 = vmatpush3.bf16.msra.mxu1 %v7430_v4  ;;  %v339_v16 = vld [vmem:[%s7730_s13 + $0x28] sm:$0xff]  ;;  %v340_v17 = vld [vmem:[%s7730_s13 + $0x30] sm:$0xff]  ;;  %v341_v18 = vld [vmem:[%s7730_s13 + $0x38] sm:$0xff]  ;;  %v398_v21 = vmul.f32 %v7751_v19, %v336_v13  ;;  %v399_v22 = vmul.f32 %v7751_v19, %v337_v14  ;;  %v400_v23 = vmul.f32 %v7751_v19, %v338_v15 }
  0x15   : > { %7036 = vmatprep.subr.bf16.mxu1 %v7432_v5  ;;  %v401_v24 = vmul.f32 %v7751_v19, %v339_v16  ;;  %v342_v25 = vld [vmem:[%s7730_s13 + $0x40] sm:$0xff]  ;;  %v402_v26 = vmul.f32 %v7751_v19, %v340_v17  ;;  %v403_v27 = vmul.f32 %v7751_v19, %v341_v18  ;;  %v343_v28 = vld [vmem:[%s7730_s13 + $0x48] sm:$0xff]  ;;  %v344_v51 = vld [vmem:[%s7730_s13 + $0x50] sm:$0xff] }
  0x16   : > { %v404_v29 = vmul.f32 %v7751_v19, %v342_v25  ;;  %v460_v31 = vadd.f32 %v7756_v20, %v398_v21  ;;  %v461_v32 = vadd.f32 %v7756_v20, %v399_v22  ;;  %v462_v33 = vadd.f32 %v7756_v20, %v400_v23  ;;  %v345_v56 = vld [vmem:[%s7730_s13 + $0x58] sm:$0xff]  ;;  %v346_v57 = vld [vmem:[%s7730_s13 + $0x60] sm:$0xff]  ;;  %v347_v61 = vld [vmem:[%s7730_s13 + $0x68] sm:$0xff] }
  0x17   : > { %1531 = vmatpush1.bf16.msra.mxu0 %v7431_v6  ;;  %v463_v34 = vadd.f32 %v7756_v20, %v401_v24  ;;  %v464_v36 = vadd.f32 %v7756_v20, %v402_v26  ;;  %v465_v37 = vadd.f32 %v7756_v20, %v403_v27  ;;  %v405_v38 = vmul.f32 %v7751_v19, %v343_v28  ;;  %v7443_v4 = vld [vmem:[%s11028_s3 + $0x100] sm:$0xff]   ;;  %v7444_v14 = vld [vmem:[%s11028_s3 + $0x108] sm:$0xff]   ;;  %v348_v22 = vld [vmem:[%s7730_s13 + $0x70] sm:$0xff] }
  0x18   : > { %1532 = vmatprep.subr.bf16.mxu0 %v11041_v1  ;;  %7037 = vmatpush3.bf16.msra.mxu1 %v7432_v5  ;;  %v466_v39 = vadd.f32 %v7756_v20, %v404_v29  ;;  %vm515_vm1 = vcmp.ge.f32.partialorder %v460_v31, 0.0  ;;  %vm516_vm2 = vcmp.ge.f32.partialorder %v461_v32, 0.0  ;;  %vm517_vm3 = vcmp.ge.f32.partialorder %v462_v33, 0.0  ;;  %v349_v23 = vld [vmem:[%s7730_s13 + $0x78] sm:$0xff]  ;;  %v350_v27 = vld [vmem:[%s7730_s13 + $0x80] sm:$0xff] }
  0x19   : > { %7038 = vmatprep.subr.bf16.mxu1 %v7434_v7  ;;  %vm518_vm4 = vcmp.ge.f32.partialorder %v463_v34, 0.0  ;;  %vm519_vm5 = vcmp.ge.f32.partialorder %v464_v36, 0.0  ;;  %vm520_vm6 = vcmp.ge.f32.partialorder %v465_v37, 0.0  ;;  %v570_v42 = vmul.f32 0.1, %v460_v31 }
  0x1a   : > { %v571_v43 = vmul.f32 0.1, %v461_v32  ;;  %v572_v44 = vmul.f32 0.1, %v462_v33  ;;  %v573_v45 = vmul.f32 0.1, %v463_v34  ;;  %v467_v47 = vadd.f32 %v7756_v20, %v405_v38 }
  0x1b   : > { %1533 = vmatpush1.bf16.msra.mxu0 %v7433_v8  ;;  %v574_v46 = vmul.f32 0.1, %v464_v36  ;;  %v575_v48 = vmul.f32 0.1, %v465_v37  ;;  %v625_v49 = vsel %vm515_vm1, %v460_v31, %v570_v42  ;;  %vm521_vm8 = vcmp.ge.f32.partialorder %v466_v39, 0.0  ;;  %v351_v31 = vld [vmem:[%s7730_s13 + $0x88] sm:$0xff] }
  0x1c   : > { %1534 = vmatprep.subr.bf16.mxu0 %v11041_v1  ;;  %7039 = vmatpush3.bf16.msra.mxu1 %v7434_v7  ;;  %v626_v50 = vsel %vm516_vm2, %v461_v32, %v571_v43  ;;  %v627_v52 = vsel %vm517_vm3, %v462_v33, %v572_v44  ;;  %v628_v53 = vsel %vm518_vm4, %v463_v34, %v573_v45  ;;  %vm522_vm9 = vcmp.ge.f32.partialorder %v467_v47, 0.0  ;;  %v7445_v38 = vld [vmem:[%s11028_s3 + $0x110] sm:$0xff]  }
  0x1d   : > { %7040 = vmatprep.subr.bf16.mxu1 %v7436_v9  ;;  %v629_v54 = vsel %vm519_vm5, %v464_v36, %v574_v46  ;;  %v7797_v55 = vpack.c.bf16 %v626_v50, %v625_v49  ;;  %v630_v58 = vsel %vm520_vm6, %v465_v37, %v575_v48  ;;  %v7802_v59 = vpack.c.bf16 %v628_v53, %v627_v52  ;;  %v352_v45 = vld [vmem:[%s7730_s13 + $0x90] sm:$0xff] }
  0x1e   : > { %v576_v60 = vmul.f32 0.1, %v466_v39  ;;  %v7805_v62 = vpack.c.bf16 %v630_v58, %v629_v54  ;;  %v577_v0 = vmul.f32 0.1, %v467_v47  ;;  %v406_v2 = vmul.f32 %v7751_v19, %v344_v51  ;;  %v7446_v51 = vld [vmem:[%s11028_s3 + $0x118] sm:$0xff]  }
  0x1f   : > { %1535 = vmatpush1.bf16.msra.mxu0 %v7435_v10  ;;  %v11035_v63 = vrot.slane %v7797_v55, 1  ;;  %v986_v3 = vrot.slane %v7802_v59, 1  ;;  %v407_v6 = vmul.f32 %v7751_v19, %v345_v56  ;;  %v408_v7 = vmul.f32 %v7751_v19, %v346_v57 }
  0x20   : > { %1536 = vmatprep.subr.bf16.mxu0 %v11041_v1  ;;  %7041 = vmatpush3.bf16.msra.mxu1 %v7436_v9  ;;  %v631_v5 = vsel %vm521_vm8, %v466_v39, %v576_v60  ;;  %v988_v8 = vrot.slane %v7805_v62, 1  ;;  %v632_v9 = vsel %vm522_vm9, %v467_v47, %v577_v0  ;;  %v468_v10 = vadd.f32 %v7756_v20, %v406_v2  ;;  %v7452_v60 = vld [vmem:[%s11028_s3 + $0x8] sm:$0xff]  }
  0x21   : > { %7042 = vmatprep.subr.bf16.mxu1 %v7438_v11  ;;  %v7826_v13 = vpack.c.bf16 %v632_v9, %v631_v5  ;;  %v469_v15 = vadd.f32 %v7756_v20, %v407_v6  ;;  %v470_v16 = vadd.f32 %v7756_v20, %v408_v7  ;;  %v411_v42 = vmul.f32 %v7751_v19, %v349_v23  ;;  %v354_v6 = vld [vmem:[%s7730_s13 + $0xa0] sm:$0xff]  ;;  %v355_v7 = vld [vmem:[%s7730_s13 + $0xa8] sm:$0xff] }
  0x22   : > { %v7834_v17 = vsel %vm982_vm0, %v986_v3, %v988_v8  ;;  %vm523_vm10 = vcmp.ge.f32.partialorder %v468_v10, 0.0  ;;  %v578_v21 = vmul.f32 0.1, %v468_v10  ;;  %v412_v44 = vmul.f32 %v7751_v19, %v350_v27 }
  0x23   : > { %1537 = vmatpush1.bf16.msra.mxu0 %v7437_v12  ;;  %v7824_v12 = vsel %vm982_vm0, %v11035_v63, %v986_v3  ;;  %11221 = vst [vmem:[#allocation4_spill] sm:$0xff] %v7834_v17  ;;  %v1170_v24 = vrot.slane %v7834_v17, 4  ;;  %v990_v25 = vrot.slane %v7826_v13, 1  ;;  %vm524_vm11 = vcmp.ge.f32.partialorder %v469_v15, 0.0  ;;  %v353_v3 = vld [vmem:[%s7730_s13 + $0x98] sm:$0xff]  ;;  %v371_v63 = vld [vmem:[%s7730_s13 + $0x128] sm:$0xff] }
  0x24   : > { %1538 = vmatprep.subr.bf16.mxu0 %v11041_v1  ;;  %7043 = vmatpush3.bf16.msra.mxu1 %v7438_v11  ;;  %v409_v11 = vmul.f32 %v7751_v19, %v347_v61  ;;  %11220 = vst [vmem:[#allocation3_spill] sm:$0xff] %v7824_v12  ;;  %v1169_v18 = vrot.slane %v7824_v12, 4  ;;  %v579_v26 = vmul.f32 0.1, %v469_v15  ;;  %v633_v28 = vsel %vm523_vm10, %v468_v10, %v578_v21  ;;  %v7454_v21 = vld [vmem:[%s11028_s3 + $0x10] sm:$0xff]  }
  0x25   : > { %7044 = vmatprep.subr.bf16.mxu1 %v7440_v30  ;;  %vm525_vm12 = vcmp.ge.f32.partialorder %v470_v16, 0.0  ;;  %v7848_v33 = vsel %vm982_vm0, %v988_v8, %v990_v25  ;;  %v413_v49 = vmul.f32 %v7751_v19, %v351_v31  ;;  %v473_v52 = vadd.f32 %v7756_v20, %v411_v42 }
  0x26   : > { %v471_v29 = vadd.f32 %v7756_v20, %v409_v11  ;;  %v1171_v32 = vsel %vm1162_vm7, %v1169_v18, %v1170_v24  ;;  %11222 = vst [vmem:[#allocation5_spill] sm:$0xff] %v7848_v33  ;;  %v634_v34 = vsel %vm524_vm11, %v469_v15, %v579_v26  ;;  %v1176_v36 = vrot.slane %v7848_v33, 4  ;;  %v335_v33 = vld [vmem:[%s7730_s13 + $0x8] sm:$0xff] }
  0x27   : > { %1539 = vmatpush1.bf16.msra.mxu0 %v7439_v35  ;;  %v410_v35 = vmul.f32 %v7751_v19, %v348_v22  ;;  %7048 = vmatprep.mubr.bf16.mxu1 %v1171_v32  ;;  %v7852_v37 = vpack.c.bf16 %v634_v34, %v633_v28  ;;  %v474_v56 = vadd.f32 %v7756_v20, %v412_v44  ;;  %vm528_vm15 = vcmp.ge.f32.partialorder %v473_v52, 0.0  ;;  %v7447_v22 = vld [vmem:[%s11028_s3 + $0x120] sm:$0xff]  }
  0x28   : > { %1540 = vmatprep.subr.bf16.mxu0 %v11041_v1  ;;  %7045 = vmatpush3.bf16.msra.mxu1 %v7440_v30  ;;  %v580_v30 = vmul.f32 0.1, %v470_v16  ;;  %vm526_vm13 = vcmp.ge.f32.partialorder %v471_v29, 0.0  ;;  %v581_v39 = vmul.f32 0.1, %v471_v29  ;;  %v1177_v46 = vsel %vm1162_vm7, %v1170_v24, %v1176_v36 }
  0x29   : > { %7046 = vmatprep.subr.bf16.mxu1 %v7442_v40  ;;  %v472_v43 = vadd.f32 %v7756_v20, %v410_v35  ;;  %v992_v47 = vrot.slane %v7852_v37, 1  ;;  %v475_v57 = vadd.f32 %v7756_v20, %v413_v49  ;;  %v414_v58 = vmul.f32 %v7751_v19, %v352_v45 }
  0x2a   : > { %v636_v48 = vsel %vm526_vm13, %v471_v29, %v581_v39  ;;  %v583_v2 = vmul.f32 0.1, %v473_v52  ;;  %vm529_vm1 = vcmp.ge.f32.partialorder %v474_v56, 0.0  ;;  %v584_v5 = vmul.f32 0.1, %v474_v56  ;;  %v7455_v39 = vld [vmem:[%s11028_s3 + $0x18] sm:$0xff]  }
  0x2b   : > { %1541 = vmatpush1.bf16.msra.mxu0 %v7441_v41  ;;  %v635_v41 = vsel %vm525_vm12, %v470_v16, %v580_v30  ;;  %vm527_vm14 = vcmp.ge.f32.partialorder %v472_v43, 0.0  ;;  %v582_v53 = vmul.f32 0.1, %v472_v43  ;;  %v7875_v54 = vsel %vm982_vm0, %v990_v25, %v992_v47 }
  0x2c   : > { %1542 = vmatprep.subr.bf16.mxu0 %v11041_v1  ;;  %7047 = vmatpush3.bf16.msra.mxu1 %v7442_v40  ;;  %v7450_v40 = vld [vmem:[%s11028_s3] sm:$0xff]   ;;  %v7868_v50 = vpack.c.bf16 %v636_v48, %v635_v41  ;;  %11223 = vst [vmem:[#allocation6_spill] sm:$0xff] %v7875_v54  ;;  %v1182_v61 = vrot.slane %v7875_v54, 4  ;;  %vm530_vm2 = vcmp.ge.f32.partialorder %v475_v57, 0.0  ;;  %v638_v10 = vsel %vm528_vm15, %v473_v52, %v583_v2  ;;  %v7448_v41 = vld [vmem:[%s11028_s3 + $0x128] sm:$0xff]   ;;  %v7449_v52 = vld [vmem:[%s11028_s3 + $0x130] sm:$0xff]  }
  0x2d   : > { %2088 = vmatprep.subr.bf16.mxu1 %v11041_v1  ;;  %v585_v11 = vmul.f32 0.1, %v475_v57  ;;  %v639_v16 = vsel %vm529_vm1, %v474_v56, %v584_v5  ;;  %v415_v18 = vmul.f32 %v7751_v19, %v353_v3  ;;  %v476_v24 = vadd.f32 %v7756_v20, %v414_v58 }
  0x2e   : > { %v994_v0 = vrot.slane %v7868_v50, 1  ;;  %v1183_v8 = vsel %vm1162_vm7, %v1176_v36, %v1182_v61  ;;  %v416_v25 = vmul.f32 %v7751_v19, %v354_v6  ;;  %v417_v26 = vmul.f32 %v7751_v19, %v355_v7 }
  0x2f   : > { %1543 = vmatpush1.bf16.msra.mxu0 %v7443_v4  ;;  %7049 = vmatmul.mubr.bf16.vlgmr.msra.gmra.mrb[0].mxu1 %v1177_v46  ;;  %v637_v4 = vsel %vm527_vm14, %v472_v43, %v582_v53  ;;  %v640_v23 = vsel %vm530_vm2, %v475_v57, %v585_v11  ;;  %v477_v30 = vadd.f32 %v7756_v20, %v415_v18  ;;  %vm706_vm3 = vsmask.f32 7424 }
  0x30   : > { %1544 = vmatprep.subr.bf16.mxu0 %v11041_v1  ;;  %2089 = vmatpush1.bf16.msra.mxu1 %v7450_v40  ;;  %v7893_v9 = vsel %vm982_vm0, %v992_v47, %v994_v0  ;;  %v7896_v15 = vpack.c.bf16 %v638_v10, %v637_v4  ;;  %v7912_v29 = vpack.c.bf16 %v640_v23, %v639_v16  ;;  %vm531_vm4 = vcmp.ge.f32.partialorder %v476_v24, 0.0  ;;  %v357_v10 = vld [vmem:[%s7730_s13 + $0xb8] sm:$0xff] }
  0x31   : > { %2090 = vmatprep.subr.bf16.mxu1 %v11041_v1  ;;  %11224 = vst [vmem:[#allocation7_spill] sm:$0xff] %v7893_v9  ;;  %7052 = vmatprep.mubr.bf16.mxu1 %v1183_v8  ;;  %v586_v31 = vmul.f32 0.1, %v476_v24  ;;  %v478_v32 = vadd.f32 %v7756_v20, %v416_v25  ;;  %v479_v34 = vadd.f32 %v7756_v20, %v417_v26  ;;  %vm532_vm5 = vcmp.ge.f32.partialorder %v477_v30, 0.0  ;;  %v356_v8 = vld [vmem:[%s7730_s13 + $0xb0] sm:$0xff]  ;;  %v7451_v16 = vld [vmem:[%s11028_s3 + $0x138] sm:$0xff]  }
  0x32   : > { %v996_v28 = vrot.slane %v7896_v15, 1  ;;  %v998_v36 = vrot.slane %v7912_v29, 1  ;;  %v719_v57 = vshrl.u32 %v7797_v55, 16  ;;  %v723_v58 = vshll.u32 %v7802_v59, 16 }
  0x33   : > { %1545 = vmatpush1.bf16.msra.mxu0 %v7444_v14  ;;  %v1188_v14 = vrot.slane %v7893_v9, 4  ;;  %v641_v42 = vsel %vm531_vm4, %v476_v24, %v586_v31  ;;  %vm533_vm6 = vcmp.ge.f32.partialorder %v478_v32, 0.0  ;;  %vm534_vm8 = vcmp.ge.f32.partialorder %v479_v34, 0.0 }
  0x34   : > { %1546 = vmatprep.subr.bf16.mxu0 %v11041_v1  ;;  %2091 = vmatpush1.bf16.msra.mxu1 %v7452_v60  ;;  %v7919_v35 = vsel %vm982_vm0, %v994_v0, %v996_v28  ;;  %v7931_v43 = vsel %vm982_vm0, %v996_v28, %v998_v36  ;;  %v588_v45 = vmul.f32 0.1, %v478_v32  ;;  %v589_v46 = vmul.f32 0.1, %v479_v34  ;;  %v7456_v60 = vld [vmem:[%s11028_s3 + $0x20] sm:$0xff]  }
  0x35   : > { %v1189_v27 = vsel %vm1162_vm7, %v1182_v61, %v1188_v14  ;;  %2092 = vmatprep.subr.bf16.mxu1 %v11041_v1  ;;  %11225 = vst [vmem:[#allocation8_spill] sm:$0xff] %v7919_v35  ;;  %v1194_v40 = vrot.slane %v7919_v35, 4  ;;  %11226 = vst [vmem:[#allocation9_spill] sm:$0xff] %v7931_v43  ;;  %v1200_v48 = vrot.slane %v7931_v43, 4  ;;  %v725_v4 = vrot.slane %v723_v58, 1  ;;  %v383_v35 = vld [vmem:[%s7730_s13 + $0x188] sm:$0xff] }
  0x36   : > { %v643_v53 = vsel %vm533_vm6, %v478_v32, %v588_v45  ;;  %v644_v56 = vsel %vm534_vm8, %v479_v34, %v589_v46  ;;  %v727_v5 = vshrl.u32 %v7802_v59, 16  ;;  %v731_v6 = vshll.u32 %v7805_v62, 16  ;;  %v359_v34 = vld [vmem:[%s7730_s13 + $0xc8] sm:$0xff] }
  0x37   : > { %1547 = vmatpush1.bf16.msra.mxu0 %v7445_v38  ;;  %7053 = vmatmul.mubr.bf16.gmra.mrb[4].mxu1 %v1189_v27  ;;  %v587_v38 = vmul.f32 0.1, %v477_v30  ;;  %v1195_v47 = vsel %vm1162_vm7, %v1188_v14, %v1194_v40  ;;  %v1201_v61 = vsel %vm1162_vm7, %v1194_v40, %v1200_v48  ;;  %v7949_v2 = vpack.c.bf16 %v644_v56, %v643_v53  ;;  %v7457_v27 = vld [vmem:[%s11028_s3 + $0x28] sm:$0xff]  }
  0x38   : > { %1548 = vmatprep.subr.bf16.mxu0 %v11041_v1  ;;  %2093 = vmatpush1.bf16.msra.mxu1 %v7454_v21  ;;  %v735_v7 = vshrl.u32 %v7805_v62, 16  ;;  %v1163_v21 = vrot.slane %v7797_v55, 4  ;;  %v729_v24 = vor.u32 %v727_v5, %v725_v4  ;;  %v733_v25 = vrot.slane %v731_v6, 1  ;;  %v7458_v5 = vld [vmem:[%s11028_s3 + $0x88] sm:$0xff]  }
  0x39   : > { %2094 = vmatprep.subr.bf16.mxu1 %v11041_v1  ;;  %v642_v44 = vsel %vm532_vm5, %v477_v30, %v587_v38  ;;  %7056 = vmatprep.mubr.bf16.mxu1 %v1195_v47  ;;  %v1002_v14 = vrot.slane %v7949_v2, 1  ;;  %v1164_v26 = vrot.slane %v7802_v59, 4  ;;  %v418_v31 = vmul.f32 %v7751_v19, %v356_v8  ;;  %v360_v47 = vld [vmem:[%s7730_s13 + $0xd0] sm:$0xff] }
  0x3a   : > { %v7936_v49 = vpack.c.bf16 %v642_v44, %v641_v42  ;;  %v419_v32 = vmul.f32 %v7751_v19, %v357_v10  ;;  %v737_v40 = vor.u32 %v735_v7, %v733_v25  ;;  %v421_v56 = vmul.f32 %v7751_v19, %v359_v34  ;;  %v361_v10 = vld [vmem:[%s7730_s13 + $0xd8] sm:$0xff] }
  0x3b   : > { %1549 = vmatpush1.bf16.msra.mxu0 %v7446_v51  ;;  %v715_v51 = vshll.u32 %v7797_v55, 16  ;;  %v1165_v45 = vsel %vm1162_vm7, %v1163_v21, %v1164_v26  ;;  %v480_v46 = vadd.f32 %v7756_v20, %v418_v31  ;;  %v1172_v8 = vrot.slane %v7805_v62, 4 }
  0x3c   : > { %1550 = vmatprep.subr.bf16.mxu0 %v11041_v1  ;;  %11227 = vst [vmem:[#allocation10_spill] sm:$0xff] %v7936_v49  ;;  %2095 = vmatpush1.bf16.msra.mxu1 %v7455_v39  ;;  %v1000_v0 = vrot.slane %v7936_v49, 1  ;;  %v7990_v39 = vsel %vm706_vm3, %v729_v24, %v733_v25  ;;  %v7460_v24 = vld [vmem:[%s11028_s3 + $0x38] sm:$0xff]  }
  0x3d   : > { %v7951_v3 = vrot.slane %v715_v51, 1  ;;  %2096 = vmatprep.subr.bf16.mxu1 %v11041_v1  ;;  %v1167_v44 = vrot.slane %v7990_v39, 4  ;;  %vm535_vm9 = vcmp.ge.f32.partialorder %v480_v46, 0.0  ;;  %v590_v58 = vmul.f32 0.1, %v480_v46 }
  0x3e   : > { %v7961_v11 = vsel %vm982_vm0, %v998_v36, %v1000_v0  ;;  %v7978_v28 = vsel %vm982_vm0, %v1000_v0, %v1002_v14 }
  0x3f   : > { %1551 = vmatpush1.bf16.msra.mxu0 %v7447_v22  ;;  %7057 = vmatmul.mubr.bf16.gmra.mrb[8].mxu1 %v1201_v61  ;;  %11228 = vst [vmem:[#allocation11_spill] sm:$0xff] %v7961_v11  ;;  %v721_v18 = vor.u32 %v719_v57, %v7951_v3  ;;  %v358_v22 = vld [vmem:[%s7730_s13 + $0xc0] sm:$0xff]  ;;  %v1206_v23 = vrot.slane %v7961_v11, 4  ;;  %11229 = vst [vmem:[#allocation12_spill] sm:$0xff] %v7978_v28  ;;  %v1212_v38 = vrot.slane %v7978_v28, 4 }
  0x40   : > { %1552 = vmatprep.subr.bf16.mxu0 %v11041_v1  ;;  %2097 = vmatpush1.bf16.msra.mxu1 %v7456_v60  ;;  %v420_v53 = vmul.f32 %v7751_v19, %v358_v22  ;;  %v739_v60 = vshll.u32 %v7826_v13, 16  ;;  %v645_v6 = vsel %vm535_vm9, %v480_v46, %v590_v58 }
  0x41   : > { %v7981_v30 = vsel %vm706_vm3, %v721_v18, %v725_v4  ;;  %v1207_v36 = vsel %vm1162_vm7, %v1200_v48, %v1206_v23  ;;  %2098 = vmatprep.subr.bf16.mxu1 %v11041_v1  ;;  %v7459_v48 = vld [vmem:[%s11028_s3 + $0x30] sm:$0xff]   ;;  %v1213_v51 = vsel %vm1162_vm7, %v1206_v23, %v1212_v38  ;;  %v483_v4 = vadd.f32 %v7756_v20, %v421_v56  ;;  %v362_v18 = vld [vmem:[%s7730_s13 + $0xe0] sm:$0xff]  ;;  %v363_v23 = vld [vmem:[%s7730_s13 + $0xe8] sm:$0xff] }
  0x42   : > { %7060 = vmatprep.mubr.bf16.mxu1 %v1207_v36  ;;  %v1166_v42 = vrot.slane %v7981_v30, 4  ;;  %v482_v0 = vadd.f32 %v7756_v20, %v420_v53  ;;  %v8018_v7 = vrot.slane %v739_v60, 1  ;;  %v7461_v53 = vld [vmem:[%s11028_s3 + $0x40] sm:$0xff]  }
  0x43   : > { %1553 = vmatpush1.bf16.msra.mxu0 %v7448_v41  ;;  %v7453_v41 = vld [vmem:[%s11028_s3 + $0x80] sm:$0xff]   ;;  %vm538_vm12 = vcmp.ge.f32.partialorder %v483_v4, 0.0 }
  0x44   : > { %1554 = vmatprep.subr.bf16.mxu0 %v11041_v1  ;;  %2099 = vmatpush1.bf16.msra.mxu1 %v7457_v27  ;;  %v1168_v57 = vsel %vm1162_vm7, %v1166_v42, %v1167_v44  ;;  %vm537_vm11 = vcmp.ge.f32.partialorder %v482_v0, 0.0  ;;  %v592_v22 = vmul.f32 0.1, %v482_v0  ;;  %v593_v27 = vmul.f32 0.1, %v483_v4 }
  0x45   : > { %2100 = vmatprep.subr.bf16.mxu1 %v11041_v1  ;;  %1558 = vmatprep.mubr.bf16.mxu0 %v1168_v57  ;;  %v8032_v31 = vsel %vm706_vm3, %v737_v40, %v8018_v7  ;;  %v423_v42 = vmul.f32 %v7751_v19, %v361_v10  ;;  %v365_v10 = vld [vmem:[%s7730_s13 + $0xf8] sm:$0xff] }
  0x46   : > { %v647_v34 = vsel %vm537_vm11, %v482_v0, %v592_v22  ;;  %v1174_v36 = vrot.slane %v8032_v31, 4  ;;  %v648_v46 = vsel %vm538_vm12, %v483_v4, %v593_v27  ;;  %v364_v4 = vld [vmem:[%s7730_s13 + $0xf0] sm:$0xff]  ;;  %v7462_v22 = vld [vmem:[%s11028_s3 + $0x48] sm:$0xff]  }
  0x47   : > { %1555 = vmatpush1.bf16.msra.mxu0 %v7449_v52  ;;  %v481_v52 = vadd.f32 %v7756_v20, %v419_v32  ;;  %7061 = vmatmul.mubr.bf16.gmra.mrb[12].mxu1 %v1213_v51  ;;  %v1173_v32 = vsel %vm1162_vm7, %v1164_v26, %v1172_v8  ;;  %v424_v26 = vmul.f32 %v7751_v19, %v362_v18 }
  0x48   : > { %1556 = vmatprep.subr.bf16.mxu0 %v11041_v1  ;;  %2101 = vmatpush1.bf16.msra.mxu1 %v7459_v48  ;;  %v8048_v48 = vpack.c.bf16 %v648_v46, %v647_v34  ;;  %v1175_v51 = vsel %vm1162_vm7, %v1167_v44, %v1174_v36  ;;  %v366_v46 = vld [vmem:[%s7730_s13 + $0x100] sm:$0xff] }
  0x49   : > { %vm536_vm10 = vcmp.ge.f32.partialorder %v481_v52, 0.0  ;;  %v591_v61 = vmul.f32 0.1, %v481_v52  ;;  %2102 = vmatprep.subr.bf16.mxu1 %v11041_v1  ;;  %v486_v58 = vadd.f32 %v7756_v20, %v424_v26  ;;  %v367_v26 = vld [vmem:[%s7730_s13 + $0x108] sm:$0xff] }
  0x4a   : > { %11231 = vst [vmem:[#allocation14_spill] sm:$0xff] %v8048_v48 }
  0x4b   : > { %1557 = vmatpush1.bf16.msra.mxu0 %v7451_v16  ;;  %v422_v16 = vmul.f32 %v7751_v19, %v360_v47  ;;  %v646_v21 = vsel %vm536_vm10, %v481_v52, %v591_v61  ;;  %v425_v47 = vmul.f32 %v7751_v19, %v363_v23  ;;  %v485_v52 = vadd.f32 %v7756_v20, %v423_v42  ;;  %v7470_v23 = vld [vmem:[%s11028_s3 + $0x98] sm:$0xff]  }
  0x4c   : > { %7096 = vmatprep.subr.bf16.mxu0 %v7453_v41  ;;  %v8028_v25 = vpack.c.bf16 %v646_v21, %v645_v6  ;;  %2103 = vmatpush1.bf16.msra.mxu1 %v7460_v24  ;;  %v1006_v61 = vrot.slane %v8048_v48, 1  ;;  %vm541_vm15 = vcmp.ge.f32.partialorder %v486_v58, 0.0  ;;  %v596_v6 = vmul.f32 0.1, %v486_v58 }
  0x4d   : > { %v487_v44 = vadd.f32 %v7756_v20, %v425_v47  ;;  %vm540_vm14 = vcmp.ge.f32.partialorder %v485_v52, 0.0  ;;  %v595_v0 = vmul.f32 0.1, %v485_v52  ;;  %2104 = vmatprep.subr.bf16.mxu1 %v11041_v1  ;;  %v747_v42 = vshll.u32 %v7852_v37, 16 }
  0x4e   : > { %1559 = vmatmul.mubr.bf16.vlgmr.msra.gmra.mrb[0].mxu0 %v1165_v45  ;;  %11230 = vst [vmem:[#allocation13_spill] sm:$0xff] %v8028_v25  ;;  %v484_v45 = vadd.f32 %v7756_v20, %v422_v16  ;;  %v1004_v40 = vrot.slane %v8028_v25, 1  ;;  %v651_v27 = vsel %vm541_vm15, %v486_v58, %v596_v6  ;;  %v7463_v6 = vld [vmem:[%s11028_s3 + $0x50] sm:$0xff]  }
  0x4f   : > { %7097 = vmatpush3.bf16.msra.mxu0 %v7453_v41  ;;  %v7465_v41 = vld [vmem:[%s11028_s3 + $0x90] sm:$0xff]   ;;  %1566 = vmatprep.mubr.bf16.mxu0 %v1175_v51  ;;  %vm542_vm1 = vcmp.ge.f32.partialorder %v487_v44, 0.0  ;;  %v650_v18 = vsel %vm540_vm14, %v485_v52, %v595_v0  ;;  %v597_v21 = vmul.f32 0.1, %v487_v44  ;;  %v749_v58 = vrot.slane %v747_v42, 1 }
  0x50   : > { %7098 = vmatprep.subr.bf16.mxu0 %v7458_v5  ;;  %vm539_vm13 = vcmp.ge.f32.partialorder %v484_v45, 0.0  ;;  %v8060_v56 = vsel %vm982_vm0, %v1002_v14, %v1004_v40  ;;  %v594_v57 = vmul.f32 0.1, %v484_v45  ;;  %v8074_v16 = vsel %vm982_vm0, %v1004_v40, %v1006_v61  ;;  %2105 = vmatpush1.bf16.msra.mxu1 %v7461_v53 }
  0x51   : > { %11232 = vst [vmem:[#allocation15_spill] sm:$0xff] %v8060_v56  ;;  %v1218_v60 = vrot.slane %v8060_v56, 4  ;;  %11233 = vst [vmem:[#allocation16_spill] sm:$0xff] %v8074_v16  ;;  %2106 = vmatprep.subr.bf16.mxu1 %v11041_v1  ;;  %v652_v34 = vsel %vm542_vm1, %v487_v44, %v597_v21  ;;  %v426_v40 = vmul.f32 %v7751_v19, %v364_v4  ;;  %v381_v56 = vld [vmem:[%s7730_s13 + $0x178] sm:$0xff] }
  0x52   : > { %v649_v14 = vsel %vm539_vm13, %v484_v45, %v594_v57  ;;  %v1178_v45 = vrot.slane %v7826_v13, 4  ;;  %v8095_v52 = vpack.c.bf16 %v652_v34, %v651_v27  ;;  %v7472_v57 = vld [vmem:[%s11028_s3 + $0xa0] sm:$0xff]   ;;  %v427_v44 = vmul.f32 %v7751_v19, %v365_v10  ;;  %v368_v27 = vld [vmem:[%s7730_s13 + $0x110] sm:$0xff] }
  0x53   : > { %7099 = vmatpush3.bf16.msra.mxu0 %v7458_v5  ;;  %v1219_v5 = vsel %vm1162_vm7, %v1212_v38, %v1218_v60  ;;  %v1224_v38 = vrot.slane %v8074_v16, 4  ;;  %v8083_v24 = vpack.c.bf16 %v650_v18, %v649_v14  ;;  %v428_v4 = vmul.f32 %v7751_v19, %v366_v46 }
  0x54   : > { %7100 = vmatprep.subr.bf16.mxu0 %v7465_v41  ;;  %7064 = vmatprep.mubr.bf16.mxu1 %v1219_v5  ;;  %11235 = vst [vmem:[#allocation18_spill] sm:$0xff] %v8095_v52  ;;  %v429_v14 = vmul.f32 %v7751_v19, %v367_v26 }
  0x55   : > { %11234 = vst [vmem:[#allocation17_spill] sm:$0xff] %v8083_v24  ;;  %v1225_v47 = vsel %vm1162_vm7, %v1218_v60, %v1224_v38  ;;  %v1008_v51 = vrot.slane %v8083_v24, 1  ;;  %v488_v60 = vadd.f32 %v7756_v20, %v426_v40  ;;  %2107 = vmatpush1.bf16.msra.mxu1 %v7462_v22  ;;  %v490_v22 = vadd.f32 %v7756_v20, %v428_v4  ;;  %v369_v40 = vld [vmem:[%s7730_s13 + $0x118] sm:$0xff] }
  0x56   : > { %1567 = vmatmul.mubr.bf16.gmra.mrb[4].mxu0 %v1173_v32  ;;  %v743_v32 = vshrl.u32 %v7826_v13, 16  ;;  %7065 = vmatmul.mubr.bf16.gmra.mrb[16].mxu1 %v1225_v47  ;;  %v491_v47 = vadd.f32 %v7756_v20, %v429_v14  ;;  %v755_v14 = vshll.u32 %v7868_v50, 16 }
  0x57   : > { %7101 = vmatpush3.bf16.msra.mxu0 %v7465_v41  ;;  %v1179_v41 = vsel %vm1162_vm7, %v1172_v8, %v1178_v45  ;;  %v8109_v0 = vsel %vm982_vm0, %v1006_v61, %v1008_v51  ;;  %v489_v61 = vadd.f32 %v7756_v20, %v427_v44  ;;  %vm543_vm2 = vcmp.ge.f32.partialorder %v488_v60, 0.0  ;;  %2108 = vmatprep.subr.bf16.mxu1 %v11041_v1 }
  0x58   : > { %v745_v53 = vor.u32 %v743_v32, %v8018_v7  ;;  %7102 = vmatprep.subr.bf16.mxu0 %v7470_v23  ;;  %11236 = vst [vmem:[#allocation19_spill] sm:$0xff] %v8109_v0  ;;  %v1010_v7 = vrot.slane %v8095_v52, 1  ;;  %v1230_v8 = vrot.slane %v8109_v0, 4  ;;  %v598_v21 = vmul.f32 0.1, %v488_v60  ;;  %v7464_v32 = vld [vmem:[%s11028_s3 + $0x58] sm:$0xff]  }
  0x59   : > { %vm544_vm4 = vcmp.ge.f32.partialorder %v489_v61, 0.0  ;;  %vm545_vm5 = vcmp.ge.f32.partialorder %v490_v22, 0.0  ;;  %2109 = vmatpush1.bf16.msra.mxu1 %v7463_v6  ;;  %v600_v4 = vmul.f32 0.1, %v490_v22  ;;  %vm546_vm6 = vcmp.ge.f32.partialorder %v491_v47, 0.0 }
  0x5a   : > { %v8119_v10 = vsel %vm706_vm3, %v745_v53, %v749_v58  ;;  %v8124_v5 = vsel %vm982_vm0, %v1008_v51, %v1010_v7  ;;  %v1231_v34 = vsel %vm1162_vm7, %v1224_v38, %v1230_v8  ;;  %v653_v26 = vsel %vm543_vm2, %v488_v60, %v598_v21  ;;  %v370_v51 = vld [vmem:[%s7730_s13 + $0x120] sm:$0xff]  ;;  %v7475_v38 = vld [vmem:[%s11028_s3 + $0xa8] sm:$0xff]   ;;  %2110 = vmatprep.subr.bf16.mxu1 %v11041_v1 }
  0x5b   : > { %7103 = vmatpush3.bf16.msra.mxu0 %v7470_v23  ;;  %11237 = vst [vmem:[#allocation20_spill] sm:$0xff] %v8124_v5  ;;  %v1180_v18 = vrot.slane %v8119_v10, 4  ;;  %v1236_v42 = vrot.slane %v8124_v5, 4  ;;  %v599_v23 = vmul.f32 0.1, %v489_v61  ;;  %7068 = vmatprep.mubr.bf16.mxu1 %v1231_v34  ;;  %v751_v34 = vshrl.u32 %v7852_v37, 16 }
  0x5c   : > { %7104 = vmatprep.subr.bf16.mxu0 %v7472_v57  ;;  %v601_v60 = vmul.f32 0.1, %v491_v47  ;;  %v655_v6 = vsel %vm545_vm5, %v490_v22, %v600_v4  ;;  %v379_v5 = vld [vmem:[%s7730_s13 + $0x168] sm:$0xff] }
  0x5d   : > { %v1181_v46 = vsel %vm1162_vm7, %v1174_v36, %v1180_v18  ;;  %v1237_v53 = vsel %vm1162_vm7, %v1230_v8, %v1236_v42  ;;  %v654_v44 = vsel %vm544_vm4, %v489_v61, %v599_v23  ;;  %v753_v21 = vor.u32 %v751_v34, %v749_v58  ;;  %v7466_v23 = vld [vmem:[%s11028_s3 + $0x60] sm:$0xff]   ;;  %2111 = vmatpush1.bf16.msra.mxu1 %v7464_v32 }
  0x5e   : > { %1573 = vmatprep.mubr.bf16.mxu0 %v1181_v46  ;;  %v8150_v36 = vpack.c.bf16 %v654_v44, %v653_v26  ;;  %7069 = vmatmul.mubr.bf16.gmra.mrb[20].mxu1 %v1237_v53  ;;  %v11037_v8 = vrot.slane %v7852_v37, 4  ;;  %v430_v61 = vmul.f32 %v7751_v19, %v368_v27  ;;  %v656_v46 = vsel %vm546_vm6, %v491_v47, %v601_v60 }
  0x5f   : > { %1574 = vmatmul.mubr.bf16.gmra.mrb[8].mxu0 %v1179_v41  ;;  %v757_v26 = vrot.slane %v755_v14, 1  ;;  %v431_v44 = vmul.f32 %v7751_v19, %v369_v40  ;;  %v8161_v53 = vpack.c.bf16 %v656_v46, %v655_v6  ;;  %2112 = vmatprep.subr.bf16.mxu1 %v11041_v1  ;;  %v433_v47 = vmul.f32 %v7751_v19, %v371_v63  ;;  %v7467_v63 = vld [vmem:[%s11028_s3 + $0x68] sm:$0xff]  }
  0x60   : > { %11238 = vst [vmem:[#allocation21_spill] sm:$0xff] %v8150_v36  ;;  %7105 = vmatpush3.bf16.msra.mxu0 %v7472_v57  ;;  %v1012_v41 = vrot.slane %v8150_v36, 1  ;;  %v1185_v58 = vsel %vm1162_vm7, %v1178_v45, %v11037_v8  ;;  %v492_v22 = vadd.f32 %v7756_v20, %v430_v61  ;;  %v432_v57 = vmul.f32 %v7751_v19, %v370_v51  ;;  %v372_v19 = vld [vmem:[%s7730_s13 + $0x130] sm:$0xff] }
  0x61   : > { %7106 = vmatprep.subr.bf16.mxu0 %v7475_v38  ;;  %11239 = vst [vmem:[#allocation22_spill] sm:$0xff] %v8161_v53  ;;  %v8175_v32 = vsel %vm706_vm3, %v753_v21, %v757_v26  ;;  %v493_v40 = vadd.f32 %v7756_v20, %v431_v44  ;;  %v1014_v45 = vrot.slane %v8161_v53, 1  ;;  %2113 = vmatpush1.bf16.msra.mxu1 %v7466_v23 }
  0x62   : > { %v8172_v27 = vsel %vm982_vm0, %v1010_v7, %v1012_v41  ;;  %v11036_v34 = vrot.slane %v8175_v32, 4  ;;  %vm547_vm8 = vcmp.ge.f32.partialorder %v492_v22, 0.0  ;;  %v602_v51 = vmul.f32 0.1, %v492_v22  ;;  %v8185_v7 = vld [vmem:[%s11027_s2] ss:$0 sm:$0xff]  ;;  %2114 = vmatprep.subr.bf16.mxu1 %v11041_v1 }
  0x63   : > { %11240 = vst [vmem:[#allocation23_spill] sm:$0xff] %v8172_v27  ;;  %v1242_v4 = vrot.slane %v8172_v27, 4  ;;  %vm548_vm9 = vcmp.ge.f32.partialorder %v493_v40, 0.0  ;;  %v603_v60 = vmul.f32 0.1, %v493_v40  ;;  %v494_v20 = vadd.f32 %v8185_v7, %v432_v57  ;;  %v374_v57 = vld [vmem:[%s7730_s13 + $0x140] sm:$0xff] }
  0x64   : > { %7107 = vmatpush3.bf16.msra.mxu0 %v7475_v38  ;;  %v8194_v38 = vsel %vm982_vm0, %v1012_v41, %v1014_v45  ;;  %v1187_v6 = vsel %vm1162_vm7, %v1180_v18, %v11036_v34  ;;  %v495_v21 = vadd.f32 %v8185_v7, %v433_v47  ;;  %v373_v41 = vld [vmem:[%s7730_s13 + $0x138] sm:$0xff]  ;;  %v11248_v27 = vmov 0  }
  0x65   : > { %v1243_v14 = vsel %vm1162_vm7, %v1236_v42, %v1242_v4  ;;  %11241 = vst [vmem:[#allocation24_spill] sm:$0xff] %v8194_v38  ;;  %v1248_v61 = vrot.slane %v8194_v38, 4  ;;  %1580 = vmatprep.mubr.bf16.mxu0 %v1187_v6  ;;  %v657_v42 = vsel %vm547_vm8, %v492_v22, %v602_v51  ;;  %v658_v23 = vsel %vm548_vm9, %v493_v40, %v603_v60 }
  0x66   : > { %7072 = vmatprep.mubr.bf16.mxu1 %v1243_v14  ;;  %vm549_vm10 = vcmp.ge.f32.partialorder %v494_v20, 0.0  ;;  %v8207_v46 = vpack.c.bf16 %v658_v23, %v657_v42  ;;  %vm550_vm11 = vcmp.ge.f32.partialorder %v495_v21, 0.0  ;;  %v604_v18 = vmul.f32 0.1, %v494_v20  ;;  %2115 = vmatpush1.bf16.msra.mxu1 %v7467_v63  ;;  %v375_v23 = vld [vmem:[%s7730_s13 + $0x148] sm:$0xff] }
  0x67   : > { %1581 = vmatmul.mubr.bf16.gmra.mrb[12].mxu0 %v1185_v58  ;;  %v605_v44 = vmul.f32 0.1, %v495_v21  ;;  %v1249_v47 = vsel %vm1162_vm7, %v1242_v4, %v1248_v61  ;;  %v759_v14 = vshrl.u32 %v7868_v50, 16  ;;  %v763_v6 = vshll.u32 %v7896_v15, 16  ;;  %v7468_v58 = vld [vmem:[%s11028_s3 + $0x70] sm:$0xff]   ;;  %2116 = vmatprep.subr.bf16.mxu1 %v11041_v1 }
  0x68   : > { %11242 = vst [vmem:[#allocation25_spill] sm:$0xff] %v8207_v46  ;;  %v11038_v22 = vrot.slane %v7868_v50, 4  ;;  %7073 = vmatmul.mubr.bf16.gmra.mrb[24].mxu1 %v1249_v47  ;;  %v1016_v40 = vrot.slane %v8207_v46, 1  ;;  %v659_v51 = vsel %vm549_vm10, %v494_v20, %v604_v18  ;;  %v8222_v4 = vld [vmem:[%s11026_s1] ss:$0 sm:$0xff]  ;;  %v11244_v47 = vrot.slane %v7852_v37, 4 }
  0x69   : > { %v660_v60 = vsel %vm550_vm11, %v495_v21, %v605_v44  ;;  %v434_v42 = vmul.f32 %v8222_v4, %v372_v19  ;;  %v761_v34 = vor.u32 %v759_v14, %v757_v26  ;;  %v765_v8 = vrot.slane %v763_v6, 1  ;;  %v7469_v21 = vld [vmem:[%s11028_s3 + $0x78] sm:$0xff]   ;;  %v7478_v14 = vld [vmem:[%s11028_s3 + $0xb0] sm:$0xff]  }
  0x6a   : > { %v8227_v63 = vpack.c.bf16 %v660_v60, %v659_v51  ;;  %v1191_v20 = vsel %vm1162_vm7, %v11244_v47, %v11038_v22  ;;  %v8238_v18 = vsel %vm982_vm0, %v1014_v45, %v1016_v40  ;;  %v435_v19 = vmul.f32 %v8222_v4, %v373_v41  ;;  %2117 = vmatpush1.bf16.msra.mxu1 %v7468_v58  ;;  %v377_v58 = vld [vmem:[%s7730_s13 + $0x158] sm:$0xff] }
  0x6b   : > { %11245 = vst [vmem:[#allocation27_spill] sm:$0xff] %v8238_v18  ;;  %v496_v44 = vadd.f32 %v8185_v7, %v434_v42  ;;  %v436_v26 = vmul.f32 %v8222_v4, %v374_v57  ;;  %v1254_v6 = vrot.slane %v8238_v18, 4  ;;  %v8249_v60 = vsel %vm706_vm3, %v761_v34, %v765_v8  ;;  %2118 = vmatprep.subr.bf16.mxu1 %v11041_v1 }
  0x6c   : > { %11243 = vst [vmem:[#allocation26_spill] sm:$0xff] %v8227_v63  ;;  %v1018_v51 = vrot.slane %v8227_v63, 1  ;;  %v437_v45 = vmul.f32 %v8222_v4, %v375_v23  ;;  %v11049_v41 = vrot.slane %v8249_v60, 4  ;;  %v497_v57 = vadd.f32 %v8185_v7, %v435_v19  ;;  %7108 = vmatprep.subr.bf16.mxu0 %v7478_v14  ;;  %v376_v23 = vld [vmem:[%s7730_s13 + $0x150] sm:$0xff] }
  0x6d   : > { %vm551_vm12 = vcmp.ge.f32.partialorder %v496_v44, 0.0  ;;  %v606_v42 = vmul.f32 0.1, %v496_v44  ;;  %v1255_v47 = vsel %vm1162_vm7, %v1248_v61, %v1254_v6  ;;  %v498_v34 = vadd.f32 %v8185_v7, %v436_v26  ;;  %7109 = vmatpush3.bf16.msra.mxu0 %v7478_v14 }
  0x6e   : > { %v8257_v22 = vsel %vm982_vm0, %v1016_v40, %v1018_v51  ;;  %v499_v18 = vadd.f32 %v8185_v7, %v437_v45  ;;  %7076 = vmatprep.mubr.bf16.mxu1 %v1255_v47  ;;  %v11247_v1 = vrot.slane %v8175_v32, 4  ;;  %vm552_vm13 = vcmp.ge.f32.partialorder %v497_v57, 0.0  ;;  %2119 = vmatpush1.bf16.msra.mxu1 %v7469_v21 }
  0x6f   : > { %11246 = vst [vmem:[#allocation28_spill] sm:$0xff] %v8257_v22  ;;  %v1260_v19 = vrot.slane %v8257_v22, 4  ;;  %v607_v61 = vmul.f32 0.1, %v497_v57  ;;  %v661_v40 = vsel %vm551_vm12, %v496_v44, %v606_v42  ;;  %vm553_vm14 = vcmp.ge.f32.partialorder %v498_v34, 0.0  ;;  %2699 = vmatprep.subr.bf16.mxu1 %v11248_v27 }
  0x70   : > { %v1193_v38 = vsel %vm1162_vm7, %v11247_v1, %v11049_v41  ;;  %vm554_vm15 = vcmp.ge.f32.partialorder %v499_v18, 0.0  ;;  %v608_v26 = vmul.f32 0.1, %v498_v34  ;;  %v609_v47 = vmul.f32 0.1, %v499_v18  ;;  %v378_v41 = vld [vmem:[%s7730_s13 + $0x160] sm:$0xff] }
  0x71   : > { %1588 = vmatprep.mubr.bf16.mxu0 %v1193_v38  ;;  %v1261_v14 = vsel %vm1162_vm7, %v1254_v6, %v1260_v19  ;;  %v662_v45 = vsel %vm552_vm13, %v497_v57, %v607_v61  ;;  %v767_v22 = vshrl.u32 %v7896_v15, 16  ;;  %v771_v44 = vshll.u32 %v7912_v29, 16 }
  0x72   : > { %1589 = vmatmul.mubr.bf16.gmra.mrb[16].mxu0 %v1191_v20  ;;  %7077 = vmatmul.mubr.bf16.gmra.mrb[28].mxu1 %v1261_v14  ;;  %v8273_v1 = vpack.c.bf16 %v662_v45, %v661_v40  ;;  %v663_v38 = vsel %vm553_vm14, %v498_v34, %v608_v26  ;;  %v1196_v42 = vrot.slane %v7896_v15, 4  ;;  %v664_v21 = vsel %vm554_vm15, %v499_v18, %v609_v47 }
  0x73   : > { %v769_v6 = vor.u32 %v767_v22, %v765_v8  ;;  %v438_v20 = vmul.f32 %v8222_v4, %v376_v23  ;;  %v439_v57 = vmul.f32 %v8222_v4, %v377_v58  ;;  %v8283_v0 = vpack.c.bf16 %v664_v21, %v663_v38 }
  0x74   : > { %11249 = vst [vmem:[#allocation29_spill] sm:$0xff] %v8273_v1  ;;  %v1020_v61 = vrot.slane %v8273_v1, 1  ;;  %v773_v40 = vrot.slane %v771_v44, 1  ;;  %v11251_v34 = vrot.slane %v7868_v50, 4  ;;  %v440_v8 = vmul.f32 %v8222_v4, %v378_v41 }
  0x75   : > { %11250 = vst [vmem:[#allocation30_spill] sm:$0xff] %v8283_v0  ;;  %v500_v14 = vadd.f32 %v8185_v7, %v438_v20  ;;  %v501_v45 = vadd.f32 %v8185_v7, %v439_v57  ;;  %v441_v22 = vmul.f32 %v8222_v4, %v379_v5  ;;  %v1022_v23 = vrot.slane %v8283_v0, 1  ;;  %v380_v20 = vld [vmem:[%s7730_s13 + $0x170] sm:$0xff] }
  0x76   : > { %v1197_v26 = vsel %vm1162_vm7, %v11251_v34, %v1196_v42  ;;  %v8293_v18 = vsel %vm982_vm0, %v1018_v51, %v1020_v61  ;;  %v8297_v58 = vsel %vm706_vm3, %v769_v6, %v773_v40  ;;  %v775_v47 = vshrl.u32 %v7912_v29, 16 }
  0x77   : > { %11252 = vst [vmem:[#allocation31_spill] sm:$0xff] %v8293_v18  ;;  %v1266_v38 = vrot.slane %v8293_v18, 4  ;;  %v1198_v44 = vrot.slane %v8297_v58, 4  ;;  %vm555_vm1 = vcmp.ge.f32.partialorder %v500_v14, 0.0  ;;  %vm556_vm2 = vcmp.ge.f32.partialorder %v501_v45, 0.0 }
  0x78   : > { %v8303_v41 = vsel %vm982_vm0, %v1020_v61, %v1022_v23  ;;  %v610_v5 = vmul.f32 0.1, %v500_v14  ;;  %v611_v51 = vmul.f32 0.1, %v501_v45  ;;  %v502_v21 = vadd.f32 %v8185_v7, %v440_v8  ;;  %v382_v8 = vld [vmem:[%s7730_s13 + $0x180] sm:$0xff] }
  0x79   : > { %11253 = vst [vmem:[#allocation32_spill] sm:$0xff] %v8303_v41  ;;  %v1267_v6 = vsel %vm1162_vm7, %v1260_v19, %v1266_v38  ;;  %v1272_v57 = vrot.slane %v8303_v41, 4  ;;  %v11254_v34 = vrot.slane %v8249_v60, 4  ;;  %v503_v16 = vadd.f32 %v8185_v7, %v441_v22 }
  0x7a   : > { %7080 = vmatprep.mubr.bf16.mxu1 %v1267_v6  ;;  %v665_v61 = vsel %vm555_vm1, %v500_v14, %v610_v5  ;;  %v666_v28 = vsel %vm556_vm2, %v501_v45, %v611_v51  ;;  %vm557_vm4 = vcmp.ge.f32.partialorder %v502_v21, 0.0  ;;  %v612_v11 = vmul.f32 0.1, %v502_v21 }
  0x7b   : > { %v1199_v18 = vsel %vm1162_vm7, %v11254_v34, %v1198_v44  ;;  %v1273_v43 = vsel %vm1162_vm7, %v1266_v38, %v1272_v57  ;;  %v8316_v19 = vpack.c.bf16 %v666_v28, %v665_v61  ;;  %vm558_vm5 = vcmp.ge.f32.partialorder %v503_v16, 0.0 }
  0x7c   : > { %1595 = vmatprep.mubr.bf16.mxu0 %v1199_v18  ;;  %v613_v41 = vmul.f32 0.1, %v503_v16  ;;  %7081 = vmatmul.mubr.bf16.gmra.mrb[32].mxu1 %v1273_v43  ;;  %v667_v34 = vsel %vm557_vm4, %v502_v21, %v612_v11  ;;  %v777_v9 = vor.u32 %v775_v47, %v773_v40  ;;  %v779_v22 = vshll.u32 %v7936_v49, 16 }
  0x7d   : > { %1596 = vmatmul.mubr.bf16.gmra.mrb[20].mxu0 %v1197_v26  ;;  %11255 = vst [vmem:[#allocation33_spill] sm:$0xff] %v8316_v19  ;;  %v1202_v18 = vrot.slane %v7912_v29, 4  ;;  %v1024_v14 = vrot.slane %v8316_v19, 1  ;;  %v442_v5 = vmul.f32 %v8222_v4, %v380_v20  ;;  %v443_v38 = vmul.f32 %v8222_v4, %v381_v56 }
  0x7e   : > { %v668_v45 = vsel %vm558_vm5, %v503_v16, %v613_v41  ;;  %v781_v28 = vrot.slane %v779_v22, 1  ;;  %v444_v43 = vmul.f32 %v8222_v4, %v382_v8  ;;  %v445_v16 = vmul.f32 %v8222_v4, %v383_v35 }
  0x7f   : > { %v8324_v26 = vpack.c.bf16 %v668_v45, %v667_v34  ;;  %v1203_v51 = vsel %vm1162_vm7, %v1196_v42, %v1202_v18  ;;  %v8329_v11 = vsel %vm982_vm0, %v1022_v23, %v1024_v14  ;;  %v504_v40 = vadd.f32 %v8185_v7, %v442_v5  ;;  %v384_v34 = vld [vmem:[%s7730_s13 + $0x190] sm:$0xff]  ;;  %v385_v5 = vld [vmem:[%s7730_s13 + $0x198] sm:$0xff] }
  0x80   : > { %11257 = vst [vmem:[#allocation35_spill] sm:$0xff] %v8329_v11  ;;  %v505_v47 = vadd.f32 %v8185_v7, %v443_v38  ;;  %v1278_v41 = vrot.slane %v8329_v11, 4  ;;  %v8337_v21 = vsel %vm706_vm3, %v777_v9, %v781_v28  ;;  %v506_v42 = vadd.f32 %v8185_v7, %v444_v43  ;;  %v387_v11 = vld [vmem:[%s7730_s13 + $0x1a8] sm:$0xff] }
  0x81   : > { %11256 = vst [vmem:[#allocation34_spill] sm:$0xff] %v8324_v26  ;;  %v1026_v56 = vrot.slane %v8324_v26, 1  ;;  %v1204_v23 = vrot.slane %v8337_v21, 4  ;;  %vm559_vm6 = vcmp.ge.f32.partialorder %v504_v40, 0.0  ;;  %v614_v20 = vmul.f32 0.1, %v504_v40 }
  0x82   : > { %vm560_vm8 = vcmp.ge.f32.partialorder %v505_v47, 0.0  ;;  %v1279_v6 = vsel %vm1162_vm7, %v1272_v57, %v1278_v41  ;;  %v615_v35 = vmul.f32 0.1, %v505_v47  ;;  %v507_v8 = vadd.f32 %v8185_v7, %v445_v16  ;;  %v7481_v57 = vld [vmem:[%s11028_s3 + $0xb8] sm:$0xff]   ;;  %v386_v16 = vld [vmem:[%s7730_s13 + $0x1a0] sm:$0xff] }
  0x83   : > { %v8343_v61 = vsel %vm982_vm0, %v1024_v14, %v1026_v56  ;;  %7084 = vmatprep.mubr.bf16.mxu1 %v1279_v6  ;;  %v1205_v22 = vsel %vm1162_vm7, %v1198_v44, %v1204_v23  ;;  %v669_v45 = vsel %vm559_vm6, %v504_v40, %v614_v20  ;;  %vm561_vm9 = vcmp.ge.f32.partialorder %v506_v42, 0.0  ;;  %7110 = vmatprep.subr.bf16.mxu0 %v7481_v57 }
  0x84   : > { %11258 = vst [vmem:[#allocation36_spill] sm:$0xff] %v8343_v61  ;;  %v1284_v9 = vrot.slane %v8343_v61, 4  ;;  %1602 = vmatprep.mubr.bf16.mxu0 %v1205_v22  ;;  %v670_v14 = vsel %vm560_vm8, %v505_v47, %v615_v35  ;;  %vm562_vm10 = vcmp.ge.f32.partialorder %v507_v8, 0.0  ;;  %v616_v38 = vmul.f32 0.1, %v506_v42  ;;  %7111 = vmatpush3.bf16.msra.mxu0 %v7481_v57 }
  0x85   : > { %v617_v43 = vmul.f32 0.1, %v507_v8  ;;  %1603 = vmatmul.mubr.bf16.gmra.mrb[24].mxu0 %v1203_v51  ;;  %v8355_v61 = vpack.c.bf16 %v670_v14, %v669_v45  ;;  %v783_v44 = vshrl.u32 %v7936_v49, 16  ;;  %v787_v40 = vshll.u32 %v7949_v2, 16 }
  0x86   : > { %v1285_v6 = vsel %vm1162_vm7, %v1278_v41, %v1284_v9  ;;  %v671_v20 = vsel %vm561_vm9, %v506_v42, %v616_v38  ;;  %v1208_v47 = vrot.slane %v7936_v49, 4  ;;  %v446_v35 = vmul.f32 %v8222_v4, %v384_v34 }
  0x87   : > { %11259 = vst [vmem:[#allocation37_spill] sm:$0xff] %v8355_v61  ;;  %7085 = vmatmul.mubr.bf16.gmra.mrb[36].mxu1 %v1285_v6  ;;  %v672_v22 = vsel %vm562_vm10, %v507_v8, %v617_v43  ;;  %v1028_v41 = vrot.slane %v8355_v61, 1  ;;  %v785_v45 = vor.u32 %v783_v44, %v781_v28  ;;  %v789_v14 = vrot.slane %v787_v40, 1  ;;  %v334_v44 = vld [vmem:[%s7730_s13] sm:$0xff] }
  0x88   : > { %v8364_v51 = vpack.c.bf16 %v672_v22, %v671_v20  ;;  %v1209_v54 = vsel %vm1162_vm7, %v1202_v18, %v1208_v47  ;;  %v447_v6 = vmul.f32 %v8222_v4, %v385_v5  ;;  %v508_v42 = vadd.f32 %v8185_v7, %v446_v35 }
  0x89   : > { %v448_v8 = vmul.f32 %v8222_v4, %v386_v16  ;;  %v8371_v38 = vsel %vm982_vm0, %v1026_v56, %v1028_v41  ;;  %v8375_v57 = vsel %vm706_vm3, %v785_v45, %v789_v14  ;;  %v449_v43 = vmul.f32 %v8222_v4, %v387_v11 }
  0x8a   : > { %11260 = vst [vmem:[#allocation38_spill] sm:$0xff] %v8364_v51  ;;  %11261 = vst [vmem:[#allocation39_spill] sm:$0xff] %v8371_v38  ;;  %v1030_v34 = vrot.slane %v8364_v51, 1  ;;  %v1290_v28 = vrot.slane %v8371_v38, 4  ;;  %v1210_v18 = vrot.slane %v8375_v57, 4  ;;  %v509_v5 = vadd.f32 %v8185_v7, %v447_v6 }
  0x8b   : > { %vm563_vm11 = vcmp.ge.f32.partialorder %v508_v42, 0.0  ;;  %v618_v56 = vmul.f32 0.1, %v508_v42  ;;  %v510_v40 = vadd.f32 %v8185_v7, %v448_v8  ;;  %v511_v20 = vadd.f32 %v8185_v7, %v449_v43 }
  0x8c   : > { %v8383_v16 = vsel %vm982_vm0, %v1028_v41, %v1030_v34  ;;  %v1291_v22 = vsel %vm1162_vm7, %v1284_v9, %v1290_v28  ;;  %v1211_v35 = vsel %vm1162_vm7, %v1204_v23, %v1210_v18  ;;  %vm564_vm12 = vcmp.ge.f32.partialorder %v509_v5, 0.0 }
  0x8d   : > { %11262 = vst [vmem:[#allocation40_spill] sm:$0xff] %v8383_v16  ;;  %v1296_v11 = vrot.slane %v8383_v16, 4  ;;  %7088 = vmatprep.mubr.bf16.mxu1 %v1291_v22  ;;  %1610 = vmatprep.mubr.bf16.mxu0 %v1211_v35  ;;  %v619_v45 = vmul.f32 0.1, %v509_v5  ;;  %v673_v6 = vsel %vm563_vm11, %v508_v42, %v618_v56  ;;  %vm565_vm13 = vcmp.ge.f32.partialorder %v510_v40, 0.0 }
  0x8e   : > { %vm566_vm14 = vcmp.ge.f32.partialorder %v511_v20, 0.0  ;;  %1611 = vmatmul.mubr.bf16.gmra.mrb[28].mxu0 %v1209_v54  ;;  %v620_v8 = vmul.f32 0.1, %v510_v40  ;;  %v621_v38 = vmul.f32 0.1, %v511_v20  ;;  %v791_v43 = vshrl.u32 %v7949_v2, 16 }
  0x8f   : > { %v1297_v41 = vsel %vm1162_vm7, %v1290_v28, %v1296_v11  ;;  %v674_v9 = vsel %vm564_vm12, %v509_v5, %v619_v45  ;;  %v795_v16 = vshll.u32 %v8028_v25, 16  ;;  %v1214_v23 = vrot.slane %v7949_v2, 4 }
  0x90   : > { %7089 = vmatmul.mubr.bf16.gmra.mrb[40].mxu1 %v1297_v41  ;;  %v396_v22 = vmul.f32 %v8222_v4, %v334_v44  ;;  %v8396_v35 = vpack.c.bf16 %v674_v9, %v673_v6  ;;  %v675_v42 = vsel %vm565_vm13, %v510_v40, %v620_v8  ;;  %v676_v56 = vsel %vm566_vm14, %v511_v20, %v621_v38 }
  0x91   : > { %v793_v17 = vor.u32 %v791_v43, %v789_v14  ;;  %v8398_v28 = vpack.c.bf16 %v676_v56, %v675_v42  ;;  %v797_v54 = vrot.slane %v795_v16, 1  ;;  %v397_v12 = vmul.f32 %v8222_v4, %v335_v33 }
  0x92   : > { %11263 = vst [vmem:[#allocation41_spill] sm:$0xff] %v8396_v35  ;;  %v1032_v49 = vrot.slane %v8396_v35, 1  ;;  %v1215_v5 = vsel %vm1162_vm7, %v1208_v47, %v1214_v23  ;;  %v458_v45 = vadd.f32 %v8185_v7, %v396_v22  ;;  %v799_v41 = vshrl.u32 %v8028_v25, 16 }
  0x93   : > { %11264 = vst [vmem:[#allocation42_spill] sm:$0xff] %v8398_v28  ;;  %v11088_v44 = vrot.slane %v8398_v28, 1  ;;  %v8407_v6 = vsel %vm706_vm3, %v793_v17, %v797_v54  ;;  %v459_v14 = vadd.f32 %v8185_v7, %v397_v12  ;;  %v803_v38 = vshll.u32 %v8048_v48, 16 }
  0x94   : > { %v8412_v16 = vsel %vm982_vm0, %v1030_v34, %v1032_v49  ;;  %v1216_v33 = vrot.slane %v8407_v6, 4  ;;  %vm513_vm15 = vcmp.ge.f32.partialorder %v458_v45, 0.0  ;;  %v568_v4 = vmul.f32 0.1, %v458_v45 }
  0x95   : > { %11265 = vst [vmem:[#allocation43_spill] sm:$0xff] %v8412_v16  ;;  %v1302_v47 = vrot.slane %v8412_v16, 4  ;;  %v8419_v40 = vsel %vm982_vm0, %v1032_v49, %v11088_v44  ;;  %vm514_vm1 = vcmp.ge.f32.partialorder %v459_v14, 0.0  ;;  %v569_v17 = vmul.f32 0.1, %v459_v14  ;;  %v11278_v44 = vld [vmem:[#allocation10_spill] sm:$0xff] }
  0x96   : > { %11266 = vst [vmem:[#allocation44_spill] sm:$0xff] %v8419_v40  ;;  %v1308_v12 = vrot.slane %v8419_v40, 4  ;;  %v1217_v7 = vsel %vm1162_vm7, %v1210_v18, %v1216_v33  ;;  %v623_v20 = vsel %vm513_vm15, %v458_v45, %v568_v4  ;;  %v801_v34 = vor.u32 %v799_v41, %v797_v54 }
  0x97   : > { %v1303_v8 = vsel %vm1162_vm7, %v1296_v11, %v1302_v47  ;;  %1617 = vmatprep.mubr.bf16.mxu0 %v1217_v7  ;;  %v624_v43 = vsel %vm514_vm1, %v459_v14, %v569_v17  ;;  %v805_v9 = vrot.slane %v803_v38, 1  ;;  %v807_v49 = vshrl.u32 %v8048_v48, 16  ;;  %v8441_v17 = vld [vmem:[%s11028_s3 + $0x200] sm:$0xff]  }
  0x98   : > { %7092 = vmatprep.mubr.bf16.mxu1 %v1303_v8  ;;  %v1309_v22 = vsel %vm1162_vm7, %v1302_v47, %v1308_v12  ;;  %1618 = vmatmul.mubr.bf16.gmra.mrb[32].mxu0 %v1215_v5  ;;  %v8425_v42 = vpack.c.bf16 %v624_v43, %v623_v20  ;;  %v811_v56 = vshll.u32 %v8083_v24, 16  ;;  %v1220_v54 = vrot.slane %v8028_v25, 4 }
  0x99   : > { %7093 = vmatmul.mubr.bf16.gmra.mrb[44].mxu1 %v1309_v22  ;;  %v8430_v18 = vsel %vm706_vm3, %v801_v34, %v805_v9  ;;  %v815_v11 = vshrl.u32 %v8083_v24, 16  ;;  %v819_v45 = vshll.u32 %v8095_v52, 16  ;;  %v809_v38 = vor.u32 %v807_v49, %v805_v9  ;;  %7160 = vmatprep.subr.bf16.mxu0 %v8441_v17  ;;  %v7471_v22 = vld [vmem:[%s11028_s3 + $0x180] sm:$0xff]  }
  0x9a   : > { %v708_v41 = vshrl.u32 %v8425_v42, 16  ;;  %v710_v5 = vshll.u32 %v8425_v42, 16  ;;  %v1222_v14 = vrot.slane %v8430_v18, 4  ;;  %v813_v4 = vrot.slane %v811_v56, 1 }
  0x9b   : > { %v821_v47 = vrot.slane %v819_v45, 1  ;;  %v1221_v20 = vsel %vm1162_vm7, %v1214_v23, %v1220_v54  ;;  %v827_v23 = vshll.u32 %v8150_v36, 16  ;;  %v1226_v45 = vrot.slane %v8048_v48, 4 }
  0x9c   : > { %v712_v12 = vrot.slane %v710_v5, 1  ;;  %v1223_v7 = vsel %vm1162_vm7, %v1216_v33, %v1222_v14  ;;  %v8446_v34 = vsel %vm706_vm3, %v809_v38, %v813_v4  ;;  %v817_v8 = vor.u32 %v815_v11, %v813_v4 }
  0x9d   : > { %1624 = vmatprep.mubr.bf16.mxu0 %v1223_v7  ;;  %11267 = vst [vmem:[#allocation45_spill] sm:$0xff] %v8446_v34  ;;  %v1228_v9 = vrot.slane %v8446_v34, 4  ;;  %v823_v33 = vshrl.u32 %v8095_v52, 16  ;;  %v829_v38 = vrot.slane %v827_v23, 1  ;;  %v831_v7 = vshrl.u32 %v8150_v36, 16  ;;  %v7477_v23 = vld [vmem:[%s11028_s3 + $0x1a0] sm:$0xff]  }
  0x9e   : > { %v713_v43 = vor.u32 %v712_v12, %v708_v41  ;;  %v8454_v49 = vsel %vm706_vm3, %v817_v8, %v821_v47  ;;  %v1286_v40 = vrot.slane %v8324_v26, 4  ;;  %v1292_v16 = vrot.slane %v8355_v61, 4 }
  0x9f   : > { %11268 = vst [vmem:[#allocation46_spill] sm:$0xff] %v8454_v49  ;;  %v1229_v11 = vsel %vm1162_vm7, %v1222_v14, %v1228_v9  ;;  %v1234_v41 = vrot.slane %v8454_v49, 4  ;;  %v825_v5 = vor.u32 %v823_v33, %v821_v47  ;;  %v1227_v14 = vsel %vm1162_vm7, %v1220_v54, %v1226_v45  ;;  %v7474_v47 = vld [vmem:[%s11028_s3 + $0x190] sm:$0xff]  }
  0xa0   : > { %v718_v56 = vsel %vm706_vm3, %v713_v43, %v7951_v3  ;;  %1625 = vmatmul.mubr.bf16.gmra.mrb[36].mxu0 %v1221_v20  ;;  %v7473_v3 = vld [vmem:[%s11028_s3 + $0x188] sm:$0xff]   ;;  %v1232_v54 = vrot.slane %v8083_v24, 4  ;;  %v833_v8 = vor.u32 %v831_v7, %v829_v38  ;;  %v847_v7 = vshrl.u32 %v8207_v46, 16 }
  0xa1   : > { %2120 = vmatprep.mubr.bf16.mxu1 %v718_v56  ;;  %1632 = vmatprep.mubr.bf16.mxu0 %v1229_v11  ;;  %v1235_v4 = vsel %vm1162_vm7, %v1228_v9, %v1234_v41  ;;  %v8472_v12 = vsel %vm706_vm3, %v825_v5, %v829_v38  ;;  %v7476_v9 = vld [vmem:[%s11028_s3 + $0x198] sm:$0xff]   ;;  %v843_v11 = vshll.u32 %v8207_v46, 16 }
  0xa2   : > { %2121 = vmatmul.mubr.bf16.vlgmr.msra.gmra.mrb[48].mxu1 %v8425_v42  ;;  %11269 = vst [vmem:[#allocation47_spill] sm:$0xff] %v8472_v12  ;;  %v1240_v20 = vrot.slane %v8472_v12, 4 }
  0xa3   : > { %2128 = vmatprep.mubr.bf16.mxu1 %v7981_v30  ;;  %2700 = vmatpush1.bf16.msra.mxu1 %v7471_v22  ;;  %v835_v30 = vshll.u32 %v8161_v53, 16  ;;  %v1233_v22 = vsel %vm1162_vm7, %v1226_v45, %v1232_v54  ;;  %v1238_v45 = vrot.slane %v8095_v52, 4  ;;  %v845_v38 = vrot.slane %v843_v11, 1 }
  0xa4   : > { %2701 = vmatprep.subr.bf16.mxu1 %v11248_v27  ;;  %v1241_v33 = vsel %vm1162_vm7, %v1234_v41, %v1240_v20 }
  0xa5   : > { %v837_v43 = vrot.slane %v835_v30, 1 }
  0xa7   : > { %2702 = vmatpush1.bf16.msra.mxu1 %v7473_v3  ;;  %v8494_v56 = vsel %vm706_vm3, %v833_v8, %v837_v43  ;;  %v7479_v3 = vld [vmem:[%s11028_s3 + $0x1a8] sm:$0xff]   ;;  %v859_v8 = vshll.u32 %v8273_v1, 16 }
  0xa8   : > { %1633 = vmatmul.mubr.bf16.gmra.mrb[40].mxu0 %v1227_v14  ;;  %2703 = vmatprep.subr.bf16.mxu1 %v11248_v27  ;;  %11270 = vst [vmem:[#allocation48_spill] sm:$0xff] %v8494_v56  ;;  %v1246_v41 = vrot.slane %v8494_v56, 4  ;;  %v1239_v14 = vsel %vm1162_vm7, %v1232_v54, %v1238_v45  ;;  %v1244_v54 = vrot.slane %v8150_v36, 4 }
  0xa9   : > { %1639 = vmatprep.mubr.bf16.mxu0 %v1235_v4 }
  0xaa   : > { %2129 = vmatmul.mubr.bf16.gmra.mrb[52].mxu1 %v7797_v55  ;;  %v1247_v4 = vsel %vm1162_vm7, %v1240_v20, %v1246_v41  ;;  %v1250_v20 = vrot.slane %v8161_v53, 4  ;;  %v1245_v11 = vsel %vm1162_vm7, %v1238_v45, %v1244_v54 }
  0xab   : > { %2135 = vmatprep.mubr.bf16.mxu1 %v7990_v39  ;;  %2704 = vmatpush1.bf16.msra.mxu1 %v7474_v47  ;;  %v839_v39 = vshrl.u32 %v8161_v53, 16  ;;  %v851_v47 = vshll.u32 %v8227_v63, 16 }
  0xac   : > { %2705 = vmatprep.subr.bf16.mxu1 %v11248_v27 }
  0xad   : > { %v841_v5 = vor.u32 %v839_v39, %v837_v43  ;;  %v7482_v43 = vld [vmem:[%s11028_s3 + $0x1b8] sm:$0xff]   ;;  %v861_v39 = vrot.slane %v859_v8, 1  ;;  %v867_v8 = vshll.u32 %v8283_v0, 16 }
  0xaf   : > { %2706 = vmatpush1.bf16.msra.mxu1 %v7476_v9  ;;  %v8514_v30 = vsel %vm706_vm3, %v841_v5, %v845_v38  ;;  %v7483_v5 = vld [vmem:[%s11028_s3 + $0x1c0] sm:$0xff]  }
  0xb0   : > { %1640 = vmatmul.mubr.bf16.gmra.mrb[44].mxu0 %v1233_v22  ;;  %2707 = vmatprep.subr.bf16.mxu1 %v11248_v27  ;;  %11271 = vst [vmem:[#allocation49_spill] sm:$0xff] %v8514_v30  ;;  %v1252_v9 = vrot.slane %v8514_v30, 4  ;;  %v855_v22 = vshrl.u32 %v8227_v63, 16 }
  0xb1   : > { %1646 = vmatprep.mubr.bf16.mxu0 %v1241_v33  ;;  %v849_v33 = vor.u32 %v847_v7, %v845_v38  ;;  %v7485_v38 = vld [vmem:[%s11028_s3 + $0x1c8] sm:$0xff]   ;;  %v1251_v7 = vsel %vm1162_vm7, %v1244_v54, %v1250_v20 }
  0xb2   : > { %2136 = vmatmul.mubr.bf16.gmra.mrb[56].mxu1 %v7802_v59  ;;  %v7480_v59 = vld [vmem:[%s11028_s3 + $0x1b0] sm:$0xff]  }
  0xb3   : > { %2142 = vmatprep.mubr.bf16.mxu1 %v8032_v31  ;;  %2708 = vmatpush1.bf16.msra.mxu1 %v7477_v23  ;;  %v853_v23 = vrot.slane %v851_v47, 1 }
  0xb4   : > { %2709 = vmatprep.subr.bf16.mxu1 %v11248_v27 }
  0xb7   : > { %2710 = vmatpush1.bf16.msra.mxu1 %v7479_v3  ;;  %v1253_v3 = vsel %vm1162_vm7, %v1246_v41, %v1252_v9  ;;  %v857_v41 = vor.u32 %v855_v22, %v853_v23  ;;  %v1256_v22 = vrot.slane %v8207_v46, 4 }
  0xb8   : > { %1647 = vmatmul.mubr.bf16.gmra.mrb[48].mxu0 %v1239_v14  ;;  %2711 = vmatprep.subr.bf16.mxu1 %v11248_v27  ;;  %v8535_v14 = vsel %vm706_vm3, %v849_v33, %v853_v23  ;;  %v869_v33 = vrot.slane %v867_v8, 1  ;;  %v7489_v23 = vld [vmem:[%s11028_s3 + $0x1d8] sm:$0xff]  }
  0xb9   : > { %1654 = vmatprep.mubr.bf16.mxu0 %v1247_v4  ;;  %11272 = vst [vmem:[#allocation50_spill] sm:$0xff] %v8535_v14  ;;  %v1258_v45 = vrot.slane %v8535_v14, 4  ;;  %v863_v4 = vshrl.u32 %v8273_v1, 16  ;;  %v8549_v47 = vsel %vm706_vm3, %v857_v41, %v861_v39  ;;  %v875_v41 = vshll.u32 %v8316_v19, 16 }
  0xba   : > { %2143 = vmatmul.mubr.bf16.gmra.mrb[60].mxu1 %v7805_v62  ;;  %11273 = vst [vmem:[#allocation51_spill] sm:$0xff] %v8549_v47  ;;  %v1264_v54 = vrot.slane %v8549_v47, 4 }
  0xbb   : > { %2150 = vmatprep.mubr.bf16.mxu1 %v8119_v10  ;;  %2712 = vmatpush1.bf16.msra.mxu1 %v7480_v59  ;;  %v1259_v59 = vsel %vm1162_vm7, %v1252_v9, %v1258_v45  ;;  %v865_v9 = vor.u32 %v863_v4, %v861_v39  ;;  %v7491_v39 = vld [vmem:[%s11028_s3 + $0x1e0] sm:$0xff]  }
  0xbc   : > { %2713 = vmatprep.subr.bf16.mxu1 %v11248_v27 }
  0xbf   : > { %2714 = vmatpush1.bf16.msra.mxu1 %v7482_v43  ;;  %v7487_v43 = vld [vmem:[%s11028_s3 + $0x1d0] sm:$0xff]  }
  0xc0   : > { %1655 = vmatmul.mubr.bf16.gmra.mrb[52].mxu0 %v1245_v11  ;;  %2715 = vmatprep.subr.bf16.mxu1 %v11248_v27  ;;  %v1257_v11 = vsel %vm1162_vm7, %v1250_v20, %v1256_v22  ;;  %v1262_v20 = vrot.slane %v8227_v63, 4 }
  0xc1   : > { %1661 = vmatprep.mubr.bf16.mxu0 %v1253_v3  ;;  %v8567_v3 = vsel %vm706_vm3, %v865_v9, %v869_v33 }
  0xc2   : > { %2151 = vmatmul.mubr.bf16.gmra.mrb[64].mxu1 %v7826_v13  ;;  %11274 = vst [vmem:[#allocation52_spill] sm:$0xff] %v8567_v3  ;;  %v1263_v8 = vsel %vm1162_vm7, %v1256_v22, %v1262_v20  ;;  %v7494_v22 = vld [vmem:[%s11028_s3 + $0x1f0] sm:$0xff]  }
  0xc3   : > { %2157 = vmatprep.mubr.bf16.mxu1 %v8175_v32  ;;  %2716 = vmatpush1.bf16.msra.mxu1 %v7483_v5  ;;  %v1265_v5 = vsel %vm1162_vm7, %v1258_v45, %v1264_v54  ;;  %v1270_v45 = vrot.slane %v8567_v3, 4 }
  0xc4   : > { %2717 = vmatprep.subr.bf16.mxu1 %v11248_v27 }
  0xc7   : > { %2718 = vmatpush1.bf16.msra.mxu1 %v7485_v38  ;;  %v871_v38 = vshrl.u32 %v8283_v0, 16 }
  0xc8   : > { %1662 = vmatmul.mubr.bf16.gmra.mrb[56].mxu0 %v1251_v7  ;;  %2719 = vmatprep.subr.bf16.mxu1 %v11248_v27  ;;  %v877_v7 = vrot.slane %v875_v41, 1  ;;  %v7496_v41 = vld [vmem:[%s11028_s3 + $0x1f8] sm:$0xff]  }
  0xc9   : > { %1668 = vmatprep.mubr.bf16.mxu0 %v1259_v59  ;;  %v873_v4 = vor.u32 %v871_v38, %v869_v33  ;;  %v7493_v59 = vld [vmem:[%s11028_s3 + $0x1e8] sm:$0xff]   ;;  %v1268_v33 = vrot.slane %v8273_v1, 4 }
  0xca   : > { %2158 = vmatmul.mubr.bf16.gmra.mrb[68].mxu1 %v7852_v37 }
  0xcb   : > { %2164 = vmatprep.mubr.bf16.mxu1 %v8249_v60  ;;  %2720 = vmatpush1.bf16.msra.mxu1 %v7487_v43  ;;  %v1271_v43 = vsel %vm1162_vm7, %v1264_v54, %v1270_v45  ;;  %v8586_v9 = vsel %vm706_vm3, %v873_v4, %v877_v7 }
  0xcc   : > { %2721 = vmatprep.subr.bf16.mxu1 %v11248_v27  ;;  %11275 = vst [vmem:[#allocation53_spill] sm:$0xff] %v8586_v9  ;;  %v1276_v54 = vrot.slane %v8586_v9, 4 }
  0xce   : > { %v1277_v4 = vsel %vm1162_vm7, %v1270_v45, %v1276_v54 }
  0xcf   : > { %2722 = vmatpush1.bf16.msra.mxu1 %v7489_v23  ;;  %v879_v23 = vshrl.u32 %v8316_v19, 16 }
  0xd0   : > { %1669 = vmatmul.mubr.bf16.gmra.mrb[60].mxu0 %v1257_v11  ;;  %2723 = vmatprep.subr.bf16.mxu1 %v11248_v27  ;;  %v883_v11 = vshll.u32 %v8324_v26, 16 }
  0xd1   : > { %1676 = vmatprep.mubr.bf16.mxu0 %v1265_v5  ;;  %v881_v5 = vor.u32 %v879_v23, %v877_v7  ;;  %v1274_v7 = vrot.slane %v8283_v0, 4 }
  0xd2   : > { %2165 = vmatmul.mubr.bf16.gmra.mrb[72].mxu1 %v7868_v50  ;;  %v885_v38 = vrot.slane %v883_v11, 1 }
  0xd3   : > { %2172 = vmatprep.mubr.bf16.mxu1 %v8297_v58  ;;  %2724 = vmatpush1.bf16.msra.mxu1 %v7491_v39  ;;  %v1269_v39 = vsel %vm1162_vm7, %v1262_v20, %v1268_v33  ;;  %v1275_v11 = vsel %vm1162_vm7, %v1268_v33, %v1274_v7 }
  0xd4   : > { %2725 = vmatprep.subr.bf16.mxu1 %v11248_v27 }
  0xd7   : > { %2726 = vmatpush1.bf16.msra.mxu1 %v7493_v59  ;;  %v8605_v59 = vsel %vm706_vm3, %v881_v5, %v885_v38 }
  0xd8   : > { %1677 = vmatmul.mubr.bf16.gmra.mrb[64].mxu0 %v1263_v8  ;;  %2727 = vmatprep.subr.bf16.mxu1 %v11248_v27  ;;  %11276 = vst [vmem:[#allocation54_spill] sm:$0xff] %v8605_v59  ;;  %v887_v8 = vshrl.u32 %v8324_v26, 16  ;;  %v1282_v23 = vrot.slane %v8605_v59, 4 }
  0xd9   : > { %1683 = vmatprep.mubr.bf16.mxu0 %v1271_v43  ;;  %v891_v43 = vshll.u32 %v8355_v61, 16 }
  0xda   : > { %2173 = vmatmul.mubr.bf16.gmra.mrb[76].mxu1 %v7896_v15  ;;  %v889_v20 = vor.u32 %v887_v8, %v885_v38 }
  0xdb   : > { %2179 = vmatprep.mubr.bf16.mxu1 %v8337_v21  ;;  %2728 = vmatpush1.bf16.msra.mxu1 %v7494_v22  ;;  %v893_v45 = vrot.slane %v891_v43, 1  ;;  %v1283_v22 = vsel %vm1162_vm7, %v1276_v54, %v1282_v23 }
  0xdc   : > { %2729 = vmatprep.subr.bf16.mxu1 %v11248_v27 }
  0xdd   : > { %v8616_v5 = vsel %vm706_vm3, %v889_v20, %v893_v45 }
  0xde   : > { %11277 = vst [vmem:[#allocation55_spill] sm:$0xff] %v8616_v5  ;;  %v1288_v38 = vrot.slane %v8616_v5, 4 }
  0xdf   : > { %2730 = vmatpush1.bf16.msra.mxu1 %v7496_v41  ;;  %v895_v41 = vshrl.u32 %v8355_v61, 16 }
  0xe0   : > { %1684 = vmatmul.mubr.bf16.gmra.mrb[68].mxu0 %v1269_v39  ;;  %v899_v39 = vshll.u32 %v8364_v51, 16  ;;  %v1289_v43 = vsel %vm1162_vm7, %v1282_v23, %v1288_v38 }
  0xe1   : > { %1690 = vmatprep.mubr.bf16.mxu0 %v1277_v4  ;;  %v1280_v4 = vrot.slane %v8316_v19, 4  ;;  %v897_v33 = vor.u32 %v895_v41, %v893_v45 }
  0xe2   : > { %2180 = vmatmul.mubr.bf16.gmra.mrb[80].mxu1 %v7912_v29  ;;  %v901_v8 = vrot.slane %v899_v39, 1 }
  0xe3   : > { %2186 = vmatprep.mubr.bf16.mxu1 %v8375_v57  ;;  %v1281_v54 = vsel %vm1162_vm7, %v1274_v7, %v1280_v4  ;;  %v1287_v23 = vsel %vm1162_vm7, %v1280_v4, %v1286_v40 }
  0xe4   : > { %v8627_v20 = vsel %vm706_vm3, %v897_v33, %v901_v8 }
  0xe5   : > { %11279 = vst [vmem:[#allocation10_spill] sm:$0xff] %v8627_v20  ;;  %v1294_v45 = vrot.slane %v8627_v20, 4 }
  0xe7   : > { %v1295_v39 = vsel %vm1162_vm7, %v1288_v38, %v1294_v45  ;;  %v1293_v38 = vsel %vm1162_vm7, %v1286_v40, %v1292_v16 }
  0xe8   : > { %1691 = vmatmul.mubr.bf16.gmra.mrb[72].mxu0 %v1275_v11  ;;  %v903_v11 = vshrl.u32 %v8364_v51, 16 }
  0xe9   : > { %1698 = vmatprep.mubr.bf16.mxu0 %v1283_v22  ;;  %v907_v22 = vshll.u32 %v8396_v35, 16 }
  0xea   : > { %2187 = vmatmul.mubr.bf16.gmra.mrb[84].mxu1 %v11278_v44  ;;  %v905_v7 = vor.u32 %v903_v11, %v901_v8 }
  0xeb   : > { %2194 = vmatprep.mubr.bf16.mxu1 %v8407_v6  ;;  %v909_v41 = vrot.slane %v907_v22, 1 }
  0xed   : > { %v8638_v33 = vsel %vm706_vm3, %v905_v7, %v909_v41 }
  0xee   : > { %11280 = vst [vmem:[#allocation56_spill] sm:$0xff] %v8638_v33  ;;  %v1300_v8 = vrot.slane %v8638_v33, 4 }
  0xf0   : > { %1699 = vmatmul.mubr.bf16.gmra.mrb[76].mxu0 %v1281_v54  ;;  %v911_v54 = vshrl.u32 %v8396_v35, 16  ;;  %v1301_v22 = vsel %vm1162_vm7, %v1294_v45, %v1300_v8 }
  0xf1   : > { %1705 = vmatprep.mubr.bf16.mxu0 %v1289_v43  ;;  %v915_v43 = vshll.u32 %v8398_v28, 16 }
  0xf2   : > { %2195 = vmatmul.mubr.bf16.gmra.mrb[88].mxu1 %v7949_v2  ;;  %v913_v4 = vor.u32 %v911_v54, %v909_v41 }
  0xf3   : > { %2201 = vmatprep.mubr.bf16.mxu1 %v8430_v18  ;;  %v8646_v11 = vrot.slane %v915_v43, 1 }
  0xf5   : > { %11281 = vst [vmem:[#allocation57_spill] sm:$0xff] %v8646_v11  ;;  %v8652_v7 = vsel %vm706_vm3, %v913_v4, %v8646_v11 }
  0xf6   : > { %11282 = vst [vmem:[#allocation58_spill] sm:$0xff] %v8652_v7 }
  0xf8   : > { %1706 = vmatmul.mubr.bf16.gmra.mrb[80].mxu0 %v1287_v23  ;;  %v1298_v23 = vrot.slane %v8364_v51, 4 }
  0xf9   : > { %1712 = vmatprep.mubr.bf16.mxu0 %v1295_v39  ;;  %v1306_v39 = vrot.slane %v8652_v7, 4 }
  0xfa   : > { %2202 = vmatmul.mubr.bf16.gmra.mrb[92].mxu1 %v8028_v25  ;;  %v1299_v41 = vsel %vm1162_vm7, %v1292_v16, %v1298_v23  ;;  %v11283_v16 = vrot.slane %v7797_v55, 1  ;;  %v11299_v25 = vld [vmem:[#allocation23_spill] sm:$0xff] }
  0xfb   : > { %2208 = vmatprep.mubr.bf16.mxu1 %v8446_v34  ;;  %v1307_v40 = vsel %vm1162_vm7, %v1300_v8, %v1306_v39 }
 0x100   : > { %1713 = vmatmul.mubr.bf16.gmra.mrb[84].mxu0 %v1293_v38  ;;  %v1304_v38 = vrot.slane %v8396_v35, 4  ;;  %v11286_v35 = vld [vmem:[#allocation5_spill] sm:$0xff] }
 0x101   : > { %1720 = vmatprep.mubr.bf16.mxu0 %v1301_v22  ;;  %v983_v22 = vrot.slane %v8425_v42, 1 }
 0x102   : > { %2209 = vmatmul.mubr.bf16.gmra.mrb[96].mxu1 %v8048_v48  ;;  %v7050_v54 = vpop.f32.mrb[0].mxu1  ;;  %v1305_v11 = vsel %vm1162_vm7, %v1298_v23, %v1304_v38  ;;  %v7486_v23 = vld [vmem:[%s11028_s3 + $0x208] sm:$0xff]  }
 0x103   : > { %2216 = vmatprep.mubr.bf16.mxu1 %v8454_v49  ;;  %v1769_v45 = vpop.f32.mrb[1].mxu1  ;;  %v985_v8 = vsel %vm982_vm0, %v983_v22, %v11283_v16  ;;  %v11284_v38 = vld [vmem:[#allocation3_spill] sm:$0xff]  ;;  %v7488_v16 = vld [vmem:[%s11028_s3 + $0x210] sm:$0xff]  }
 0x104   : > { %v7051_v43 = vpop.f32.mrb[2].mxu1  ;;  %v11295_v48 = vld [vmem:[#allocation19_spill] sm:$0xff] }
 0x105   : > { %v1772_v4 = vpop.f32.mrb[3].mxu1 }
 0x108   : > { %1721 = vmatmul.mubr.bf16.gmra.mrb[88].mxu0 %v1299_v41 }
 0x109   : > { %1727 = vmatprep.mubr.bf16.mxu0 %v1307_v40 }
 0x10a   : > { %2217 = vmatmul.mubr.bf16.gmra.mrb[100].mxu1 %v8083_v24  ;;  %v8665_v7 = vpop.f32.mrb[4].mxu1 }
 0x10b   : > { %2223 = vmatprep.mubr.bf16.mxu1 %v8472_v12  ;;  %v8670_v39 = vpop.f32.mrb[5].mxu1 }
 0x10c   : > { %v8672_v41 = vpop.f32.mrb[6].mxu1 }
 0x10d   : > { %v1787_v54 = vpop.f32.mrb[7].mxu1 }
 0x110   : > { %1728 = vmatmul.mubr.bf16.gmra.mrb[92].mxu0 %v1305_v11  ;;  %v11285_v11 = vld [vmem:[#allocation4_spill] sm:$0xff] }
 0x111   : > { %7112 = vmatprep.mubr.bf16.mxu0 %v985_v8 }
 0x112   : > { %2224 = vmatmul.mubr.bf16.gmra.mrb[104].mxu1 %v8095_v52  ;;  %v8676_v42 = vpop.f32.mrb[8].mxu1 }
 0x113   : > { %2230 = vmatprep.mubr.bf16.mxu1 %v8494_v56  ;;  %v1799_v55 = vpop.f32.mrb[9].mxu1 }
 0x114   : > { %v7059_v40 = vpop.f32.mrb[10].mxu1 }
 0x115   : > { %v8682_v22 = vpop.f32.mrb[11].mxu1 }
 0x118   : > { %7113 = vmatmul.mubr.bf16.vlgmr.msra.gmra.mrb[96].mxu0 %v11284_v38 }
 0x119   : > { %7161 = vmatpush3.bf16.msra.mxu0 %v8441_v17  ;;  %7116 = vmatprep.mubr.bf16.mxu0 %v11285_v11  ;;  %v7490_v17 = vld [vmem:[%s11028_s3 + $0x218] sm:$0xff]  }
 0x11a   : > { %2231 = vmatmul.mubr.bf16.gmra.mrb[108].mxu1 %v8150_v36  ;;  %7162 = vmatprep.subr.bf16.mxu0 %v7486_v23  ;;  %v7062_v8 = vpop.f32.mrb[12].mxu1 }
 0x11b   : > { %2238 = vmatprep.mubr.bf16.mxu1 %v8514_v30  ;;  %v8691_v55 = vpop.f32.mrb[13].mxu1 }
 0x11c   : > { %v8698_v11 = vpop.f32.mrb[14].mxu1 }
 0x11d   : > { %7163 = vmatpush3.bf16.msra.mxu0 %v7486_v23  ;;  %v8701_v33 = vpop.f32.mrb[15].mxu1  ;;  %v11287_v23 = vld [vmem:[#allocation6_spill] sm:$0xff] }
 0x11e   : > { %7164 = vmatprep.subr.bf16.mxu0 %v7488_v16 }
 0x120   : > { %7117 = vmatmul.mubr.bf16.gmra.mrb[100].mxu0 %v11286_v35 }
 0x121   : > { %v1560_v54 = vpop.f32.mrb[0].mxu0  ;;  %7120 = vmatprep.mubr.bf16.mxu0 %v11287_v23  ;;  %7165 = vmatpush3.bf16.msra.mxu0 %v7488_v16  ;;  %v11289_v16 = vld [vmem:[#allocation8_spill] sm:$0xff] }
 0x122   : > { %v8696_v40 = vadd.f32 %v1769_v45, %v1560_v54  ;;  %v1562_v38 = vpop.f32.mrb[1].mxu0  ;;  %2239 = vmatmul.mubr.bf16.gmra.mrb[112].mxu1 %v8161_v53  ;;  %7166 = vmatprep.subr.bf16.mxu0 %v7490_v17  ;;  %v7492_v45 = vld [vmem:[%s11028_s3 + $0x220] sm:$0xff]  }
 0x123   : > { %v1563_v51 = vpop.f32.mrb[2].mxu0  ;;  %2245 = vmatprep.mubr.bf16.mxu1 %v8535_v14  ;;  %v7495_v38 = vld [vmem:[%s11028_s3 + $0x228] sm:$0xff]  }
 0x124   : > { %v8704_v8 = vadd.f32 %v1772_v4, %v1563_v51  ;;  %v1565_v28 = vpop.f32.mrb[3].mxu0  ;;  %v11288_v4 = vld [vmem:[#allocation7_spill] sm:$0xff] }
 0x125   : > { %7167 = vmatpush3.bf16.msra.mxu0 %v7490_v17  ;;  %v7497_v17 = vld [vmem:[%s11028_s3 + $0x230] sm:$0xff]  }
 0x126   : > { %7168 = vmatprep.subr.bf16.mxu0 %v7492_v45 }
 0x128   : > { %7121 = vmatmul.mubr.bf16.gmra.mrb[104].mxu0 %v11288_v4 }
 0x129   : > { %v1568_v54 = vpop.f32.mrb[4].mxu0  ;;  %7124 = vmatprep.mubr.bf16.mxu0 %v11289_v16  ;;  %7169 = vmatpush3.bf16.msra.mxu0 %v7492_v45  ;;  %v8719_v14 = vpop.f32.mrb[16].mxu1  ;;  %v11291_v45 = vld [vmem:[#allocation11_spill] sm:$0xff] }
 0x12a   : > { %v1569_v51 = vpop.f32.mrb[5].mxu0  ;;  %2246 = vmatmul.mubr.bf16.gmra.mrb[116].mxu1 %v8207_v46  ;;  %7170 = vmatprep.subr.bf16.mxu0 %v7495_v38  ;;  %v8725_v54 = vpop.f32.mrb[17].mxu1 }
 0x12b   : > { %v1570_v28 = vpop.f32.mrb[6].mxu0  ;;  %2252 = vmatprep.mubr.bf16.mxu1 %v8549_v47  ;;  %v8727_v51 = vpop.f32.mrb[18].mxu1 }
 0x12c   : > { %v8716_v53 = vadd.f32 %v7051_v43, %v1570_v28  ;;  %v1572_v30 = vpop.f32.mrb[7].mxu0  ;;  %v1831_v36 = vpop.f32.mrb[19].mxu1  ;;  %v11290_v43 = vld [vmem:[#allocation9_spill] sm:$0xff] }
 0x12d   : > { %7171 = vmatpush3.bf16.msra.mxu0 %v7495_v38  ;;  %v7498_v30 = vld [vmem:[%s11028_s3 + $0x238] sm:$0xff]  }
 0x12e   : > { %7172 = vmatprep.subr.bf16.mxu0 %v7497_v17 }
 0x130   : > { %7125 = vmatmul.mubr.bf16.gmra.mrb[108].mxu0 %v11290_v43 }
 0x131   : > { %7128 = vmatprep.mubr.bf16.mxu0 %v11291_v45  ;;  %7173 = vmatpush3.bf16.msra.mxu0 %v7497_v17  ;;  %v8738_v56 = vpop.f32.mrb[20].mxu1  ;;  %v11292_v17 = vld [vmem:[#allocation12_spill] sm:$0xff] }
 0x132   : > { %v1575_v28 = vpop.f32.mrb[8].mxu0  ;;  %2253 = vmatmul.mubr.bf16.gmra.mrb[120].mxu1 %v8227_v63  ;;  %7174 = vmatprep.subr.bf16.mxu0 %v7498_v30  ;;  %v1843_v38 = vpop.f32.mrb[21].mxu1  ;;  %v11293_v63 = vld [vmem:[#allocation15_spill] sm:$0xff] }
 0x133   : > { %v8736_v47 = vadd.f32 %v8670_v39, %v1575_v28  ;;  %v1577_v46 = vpop.f32.mrb[9].mxu0  ;;  %2260 = vmatprep.mubr.bf16.mxu1 %v8567_v3  ;;  %v7071_v12 = vpop.f32.mrb[22].mxu1 }
 0x134   : > { %v1578_v36 = vpop.f32.mrb[10].mxu0  ;;  %v8741_v24 = vpop.f32.mrb[23].mxu1 }
 0x135   : > { %v1579_v52 = vpop.f32.mrb[11].mxu0  ;;  %7175 = vmatpush3.bf16.msra.mxu0 %v7498_v30 }
 0x136   : > { %4297 = vmatprep.subr.bf16.mxu0 %v11248_v27  ;;  %v11298_v27 = vld [vmem:[#allocation20_spill] sm:$0xff] }
 0x138   : > { %7129 = vmatmul.mubr.bf16.gmra.mrb[112].mxu0 %v11292_v17 }
 0x139   : > { %7132 = vmatprep.mubr.bf16.mxu0 %v11293_v63 }
 0x13a   : > { %2261 = vmatmul.mubr.bf16.gmra.mrb[124].mxu1 %v8273_v1  ;;  %v1582_v46 = vpop.f32.mrb[12].mxu0  ;;  %v11294_v1 = vld [vmem:[#allocation16_spill] sm:$0xff] }
 0x13b   : > { %2267 = vmatprep.mubr.bf16.mxu1 %v8586_v9  ;;  %v8749_v39 = vadd.f32 %v8665_v7, %v1582_v46  ;;  %v1584_v28 = vpop.f32.mrb[13].mxu0  ;;  %v7074_v12 = vpop.f32.mrb[24].mxu1 }
 0x13c   : > { %v1585_v52 = vpop.f32.mrb[14].mxu0  ;;  %v8754_v38 = vpop.f32.mrb[25].mxu1 }
 0x13d   : > { %v8752_v36 = vadd.f32 %v8672_v41, %v1585_v52  ;;  %v1587_v30 = vpop.f32.mrb[15].mxu0  ;;  %v8756_v3 = vpop.f32.mrb[26].mxu1 }
 0x13e   : > { %v8758_v49 = vpop.f32.mrb[27].mxu1 }
 0x140   : > { %7133 = vmatmul.mubr.bf16.gmra.mrb[116].mxu0 %v11294_v1 }
 0x141   : > { %7136 = vmatprep.mubr.bf16.mxu0 %v11295_v48 }
 0x142   : > { %2268 = vmatmul.mubr.bf16.gmra.mrb[128].mxu1 %v8283_v0 }
 0x143   : > { %2274 = vmatprep.mubr.bf16.mxu1 %v8605_v59 }
 0x145   : > { %v1590_v7 = vpop.f32.mrb[16].mxu0  ;;  %v8764_v28 = vpop.f32.mrb[28].mxu1 }
 0x146   : > { %v1591_v46 = vpop.f32.mrb[17].mxu0  ;;  %11296 = vst [vmem:[#allocation3_spill] sm:$0xff] %v8764_v28  ;;  %v8766_v52 = vpop.f32.mrb[29].mxu1  ;;  %v11302_v28 = vld [vmem:[#allocation27_spill] sm:$0xff] }
 0x147   : > { %v1592_v41 = vpop.f32.mrb[18].mxu0  ;;  %v8771_v9 = vpop.f32.mrb[30].mxu1 }
 0x148   : > { %v8769_v12 = vadd.f32 %v8682_v22, %v1592_v41  ;;  %v1594_v30 = vpop.f32.mrb[19].mxu0  ;;  %11297 = vst [vmem:[#allocation4_spill] sm:$0xff] %v8771_v9  ;;  %7137 = vmatmul.mubr.bf16.gmra.mrb[120].mxu0 %v11298_v27  ;;  %v1875_v34 = vpop.f32.mrb[31].mxu1  ;;  %v11301_v22 = vld [vmem:[#allocation24_spill] sm:$0xff] }
 0x149   : > { %7140 = vmatprep.mubr.bf16.mxu0 %v11299_v25 }
 0x14a   : > { %2275 = vmatmul.mubr.bf16.gmra.mrb[132].mxu1 %v8316_v19 }
 0x14b   : > { %2282 = vmatprep.mubr.bf16.mxu1 %v8616_v5  ;;  %v11304_v5 = vld [vmem:[#allocation28_spill] sm:$0xff] }
 0x14f   : > { %v8780_v0 = vpop.f32.mrb[32].mxu1 }
 0x150   : > { %v1597_v7 = vpop.f32.mrb[20].mxu0  ;;  %11300 = vst [vmem:[#allocation5_spill] sm:$0xff] %v8780_v0  ;;  %7141 = vmatmul.mubr.bf16.gmra.mrb[124].mxu0 %v11301_v22  ;;  %v1887_v30 = vpop.f32.mrb[33].mxu1  ;;  %v11305_v0 = vld [vmem:[#allocation31_spill] sm:$0xff] }
 0x151   : > { %v8778_v46 = vadd.f32 %v8676_v42, %v1597_v7  ;;  %v1599_v59 = vpop.f32.mrb[21].mxu0  ;;  %7144 = vmatprep.mubr.bf16.mxu0 %v11302_v28  ;;  %v7083_v34 = vpop.f32.mrb[34].mxu1 }
 0x152   : > { %v1600_v41 = vpop.f32.mrb[22].mxu0  ;;  %2283 = vmatmul.mubr.bf16.gmra.mrb[136].mxu1 %v8324_v26  ;;  %v8785_v19 = vpop.f32.mrb[35].mxu1 }
 0x153   : > { %v1601_v9 = vpop.f32.mrb[23].mxu0  ;;  %11303 = vst [vmem:[#allocation6_spill] sm:$0xff] %v8785_v19  ;;  %2289 = vmatprep.mubr.bf16.mxu1 %v8627_v20 }
 0x158   : > { %7145 = vmatmul.mubr.bf16.gmra.mrb[128].mxu0 %v11304_v5  ;;  %v1604_v42 = vpop.f32.mrb[24].mxu0 }
 0x159   : > { %v8790_v59 = vadd.f32 %v8691_v55, %v1604_v42  ;;  %v1606_v7 = vpop.f32.mrb[25].mxu0  ;;  %7148 = vmatprep.mubr.bf16.mxu0 %v11305_v0  ;;  %v11309_v55 = vld [vmem:[#allocation32_spill] sm:$0xff] }
 0x15a   : > { %v7086_v41 = vpop.f32.mrb[36].mxu1  ;;  %2290 = vmatmul.mubr.bf16.gmra.mrb[140].mxu1 %v8355_v61  ;;  %v1607_v9 = vpop.f32.mrb[26].mxu0  ;;  %v11310_v7 = vld [vmem:[#allocation35_spill] sm:$0xff] }
 0x15b   : > { %v8794_v30 = vpop.f32.mrb[37].mxu1  ;;  %2731 = vmatprep.mubr.bf16.mxu1 %v8032_v31  ;;  %v8798_v34 = vadd.f32 %v8701_v33, %v1607_v9  ;;  %v1609_v20 = vpop.f32.mrb[27].mxu0 }
 0x15c   : > { %11306 = vst [vmem:[#allocation7_spill] sm:$0xff] %v8794_v30  ;;  %v8800_v26 = vpop.f32.mrb[38].mxu1  ;;  %v11315_v30 = vld [vmem:[#allocation39_spill] sm:$0xff] }
 0x15d   : > { %11307 = vst [vmem:[#allocation8_spill] sm:$0xff] %v8800_v26  ;;  %v8802_v19 = vpop.f32.mrb[39].mxu1 }
 0x15e   : > { %11308 = vst [vmem:[#allocation9_spill] sm:$0xff] %v8802_v19 }
 0x160   : > { %7149 = vmatmul.mubr.bf16.gmra.mrb[132].mxu0 %v11309_v55 }
 0x161   : > { %v1612_v42 = vpop.f32.mrb[28].mxu0  ;;  %7152 = vmatprep.mubr.bf16.mxu0 %v11310_v7 }
 0x162   : > { %2732 = vmatmul.mubr.bf16.vlgmr.msra.gmra.mrb[144].mxu1 %v7805_v62  ;;  %v1613_v41 = vpop.f32.mrb[29].mxu0  ;;  %v11314_v42 = vld [vmem:[#allocation36_spill] sm:$0xff] }
 0x163   : > { %v8807_v61 = vpop.f32.mrb[40].mxu1  ;;  %2739 = vmatprep.mubr.bf16.mxu1 %v8119_v10  ;;  %v1614_v31 = vpop.f32.mrb[30].mxu0 }
 0x164   : > { %11311 = vst [vmem:[#allocation11_spill] sm:$0xff] %v8807_v61  ;;  %v8810_v33 = vpop.f32.mrb[41].mxu1  ;;  %v8813_v20 = vadd.f32 %v8698_v11, %v1614_v31  ;;  %v1616_v9 = vpop.f32.mrb[31].mxu0 }
 0x165   : > { %11312 = vst [vmem:[#allocation12_spill] sm:$0xff] %v8810_v33  ;;  %v8815_v26 = vpop.f32.mrb[42].mxu1  ;;  %v11316_v33 = vld [vmem:[#allocation40_spill] sm:$0xff] }
 0x166   : > { %11313 = vst [vmem:[#allocation15_spill] sm:$0xff] %v8815_v26  ;;  %v1919_v19 = vpop.f32.mrb[43].mxu1 }
 0x168   : > { %7153 = vmatmul.mubr.bf16.gmra.mrb[136].mxu0 %v11314_v42 }
 0x169   : > { %7156 = vmatprep.mubr.bf16.mxu0 %v11315_v30 }
 0x16a   : > { %2740 = vmatmul.mubr.bf16.gmra.mrb[148].mxu1 %v7826_v13 }
 0x16b   : > { %2746 = vmatprep.mubr.bf16.mxu1 %v8175_v32  ;;  %v1619_v62 = vpop.f32.mrb[32].mxu0 }
 0x16c   : > { %v8821_v10 = vpop.f32.mrb[44].mxu1  ;;  %v8824_v41 = vadd.f32 %v8725_v54, %v1619_v62  ;;  %v1621_v11 = vpop.f32.mrb[33].mxu0 }
 0x16d   : > { %v1931_v31 = vpop.f32.mrb[45].mxu1  ;;  %v1622_v9 = vpop.f32.mrb[34].mxu0 }
 0x16e   : > { %v7095_v61 = vpop.f32.mrb[46].mxu1  ;;  %v1623_v26 = vpop.f32.mrb[35].mxu0 }
 0x16f   : > { %v8826_v19 = vpop.f32.mrb[47].mxu1 }
 0x170   : > { %7157 = vmatmul.mubr.bf16.gmra.mrb[140].mxu0 %v11316_v33 }
 0x171   : > { %7176 = vmatprep.mubr.bf16.mxu0 %v11286_v35 }
 0x172   : > { %2747 = vmatmul.mubr.bf16.gmra.mrb[152].mxu1 %v7852_v37 }
 0x173   : > { %2753 = vmatprep.mubr.bf16.mxu1 %v8249_v60  ;;  %v1626_v13 = vpop.f32.mrb[36].mxu0 }
 0x174   : > { %v8833_v32 = vadd.f32 %v8719_v14, %v1626_v13  ;;  %v1628_v54 = vpop.f32.mrb[37].mxu0 }
 0x175   : > { %v2122_v62 = vpop.f32.mrb[48].mxu1  ;;  %v1629_v11 = vpop.f32.mrb[38].mxu0 }
 0x176   : > { %v8836_v61 = vadd.f32 %v2122_v62, %v8696_v40  ;;  %v2124_v26 = vpop.f32.mrb[49].mxu1  ;;  %v8839_v31 = vadd.f32 %v8727_v51, %v1629_v11  ;;  %v1631_v9 = vpop.f32.mrb[39].mxu0 }
 0x177   : > { %v2125_v35 = vpop.f32.mrb[50].mxu1 }
 0x178   : > { %v8842_v37 = vadd.f32 %v2125_v35, %v8704_v8  ;;  %v2127_v60 = vpop.f32.mrb[51].mxu1  ;;  %7177 = vmatmul.mubr.bf16.vlgmr.msra.gmra.mrb[144].mxu0 %v11287_v23 }
 0x179   : > { %7180 = vmatprep.mubr.bf16.mxu0 %v11288_v4 }
 0x17a   : > { %2754 = vmatmul.mubr.bf16.gmra.mrb[156].mxu1 %v7868_v50 }
 0x17b   : > { %2761 = vmatprep.mubr.bf16.mxu1 %v8297_v58  ;;  %v1634_v14 = vpop.f32.mrb[40].mxu0 }
 0x17c   : > { %v1635_v40 = vpop.f32.mrb[41].mxu0 }
 0x17d   : > { %v2130_v13 = vpop.f32.mrb[52].mxu1  ;;  %v1636_v54 = vpop.f32.mrb[42].mxu0 }
 0x17e   : > { %v2131_v51 = vpop.f32.mrb[53].mxu1  ;;  %v8849_v62 = vadd.f32 %v8741_v24, %v1636_v54  ;;  %v1638_v11 = vpop.f32.mrb[43].mxu0 }
 0x17f   : > { %v2132_v8 = vpop.f32.mrb[54].mxu1 }
 0x180   : > { %v8852_v26 = vadd.f32 %v2132_v8, %v8716_v53  ;;  %v2134_v23 = vpop.f32.mrb[55].mxu1  ;;  %7181 = vmatmul.mubr.bf16.gmra.mrb[148].mxu0 %v11289_v16 }
 0x181   : > { %7184 = vmatprep.mubr.bf16.mxu0 %v11290_v43 }
 0x182   : > { %2762 = vmatmul.mubr.bf16.gmra.mrb[160].mxu1 %v7896_v15 }
 0x183   : > { %2768 = vmatprep.mubr.bf16.mxu1 %v8337_v21  ;;  %v1641_v50 = vpop.f32.mrb[44].mxu0 }
 0x184   : > { %v8859_v58 = vadd.f32 %v8738_v56, %v1641_v50  ;;  %v1643_v24 = vpop.f32.mrb[45].mxu0 }
 0x185   : > { %v2137_v4 = vpop.f32.mrb[56].mxu1  ;;  %v1644_v9 = vpop.f32.mrb[46].mxu0 }
 0x186   : > { %v8862_v35 = vadd.f32 %v2137_v4, %v8736_v47  ;;  %v2139_v53 = vpop.f32.mrb[57].mxu1  ;;  %v1645_v60 = vpop.f32.mrb[47].mxu0 }
 0x187   : > { %v2140_v14 = vpop.f32.mrb[58].mxu1  ;;  %v11319_v60 = vmov 0  }
 0x188   : > { %v2141_v16 = vpop.f32.mrb[59].mxu1  ;;  %7185 = vmatmul.mubr.bf16.gmra.mrb[152].mxu0 %v11291_v45  ;;  %v11320_v14 = vld [vmem:[#allocation3_spill] sm:$0xff] }
 0x189   : > { %7188 = vmatprep.mubr.bf16.mxu0 %v11292_v17 }
 0x18a   : > { %2769 = vmatmul.mubr.bf16.gmra.mrb[164].mxu1 %v7912_v29 }
 0x18b   : > { %2775 = vmatprep.mubr.bf16.mxu1 %v8375_v57  ;;  %v1648_v15 = vpop.f32.mrb[48].mxu0 }
 0x18c   : > { %v8869_v21 = vadd.f32 %v8754_v38, %v1648_v15  ;;  %v1650_v56 = vpop.f32.mrb[49].mxu0 }
 0x18d   : > { %v2144_v43 = vpop.f32.mrb[60].mxu1  ;;  %v1651_v47 = vpop.f32.mrb[50].mxu0 }
 0x18e   : > { %v8872_v40 = vadd.f32 %v2144_v43, %v8749_v39  ;;  %v2146_v13 = vpop.f32.mrb[61].mxu1  ;;  %v8875_v54 = vadd.f32 %v8758_v49, %v1651_v47  ;;  %v1653_v45 = vpop.f32.mrb[51].mxu0  ;;  %v7501_v43 = vld [vmem:[%s11031_s6 + $0xc8] sm:$0xff]  }
 0x18f   : > { %v2147_v17 = vpop.f32.mrb[62].mxu1  ;;  %v11321_v13 = vld [vmem:[#allocation4_spill] sm:$0xff] }
 0x190   : > { %v8878_v29 = vadd.f32 %v2147_v17, %v8752_v36  ;;  %v2149_v57 = vpop.f32.mrb[63].mxu1  ;;  %7189 = vmatmul.mubr.bf16.gmra.mrb[156].mxu0 %v11293_v63 }
 0x191   : > { %7192 = vmatprep.mubr.bf16.mxu0 %v11294_v1 }
 0x192   : > { %2776 = vmatmul.mubr.bf16.gmra.mrb[168].mxu1 %v11278_v44 }
 0x193   : > { %2783 = vmatprep.mubr.bf16.mxu1 %v8407_v6  ;;  %v1656_v39 = vpop.f32.mrb[52].mxu0 }
 0x194   : > { %v1657_v38 = vpop.f32.mrb[53].mxu0 }
 0x195   : > { %v2152_v51 = vpop.f32.mrb[64].mxu1  ;;  %v1658_v11 = vpop.f32.mrb[54].mxu0 }
 0x196   : > { %v2153_v49 = vpop.f32.mrb[65].mxu1  ;;  %v8885_v8 = vadd.f32 %v8756_v3, %v1658_v11  ;;  %v1660_v23 = vpop.f32.mrb[55].mxu0  ;;  %v11322_v51 = vld [vmem:[#allocation14_spill] sm:$0xff] }
 0x197   : > { %v2154_v36 = vpop.f32.mrb[66].mxu1  ;;  %v11323_v11 = vld [vmem:[#allocation46_spill] sm:$0xff] }
 0x198   : > { %v8888_v50 = vadd.f32 %v2154_v36, %v8769_v12  ;;  %v2156_v63 = vpop.f32.mrb[67].mxu1  ;;  %7193 = vmatmul.mubr.bf16.gmra.mrb[160].mxu0 %v11295_v48  ;;  %v7499_v48 = vld [vmem:[%s11031_s6 + $0x140] sm:$0xff]  }
 0x199   : > { %7196 = vmatprep.mubr.bf16.mxu0 %v11298_v27  ;;  %7224 = vmatprep.subr.bf16.mxu1 %v7499_v48  ;;  %v11324_v63 = vld [vmem:[#allocation6_spill] sm:$0xff] }
 0x19a   : > { %2784 = vmatmul.mubr.bf16.gmra.mrb[172].mxu1 %v7949_v2 }
 0x19b   : > { %2790 = vmatprep.mubr.bf16.mxu1 %v8430_v18  ;;  %v1663_v1 = vpop.f32.mrb[56].mxu0  ;;  %v7500_v18 = vld [vmem:[%s11031_s6 + $0xc0] sm:$0xff]   ;;  %7225 = vmatpush3.bf16.msra.mxu1 %v7499_v48 }
 0x19c   : > { %v8895_v44 = vadd.f32 %v8766_v52, %v1663_v1  ;;  %v1665_v6 = vpop.f32.mrb[57].mxu0  ;;  %v11317_v52 = vld [vmem:[#allocation13_spill] sm:$0xff]  ;;  %4298 = vmatpush1.bf16.msra.mxu0 %v7500_v18  ;;  %v7505_v48 = vld [vmem:[%s11031_s6 + $0xe0] sm:$0xff]  }
 0x19d   : > { %v2159_v3 = vpop.f32.mrb[68].mxu1  ;;  %v1666_v24 = vpop.f32.mrb[58].mxu0  ;;  %4299 = vmatprep.subr.bf16.mxu0 %v11319_v60 }
 0x19e   : > { %v8898_v4 = vadd.f32 %v2159_v3, %v8778_v46  ;;  %v2161_v12 = vpop.f32.mrb[69].mxu1  ;;  %v1667_v9 = vpop.f32.mrb[59].mxu0  ;;  %v11318_v46 = vld [vmem:[#allocation45_spill] sm:$0xff]  ;;  %v7504_v3 = vld [vmem:[%s11031_s6 + $0x148] sm:$0xff]  }
 0x19f   : > { %v2162_v27 = vpop.f32.mrb[70].mxu1  ;;  %7226 = vmatprep.subr.bf16.mxu1 %v7504_v3 }
 0x1a0   : > { %v2163_v2 = vpop.f32.mrb[71].mxu1  ;;  %7197 = vmatmul.mubr.bf16.gmra.mrb[164].mxu0 %v11299_v25  ;;  %v11325_v27 = vld [vmem:[#allocation17_spill] sm:$0xff]  ;;  %7227 = vmatpush3.bf16.msra.mxu1 %v7504_v3 }
 0x1a1   : > { %7200 = vmatprep.mubr.bf16.mxu0 %v11301_v22  ;;  %4300 = vmatpush1.bf16.msra.mxu0 %v7501_v43  ;;  %v11326_v2 = vld [vmem:[#allocation47_spill] sm:$0xff]  ;;  %v7573_v43 = vld [vmem:[%s11026_s1] ss:$0 sm:$0xff] }
 0x1a2   : > { %2791 = vmatmul.mubr.bf16.gmra.mrb[176].mxu1 %v11317_v52  ;;  %4301 = vmatprep.subr.bf16.mxu0 %v11319_v60  ;;  %v11327_v52 = vld [vmem:[#allocation5_spill] sm:$0xff] }
 0x1a3   : > { %2797 = vmatprep.mubr.bf16.mxu1 %v11318_v46  ;;  %v1670_v53 = vpop.f32.mrb[60].mxu0 }
 0x1a4   : > { %v8912_v16 = vadd.f32 %v11320_v14, %v1670_v53  ;;  %v1672_v25 = vpop.f32.mrb[61].mxu0  ;;  %v7506_v14 = vld [vmem:[%s11031_s6 + $0xe8] sm:$0xff]  }
 0x1a5   : > { %v2166_v15 = vpop.f32.mrb[72].mxu1  ;;  %v1673_v56 = vpop.f32.mrb[62].mxu0 }
 0x1a6   : > { %v8918_v22 = vadd.f32 %v2166_v15, %v8790_v59  ;;  %v2168_v47 = vpop.f32.mrb[73].mxu1  ;;  %v8921_v45 = vadd.f32 %v11321_v13, %v1673_v56  ;;  %v1675_v17 = vpop.f32.mrb[63].mxu0  ;;  %v7502_v59 = vld [vmem:[%s11031_s6 + $0xd0] sm:$0xff]  }
 0x1a7   : > { %v2169_v57 = vpop.f32.mrb[74].mxu1  ;;  %4302 = vmatpush1.bf16.msra.mxu0 %v7502_v59 }
 0x1a8   : > { %v8924_v39 = vadd.f32 %v2169_v57, %v8798_v34  ;;  %v2171_v38 = vpop.f32.mrb[75].mxu1  ;;  %7201 = vmatmul.mubr.bf16.gmra.mrb[168].mxu0 %v11302_v28  ;;  %4303 = vmatprep.subr.bf16.mxu0 %v11319_v60  ;;  %v11328_v57 = vld [vmem:[#allocation18_spill] sm:$0xff] }
 0x1a9   : > { %7204 = vmatprep.mubr.bf16.mxu0 %v11304_v5  ;;  %v7503_v5 = vld [vmem:[%s11031_s6 + $0xd8] sm:$0xff]   ;;  %v7574_v38 = vld [vmem:[%s11027_s2] ss:$0 sm:$0xff] }
 0x1aa   : > { %2798 = vmatmul.mubr.bf16.gmra.mrb[180].mxu1 %v11322_v51  ;;  %v11329_v51 = vld [vmem:[#allocation48_spill] sm:$0xff] }
 0x1ab   : > { %2805 = vmatprep.mubr.bf16.mxu1 %v11323_v11  ;;  %v1678_v49 = vpop.f32.mrb[64].mxu0  ;;  %4304 = vmatpush1.bf16.msra.mxu0 %v7503_v5 }
 0x1ac   : > { %v1679_v23 = vpop.f32.mrb[65].mxu0  ;;  %4305 = vmatprep.subr.bf16.mxu0 %v11319_v60 }
 0x1ad   : > { %v2174_v34 = vpop.f32.mrb[76].mxu1  ;;  %v1680_v36 = vpop.f32.mrb[66].mxu0 }
 0x1ae   : > { %v2175_v28 = vpop.f32.mrb[77].mxu1  ;;  %v8936_v1 = vadd.f32 %v11324_v63, %v1680_v36  ;;  %v1682_v6 = vpop.f32.mrb[67].mxu0  ;;  %v11331_v63 = vld [vmem:[#allocation9_spill] sm:$0xff] }
 0x1af   : > { %v2176_v24 = vpop.f32.mrb[78].mxu1  ;;  %4306 = vmatpush1.bf16.msra.mxu0 %v7505_v48 }
 0x1b0   : > { %v8945_v12 = vadd.f32 %v2176_v24, %v8813_v20  ;;  %v2178_v9 = vpop.f32.mrb[79].mxu1  ;;  %7205 = vmatmul.mubr.bf16.gmra.mrb[172].mxu0 %v11305_v0  ;;  %v388_v20 = vld [vmem:[%s7730_s13 + $0x1b0] sm:$0xff]  ;;  %4307 = vmatprep.subr.bf16.mxu0 %v11319_v60  ;;  %v7508_v24 = vld [vmem:[%s11031_s6 + $0xf8] sm:$0xff]  }
 0x1b1   : > { %7208 = vmatprep.mubr.bf16.mxu0 %v11309_v55  ;;  %v450_v47 = vmul.f32 %v7573_v43, %v388_v20  ;;  %v7510_v43 = vld [vmem:[%s11031_s6 + $0x100] sm:$0xff]  }
 0x1b2   : > { %2806 = vmatmul.mubr.bf16.gmra.mrb[184].mxu1 %v11325_v27 }
 0x1b3   : > { %2812 = vmatprep.mubr.bf16.mxu1 %v11326_v2  ;;  %v1685_v18 = vpop.f32.mrb[68].mxu0  ;;  %4308 = vmatpush1.bf16.msra.mxu0 %v7506_v14  ;;  %v512_v59 = vadd.f32 %v7574_v38, %v450_v47  ;;  %v11337_v38 = vld [vmem:[#allocation22_spill] sm:$0xff] }
 0x1b4   : > { %v8957_v46 = vadd.f32 %v11327_v52, %v1685_v18  ;;  %v1687_v0 = vpop.f32.mrb[69].mxu0  ;;  %4309 = vmatprep.subr.bf16.mxu0 %v11319_v60  ;;  %v11333_v18 = vld [vmem:[#allocation49_spill] sm:$0xff] }
 0x1b5   : > { %v2181_v53 = vpop.f32.mrb[80].mxu1  ;;  %v1688_v55 = vpop.f32.mrb[70].mxu0  ;;  %v622_v3 = vmul.f32 0.1, %v512_v59  ;;  %vm567_vm2 = vcmp.ge.f32.partialorder %v512_v59, 0.0 }
 0x1b6   : > { %v8963_v25 = vadd.f32 %v2181_v53, %v8824_v41  ;;  %v2183_v15 = vpop.f32.mrb[81].mxu1  ;;  %v1689_v56 = vpop.f32.mrb[71].mxu0  ;;  %v7507_v41 = vld [vmem:[%s11031_s6 + $0xf0] sm:$0xff]  }
 0x1b7   : > { %v2184_v13 = vpop.f32.mrb[82].mxu1  ;;  %4310 = vmatpush1.bf16.msra.mxu0 %v7507_v41  ;;  %v677_v2 = vsel %vm567_vm2, %v512_v59, %v622_v3  ;;  %v11336_v41 = vld [vmem:[#allocation44_spill] sm:$0xff]  ;;  %v11338_v59 = vld [vmem:[#allocation50_spill] sm:$0xff] }
 0x1b8   : > { %v2185_v17 = vpop.f32.mrb[83].mxu1  ;;  %7209 = vmatmul.mubr.bf16.gmra.mrb[176].mxu0 %v11310_v7  ;;  %v11330_v7 = vld [vmem:[#allocation7_spill] sm:$0xff]  ;;  %4311 = vmatprep.subr.bf16.mxu0 %v11319_v60  ;;  %v9004_v55 = vpack.c.bf16 %v677_v2, %v677_v2 }
 0x1b9   : > { %7212 = vmatprep.mubr.bf16.mxu0 %v11314_v42  ;;  %v11335_v17 = vld [vmem:[#allocation43_spill] sm:$0xff] }
 0x1ba   : > { %2813 = vmatmul.mubr.bf16.gmra.mrb[188].mxu1 %v11328_v57  ;;  %v1036_v57 = vrot.slane %v9004_v55, 1  ;;  %v11343_v2 = vld [vmem:[#allocation51_spill] sm:$0xff] }
 0x1bb   : > { %2819 = vmatprep.mubr.bf16.mxu1 %v11329_v51  ;;  %v1692_v11 = vpop.f32.mrb[72].mxu0  ;;  %4312 = vmatpush1.bf16.msra.mxu0 %v7508_v24 }
 0x1bc   : > { %v8981_v49 = vadd.f32 %v11330_v7, %v1692_v11  ;;  %v1694_v42 = vpop.f32.mrb[73].mxu0  ;;  %4313 = vmatprep.subr.bf16.mxu0 %v11319_v60  ;;  %v11339_v11 = vld [vmem:[#allocation12_spill] sm:$0xff] }
 0x1bd   : > { %v2188_v23 = vpop.f32.mrb[84].mxu1  ;;  %v1695_v34 = vpop.f32.mrb[74].mxu0 }
 0x1be   : > { %v8984_v36 = vadd.f32 %v2188_v23, %v8833_v32  ;;  %v2190_v28 = vpop.f32.mrb[85].mxu1  ;;  %v8987_v6 = vadd.f32 %v11331_v63, %v1695_v34  ;;  %v1697_v5 = vpop.f32.mrb[75].mxu0  ;;  %v11332_v32 = vld [vmem:[#allocation21_spill] sm:$0xff]  ;;  %v11340_v34 = vld [vmem:[#allocation42_spill] sm:$0xff] }
 0x1bf   : > { %v2191_v9 = vpop.f32.mrb[86].mxu1  ;;  %4314 = vmatpush1.bf16.msra.mxu0 %v7510_v43  ;;  %v11341_v28 = vrot.slane %v11340_v34, 1 }
 0x1c0   : > { %v8994_v48 = vadd.f32 %v2191_v9, %v8839_v31  ;;  %v2193_v27 = vpop.f32.mrb[87].mxu1  ;;  %7213 = vmatmul.mubr.bf16.gmra.mrb[180].mxu0 %v11315_v30  ;;  %v7509_v31 = vld [vmem:[%s11031_s6 + $0x150] sm:$0xff]   ;;  %4315 = vmatprep.subr.bf16.mxu0 %v11319_v60 }
 0x1c1   : > { %7216 = vmatprep.mubr.bf16.mxu0 %v11316_v33  ;;  %v11334_v33 = vld [vmem:[#allocation8_spill] sm:$0xff]  ;;  %7228 = vmatprep.subr.bf16.mxu1 %v7509_v31  ;;  %v1037_v63 = vsel %vm982_vm0, %v11341_v28, %v1036_v57  ;;  %v11346_v57 = vld [vmem:[#allocation26_spill] sm:$0xff] }
 0x1c2   : > { %2820 = vmatmul.mubr.bf16.gmra.mrb[192].mxu1 %v11332_v32  ;;  %v11342_v32 = vld [vmem:[#allocation25_spill] sm:$0xff] }
 0x1c3   : > { %2827 = vmatprep.mubr.bf16.mxu1 %v11333_v18  ;;  %v1700_v20 = vpop.f32.mrb[76].mxu0  ;;  %7229 = vmatpush3.bf16.msra.mxu1 %v7509_v31 }
 0x1c4   : > { %v1701_v52 = vpop.f32.mrb[77].mxu0  ;;  %v11344_v20 = vld [vmem:[#allocation11_spill] sm:$0xff] }
 0x1c5   : > { %v2196_v0 = vpop.f32.mrb[88].mxu1  ;;  %v1702_v53 = vpop.f32.mrb[78].mxu0 }
 0x1c6   : > { %v2197_v30 = vpop.f32.mrb[89].mxu1  ;;  %v9007_v14 = vadd.f32 %v11334_v33, %v1702_v53  ;;  %v1704_v15 = vpop.f32.mrb[79].mxu0  ;;  %v11345_v33 = vld [vmem:[#allocation15_spill] sm:$0xff] }
 0x1c7   : > { %v2198_v56 = vpop.f32.mrb[90].mxu1 }
 0x1c8   : > { %v9013_v47 = vadd.f32 %v2198_v56, %v8849_v62  ;;  %v2200_v13 = vpop.f32.mrb[91].mxu1  ;;  %7217 = vmatmul.mubr.bf16.gmra.mrb[184].mxu0 %v11335_v17 }
 0x1c9   : > { %7220 = vmatprep.mubr.bf16.mxu0 %v11336_v41  ;;  %v7511_v41 = vld [vmem:[%s11031_s6 + $0x108] sm:$0xff]  }
 0x1ca   : > { %2828 = vmatmul.mubr.bf16.gmra.mrb[196].mxu1 %v11337_v38  ;;  %4316 = vmatpush1.bf16.msra.mxu0 %v7511_v41  ;;  %v11347_v38 = vld [vmem:[#allocation52_spill] sm:$0xff] }
 0x1cb   : > { %2834 = vmatprep.mubr.bf16.mxu1 %v11338_v59  ;;  %v1707_v51 = vpop.f32.mrb[80].mxu0  ;;  %4317 = vmatprep.subr.bf16.mxu0 %v11319_v60 }
 0x1cc   : > { %v9022_v7 = vadd.f32 %v11339_v11, %v1707_v51  ;;  %v1709_v62 = vpop.f32.mrb[81].mxu0 }
 0x1cd   : > { %v2203_v42 = vpop.f32.mrb[92].mxu1  ;;  %v1710_v23 = vpop.f32.mrb[82].mxu0 }
 0x1ce   : > { %v9028_v5 = vadd.f32 %v2203_v42, %v8859_v58  ;;  %v2205_v3 = vpop.f32.mrb[93].mxu1  ;;  %v1711_v24 = vpop.f32.mrb[83].mxu0 }
 0x1cf   : > { %v2206_v9 = vpop.f32.mrb[94].mxu1  ;;  %v7513_v24 = vld [vmem:[%s11031_s6 + $0x118] sm:$0xff]  }
 0x1d0   : > { %v2207_v27 = vpop.f32.mrb[95].mxu1  ;;  %7221 = vmatmul.mubr.bf16.gmra.mrb[188].mxu0 %v1037_v63  ;;  %v11348_v9 = vld [vmem:[#allocation29_spill] sm:$0xff] }
 0x1d1   : > { %v11349_v27 = vld [vmem:[#allocation53_spill] sm:$0xff] }
 0x1d2   : > { %2835 = vmatmul.mubr.bf16.gmra.mrb[200].mxu1 %v11342_v32 }
 0x1d3   : > { %2841 = vmatprep.mubr.bf16.mxu1 %v11343_v2  ;;  %v1714_v18 = vpop.f32.mrb[84].mxu0 }
 0x1d4   : > { %v9033_v52 = vadd.f32 %v11344_v20, %v1714_v18  ;;  %v1716_v31 = vpop.f32.mrb[85].mxu0 }
 0x1d5   : > { %v2210_v0 = vpop.f32.mrb[96].mxu1  ;;  %v1717_v53 = vpop.f32.mrb[86].mxu0 }
 0x1d6   : > { %v9036_v30 = vadd.f32 %v2210_v0, %v8869_v21  ;;  %v2212_v58 = vpop.f32.mrb[97].mxu1  ;;  %v9039_v15 = vadd.f32 %v11345_v33, %v1717_v53  ;;  %v1719_v56 = vpop.f32.mrb[87].mxu0  ;;  %v7512_v21 = vld [vmem:[%s11031_s6 + $0x110] sm:$0xff]  }
 0x1d7   : > { %v2213_v43 = vpop.f32.mrb[98].mxu1  ;;  %4318 = vmatpush1.bf16.msra.mxu0 %v7512_v21  ;;  %v11350_v56 = vld [vmem:[#allocation30_spill] sm:$0xff] }
 0x1d8   : > { %v9042_v13 = vadd.f32 %v2213_v43, %v8875_v54  ;;  %v2215_v17 = vpop.f32.mrb[99].mxu1  ;;  %4319 = vmatprep.subr.bf16.mxu0 %v11319_v60  ;;  %v7515_v43 = vld [vmem:[%s11031_s6 + $0x120] sm:$0xff]  }
 0x1d9   : > { %v11351_v17 = vld [vmem:[#allocation54_spill] sm:$0xff] }
 0x1da   : > { %2842 = vmatmul.mubr.bf16.gmra.mrb[204].mxu1 %v11346_v57  ;;  %v7518_v57 = vld [vmem:[%s11031_s6 + $0x168] sm:$0xff]  }
 0x1db   : > { %2849 = vmatprep.mubr.bf16.mxu1 %v11347_v38  ;;  %v1722_v59 = vpop.f32.mrb[88].mxu0  ;;  %4320 = vmatpush1.bf16.msra.mxu0 %v7513_v24  ;;  %v11352_v24 = vld [vmem:[#allocation33_spill] sm:$0xff] }
 0x1dc   : > { %v1723_v51 = vpop.f32.mrb[89].mxu0  ;;  %4321 = vmatprep.subr.bf16.mxu0 %v11319_v60 }
 0x1dd   : > { %v2218_v54 = vpop.f32.mrb[100].mxu1  ;;  %v1724_v11 = vpop.f32.mrb[90].mxu0 }
 0x1de   : > { %v2219_v62 = vpop.f32.mrb[101].mxu1  ;;  %v9054_v42 = vadd.f32 %v8826_v19, %v1724_v11  ;;  %v1726_v23 = vpop.f32.mrb[91].mxu0 }
 0x1df   : > { %v2220_v28 = vpop.f32.mrb[102].mxu1  ;;  %4322 = vmatpush1.bf16.msra.mxu0 %v7515_v43 }
 0x1e0   : > { %v9058_v63 = vadd.f32 %v2220_v28, %v8885_v8  ;;  %v2222_v3 = vpop.f32.mrb[103].mxu1  ;;  %v7514_v8 = vld [vmem:[%s11031_s6 + $0x158] sm:$0xff]   ;;  %4323 = vmatprep.subr.bf16.mxu0 %v11319_v60 }
 0x1e1   : > { %7230 = vmatprep.subr.bf16.mxu1 %v7514_v8 }
 0x1e2   : > { %2850 = vmatmul.mubr.bf16.gmra.mrb[208].mxu1 %v11348_v9  ;;  %v11353_v9 = vld [vmem:[#allocation55_spill] sm:$0xff] }
 0x1e3   : > { %2856 = vmatprep.mubr.bf16.mxu1 %v11349_v27  ;;  %v1729_v32 = vpop.f32.mrb[92].mxu0  ;;  %7231 = vmatpush3.bf16.msra.mxu1 %v7514_v8 }
 0x1e4   : > { %v9066_v19 = vadd.f32 %v8821_v10, %v1729_v32  ;;  %v1731_v2 = vpop.f32.mrb[93].mxu0  ;;  %v7516_v10 = vld [vmem:[%s11031_s6 + $0x160] sm:$0xff]   ;;  %v7521_v32 = vld [vmem:[%s11031_s6 + $0x178] sm:$0xff]  }
 0x1e5   : > { %v2225_v18 = vpop.f32.mrb[104].mxu1  ;;  %v1732_v20 = vpop.f32.mrb[94].mxu0  ;;  %7232 = vmatprep.subr.bf16.mxu1 %v7516_v10 }
 0x1e6   : > { %v9073_v31 = vadd.f32 %v2225_v18, %v8895_v44  ;;  %v2227_v0 = vpop.f32.mrb[105].mxu1  ;;  %v1733_v53 = vpop.f32.mrb[95].mxu0  ;;  %v7520_v20 = vld [vmem:[%s11031_s6 + $0x130] sm:$0xff]  }
 0x1e7   : > { %v2228_v58 = vpop.f32.mrb[106].mxu1  ;;  %7233 = vmatpush3.bf16.msra.mxu1 %v7516_v10 }
 0x1e8   : > { %v2229_v33 = vpop.f32.mrb[107].mxu1  ;;  %7234 = vmatprep.subr.bf16.mxu1 %v7518_v57 }
 0x1ea   : > { %2857 = vmatmul.mubr.bf16.gmra.mrb[212].mxu1 %v11350_v56  ;;  %v11354_v56 = vld [vmem:[#allocation34_spill] sm:$0xff] }
 0x1eb   : > { %2863 = vmatprep.mubr.bf16.mxu1 %v11351_v17  ;;  %v7114_v44 = vpop.f32.mrb[96].mxu0  ;;  %7235 = vmatpush3.bf16.msra.mxu1 %v7518_v57 }
 0x1ec   : > { %v2331_v41 = vpop.f32.mrb[97].mxu0 }
 0x1ed   : > { %v2232_v21 = vpop.f32.mrb[108].mxu1  ;;  %v9087_v38 = vadd.f32 %v2331_v41, %v8836_v61  ;;  %v7115_v59 = vpop.f32.mrb[98].mxu0 }
 0x1ee   : > { %v9091_v51 = vadd.f32 %v2232_v21, %v8912_v16  ;;  %v2234_v54 = vpop.f32.mrb[109].mxu1  ;;  %v9094_v11 = vadd.f32 %v7115_v59, %v8852_v26  ;;  %v2334_v62 = vpop.f32.mrb[99].mxu0  ;;  %v7519_v16 = vld [vmem:[%s11031_s6 + $0x170] sm:$0xff]   ;;  %v7517_v26 = vld [vmem:[%s11031_s6 + $0x128] sm:$0xff]  }
 0x1ef   : > { %v2235_v23 = vpop.f32.mrb[110].mxu1  ;;  %v9097_v28 = vadd.f32 %v2334_v62, %v8842_v37  ;;  %7236 = vmatprep.subr.bf16.mxu1 %v7519_v16  ;;  %4324 = vmatpush1.bf16.msra.mxu0 %v7517_v26 }
 0x1f0   : > { %v9100_v61 = vadd.f32 %v2235_v23, %v8921_v45  ;;  %v2237_v3 = vpop.f32.mrb[111].mxu1  ;;  %4325 = vmatprep.subr.bf16.mxu0 %v11319_v60  ;;  %7237 = vmatpush3.bf16.msra.mxu1 %v7519_v16  ;;  %v11357_v16 = vld [vmem:[#allocation56_spill] sm:$0xff] }
 0x1f1   : > { %7238 = vmatprep.subr.bf16.mxu1 %v7521_v32  ;;  %v11356_v3 = vld [vmem:[#allocation37_spill] sm:$0xff] }
 0x1f2   : > { %2864 = vmatmul.mubr.bf16.gmra.mrb[216].mxu1 %v11352_v24 }
 0x1f3   : > { %2871 = vmatprep.mubr.bf16.mxu1 %v11353_v9  ;;  %v7118_v37 = vpop.f32.mrb[100].mxu0  ;;  %4326 = vmatpush1.bf16.msra.mxu0 %v7520_v20 }
 0x1f4   : > { %v9111_v27 = vadd.f32 %v7118_v37, %v8872_v40  ;;  %v2346_v45 = vpop.f32.mrb[101].mxu0  ;;  %7239 = vmatpush3.bf16.msra.mxu1 %v7521_v32  ;;  %4327 = vmatprep.subr.bf16.mxu0 %v11319_v60 }
 0x1f5   : > { %v2240_v2 = vpop.f32.mrb[112].mxu1  ;;  %v9118_v8 = vadd.f32 %v2346_v45, %v8862_v35  ;;  %v7119_v18 = vpop.f32.mrb[102].mxu0  ;;  %v7522_v35 = vld [vmem:[%s11031_s6 + $0x138] sm:$0xff]   ;;  %4891 = vmatprep.subr.bf16.mxu1 %v11319_v60 }
 0x1f6   : > { %v2241_v0 = vpop.f32.mrb[113].mxu1  ;;  %v9124_v40 = vadd.f32 %v7119_v18, %v8878_v29  ;;  %v2349_v53 = vpop.f32.mrb[103].mxu0  ;;  %v11355_v29 = vld [vmem:[#allocation10_spill] sm:$0xff] }
 0x1f7   : > { %v2242_v58 = vpop.f32.mrb[114].mxu1  ;;  %4328 = vmatpush1.bf16.msra.mxu0 %v7522_v35  ;;  %v923_v53 = vshll.u32 %v9004_v55, 16  ;;  %v11360_v35 = vld [vmem:[#allocation57_spill] sm:$0xff] }
 0x1f8   : > { %v9127_v33 = vadd.f32 %v2242_v58, %v8936_v1  ;;  %v2244_v10 = vpop.f32.mrb[115].mxu1  ;;  %v11359_v58 = vld [vmem:[#allocation58_spill] sm:$0xff] }
 0x1fa   : > { %2872 = vmatmul.mubr.bf16.gmra.mrb[220].mxu1 %v11354_v56 }
 0x1fb   : > { %2878 = vmatprep.mubr.bf16.mxu1 %v11355_v29  ;;  %v7122_v43 = vpop.f32.mrb[104].mxu0  ;;  %v925_v29 = vrot.slane %v923_v53, 1 }
 0x1fc   : > { %v9137_v17 = vadd.f32 %v7122_v43, %v8898_v4  ;;  %v2361_v1 = vpop.f32.mrb[105].mxu0 }
 0x1fd   : > { %v2247_v44 = vpop.f32.mrb[116].mxu1  ;;  %v7123_v41 = vpop.f32.mrb[106].mxu0 }
 0x1fe   : > { %v9140_v57 = vadd.f32 %v2247_v44, %v8957_v46  ;;  %v2249_v21 = vpop.f32.mrb[117].mxu1  ;;  %v2363_v59 = vpop.f32.mrb[107].mxu0 }
 0x1ff   : > { %v2250_v54 = vpop.f32.mrb[118].mxu1  ;;  %v9143_v62 = vadd.f32 %v2363_v59, %v8888_v50 }
 0x200   : > { %v2251_v23 = vpop.f32.mrb[119].mxu1 }
 0x202   : > { %2879 = vmatmul.mubr.bf16.gmra.mrb[224].mxu1 %v11356_v3  ;;  %v11361_v3 = vld [vmem:[#allocation41_spill] sm:$0xff] }
 0x203   : > { %2885 = vmatprep.mubr.bf16.mxu1 %v11357_v16  ;;  %v7126_v26 = vpop.f32.mrb[108].mxu0 }
 0x204   : > { %v2375_v4 = vpop.f32.mrb[109].mxu0 }
 0x205   : > { %v2254_v24 = vpop.f32.mrb[120].mxu1  ;;  %v9148_v9 = vadd.f32 %v2375_v4, %v8918_v22  ;;  %v7127_v37 = vpop.f32.mrb[110].mxu0  ;;  %v919_v22 = vshrl.u32 %v11340_v34, 16 }
 0x206   : > { %v9151_v46 = vadd.f32 %v2254_v24, %v8981_v49  ;;  %v2256_v45 = vpop.f32.mrb[121].mxu1  ;;  %v9154_v32 = vadd.f32 %v7127_v37, %v8945_v12  ;;  %v2378_v50 = vpop.f32.mrb[111].mxu0  ;;  %v9167_v49 = vld [vmem:[%s11031_s6 + $0x80] sm:$0xff]  }
 0x207   : > { %v2257_v2 = vpop.f32.mrb[122].mxu1  ;;  %v9157_v18 = vadd.f32 %v2378_v50, %v8924_v39  ;;  %v11358_v12 = vld [vmem:[#allocation38_spill] sm:$0xff]  ;;  %7288 = vmatprep.subr.bf16.mxu0 %v9167_v49  ;;  %v921_v56 = vor.u32 %v919_v22, %v11360_v35 }
 0x208   : > { %v9160_v20 = vadd.f32 %v2257_v2, %v8987_v6  ;;  %v2259_v0 = vpop.f32.mrb[123].mxu1 }
 0x20a   : > { %2886 = vmatmul.mubr.bf16.gmra.mrb[228].mxu1 %v11358_v12 }
 0x20b   : > { %2893 = vmatprep.mubr.bf16.mxu1 %v11359_v58  ;;  %v7130_v10 = vpop.f32.mrb[112].mxu0 }
 0x20c   : > { %v9173_v39 = vadd.f32 %v7130_v10, %v8984_v36  ;;  %v2390_v6 = vpop.f32.mrb[113].mxu0  ;;  %v926_v36 = vsel %vm706_vm3, %v921_v56, %v925_v29 }
 0x20d   : > { %v2262_v55 = vpop.f32.mrb[124].mxu1  ;;  %v9177_v43 = vadd.f32 %v2390_v6, %v8963_v25  ;;  %v7131_v1 = vpop.f32.mrb[114].mxu0 }
 0x20e   : > { %v2263_v44 = vpop.f32.mrb[125].mxu1  ;;  %v9180_v41 = vadd.f32 %v7131_v1, %v8994_v48  ;;  %v2393_v21 = vpop.f32.mrb[115].mxu0 }
 0x20f   : > { %v2264_v59 = vpop.f32.mrb[126].mxu1 }
 0x210   : > { %v2265_v54 = vadd.f32 %v2264_v59, %v9007_v14  ;;  %v2266_v23 = vpop.f32.mrb[127].mxu1 }
 0x212   : > { %2894 = vmatmul.mubr.bf16.gmra.mrb[232].mxu1 %v11361_v3 }
 0x213   : > { %2900 = vmatprep.mubr.bf16.mxu1 %v926_v36  ;;  %v7134_v16 = vpop.f32.mrb[116].mxu0 }
 0x214   : > { %v9186_v26 = vadd.f32 %v7134_v16, %v9028_v5  ;;  %v2405_v25 = vpop.f32.mrb[117].mxu0 }
 0x215   : > { %v2269_v4 = vpop.f32.mrb[128].mxu1  ;;  %v7135_v24 = vpop.f32.mrb[118].mxu0 }
 0x216   : > { %v2270_v48 = vadd.f32 %v2269_v4, %v9022_v7  ;;  %v2271_v37 = vpop.f32.mrb[129].mxu1  ;;  %v2407_v45 = vpop.f32.mrb[119].mxu0 }
 0x217   : > { %v2272_v50 = vpop.f32.mrb[130].mxu1  ;;  %v9190_v14 = vadd.f32 %v2407_v45, %v9013_v47 }
 0x218   : > { %v2273_v2 = vpop.f32.mrb[131].mxu1 }
 0x21a   : > { %2901 = vmatmul.mubr.bf16.gmra.mrb[236].mxu1 %v11340_v34 }
 0x21b   : > { %v7138_v0 = vpop.f32.mrb[120].mxu0 }
 0x21c   : > { %v2419_v22 = vpop.f32.mrb[121].mxu0 }
 0x21d   : > { %v2276_v53 = vpop.f32.mrb[132].mxu1  ;;  %v9194_v5 = vadd.f32 %v2419_v22, %v9036_v30  ;;  %v7139_v12 = vpop.f32.mrb[122].mxu0 }
 0x21e   : > { %v2277_v58 = vadd.f32 %v2276_v53, %v9033_v52  ;;  %v2278_v10 = vpop.f32.mrb[133].mxu1  ;;  %v9198_v7 = vadd.f32 %v7139_v12, %v9058_v63  ;;  %v2422_v6 = vpop.f32.mrb[123].mxu0 }
 0x21f   : > { %v2279_v35 = vpop.f32.mrb[134].mxu1  ;;  %v9201_v47 = vadd.f32 %v2422_v6, %v9042_v13 }
 0x220   : > { %v2280_v34 = vadd.f32 %v2279_v35, %v9039_v15  ;;  %v2281_v56 = vpop.f32.mrb[135].mxu1 }
 0x223   : > { %v7142_v29 = vpop.f32.mrb[124].mxu0 }
 0x224   : > { %v9205_v55 = vadd.f32 %v7142_v29, %v9091_v51  ;;  %v2434_v30 = vpop.f32.mrb[125].mxu0 }
 0x225   : > { %v2284_v1 = vpop.f32.mrb[136].mxu1  ;;  %v9208_v52 = vadd.f32 %v2434_v30, %v9073_v31  ;;  %v7143_v44 = vpop.f32.mrb[126].mxu0 }
 0x226   : > { %v2285_v63 = vpop.f32.mrb[137].mxu1  ;;  %v9211_v21 = vadd.f32 %v7143_v44, %v9100_v61  ;;  %v2437_v59 = vpop.f32.mrb[127].mxu0 }
 0x227   : > { %v2286_v13 = vpop.f32.mrb[138].mxu1 }
 0x228   : > { %v2287_v23 = vadd.f32 %v2286_v13, %v9054_v42  ;;  %v2288_v15 = vpop.f32.mrb[139].mxu1 }
 0x22b   : > { %v7146_v36 = vpop.f32.mrb[128].mxu0 }
 0x22c   : > { %v9215_v3 = vadd.f32 %v7146_v36, %v9140_v57  ;;  %v2449_v51 = vpop.f32.mrb[129].mxu0 }
 0x22d   : > { %v2291_v16 = vpop.f32.mrb[140].mxu1  ;;  %v7147_v25 = vpop.f32.mrb[130].mxu0 }
 0x22e   : > { %v2292_v31 = vadd.f32 %v2291_v16, %v9066_v19  ;;  %v2451_v4 = vpop.f32.mrb[131].mxu0  ;;  %v2293_v24 = vpop.f32.mrb[141].mxu1 }
 0x22f   : > { %v9219_v37 = vadd.f32 %v2451_v4, %v9127_v33  ;;  %v2294_v61 = vpop.f32.mrb[142].mxu1 }
 0x230   : > { %v2295_v45 = vpop.f32.mrb[143].mxu1 }
 0x233   : > { %v7150_v50 = vpop.f32.mrb[132].mxu0 }
 0x234   : > { %v2463_v2 = vpop.f32.mrb[133].mxu0 }
 0x235   : > { %v9222_v42 = vadd.f32 %v2463_v2, %v9151_v46  ;;  %v7151_v0 = vpop.f32.mrb[134].mxu0  ;;  %v2733_v57 = vpop.f32.mrb[144].mxu1  ;;  %v9242_v2 = vld [vmem:[%s11029_s4] ss:$0 sm:$0xff] }
 0x236   : > { %v9224_v22 = vadd.f32 %v7151_v0, %v2265_v54  ;;  %v2466_v53 = vpop.f32.mrb[135].mxu0  ;;  %v2735_v12 = vpop.f32.mrb[145].mxu1 }
 0x237   : > { %v9227_v19 = vadd.f32 %v2466_v53, %v9160_v20  ;;  %v2736_v10 = vpop.f32.mrb[146].mxu1 }
 0x238   : > { %v2738_v6 = vpop.f32.mrb[147].mxu1 }
 0x23b   : > { %v7154_v33 = vpop.f32.mrb[136].mxu0 }
 0x23c   : > { %v9229_v35 = vadd.f32 %v7154_v33, %v2277_v58  ;;  %v2478_v56 = vpop.f32.mrb[137].mxu0  ;;  %v9248_v33 = vld [vmem:[%s11030_s5] ss:$0 sm:$0xff] }
 0x23d   : > { %v9231_v29 = vadd.f32 %v2478_v56, %v2270_v48  ;;  %v7155_v30 = vpop.f32.mrb[138].mxu0  ;;  %v2741_v46 = vpop.f32.mrb[148].mxu1 }
 0x23e   : > { %v9233_v1 = vadd.f32 %v7155_v30, %v2280_v34  ;;  %v2481_v44 = vpop.f32.mrb[139].mxu0  ;;  %v2742_v54 = vpop.f32.mrb[149].mxu1 }
 0x23f   : > { %v2743_v63 = vpop.f32.mrb[150].mxu1 }
 0x240   : > { %v2745_v59 = vpop.f32.mrb[151].mxu1 }
 0x243   : > { %v7158_v13 = vpop.f32.mrb[140].mxu0 }
 0x244   : > { %v9235_v15 = vadd.f32 %v7158_v13, %v2292_v31  ;;  %v2493_v20 = vpop.f32.mrb[141].mxu0 }
 0x245   : > { %v7159_v36 = vpop.f32.mrb[142].mxu0  ;;  %v2748_v51 = vpop.f32.mrb[152].mxu1 }
 0x246   : > { %v2495_v16 = vpop.f32.mrb[143].mxu0  ;;  %v2750_v58 = vpop.f32.mrb[153].mxu1 }
 0x247   : > { %v9237_v25 = vadd.f32 %v2495_v16, %v2287_v23  ;;  %v2751_v48 = vpop.f32.mrb[154].mxu1 }
 0x248   : > { %v2752_v4 = vpop.f32.mrb[155].mxu1 }
 0x24b   : > { %v7178_v24 = vpop.f32.mrb[144].mxu0 }
 0x24c   : > { %v2942_v61 = vpop.f32.mrb[145].mxu0 }
 0x24d   : > { %v2943_v34 = vadd.f32 %v2942_v61, %v2733_v57  ;;  %v7179_v45 = vpop.f32.mrb[146].mxu0  ;;  %v2755_v50 = vpop.f32.mrb[156].mxu1 }
 0x24e   : > { %v2953_v31 = vadd.f32 %v7179_v45, %v2743_v63  ;;  %v2945_v0 = vpop.f32.mrb[147].mxu0  ;;  %v2757_v53 = vpop.f32.mrb[157].mxu1 }
 0x24f   : > { %v3117_v12 = vadd.f32 %v2943_v34, %v9087_v38  ;;  %v2946_v6 = vadd.f32 %v2945_v0, %v2736_v10  ;;  %v2758_v23 = vpop.f32.mrb[158].mxu1 }
 0x250   : > { %v3119_v57 = vadd.f32 %v2953_v31, %v9094_v11  ;;  %v2760_v56 = vpop.f32.mrb[159].mxu1 }
 0x251   : > { %v3156_v30 = vmul.f32 %v9242_v2, %v3117_v12  ;;  %v3118_v46 = vadd.f32 %v2946_v6, %v9097_v28 }
 0x252   : > { %v3158_v44 = vmul.f32 %v9242_v2, %v3119_v57 }
 0x253   : > { %v3195_v54 = vadd.f32 %v9248_v33, %v3156_v30  ;;  %v3157_v38 = vmul.f32 %v9242_v2, %v3118_v46  ;;  %v7182_v10 = vpop.f32.mrb[148].mxu0 }
 0x254   : > { %v3197_v63 = vadd.f32 %v9248_v33, %v3158_v44  ;;  %v2965_v59 = vadd.f32 %v7182_v10, %v2755_v50  ;;  %v2957_v13 = vpop.f32.mrb[149].mxu0 }
 0x255   : > { %vm3227_vm4 = vcmp.ge.f32.partialorder %v3195_v54, 0.0  ;;  %v3259_v20 = vmul.f32 0.1, %v3195_v54  ;;  %v3196_v11 = vadd.f32 %v9248_v33, %v3157_v38  ;;  %v2958_v36 = vadd.f32 %v2957_v13, %v2748_v51  ;;  %v7183_v16 = vpop.f32.mrb[150].mxu0  ;;  %v2763_v58 = vpop.f32.mrb[160].mxu1 }
 0x256   : > { %vm3229_vm5 = vcmp.ge.f32.partialorder %v3197_v63, 0.0  ;;  %v3261_v28 = vmul.f32 0.1, %v3197_v63  ;;  %v3121_v48 = vadd.f32 %v2965_v59, %v9111_v27  ;;  %v2968_v4 = vadd.f32 %v7183_v16, %v2758_v23  ;;  %v2960_v24 = vpop.f32.mrb[151].mxu0  ;;  %v2764_v61 = vpop.f32.mrb[161].mxu1 }
 0x257   : > { %v3291_v34 = vsel %vm3227_vm4, %v3195_v54, %v3259_v20  ;;  %vm3228_vm6 = vcmp.ge.f32.partialorder %v3196_v11, 0.0  ;;  %v3260_v45 = vmul.f32 0.1, %v3196_v11  ;;  %v3120_v50 = vadd.f32 %v2958_v36, %v9118_v8  ;;  %v2765_v31 = vpop.f32.mrb[162].mxu1 }
 0x258   : > { %3324 = vst [vmem:[#allocation2 + $0x19] sm:$0xff] %v3291_v34  ;;  %3356 = vst [vmem:[#allocation2 + $0x17] sm:$0x2] %v3291_v34  ;;  %v3293_v0 = vsel %vm3229_vm5, %v3197_v63, %v3261_v28  ;;  %v3160_v51 = vmul.f32 %v9242_v2, %v3121_v48  ;;  %v3122_v53 = vadd.f32 %v2968_v4, %v9124_v40  ;;  %v2767_v12 = vpop.f32.mrb[163].mxu1 }
 0x259   : > { %3326 = vst [vmem:[#allocation2 + $0x31] sm:$0xff] %v3293_v0  ;;  %3357 = vst [vmem:[#allocation2 + $0x2f] sm:$0x2] %v3293_v0  ;;  %v3292_v27 = vsel %vm3228_vm6, %v3196_v11, %v3260_v45  ;;  %v3159_v6 = vmul.f32 %v9242_v2, %v3120_v50 }
 0x25a   : > { %3388 = vst [vmem:[#allocation2 + $0x1] sm:$0xff] %v3293_v0  ;;  %3390 = vst [vmem:[#allocation2 - $0x1] sm:$0x2] %v3293_v0  ;;  %v3199_v8 = vadd.f32 %v9248_v33, %v3160_v51  ;;  %v3161_v23 = vmul.f32 %v9242_v2, %v3122_v53 }
 0x25b   : > { %3325 = vst [vmem:[#allocation2 + $0x21] sm:$0xff] %v3292_v27  ;;  %3372 = vst [vmem:[#allocation2 + $0x23] sm:$0x40] %v3292_v27  ;;  %v3198_v57 = vadd.f32 %v9248_v33, %v3159_v6  ;;  %v7186_v56 = vpop.f32.mrb[152].mxu0 }
 0x25c   : > { %vm3231_vm8 = vcmp.ge.f32.partialorder %v3199_v8, 0.0  ;;  %v3263_v30 = vmul.f32 0.1, %v3199_v8  ;;  %v3200_v40 = vadd.f32 %v9248_v33, %v3161_v23  ;;  %v2972_v46 = vpop.f32.mrb[153].mxu0 }
 0x25d   : > { %vm3230_vm9 = vcmp.ge.f32.partialorder %v3198_v57, 0.0  ;;  %v3262_v44 = vmul.f32 0.1, %v3198_v57  ;;  %v2770_v54 = vpop.f32.mrb[164].mxu1  ;;  %v7187_v38 = vpop.f32.mrb[154].mxu0 }
 0x25e   : > { %v3295_v10 = vsel %vm3231_vm8, %v3199_v8, %v3263_v30  ;;  %vm3232_vm10 = vcmp.ge.f32.partialorder %v3200_v40, 0.0  ;;  %v3264_v63 = vmul.f32 0.1, %v3200_v40  ;;  %v2980_v59 = vadd.f32 %v7186_v56, %v2770_v54  ;;  %v2772_v13 = vpop.f32.mrb[165].mxu1  ;;  %v2974_v20 = vpop.f32.mrb[155].mxu0 }
 0x25f   : > { %3328 = vst [vmem:[#allocation2 + $0x49] sm:$0xff] %v3295_v10  ;;  %3358 = vst [vmem:[#allocation2 + $0x47] sm:$0x2] %v3295_v10  ;;  %v3294_v11 = vsel %vm3230_vm9, %v3198_v57, %v3262_v44  ;;  %v2773_v36 = vpop.f32.mrb[166].mxu1  ;;  %v2975_v16 = vadd.f32 %v2974_v20, %v2765_v31  ;;  %v3400_v27 = vld [vmem:[#allocation2 + $0x18] sm:$0xff] }
 0x260   : > { %3327 = vst [vmem:[#allocation2 + $0x39] sm:$0xff] %v3294_v11  ;;  %3373 = vst [vmem:[#allocation2 + $0x3b] sm:$0x40] %v3294_v11  ;;  %v3296_v58 = vsel %vm3232_vm10, %v3200_v40, %v3264_v63  ;;  %v3124_v28 = vadd.f32 %v2980_v59, %v9137_v17  ;;  %v2774_v48 = vpop.f32.mrb[167].mxu1  ;;  %v3403_v30 = vld [vmem:[#allocation2 + $0x30] sm:$0xff] }
 0x261   : > { %3389 = vst [vmem:[#allocation2 + $0x9] sm:$0xff] %v3294_v11  ;;  %3391 = vst [vmem:[#allocation2 + $0xb] sm:$0x40] %v3294_v11  ;;  %v3123_v4 = vadd.f32 %v2975_v16, %v9143_v62 }
 0x262   : > { %3329 = vst [vmem:[#allocation2 + $0x51] sm:$0xff] %v3296_v58  ;;  %3374 = vst [vmem:[#allocation2 + $0x53] sm:$0x40] %v3296_v58  ;;  %v3401_v24 = vld [vmem:[#allocation2 + $0x20] sm:$0xff]  ;;  %v3402_v61 = vld [vmem:[#allocation2 + $0x28] sm:$0xff]  ;;  %v3163_v34 = vmul.f32 %v9242_v2, %v3124_v28 }
 0x263   : > { %v9270_v45 = vpack.c.bf16 %v3402_v61, %v3401_v24  ;;  %v3162_v50 = vmul.f32 %v9242_v2, %v3123_v4  ;;  %v7190_v31 = vpop.f32.mrb[156].mxu0 }
 0x264   : > { %v3202_v0 = vadd.f32 %v9248_v33, %v3163_v34  ;;  %v2986_v51 = vpop.f32.mrb[157].mxu0 }
 0x265   : > { %v3201_v53 = vadd.f32 %v9248_v33, %v3162_v50  ;;  %v2777_v17 = vpop.f32.mrb[168].mxu1  ;;  %v9275_v12 = vpop.f32.mrb[158].mxu0  ;;  %v3758_v62 = vrot.slane %v9270_v45, 1  ;;  %v3496_v6 = vshll.u32 %v9270_v45, 16 }
 0x266   : > { %vm3234_vm11 = vcmp.ge.f32.partialorder %v3202_v0, 0.0  ;;  %v3266_v8 = vmul.f32 0.1, %v3202_v0  ;;  %v2779_v23 = vpop.f32.mrb[169].mxu1  ;;  %v2987_v57 = vadd.f32 %v2986_v51, %v2777_v17  ;;  %v2989_v56 = vpop.f32.mrb[159].mxu0  ;;  %v3406_v40 = vld [vmem:[#allocation2 + $0x48] sm:$0xff] }
 0x267   : > { %vm3233_vm12 = vcmp.ge.f32.partialorder %v3201_v53, 0.0  ;;  %v3265_v46 = vmul.f32 0.1, %v3201_v53  ;;  %v2780_v44 = vpop.f32.mrb[170].mxu1  ;;  %v3404_v38 = vld [vmem:[#allocation2 + $0x38] sm:$0xff]  ;;  %v3405_v11 = vld [vmem:[#allocation2 + $0x40] sm:$0xff] }
 0x268   : > { %v3399_v54 = vld [vmem:[#allocation2 + $0x10] sm:$0xff]  ;;  %v3298_v10 = vsel %vm3234_vm11, %v3202_v0, %v3266_v8  ;;  %v2782_v63 = vpop.f32.mrb[171].mxu1  ;;  %v3125_v59 = vadd.f32 %v2987_v57, %v9148_v9  ;;  %v2990_v13 = vadd.f32 %v2989_v56, %v2780_v44  ;;  %v9282_v28 = vpack.c.bf16 %v3404_v38, %v3403_v30 }
 0x269   : > { %v9280_v20 = vpack.c.bf16 %v3400_v27, %v3399_v54  ;;  %v3407_v36 = vld [vmem:[#allocation2 + $0x50] sm:$0xff]  ;;  %v3408_v16 = vld [vmem:[#allocation2 + $0x58] sm:$0xff]  ;;  %3331 = vst [vmem:[#allocation2 + $0x69] sm:$0xff] %v3298_v10  ;;  %3375 = vst [vmem:[#allocation2 + $0x6b] sm:$0x40] %v3298_v10  ;;  %v3297_v58 = vsel %vm3233_vm12, %v3201_v53, %v3265_v46  ;;  %v9284_v48 = vpack.c.bf16 %v3406_v40, %v3405_v11 }
 0x26a   : > { %11362 = vst [vmem:[#allocation16_spill] sm:$0xff] %v9282_v28  ;;  %v9286_v4 = vpack.c.bf16 %v3408_v16, %v3407_v36  ;;  %3330 = vst [vmem:[#allocation2 + $0x61] sm:$0xff] %v3297_v58  ;;  %v3164_v24 = vmul.f32 %v9242_v2, %v3125_v59  ;;  %v3126_v9 = vadd.f32 %v2990_v13, %v9157_v18  ;;  %v3760_v31 = vrot.slane %v9282_v28, 1 }
 0x26b   : > { %11363 = vst [vmem:[#allocation19_spill] sm:$0xff] %v9284_v48  ;;  %3359 = vst [vmem:[#allocation2 + $0x5f] sm:$0x2] %v3297_v58  ;;  %v11124_v61 = vrot.slane %v9280_v20, 1  ;;  %v3488_v34 = vshll.u32 %v9280_v20, 16  ;;  %v9292_v50 = vpop.f32.mrb[160].mxu0 }
 0x26c   : > { %v3762_v0 = vrot.slane %v9284_v48, 1  ;;  %v11126_v51 = vrot.slane %v9286_v4, 1  ;;  %v3492_v53 = vshrl.u32 %v9280_v20, 16  ;;  %v3203_v17 = vadd.f32 %v9248_v33, %v3164_v24  ;;  %v9300_v8 = vpop.f32.mrb[161].mxu0 }
 0x26d   : > { %v3165_v27 = vmul.f32 %v9242_v2, %v3126_v9  ;;  %v9305_v18 = vsel %vm982_vm0, %v11124_v61, %v3758_v62  ;;  %v9307_v23 = vrot.slane %v3488_v34, 1  ;;  %v2785_v57 = vpop.f32.mrb[172].mxu1  ;;  %v9310_v56 = vsel %vm982_vm0, %v3758_v62, %v3760_v31  ;;  %v9321_v44 = vpop.f32.mrb[162].mxu0 }
 0x26e   : > { %11364 = vst [vmem:[#allocation20_spill] sm:$0xff] %v9305_v18  ;;  %11365 = vst [vmem:[#allocation23_spill] sm:$0xff] %v9310_v56  ;;  %v3940_v30 = vrot.slane %v9305_v18, 4  ;;  %v9314_v40 = vsel %vm982_vm0, %v3760_v31, %v3762_v0  ;;  %v9319_v46 = vsel %vm982_vm0, %v3762_v0, %v11126_v51  ;;  %vm3235_vm13 = vcmp.ge.f32.partialorder %v3203_v17, 0.0  ;;  %v2786_v38 = vpop.f32.mrb[173].mxu1  ;;  %v3004_v63 = vpop.f32.mrb[163].mxu0 }
 0x26f   : > { %11366 = vst [vmem:[#allocation24_spill] sm:$0xff] %v9314_v40  ;;  %11367 = vst [vmem:[#allocation27_spill] sm:$0xff] %v9319_v46  ;;  %v3267_v54 = vmul.f32 0.1, %v3203_v17  ;;  %v3204_v10 = vadd.f32 %v9248_v33, %v3165_v27  ;;  %v3941_v62 = vrot.slane %v9310_v56, 4  ;;  %v2787_v59 = vpop.f32.mrb[174].mxu1  ;;  %v3494_v36 = vor.u32 %v3492_v53, %v9307_v23 }
 0x270   : > { %v3947_v13 = vrot.slane %v9314_v40, 4  ;;  %v11125_v11 = vrot.slane %v9319_v46, 4  ;;  %v3498_v16 = vrot.slane %v3496_v6, 1  ;;  %v2997_v24 = vadd.f32 %v9275_v12, %v2787_v59  ;;  %v2789_v34 = vpop.f32.mrb[175].mxu1  ;;  %v7527_v31 = vld [vmem:[%s11031_s6] sm:$0xff]  }
 0x271   : > { %v3299_v58 = vsel %vm3235_vm13, %v3203_v17, %v3267_v54  ;;  %vm3236_vm14 = vcmp.ge.f32.partialorder %v3204_v10, 0.0  ;;  %v3268_v9 = vmul.f32 0.1, %v3204_v10  ;;  %v3942_v0 = vsel %vm1162_vm7, %v3940_v30, %v3941_v62  ;;  %v3410_v17 = vld [vmem:[#allocation2 + $0x68] sm:$0xff] }
 0x272   : > { %3332 = vst [vmem:[#allocation2 + $0x79] sm:$0xff] %v3299_v58  ;;  %3360 = vst [vmem:[#allocation2 + $0x77] sm:$0x2] %v3299_v58  ;;  %v3948_v27 = vsel %vm1162_vm7, %v3941_v62, %v3947_v13  ;;  %v3954_v6 = vsel %vm1162_vm7, %v3947_v13, %v11125_v11  ;;  %v3500_v53 = vshrl.u32 %v9270_v45, 16  ;;  %v3409_v12 = vld [vmem:[#allocation2 + $0x60] sm:$0xff]  ;;  %v3127_v57 = vadd.f32 %v2997_v24, %v9154_v32 }
 0x273   : > { %v3300_v54 = vsel %vm3236_vm14, %v3204_v10, %v3268_v9  ;;  %7240 = vmatprep.mubr.bf16.mxu1 %v3942_v0  ;;  %v9340_v38 = vsel %vm706_vm3, %v3494_v36, %v3498_v16  ;;  %v3504_v63 = vshll.u32 %v9282_v28, 16  ;;  %v3934_v62 = vrot.slane %v9280_v20, 4  ;;  %v9346_v58 = vpop.f32.mrb[164].mxu0 }
 0x274   : > { %3333 = vst [vmem:[#allocation2 + $0x81] sm:$0xff] %v3300_v54  ;;  %3376 = vst [vmem:[#allocation2 + $0x83] sm:$0x40] %v3300_v54  ;;  %7241 = vmatmul.mubr.bf16.vlgmr.msra.gmra.mrb[240].mxu1 %v3948_v27  ;;  %v3502_v30 = vor.u32 %v3500_v53, %v3498_v16  ;;  %v11127_v59 = vrot.slane %v9270_v45, 4  ;;  %v3512_v13 = vshll.u32 %v9284_v48, 16  ;;  %v3166_v32 = vmul.f32 %v9242_v2, %v3127_v57  ;;  %v3016_v9 = vpop.f32.mrb[165].mxu0 }
 0x275   : > { %7244 = vmatprep.mubr.bf16.mxu1 %v3954_v6  ;;  %v3506_v10 = vrot.slane %v3504_v63, 1  ;;  %v3508_v36 = vshrl.u32 %v9282_v28, 16  ;;  %v9350_v24 = vpack.c.bf16 %v3410_v17, %v3409_v12  ;;  %4892 = vmatpush1.bf16.msra.mxu1 %v7527_v31  ;;  %v7528_v16 = vld [vmem:[%s11031_s6 + $0x8] sm:$0xff]   ;;  %v2792_v34 = vpop.f32.mrb[176].mxu1  ;;  %v3937_v0 = vrot.slane %v9340_v38, 4  ;;  %v7199_v53 = vpop.f32.mrb[166].mxu0 }
 0x276   : > { %v3514_v27 = vrot.slane %v3512_v13, 1  ;;  %v3516_v54 = vshrl.u32 %v9284_v48, 16  ;;  %v3520_v6 = vshll.u32 %v9286_v4, 16  ;;  %4893 = vmatprep.subr.bf16.mxu1 %v11319_v60  ;;  %v3205_v12 = vadd.f32 %v9248_v33, %v3166_v32  ;;  %v2794_v31 = vpop.f32.mrb[177].mxu1  ;;  %v9364_v9 = vpop.f32.mrb[167].mxu0 }
 0x277   : > { %v3002_v17 = vadd.f32 %v9300_v8, %v2792_v34  ;;  %v9362_v57 = vsel %vm706_vm3, %v3502_v30, %v3506_v10  ;;  %v3510_v63 = vor.u32 %v3508_v36, %v3506_v10  ;;  %v2795_v61 = vpop.f32.mrb[178].mxu1  ;;  %v3936_v53 = vsel %vm1162_vm7, %v3934_v62, %v11127_v59  ;;  %v3411_v59 = vld [vmem:[#allocation2 + $0x70] sm:$0xff] }
 0x278   : > { %v3938_v13 = vrot.slane %v9362_v57, 4  ;;  %v3766_v11 = vrot.slane %v9350_v24, 1  ;;  %v3518_v51 = vor.u32 %v3516_v54, %v3514_v27  ;;  %vm3237_vm15 = vcmp.ge.f32.partialorder %v3205_v12, 0.0  ;;  %v2796_v34 = vpop.f32.mrb[179].mxu1 }
 0x279   : > { %v3269_v32 = vmul.f32 0.1, %v3205_v12  ;;  %v3128_v8 = vadd.f32 %v3002_v17, %v9177_v43  ;;  %v9373_v30 = vsel %vm706_vm3, %v3510_v63, %v3514_v27  ;;  %v3412_v10 = vld [vmem:[#allocation2 + $0x78] sm:$0xff]  ;;  %4894 = vmatpush1.bf16.msra.mxu1 %v7528_v16  ;;  %v11368_v31 = vrot.slane %v9286_v4, 1  ;;  %v7524_v43 = vld [vmem:[%s11031_s6 + $0x88] sm:$0xff]  }
 0x27a   : > { %v3939_v61 = vsel %vm1162_vm7, %v3937_v0, %v3938_v13  ;;  %v11128_v36 = vrot.slane %v9373_v30, 4  ;;  %v9382_v54 = vrot.slane %v3520_v6, 1  ;;  %4895 = vmatprep.subr.bf16.mxu1 %v11319_v60  ;;  %v9390_v17 = vpack.c.bf16 %v3412_v10, %v3411_v59  ;;  %v7530_v6 = vld [vmem:[%s11031_s6 + $0x10] sm:$0xff]  }
 0x27b   : > { %v9380_v62 = vsel %vm982_vm0, %v11368_v31, %v3766_v11  ;;  %v3301_v27 = vsel %vm3237_vm15, %v3205_v12, %v3269_v32  ;;  %v3167_v16 = vmul.f32 %v9242_v2, %v3128_v8  ;;  %4329 = vmatprep.mubr.bf16.mxu0 %v3939_v61  ;;  %v3413_v63 = vld [vmem:[#allocation2 + $0x80] sm:$0xff]  ;;  %v3414_v34 = vld [vmem:[#allocation2 + $0x88] sm:$0xff]  ;;  %v7202_v59 = vpop.f32.mrb[168].mxu0  ;;  %v11372_v61 = vrot.slane %v9319_v46, 4 }
 0x27c   : > { %11369 = vst [vmem:[#allocation28_spill] sm:$0xff] %v9380_v62  ;;  %v3959_v0 = vrot.slane %v9380_v62, 4  ;;  %11370 = vst [vmem:[#allocation31_spill] sm:$0xff] %v9390_v17  ;;  %4330 = vmatmul.mubr.bf16.vlgmr.msra.gmra.mrb[192].mxu0 %v3936_v53  ;;  %v3946_v12 = vsel %vm1162_vm7, %v3938_v13, %v11128_v36  ;;  %v9400_v32 = vsel %vm706_vm3, %v3518_v51, %v9382_v54  ;;  %v3768_v31 = vrot.slane %v9390_v17, 1  ;;  %v7525_v51 = vld [vmem:[%s11031_s6 + $0x90] sm:$0xff]  }
 0x27d   : > { %3334 = vst [vmem:[#allocation2 + $0x91] sm:$0xff] %v3301_v27  ;;  %3361 = vst [vmem:[#allocation2 + $0x8f] sm:$0x2] %v3301_v27  ;;  %v9402_v8 = vpack.c.bf16 %v3414_v34, %v3413_v63  ;;  %v3206_v10 = vadd.f32 %v9248_v33, %v3167_v16  ;;  %4337 = vmatprep.mubr.bf16.mxu0 %v3946_v12  ;;  %7289 = vmatpush3.bf16.msra.mxu0 %v9167_v49  ;;  %v9410_v27 = vpop.f32.mrb[169].mxu0  ;;  %v2799_v13 = vpop.f32.mrb[180].mxu1  ;;  %v3528_v49 = vshll.u32 %v9350_v24, 16 }
 0x27e   : > { %11371 = vst [vmem:[#allocation32_spill] sm:$0xff] %v9400_v32  ;;  %v3960_v53 = vsel %vm1162_vm7, %v11372_v61, %v3959_v0  ;;  %v9418_v34 = vpop.f32.mrb[170].mxu0  ;;  %7290 = vmatprep.subr.bf16.mxu0 %v7524_v43  ;;  %v7531_v12 = vld [vmem:[%s11031_s6 + $0x18] sm:$0xff]   ;;  %v3009_v61 = vadd.f32 %v9292_v50, %v2799_v13  ;;  %v2801_v36 = vpop.f32.mrb[181].mxu1  ;;  %4896 = vmatpush1.bf16.msra.mxu1 %v7530_v6  ;;  %v3524_v56 = vshrl.u32 %v9286_v4, 16 }
 0x27f   : > { %7245 = vmatmul.mubr.bf16.gmra.mrb[244].mxu1 %v3960_v53  ;;  %vm3238_vm1 = vcmp.ge.f32.partialorder %v3206_v10, 0.0  ;;  %v3270_v59 = vmul.f32 0.1, %v3206_v10  ;;  %v9425_v62 = vpop.f32.mrb[171].mxu0  ;;  %v2802_v63 = vpop.f32.mrb[182].mxu1  ;;  %v9428_v16 = vsel %vm982_vm0, %v3766_v11, %v3768_v31  ;;  %v11374_v46 = vrot.slane %v9402_v8, 1  ;;  %4897 = vmatprep.subr.bf16.mxu1 %v11319_v60 }
 0x280   : > { %11373 = vst [vmem:[#allocation35_spill] sm:$0xff] %v9428_v16  ;;  %v9436_v18 = vrot.slane %v3528_v49, 1  ;;  %v3129_v36 = vadd.f32 %v3009_v61, %v9173_v39  ;;  %v3012_v6 = vadd.f32 %v9321_v44, %v2802_v63  ;;  %v2804_v13 = vpop.f32.mrb[183].mxu1  ;;  %v3965_v11 = vrot.slane %v9428_v16, 4  ;;  %v7526_v39 = vld [vmem:[%s11031_s6 + $0x98] sm:$0xff]  }
 0x281   : > { %v9433_v40 = vsel %vm982_vm0, %v3768_v31, %v11374_v46  ;;  %v3302_v50 = vsel %vm3238_vm1, %v3206_v10, %v3270_v59  ;;  %7291 = vmatpush3.bf16.msra.mxu0 %v7524_v43  ;;  %v11376_v46 = vrot.slane %v9282_v28, 4  ;;  %v11377_v31 = vrot.slane %v9270_v45, 4 }
 0x282   : > { %11375 = vst [vmem:[#allocation36_spill] sm:$0xff] %v9433_v40  ;;  %3335 = vst [vmem:[#allocation2 + $0x99] sm:$0xff] %v3302_v50  ;;  %v11137_v53 = vrot.slane %v9433_v40, 4  ;;  %7292 = vmatprep.subr.bf16.mxu0 %v7525_v51  ;;  %v3168_v44 = vmul.f32 %v9242_v2, %v3129_v36  ;;  %v3130_v10 = vadd.f32 %v3012_v6, %v9180_v41  ;;  %4898 = vmatpush1.bf16.msra.mxu1 %v7531_v12 }
 0x283   : > { %3377 = vst [vmem:[#allocation2 + $0x9b] sm:$0x40] %v3302_v50  ;;  %v3944_v49 = vsel %vm1162_vm7, %v11377_v31, %v11376_v46  ;;  %v3966_v43 = vsel %vm1162_vm7, %v3959_v0, %v3965_v11  ;;  %v3526_v63 = vor.u32 %v3524_v56, %v9382_v54  ;;  %v11378_v59 = vrot.slane %v9400_v32, 4  ;;  %v9464_v41 = vpop.f32.mrb[172].mxu0  ;;  %v7532_v56 = vld [vmem:[%s11031_s6 + $0x20] sm:$0xff]   ;;  %4899 = vmatprep.subr.bf16.mxu1 %v11319_v60 }
 0x284   : > { %4338 = vmatmul.mubr.bf16.gmra.mrb[196].mxu0 %v3944_v49  ;;  %v11379_v61 = vrot.slane %v9373_v30, 4  ;;  %7248 = vmatprep.mubr.bf16.mxu1 %v3966_v43  ;;  %v3972_v13 = vsel %vm1162_vm7, %v3965_v11, %v11137_v53  ;;  %v3536_v36 = vshll.u32 %v9390_v17, 16  ;;  %v3207_v54 = vadd.f32 %v9248_v33, %v3168_v44  ;;  %v9475_v6 = vpop.f32.mrb[173].mxu0  ;;  %v7529_v31 = vld [vmem:[%s11031_s6 + $0xa0] sm:$0xff]  }
 0x285   : > { %v3169_v0 = vmul.f32 %v9242_v2, %v3130_v10  ;;  %v9473_v12 = vsel %vm706_vm3, %v3526_v63, %v9436_v18  ;;  %7293 = vmatpush3.bf16.msra.mxu0 %v7525_v51  ;;  %v2807_v11 = vpop.f32.mrb[184].mxu1  ;;  %v9477_v46 = vpop.f32.mrb[174].mxu0 }
 0x286   : > { %v3952_v50 = vsel %vm1162_vm7, %v11379_v61, %v11378_v59  ;;  %11380 = vst [vmem:[#allocation39_spill] sm:$0xff] %v9473_v12  ;;  %7294 = vmatprep.subr.bf16.mxu0 %v7526_v39  ;;  %vm3239_vm2 = vcmp.ge.f32.partialorder %v3207_v54, 0.0  ;;  %v3271_v49 = vmul.f32 0.1, %v3207_v54  ;;  %v2808_v10 = vpop.f32.mrb[185].mxu1  ;;  %v3048_v63 = vpop.f32.mrb[175].mxu0  ;;  %4900 = vmatpush1.bf16.msra.mxu1 %v7532_v56 }
 0x287   : > { %4345 = vmatprep.mubr.bf16.mxu0 %v3952_v50  ;;  %7249 = vmatmul.mubr.bf16.gmra.mrb[248].mxu1 %v3972_v13  ;;  %v3208_v44 = vadd.f32 %v9248_v33, %v3169_v0  ;;  %v2809_v51 = vpop.f32.mrb[186].mxu1  ;;  %v3532_v61 = vshrl.u32 %v9350_v24, 16  ;;  %v3538_v50 = vrot.slane %v3536_v36, 1  ;;  %v7533_v13 = vld [vmem:[%s11031_s6 + $0x28] sm:$0xff]   ;;  %v3415_v63 = vld [vmem:[#allocation2 + $0x90] sm:$0xff] }
 0x288   : > { %v3303_v11 = vsel %vm3239_vm2, %v3207_v54, %v3271_v49  ;;  %v3019_v10 = vadd.f32 %v9364_v9, %v2809_v51  ;;  %v2811_v53 = vpop.f32.mrb[187].mxu1  ;;  %4901 = vmatprep.subr.bf16.mxu1 %v11319_v60  ;;  %v7536_v36 = vld [vmem:[%s11031_s6 + $0xa8] sm:$0xff]   ;;  %v11382_v9 = vrot.slane %v9284_v48, 4  ;;  %v11385_v51 = vrot.slane %v9400_v32, 4 }
 0x289   : > { %vm3240_vm4 = vcmp.ge.f32.partialorder %v3208_v44, 0.0  ;;  %v3272_v0 = vmul.f32 0.1, %v3208_v44  ;;  %v3416_v43 = vld [vmem:[#allocation2 + $0x98] sm:$0xff]  ;;  %7295 = vmatpush3.bf16.msra.mxu0 %v7526_v39  ;;  %3336 = vst [vmem:[#allocation2 + $0xa9] sm:$0xff] %v3303_v11  ;;  %v11383_v53 = vrot.slane %v9282_v28, 4  ;;  %v3534_v49 = vor.u32 %v3532_v61, %v9436_v18 }
 0x28a   : > { %3362 = vst [vmem:[#allocation2 + $0xa7] sm:$0x2] %v3303_v11  ;;  %v9492_v59 = vpack.c.bf16 %v3416_v43, %v3415_v63  ;;  %7296 = vmatprep.subr.bf16.mxu0 %v7529_v31  ;;  %v3131_v54 = vadd.f32 %v3019_v10, %v9190_v14  ;;  %v11384_v43 = vrot.slane %v9473_v12, 4  ;;  %v3544_v14 = vshll.u32 %v9402_v8, 16  ;;  %4902 = vmatpush1.bf16.msra.mxu1 %v7533_v13  ;;  %v7534_v18 = vld [vmem:[%s11031_s6 + $0x30] sm:$0xff]  }
 0x28b   : > { %v3304_v56 = vsel %vm3240_vm4, %v3208_v44, %v3272_v0  ;;  %v3950_v39 = vsel %vm1162_vm7, %v11383_v53, %v11382_v9  ;;  %v9511_v0 = vpop.f32.mrb[176].mxu0  ;;  %v9518_v10 = vsel %vm706_vm3, %v3534_v49, %v3538_v50  ;;  %v11387_v9 = vrot.slane %v9402_v8, 1  ;;  %4903 = vmatprep.subr.bf16.mxu1 %v11319_v60 }
 0x28c   : > { %11381 = vst [vmem:[#allocation40_spill] sm:$0xff] %v9492_v59  ;;  %3337 = vst [vmem:[#allocation2 + $0xb1] sm:$0xff] %v3304_v56  ;;  %4346 = vmatmul.mubr.bf16.gmra.mrb[200].mxu0 %v3950_v39  ;;  %v3958_v11 = vsel %vm1162_vm7, %v11385_v51, %v11384_v43  ;;  %v11138_v44 = vrot.slane %v9492_v59, 1  ;;  %v3170_v61 = vmul.f32 %v9242_v2, %v3131_v54  ;;  %v3060_v63 = vpop.f32.mrb[177].mxu0  ;;  %v3540_v13 = vshrl.u32 %v9390_v17, 16  ;;  %v7543_v54 = vld [vmem:[%s11031_s6 + $0xb0] sm:$0xff]  }
 0x28d   : > { %3378 = vst [vmem:[#allocation2 + $0xb3] sm:$0x40] %v3304_v56  ;;  %4353 = vmatprep.mubr.bf16.mxu0 %v3958_v11  ;;  %11386 = vst [vmem:[#allocation13_spill] sm:$0xff] %v9518_v10  ;;  %7297 = vmatpush3.bf16.msra.mxu0 %v7529_v31  ;;  %v2814_v56 = vpop.f32.mrb[188].mxu1  ;;  %v7211_v39 = vpop.f32.mrb[178].mxu0  ;;  %v9539_v16 = vrot.slane %v3544_v14, 1 }
 0x28e   : > { %v9525_v53 = vsel %vm982_vm0, %v11387_v9, %v11138_v44  ;;  %7298 = vmatprep.subr.bf16.mxu0 %v7536_v36  ;;  %v3209_v31 = vadd.f32 %v9248_v33, %v3170_v61  ;;  %v3024_v49 = vadd.f32 %v9346_v58, %v2814_v56  ;;  %v2816_v51 = vpop.f32.mrb[189].mxu1  ;;  %v9536_v63 = vpop.f32.mrb[179].mxu0  ;;  %v3542_v44 = vor.u32 %v3540_v13, %v3538_v50  ;;  %v7535_v61 = vld [vmem:[%s11031_s6 + $0x38] sm:$0xff]   ;;  %v3417_v39 = vld [vmem:[#allocation2 + $0xa0] sm:$0xff] }
 0x28f   : > { %11388 = vst [vmem:[#allocation45_spill] sm:$0xff] %v9525_v53  ;;  %v11143_v43 = vrot.slane %v9525_v53, 4  ;;  %v2817_v9 = vpop.f32.mrb[190].mxu1  ;;  %4904 = vmatpush1.bf16.msra.mxu1 %v7534_v18  ;;  %v11389_v51 = vrot.slane %v9433_v40, 4  ;;  %v3548_v32 = vshrl.u32 %v9402_v8, 16  ;;  %v11398_v28 = vrot.slane %v9525_v53, 4 }
 0x290   : > { %vm3241_vm5 = vcmp.ge.f32.partialorder %v3209_v31, 0.0  ;;  %v3273_v58 = vmul.f32 0.1, %v3209_v31  ;;  %v3132_v56 = vadd.f32 %v3024_v49, %v9186_v26  ;;  %v2818_v11 = vpop.f32.mrb[191].mxu1  ;;  %4905 = vmatprep.subr.bf16.mxu1 %v11319_v60  ;;  %v11391_v26 = vrot.slane %v9286_v4, 4 }
 0x291   : > { %v3978_v9 = vsel %vm1162_vm7, %v11389_v51, %v11143_v43  ;;  %v3418_v50 = vld [vmem:[#allocation2 + $0xa8] sm:$0xff]  ;;  %7299 = vmatpush3.bf16.msra.mxu0 %v7536_v36  ;;  %v11392_v49 = vrot.slane %v9284_v48, 4  ;;  %v11393_v36 = vrot.slane %v9518_v10, 4 }
 0x292   : > { %7252 = vmatprep.mubr.bf16.mxu1 %v3978_v9  ;;  %v9551_v14 = vpack.c.bf16 %v3418_v50, %v3417_v39  ;;  %7300 = vmatprep.subr.bf16.mxu0 %v7543_v54  ;;  %v3305_v18 = vsel %vm3241_vm5, %v3209_v31, %v3273_v58  ;;  %v3171_v13 = vmul.f32 %v9242_v2, %v3132_v56  ;;  %v11394_v39 = vrot.slane %v9473_v12, 4 }
 0x293   : > { %v3956_v40 = vsel %vm1162_vm7, %v11392_v49, %v11391_v26  ;;  %v3419_v51 = vld [vmem:[#allocation2 + $0xb0] sm:$0xff]  ;;  %3338 = vst [vmem:[#allocation2 + $0xc1] sm:$0xff] %v3305_v18  ;;  %3363 = vst [vmem:[#allocation2 + $0xbf] sm:$0x2] %v3305_v18  ;;  %v3552_v56 = vshll.u32 %v9492_v59, 16  ;;  %v7214_v50 = vpop.f32.mrb[180].mxu0  ;;  %4906 = vmatpush1.bf16.msra.mxu1 %v7535_v61  ;;  %v9574_v18 = vsel %vm706_vm3, %v3542_v44, %v9539_v16 }
 0x294   : > { %11390 = vst [vmem:[#allocation3_spill] sm:$0xff] %v9551_v14  ;;  %v3420_v11 = vld [vmem:[#allocation2 + $0xb8] sm:$0xff]  ;;  %4354 = vmatmul.mubr.bf16.gmra.mrb[204].mxu0 %v3956_v40  ;;  %v3964_v9 = vsel %vm1162_vm7, %v11394_v39, %v11393_v36  ;;  %v3774_v31 = vrot.slane %v9551_v14, 1  ;;  %v7537_v26 = vld [vmem:[%s11031_s6 + $0x40] sm:$0xff]   ;;  %v3210_v40 = vadd.f32 %v9248_v33, %v3171_v13  ;;  %v9576_v49 = vpop.f32.mrb[181].mxu0  ;;  %4907 = vmatprep.subr.bf16.mxu1 %v11319_v60  ;;  %v11156_v39 = vrot.slane %v9574_v18, 4 }
 0x295   : > { %v9565_v58 = vpack.c.bf16 %v3420_v11, %v3419_v51  ;;  %4361 = vmatprep.mubr.bf16.mxu0 %v3964_v9  ;;  %v2821_v51 = vpop.f32.mrb[192].mxu1  ;;  %v11395_v11 = vrot.slane %v9492_v59, 1  ;;  %v9586_v13 = vpop.f32.mrb[182].mxu0  ;;  %7301 = vmatpush3.bf16.msra.mxu0 %v7543_v54  ;;  %v3554_v54 = vrot.slane %v3552_v56, 1 }
 0x296   : > { %vm3242_vm6 = vcmp.ge.f32.partialorder %v3210_v40, 0.0  ;;  %v3274_v44 = vmul.f32 0.1, %v3210_v40  ;;  %v3031_v9 = vadd.f32 %v9410_v27, %v2821_v51  ;;  %v2823_v50 = vpop.f32.mrb[193].mxu1  ;;  %v9590_v12 = vpop.f32.mrb[183].mxu0  ;;  %v7538_v27 = vld [vmem:[%s11031_s6 + $0x48] sm:$0xff]  }
 0x297   : > { %v9582_v61 = vsel %vm982_vm0, %v11395_v11, %v3774_v31  ;;  %v11154_v36 = vrot.slane %v9565_v58, 1  ;;  %v2824_v48 = vpop.f32.mrb[194].mxu1  ;;  %4908 = vmatpush1.bf16.msra.mxu1 %v7537_v26 }
 0x298   : > { %11396 = vst [vmem:[#allocation4_spill] sm:$0xff] %v9582_v61  ;;  %v3983_v43 = vrot.slane %v9582_v61, 4  ;;  %v3306_v51 = vsel %vm3242_vm6, %v3210_v40, %v3274_v44  ;;  %v3133_v50 = vadd.f32 %v3031_v9, %v9194_v5  ;;  %v3034_v61 = vadd.f32 %v9425_v62, %v2824_v48  ;;  %4909 = vmatprep.subr.bf16.mxu1 %v11319_v60 }
 0x299   : > { %v9595_v11 = vsel %vm982_vm0, %v3774_v31, %v11154_v36  ;;  %v2826_v36 = vpop.f32.mrb[195].mxu1  ;;  %3339 = vst [vmem:[#allocation2 + $0xc9] sm:$0xff] %v3306_v51  ;;  %3379 = vst [vmem:[#allocation2 + $0xcb] sm:$0x40] %v3306_v51  ;;  %v11399_v5 = vrot.slane %v9350_v24, 4  ;;  %v11400_v48 = vrot.slane %v9286_v4, 4 }
 0x29a   : > { %11397 = vst [vmem:[#allocation14_spill] sm:$0xff] %v9595_v11  ;;  %v3984_v31 = vsel %vm1162_vm7, %v11398_v28, %v3983_v43  ;;  %v11155_v56 = vrot.slane %v9595_v11, 4  ;;  %v3172_v26 = vmul.f32 %v9242_v2, %v3133_v50  ;;  %v3134_v40 = vadd.f32 %v3034_v61, %v9201_v47  ;;  %v3421_v53 = vld [vmem:[#allocation2 + $0xc0] sm:$0xff] }
 0x29b   : > { %7253 = vmatmul.mubr.bf16.gmra.mrb[252].mxu1 %v3984_v31  ;;  %v3962_v62 = vsel %vm1162_vm7, %v11400_v48, %v11399_v5  ;;  %v3550_v28 = vor.u32 %v3548_v32, %v9539_v16  ;;  %v11401_v44 = vrot.slane %v9518_v10, 4  ;;  %v3560_v47 = vshll.u32 %v9551_v14, 16  ;;  %v9626_v61 = vpop.f32.mrb[184].mxu0  ;;  %v7539_v32 = vld [vmem:[%s11031_s6 + $0x50] sm:$0xff]  }
 0x29c   : > { %v3990_v36 = vsel %vm1162_vm7, %v3983_v43, %v11155_v56  ;;  %4362 = vmatmul.mubr.bf16.gmra.mrb[208].mxu0 %v3962_v62  ;;  %4910 = vmatpush1.bf16.msra.mxu1 %v7538_v27  ;;  %v3211_v16 = vadd.f32 %v9248_v33, %v3172_v26  ;;  %v3173_v43 = vmul.f32 %v9242_v2, %v3134_v40  ;;  %v9636_v50 = vpop.f32.mrb[185].mxu0 }
 0x29d   : > { %v3970_v9 = vsel %vm1162_vm7, %v11401_v44, %v11156_v39  ;;  %7256 = vmatprep.mubr.bf16.mxu1 %v3990_v36  ;;  %v9634_v51 = vsel %vm706_vm3, %v3550_v28, %v3554_v54  ;;  %v2829_v31 = vpop.f32.mrb[196].mxu1  ;;  %v9638_v5 = vpop.f32.mrb[186].mxu0  ;;  %4911 = vmatprep.subr.bf16.mxu1 %v11319_v60  ;;  %v3556_v28 = vshrl.u32 %v9492_v59, 16  ;;  %v11404_v44 = vrot.slane %v9390_v17, 4 }
 0x29e   : > { %4369 = vmatprep.mubr.bf16.mxu0 %v3970_v9  ;;  %11402 = vst [vmem:[#allocation46_spill] sm:$0xff] %v9634_v51  ;;  %vm3243_vm8 = vcmp.ge.f32.partialorder %v3211_v16, 0.0  ;;  %v3275_v27 = vmul.f32 0.1, %v3211_v16  ;;  %v3212_v48 = vadd.f32 %v9248_v33, %v3173_v43  ;;  %v2830_v62 = vpop.f32.mrb[197].mxu1  ;;  %v3092_v40 = vpop.f32.mrb[187].mxu0 }
 0x29f   : > { %v2831_v36 = vpop.f32.mrb[198].mxu1  ;;  %v3562_v9 = vrot.slane %v3560_v47, 1  ;;  %v7540_v31 = vld [vmem:[%s11031_s6 + $0x58] sm:$0xff]   ;;  %v3558_v10 = vor.u32 %v3556_v28, %v3554_v54  ;;  %v7541_v54 = vld [vmem:[%s11031_s6 + $0x60] sm:$0xff]  }
 0x2a0   : > { %4912 = vmatpush1.bf16.msra.mxu1 %v7539_v32  ;;  %v3307_v56 = vsel %vm3243_vm8, %v3211_v16, %v3275_v27  ;;  %vm3244_vm9 = vcmp.ge.f32.partialorder %v3212_v48, 0.0  ;;  %v3276_v39 = vmul.f32 0.1, %v3212_v48  ;;  %v3422_v43 = vld [vmem:[#allocation2 + $0xc8] sm:$0xff]  ;;  %v3041_v62 = vadd.f32 %v9418_v34, %v2831_v36  ;;  %v2833_v26 = vpop.f32.mrb[199].mxu1 }
 0x2a1   : > { %4913 = vmatprep.subr.bf16.mxu1 %v11319_v60  ;;  %3340 = vst [vmem:[#allocation2 + $0xd9] sm:$0xff] %v3307_v56  ;;  %3364 = vst [vmem:[#allocation2 + $0xd7] sm:$0x2] %v3307_v56  ;;  %v9650_v40 = vpack.c.bf16 %v3422_v43, %v3421_v53  ;;  %v11405_v16 = vrot.slane %v9350_v24, 4  ;;  %v11406_v26 = vrot.slane %v9634_v51, 4  ;;  %v11407_v53 = vrot.slane %v9574_v18, 4 }
 0x2a2   : > { %v3308_v47 = vsel %vm3244_vm9, %v3212_v48, %v3276_v39  ;;  %v3135_v32 = vadd.f32 %v3041_v62, %v9198_v7  ;;  %v3568_v7 = vshll.u32 %v9565_v58, 16  ;;  %v7546_v48 = vld [vmem:[%s11031_s6 + $0xb8] sm:$0xff]  }
 0x2a3   : > { %11403 = vst [vmem:[#allocation6_spill] sm:$0xff] %v9650_v40  ;;  %v3968_v27 = vsel %vm1162_vm7, %v11405_v16, %v11404_v44  ;;  %3341 = vst [vmem:[#allocation2 + $0xe1] sm:$0xff] %v3308_v47  ;;  %v11161_v34 = vrot.slane %v9650_v40, 1  ;;  %v3976_v39 = vsel %vm1162_vm7, %v11407_v53, %v11406_v26  ;;  %v9665_v56 = vpop.f32.mrb[188].mxu0  ;;  %v9675_v44 = vsel %vm706_vm3, %v3558_v10, %v3562_v9 }
 0x2a4   : > { %3380 = vst [vmem:[#allocation2 + $0xe3] sm:$0x40] %v3308_v47  ;;  %4370 = vmatmul.mubr.bf16.gmra.mrb[212].mxu0 %v3968_v27  ;;  %4914 = vmatpush1.bf16.msra.mxu1 %v7540_v31  ;;  %v3174_v36 = vmul.f32 %v9242_v2, %v3135_v32  ;;  %v3104_v28 = vpop.f32.mrb[189].mxu0  ;;  %v11408_v31 = vrot.slane %v9565_v58, 1  ;;  %v3564_v47 = vshrl.u32 %v9551_v14, 16  ;;  %v11163_v26 = vrot.slane %v9402_v8, 4 }
 0x2a5   : > { %4377 = vmatprep.mubr.bf16.mxu0 %v3976_v39  ;;  %4915 = vmatprep.subr.bf16.mxu1 %v11319_v60  ;;  %v2836_v62 = vpop.f32.mrb[200].mxu1  ;;  %v7223_v16 = vpop.f32.mrb[190].mxu0  ;;  %v11162_v28 = vrot.slane %v9675_v44, 4 }
 0x2a6   : > { %v9683_v43 = vsel %vm982_vm0, %v11408_v31, %v11161_v34  ;;  %7302 = vmatprep.subr.bf16.mxu0 %v7546_v48  ;;  %v3213_v10 = vadd.f32 %v9248_v33, %v3174_v36  ;;  %v3046_v32 = vadd.f32 %v9475_v6, %v2836_v62  ;;  %v2838_v27 = vpop.f32.mrb[201].mxu1  ;;  %v9690_v53 = vpop.f32.mrb[191].mxu0  ;;  %v3566_v31 = vor.u32 %v3564_v47, %v3562_v9  ;;  %v7542_v16 = vld [vmem:[%s11031_s6 + $0x68] sm:$0xff]  }
 0x2a7   : > { %11409 = vst [vmem:[#allocation17_spill] sm:$0xff] %v9683_v43  ;;  %v11164_v2 = vrot.slane %v9683_v43, 4  ;;  %7303 = vmatpush3.bf16.msra.mxu0 %v7546_v48  ;;  %v2839_v39 = vpop.f32.mrb[202].mxu1  ;;  %v9693_v34 = vrot.slane %v3568_v7, 1  ;;  %v11410_v33 = vrot.slane %v9595_v11, 4  ;;  %v3423_v7 = vld [vmem:[#allocation2 + $0xd0] sm:$0xff] }
 0x2a8   : > { %4916 = vmatpush1.bf16.msra.mxu1 %v7541_v54  ;;  %5534 = vmatprep.subr.bf16.mxu0 %v11319_v60  ;;  %vm3245_vm10 = vcmp.ge.f32.partialorder %v3213_v10, 0.0  ;;  %v3277_v48 = vmul.f32 0.1, %v3213_v10  ;;  %v3136_v36 = vadd.f32 %v3046_v32, %v9208_v52  ;;  %v2840_v9 = vpop.f32.mrb[203].mxu1  ;;  %v3424_v62 = vld [vmem:[#allocation2 + $0xd8] sm:$0xff]  ;;  %v11411_v52 = vrot.slane %v9390_v17, 4 }
 0x2a9   : > { %v3996_v6 = vsel %vm1162_vm7, %v11410_v33, %v11164_v2  ;;  %4917 = vmatprep.subr.bf16.mxu1 %v11319_v60  ;;  %v9706_v54 = vpack.c.bf16 %v3424_v62, %v3423_v7  ;;  %v9711_v27 = vld [vmem:[%s11029_s4] ss:$0 sm:$0xff]  ;;  %v3576_v7 = vshll.u32 %v9650_v40, 16  ;;  %v7544_v62 = vld [vmem:[%s11031_s6 + $0x70] sm:$0xff]  }
 0x2aa   : > { %7257 = vmatmul.mubr.bf16.gmra.mrb[0].mxu1 %v3996_v6  ;;  %v3309_v47 = vsel %vm3245_vm10, %v3213_v10, %v3277_v48  ;;  %v3175_v39 = vmul.f32 %v9711_v27, %v3136_v36  ;;  %v3974_v32 = vsel %vm1162_vm7, %v11411_v52, %v11163_v26  ;;  %v3425_v33 = vld [vmem:[#allocation2 + $0xe0] sm:$0xff]  ;;  %v11412_v10 = vrot.slane %v9634_v51, 4 }
 0x2ab   : > { %v3426_v9 = vld [vmem:[#allocation2 + $0xe8] sm:$0xff]  ;;  %3342 = vst [vmem:[#allocation2 + $0xf1] sm:$0xff] %v3309_v47  ;;  %3365 = vst [vmem:[#allocation2 + $0xef] sm:$0x2] %v3309_v47  ;;  %v3780_v36 = vrot.slane %v9706_v54, 1  ;;  %v3572_v51 = vshrl.u32 %v9565_v58, 16 }
 0x2ac   : > { %4378 = vmatmul.mubr.bf16.gmra.mrb[216].mxu0 %v3974_v32  ;;  %v3982_v6 = vsel %vm1162_vm7, %v11412_v10, %v11162_v28  ;;  %v9724_v48 = vpack.c.bf16 %v3426_v9, %v3425_v33  ;;  %4918 = vmatpush1.bf16.msra.mxu1 %v7542_v16  ;;  %v9734_v47 = vld [vmem:[%s11030_s5] ss:$0 sm:$0xff]  ;;  %v9739_v32 = vsel %vm706_vm3, %v3566_v31, %v9693_v34  ;;  %v11413_v16 = vrot.slane %v9650_v40, 1 }
 0x2ad   : > { %v3214_v52 = vadd.f32 %v9734_v47, %v3175_v39  ;;  %4385 = vmatprep.mubr.bf16.mxu0 %v3982_v6  ;;  %4919 = vmatprep.subr.bf16.mxu1 %v11319_v60  ;;  %v2843_v33 = vpop.f32.mrb[204].mxu1  ;;  %v3979_v28 = vrot.slane %v9492_v59, 4  ;;  %v3578_v17 = vrot.slane %v3576_v7, 1  ;;  %v7545_v59 = vld [vmem:[%s11031_s6 + $0x78] sm:$0xff]  }
 0x2ae   : > { %v9745_v9 = vsel %vm982_vm0, %v11413_v16, %v3780_v36  ;;  %v11175_v10 = vrot.slane %v9724_v48, 1  ;;  %v3053_v39 = vadd.f32 %v9464_v41, %v2843_v33  ;;  %v2845_v6 = vpop.f32.mrb[205].mxu1  ;;  %v3987_v16 = vrot.slane %v9739_v32, 4 }
 0x2af   : > { %11414 = vst [vmem:[#allocation47_spill] sm:$0xff] %v9745_v9  ;;  %vm3246_vm11 = vcmp.ge.f32.partialorder %v3214_v52, 0.0  ;;  %v3278_v26 = vmul.f32 0.1, %v3214_v52  ;;  %v4001_v31 = vrot.slane %v9745_v9, 4  ;;  %v2846_v2 = vpop.f32.mrb[206].mxu1 }
 0x2b0   : > { %v9754_v11 = vsel %vm982_vm0, %v3780_v36, %v11175_v10  ;;  %4920 = vmatpush1.bf16.msra.mxu1 %v7544_v62  ;;  %v3137_v33 = vadd.f32 %v3053_v39, %v9205_v55  ;;  %v3056_v6 = vadd.f32 %v9477_v46, %v2846_v2  ;;  %v11416_v9 = vrot.slane %v9683_v43, 4  ;;  %v2848_v10 = vpop.f32.mrb[207].mxu1 }
 0x2b1   : > { %11415 = vst [vmem:[#allocation5_spill] sm:$0xff] %v9754_v11  ;;  %v3310_v41 = vsel %vm3246_vm11, %v3214_v52, %v3278_v26  ;;  %4921 = vmatprep.subr.bf16.mxu1 %v11319_v60  ;;  %v11176_v7 = vrot.slane %v9754_v11, 4  ;;  %v11417_v55 = vrot.slane %v9402_v8, 4  ;;  %v3574_v2 = vor.u32 %v3572_v51, %v9693_v34 }
 0x2b2   : > { %v4002_v36 = vsel %vm1162_vm7, %v11416_v9, %v4001_v31  ;;  %3343 = vst [vmem:[#allocation2 + $0xf9] sm:$0xff] %v3310_v41  ;;  %3381 = vst [vmem:[#allocation2 + $0xfb] sm:$0x40] %v3310_v41  ;;  %v3176_v62 = vmul.f32 %v9711_v27, %v3137_v33  ;;  %v3138_v26 = vadd.f32 %v3056_v6, %v9211_v21  ;;  %v11418_v9 = vrot.slane %v9675_v44, 4 }
 0x2b3   : > { %7260 = vmatprep.mubr.bf16.mxu1 %v4002_v36  ;;  %v3980_v46 = vsel %vm1162_vm7, %v11417_v55, %v3979_v28  ;;  %v4008_v52 = vsel %vm1162_vm7, %v4001_v31, %v11176_v7  ;;  %v3584_v39 = vshll.u32 %v9706_v54, 16  ;;  %v9784_v51 = vsel %vm706_vm3, %v3574_v2, %v3578_v17 }
 0x2b4   : > { %4386 = vmatmul.mubr.bf16.gmra.mrb[220].mxu0 %v3980_v46  ;;  %v3988_v10 = vsel %vm1162_vm7, %v11418_v9, %v3987_v16  ;;  %4922 = vmatpush1.bf16.msra.mxu1 %v7545_v59  ;;  %v3215_v21 = vadd.f32 %v9734_v47, %v3176_v62  ;;  %v3177_v41 = vmul.f32 %v9711_v27, %v3138_v26  ;;  %v3985_v36 = vrot.slane %v9551_v14, 4 }
 0x2b5   : > { %7261 = vmatmul.mubr.bf16.gmra.mrb[4].mxu1 %v4008_v52  ;;  %4393 = vmatprep.mubr.bf16.mxu0 %v3988_v10  ;;  %11419 = vst [vmem:[#allocation18_spill] sm:$0xff] %v9784_v51  ;;  %v2851_v34 = vpop.f32.mrb[208].mxu1  ;;  %v3993_v59 = vrot.slane %v9784_v51, 4  ;;  %v3580_v62 = vshrl.u32 %v9650_v40, 16  ;;  %v3586_v46 = vrot.slane %v3584_v39, 1  ;;  %v3427_v10 = vld [vmem:[#allocation2 + $0xf0] sm:$0xff] }
 0x2b6   : > { %vm3247_vm12 = vcmp.ge.f32.partialorder %v3215_v21, 0.0  ;;  %v3279_v31 = vmul.f32 0.1, %v3215_v21  ;;  %v3216_v33 = vadd.f32 %v9734_v47, %v3177_v41  ;;  %v2852_v6 = vpop.f32.mrb[209].mxu1  ;;  %v3986_v51 = vsel %vm1162_vm7, %v3979_v28, %v3985_v36  ;;  %v9798_v39 = vld [vmem:[%s11031_s6 + $0x200] sm:$0xff]  }
 0x2b7   : > { %v2853_v55 = vpop.f32.mrb[210].mxu1  ;;  %v3582_v14 = vor.u32 %v3580_v62, %v3578_v17  ;;  %7352 = vmatprep.subr.bf16.mxu1 %v9798_v39  ;;  %v11421_v28 = vrot.slane %v9724_v48, 1 }
 0x2b8   : > { %v3311_v26 = vsel %vm3247_vm12, %v3215_v21, %v3279_v31  ;;  %vm3248_vm13 = vcmp.ge.f32.partialorder %v3216_v33, 0.0  ;;  %v3280_v52 = vmul.f32 0.1, %v3216_v33  ;;  %v3063_v2 = vadd.f32 %v9536_v63, %v2853_v55  ;;  %v2855_v9 = vpop.f32.mrb[211].mxu1 }
 0x2b9   : > { %v3428_v34 = vld [vmem:[#allocation2 + $0xf8] sm:$0xff]  ;;  %3344 = vst [vmem:[#allocation2 + $0x109] sm:$0xff] %v3311_v26  ;;  %3366 = vst [vmem:[#allocation2 + $0x107] sm:$0x2] %v3311_v26  ;;  %v3994_v63 = vsel %vm1162_vm7, %v3987_v16, %v3993_v59  ;;  %v3592_v31 = vshll.u32 %v9724_v48, 16  ;;  %v3588_v16 = vshrl.u32 %v9706_v54, 16 }
 0x2ba   : > { %v9791_v41 = vpack.c.bf16 %v3428_v34, %v3427_v10  ;;  %v3312_v6 = vsel %vm3248_vm13, %v3216_v33, %v3280_v52  ;;  %v3139_v7 = vadd.f32 %v3063_v2, %v9219_v37  ;;  %v9805_v37 = vsel %vm706_vm3, %v3582_v14, %v3586_v46 }
 0x2bb   : > { %3345 = vst [vmem:[#allocation2 + $0x111] sm:$0xff] %v3312_v6  ;;  %3382 = vst [vmem:[#allocation2 + $0x113] sm:$0x40] %v3312_v6  ;;  %v3991_v14 = vrot.slane %v9565_v58, 4  ;;  %v3999_v2 = vrot.slane %v9805_v37, 4  ;;  %v3590_v9 = vor.u32 %v3588_v16, %v3586_v46  ;;  %v3594_v10 = vrot.slane %v3592_v31, 1 }
 0x2bc   : > { %4394 = vmatmul.mubr.bf16.gmra.mrb[224].mxu0 %v3986_v51  ;;  %v3784_v21 = vrot.slane %v9791_v41, 1  ;;  %v3178_v33 = vmul.f32 %v9711_v27, %v3139_v7  ;;  %11420 = vst [vmem:[#allocation48_spill] sm:$0xff] %v9805_v37 }
 0x2bd   : > { %4401 = vmatprep.mubr.bf16.mxu0 %v3994_v63  ;;  %v2858_v17 = vpop.f32.mrb[212].mxu1  ;;  %v3429_v63 = vld [vmem:[#allocation2 + $0x100] sm:$0xff]  ;;  %v3992_v46 = vsel %vm1162_vm7, %v3985_v36, %v3991_v14 }
 0x2be   : > { %v9811_v55 = vsel %vm982_vm0, %v11421_v28, %v3784_v21  ;;  %v3217_v51 = vadd.f32 %v9734_v47, %v3178_v33  ;;  %v3068_v62 = vadd.f32 %v9511_v0, %v2858_v17  ;;  %v2860_v26 = vpop.f32.mrb[213].mxu1  ;;  %v11423_v33 = vrot.slane %v9754_v11, 4 }
 0x2bf   : > { %11422 = vst [vmem:[#allocation7_spill] sm:$0xff] %v9811_v55  ;;  %v4013_v7 = vrot.slane %v9811_v55, 4  ;;  %v2861_v52 = vpop.f32.mrb[214].mxu1 }
 0x2c0   : > { %vm3249_vm14 = vcmp.ge.f32.partialorder %v3217_v51, 0.0  ;;  %v3281_v34 = vmul.f32 0.1, %v3217_v51  ;;  %v3140_v6 = vadd.f32 %v3068_v62, %v9215_v3  ;;  %v3430_v28 = vld [vmem:[#allocation2 + $0x108] sm:$0xff]  ;;  %v2862_v17 = vpop.f32.mrb[215].mxu1  ;;  %v4000_v62 = vsel %vm1162_vm7, %v3993_v59, %v3999_v2 }
 0x2c1   : > { %v4014_v0 = vsel %vm1162_vm7, %v11423_v33, %v4013_v7  ;;  %v9823_v55 = vpack.c.bf16 %v3430_v28, %v3429_v63  ;;  %v3600_v63 = vshll.u32 %v9791_v41, 16  ;;  %v3997_v33 = vrot.slane %v9650_v40, 4 }
 0x2c2   : > { %7264 = vmatprep.mubr.bf16.mxu1 %v4014_v0  ;;  %v3313_v26 = vsel %vm3249_vm14, %v3217_v51, %v3281_v34  ;;  %v3179_v52 = vmul.f32 %v9711_v27, %v3140_v6  ;;  %v3431_v31 = vld [vmem:[#allocation2 + $0x110] sm:$0xff]  ;;  %v3432_v16 = vld [vmem:[#allocation2 + $0x118] sm:$0xff]  ;;  %v9834_v51 = vsel %vm706_vm3, %v3590_v9, %v3594_v10 }
 0x2c3   : > { %3346 = vst [vmem:[#allocation2 + $0x121] sm:$0xff] %v3313_v26  ;;  %3367 = vst [vmem:[#allocation2 + $0x11f] sm:$0x2] %v3313_v26  ;;  %v3786_v3 = vrot.slane %v9823_v55, 1  ;;  %v9829_v37 = vpack.c.bf16 %v3432_v16, %v3431_v31  ;;  %v3602_v31 = vrot.slane %v3600_v63, 1 }
 0x2c4   : > { %4402 = vmatmul.mubr.bf16.gmra.mrb[228].mxu0 %v3992_v46  ;;  %v3218_v28 = vadd.f32 %v9734_v47, %v3179_v52  ;;  %v3596_v46 = vshrl.u32 %v9724_v48, 16 }
 0x2c5   : > { %4409 = vmatprep.mubr.bf16.mxu0 %v4000_v62  ;;  %v9837_v36 = vsel %vm982_vm0, %v3784_v21, %v3786_v3  ;;  %v2865_v34 = vpop.f32.mrb[216].mxu1  ;;  %v11189_v6 = vrot.slane %v9829_v37, 1  ;;  %v4005_v21 = vrot.slane %v9834_v51, 4 }
 0x2c6   : > { %11424 = vst [vmem:[#allocation9_spill] sm:$0xff] %v9837_v36  ;;  %vm3250_vm15 = vcmp.ge.f32.partialorder %v3218_v28, 0.0  ;;  %v3282_v59 = vmul.f32 0.1, %v3218_v28  ;;  %v4019_v0 = vrot.slane %v9837_v36, 4  ;;  %v3075_v17 = vadd.f32 %v9576_v49, %v2865_v34  ;;  %v2867_v26 = vpop.f32.mrb[217].mxu1 }
 0x2c7   : > { %v2868_v52 = vpop.f32.mrb[218].mxu1  ;;  %v9846_v9 = vsel %vm982_vm0, %v3786_v3, %v11189_v6  ;;  %v3998_v6 = vsel %vm1162_vm7, %v3991_v14, %v3997_v33  ;;  %v3598_v63 = vor.u32 %v3596_v46, %v3594_v10 }
 0x2c8   : > { %v3314_v16 = vsel %vm3250_vm15, %v3218_v28, %v3282_v59  ;;  %v4020_v62 = vsel %vm1162_vm7, %v4013_v7, %v4019_v0  ;;  %v3141_v40 = vadd.f32 %v3075_v17, %v9222_v42  ;;  %v3078_v36 = vadd.f32 %v9590_v12, %v2868_v52  ;;  %v2870_v49 = vpop.f32.mrb[219].mxu1 }
 0x2c9   : > { %3347 = vst [vmem:[#allocation2 + $0x129] sm:$0xff] %v3314_v16  ;;  %3383 = vst [vmem:[#allocation2 + $0x12b] sm:$0x40] %v3314_v16  ;;  %7265 = vmatmul.mubr.bf16.gmra.mrb[8].mxu1 %v4020_v62  ;;  %v4025_v34 = vrot.slane %v9846_v9, 4  ;;  %v4006_v42 = vsel %vm1162_vm7, %v3999_v2, %v4005_v21  ;;  %v3608_v12 = vshll.u32 %v9823_v55, 16  ;;  %v3604_v17 = vshrl.u32 %v9791_v41, 16 }
 0x2ca   : > { %v3180_v3 = vmul.f32 %v9711_v27, %v3141_v40  ;;  %v3142_v26 = vadd.f32 %v3078_v36, %v9227_v19  ;;  %v9863_v40 = vsel %vm706_vm3, %v3598_v63, %v3602_v31  ;;  %v3433_v62 = vld [vmem:[#allocation2 + $0x120] sm:$0xff] }
 0x2cb   : > { %v4026_v28 = vsel %vm1162_vm7, %v4019_v0, %v4025_v34  ;;  %v4011_v0 = vrot.slane %v9863_v40, 4  ;;  %v3610_v52 = vrot.slane %v3608_v12, 1 }
 0x2cc   : > { %4410 = vmatmul.mubr.bf16.gmra.mrb[232].mxu0 %v3998_v6  ;;  %v3219_v7 = vadd.f32 %v9734_v47, %v3180_v3  ;;  %v3181_v59 = vmul.f32 %v9711_v27, %v3142_v26  ;;  %7268 = vmatprep.mubr.bf16.mxu1 %v4026_v28  ;;  %v4003_v6 = vrot.slane %v9706_v54, 4 }
 0x2cd   : > { %4417 = vmatprep.mubr.bf16.mxu0 %v4006_v42  ;;  %v2873_v19 = vpop.f32.mrb[220].mxu1 }
 0x2ce   : > { %vm3251_vm1 = vcmp.ge.f32.partialorder %v3219_v7, 0.0  ;;  %v3283_v14 = vmul.f32 0.1, %v3219_v7  ;;  %v3220_v10 = vadd.f32 %v9734_v47, %v3181_v59  ;;  %v2874_v36 = vpop.f32.mrb[221].mxu1  ;;  %v4004_v59 = vsel %vm1162_vm7, %v3997_v33, %v4003_v6 }
 0x2cf   : > { %v2875_v2 = vpop.f32.mrb[222].mxu1  ;;  %v3606_v19 = vor.u32 %v3604_v17, %v3602_v31 }
 0x2d0   : > { %v3315_v46 = vsel %vm3251_vm1, %v3219_v7, %v3283_v14  ;;  %vm3252_vm2 = vcmp.ge.f32.partialorder %v3220_v10, 0.0  ;;  %v3284_v16 = vmul.f32 0.1, %v3220_v10  ;;  %v3434_v49 = vld [vmem:[#allocation2 + $0x128] sm:$0xff]  ;;  %v3085_v3 = vadd.f32 %v9586_v13, %v2875_v2  ;;  %v2877_v26 = vpop.f32.mrb[223].mxu1 }
 0x2d1   : > { %3348 = vst [vmem:[#allocation2 + $0x139] sm:$0xff] %v3315_v46  ;;  %3368 = vst [vmem:[#allocation2 + $0x137] sm:$0x2] %v3315_v46  ;;  %v9870_v63 = vpack.c.bf16 %v3434_v49, %v3433_v62  ;;  %v4012_v7 = vsel %vm1162_vm7, %v4005_v21, %v4011_v0  ;;  %v3616_v13 = vshll.u32 %v9829_v37, 16  ;;  %v9879_v36 = vsel %vm706_vm3, %v3606_v19, %v3610_v52 }
 0x2d2   : > { %v3316_v28 = vsel %vm3252_vm2, %v3220_v10, %v3284_v16  ;;  %v3143_v42 = vadd.f32 %v3085_v3, %v9224_v22  ;;  %v11426_v22 = vrot.slane %v9829_v37, 1  ;;  %v3612_v10 = vshrl.u32 %v9823_v55, 16 }
 0x2d3   : > { %11425 = vst [vmem:[#allocation21_spill] sm:$0xff] %v9870_v63  ;;  %3349 = vst [vmem:[#allocation2 + $0x141] sm:$0xff] %v3316_v28  ;;  %v3790_v12 = vrot.slane %v9870_v63, 1  ;;  %v4009_v16 = vrot.slane %v9724_v48, 4  ;;  %v4017_v49 = vrot.slane %v9879_v36, 4  ;;  %v3618_v26 = vrot.slane %v3616_v13, 1 }
 0x2d4   : > { %3384 = vst [vmem:[#allocation2 + $0x143] sm:$0x40] %v3316_v28  ;;  %4418 = vmatmul.mubr.bf16.gmra.mrb[236].mxu0 %v4004_v59  ;;  %v3182_v14 = vmul.f32 %v9711_v27, %v3143_v42  ;;  %v3614_v3 = vor.u32 %v3612_v10, %v3610_v52  ;;  %v3624_v10 = vshll.u32 %v9870_v63, 16 }
 0x2d5   : > { %4425 = vmatprep.mubr.bf16.mxu0 %v4012_v7  ;;  %v9884_v33 = vsel %vm982_vm0, %v11426_v22, %v3790_v12  ;;  %v2880_v31 = vpop.f32.mrb[224].mxu1  ;;  %v3435_v7 = vld [vmem:[#allocation2 + $0x130] sm:$0xff] }
 0x2d6   : > { %11427 = vst [vmem:[#allocation49_spill] sm:$0xff] %v9884_v33  ;;  %v4031_v2 = vrot.slane %v9884_v33, 4  ;;  %v3221_v21 = vadd.f32 %v9734_v47, %v3182_v14  ;;  %v3090_v17 = vadd.f32 %v9636_v50, %v2880_v31  ;;  %v2882_v46 = vpop.f32.mrb[225].mxu1 }
 0x2d7   : > { %v2883_v62 = vpop.f32.mrb[226].mxu1  ;;  %v4010_v46 = vsel %vm1162_vm7, %v4003_v6, %v4009_v16 }
 0x2d8   : > { %v4032_v28 = vsel %vm1162_vm7, %v4025_v34, %v4031_v2  ;;  %vm3253_vm4 = vcmp.ge.f32.partialorder %v3221_v21, 0.0  ;;  %v3285_v42 = vmul.f32 0.1, %v3221_v21  ;;  %v3144_v59 = vadd.f32 %v3090_v17, %v9231_v29  ;;  %v2884_v19 = vpop.f32.mrb[227].mxu1  ;;  %v3436_v22 = vld [vmem:[#allocation2 + $0x138] sm:$0xff] }
 0x2d9   : > { %7269 = vmatmul.mubr.bf16.gmra.mrb[12].mxu1 %v4032_v28  ;;  %v9894_v14 = vpack.c.bf16 %v3436_v22, %v3435_v7  ;;  %v4018_v34 = vsel %vm1162_vm7, %v4011_v0, %v4017_v49  ;;  %v4015_v0 = vrot.slane %v9791_v41, 4 }
 0x2da   : > { %v3317_v50 = vsel %vm3253_vm4, %v3221_v21, %v3285_v42  ;;  %v3183_v31 = vmul.f32 %v9711_v27, %v3144_v59  ;;  %v3437_v62 = vld [vmem:[#allocation2 + $0x140] sm:$0xff]  ;;  %v9905_v21 = vsel %vm706_vm3, %v3614_v3, %v3618_v26 }
 0x2db   : > { %11428 = vst [vmem:[#allocation8_spill] sm:$0xff] %v9894_v14  ;;  %v3438_v52 = vld [vmem:[#allocation2 + $0x148] sm:$0xff]  ;;  %3350 = vst [vmem:[#allocation2 + $0x151] sm:$0xff] %v3317_v50  ;;  %v3792_v29 = vrot.slane %v9894_v14, 1 }
 0x2dc   : > { %3369 = vst [vmem:[#allocation2 + $0x14f] sm:$0x2] %v3317_v50  ;;  %4426 = vmatmul.mubr.bf16.gmra.mrb[240].mxu0 %v4010_v46  ;;  %v9899_v13 = vpack.c.bf16 %v3438_v52, %v3437_v62  ;;  %v3222_v17 = vadd.f32 %v9734_v47, %v3183_v31  ;;  %11429 = vst [vmem:[#allocation43_spill] sm:$0xff] %v9905_v21  ;;  %v3620_v31 = vshrl.u32 %v9829_v37, 16  ;;  %v3626_v46 = vrot.slane %v3624_v10, 1 }
 0x2dd   : > { %4433 = vmatprep.mubr.bf16.mxu0 %v4018_v34  ;;  %v2887_v6 = vpop.f32.mrb[228].mxu1  ;;  %v9908_v28 = vsel %vm982_vm0, %v3790_v12, %v3792_v29  ;;  %v4023_v12 = vrot.slane %v9905_v21, 4  ;;  %v4016_v21 = vsel %vm1162_vm7, %v4009_v16, %v4015_v0 }
 0x2de   : > { %11430 = vst [vmem:[#allocation44_spill] sm:$0xff] %v9908_v28  ;;  %v11190_v42 = vrot.slane %v9899_v13, 1  ;;  %vm3254_vm5 = vcmp.ge.f32.partialorder %v3222_v17, 0.0  ;;  %v3286_v59 = vmul.f32 0.1, %v3222_v17  ;;  %v3097_v19 = vadd.f32 %v9626_v61, %v2887_v6  ;;  %v2889_v7 = vpop.f32.mrb[229].mxu1 }
 0x2df   : > { %v4037_v22 = vrot.slane %v9908_v28, 4  ;;  %v2890_v50 = vpop.f32.mrb[230].mxu1  ;;  %v3622_v10 = vor.u32 %v3620_v31, %v3618_v26  ;;  %v3628_v31 = vshrl.u32 %v9870_v63, 16 }
 0x2e0   : > { %v9917_v3 = vsel %vm982_vm0, %v3792_v29, %v11190_v42  ;;  %v3318_v62 = vsel %vm3254_vm5, %v3222_v17, %v3286_v59  ;;  %v3145_v52 = vadd.f32 %v3097_v19, %v9229_v35  ;;  %v3100_v34 = vadd.f32 %v9638_v5, %v2890_v50  ;;  %v2892_v6 = vpop.f32.mrb[231].mxu1 }
 0x2e1   : > { %v4038_v61 = vsel %vm1162_vm7, %v4031_v2, %v4037_v22  ;;  %3351 = vst [vmem:[#allocation2 + $0x159] sm:$0xff] %v3318_v62  ;;  %3385 = vst [vmem:[#allocation2 + $0x15b] sm:$0x40] %v3318_v62  ;;  %v4043_v7 = vrot.slane %v9917_v3, 4  ;;  %v4024_v5 = vsel %vm1162_vm7, %v4017_v49, %v4023_v12  ;;  %v3632_v2 = vshll.u32 %v9894_v14, 16 }
 0x2e2   : > { %7272 = vmatprep.mubr.bf16.mxu1 %v4038_v61  ;;  %v3184_v29 = vmul.f32 %v9711_v27, %v3145_v52  ;;  %v3146_v42 = vadd.f32 %v3100_v34, %v9233_v1  ;;  %v9936_v1 = vsel %vm706_vm3, %v3622_v10, %v3626_v46 }
 0x2e3   : > { %v4044_v35 = vsel %vm1162_vm7, %v4037_v22, %v4043_v7  ;;  %v4029_v50 = vrot.slane %v9936_v1, 4  ;;  %v3634_v62 = vrot.slane %v3632_v2, 1  ;;  %v3439_v6 = vld [vmem:[#allocation2 + $0x150] sm:$0xff]  ;;  %v3630_v2 = vor.u32 %v3628_v31, %v3626_v46 }
 0x2e4   : > { %4434 = vmatmul.mubr.bf16.gmra.mrb[244].mxu0 %v4016_v21  ;;  %v3223_v17 = vadd.f32 %v9734_v47, %v3184_v29  ;;  %v3185_v59 = vmul.f32 %v9711_v27, %v3146_v42  ;;  %7273 = vmatmul.mubr.bf16.gmra.mrb[16].mxu1 %v4044_v35  ;;  %v4021_v21 = vrot.slane %v9823_v55, 4 }
 0x2e5   : > { %4441 = vmatprep.mubr.bf16.mxu0 %v4024_v5  ;;  %v2895_v16 = vpop.f32.mrb[232].mxu1 }
 0x2e6   : > { %vm3255_vm6 = vcmp.ge.f32.partialorder %v3223_v17, 0.0  ;;  %v3287_v26 = vmul.f32 0.1, %v3223_v17  ;;  %v3224_v19 = vadd.f32 %v9734_v47, %v3185_v59  ;;  %v2896_v22 = vpop.f32.mrb[233].mxu1  ;;  %v4022_v59 = vsel %vm1162_vm7, %v4015_v0, %v4021_v21 }
 0x2e7   : > { %v2897_v49 = vpop.f32.mrb[234].mxu1  ;;  %v3640_v16 = vshll.u32 %v9899_v13, 16  ;;  %v11432_v0 = vrot.slane %v9899_v13, 1  ;;  %v3636_v22 = vshrl.u32 %v9894_v14, 16 }
 0x2e8   : > { %v3319_v42 = vsel %vm3255_vm6, %v3223_v17, %v3287_v26  ;;  %vm3256_vm8 = vcmp.ge.f32.partialorder %v3224_v19, 0.0  ;;  %v3288_v52 = vmul.f32 0.1, %v3224_v19  ;;  %v3107_v34 = vadd.f32 %v9690_v53, %v2897_v49  ;;  %v2899_v61 = vpop.f32.mrb[235].mxu1  ;;  %v3440_v29 = vld [vmem:[#allocation2 + $0x158] sm:$0xff] }
 0x2e9   : > { %3352 = vst [vmem:[#allocation2 + $0x169] sm:$0xff] %v3319_v42  ;;  %3370 = vst [vmem:[#allocation2 + $0x167] sm:$0x2] %v3319_v42  ;;  %v9943_v10 = vpack.c.bf16 %v3440_v29, %v3439_v6  ;;  %v4030_v53 = vsel %vm1162_vm7, %v4023_v12, %v4029_v50  ;;  %v3638_v61 = vor.u32 %v3636_v22, %v3634_v62  ;;  %v3642_v6 = vrot.slane %v3640_v16, 1 }
 0x2ea   : > { %3393 = vst [vmem:[#allocation2 + $0x199] sm:$0xff] %v3319_v42  ;;  %3395 = vst [vmem:[#allocation2 + $0x197] sm:$0x2] %v3319_v42  ;;  %v3320_v35 = vsel %vm3256_vm8, %v3224_v19, %v3288_v52  ;;  %v3147_v5 = vadd.f32 %v3107_v34, %v9237_v25  ;;  %v9952_v19 = vsel %vm706_vm3, %v3630_v2, %v3634_v62  ;;  %v4027_v42 = vrot.slane %v9829_v37, 4 }
 0x2eb   : > { %3353 = vst [vmem:[#allocation2 + $0x171] sm:$0xff] %v3320_v35  ;;  %3386 = vst [vmem:[#allocation2 + $0x173] sm:$0x40] %v3320_v35  ;;  %v3796_v17 = vrot.slane %v9943_v10, 1  ;;  %v4035_v34 = vrot.slane %v9952_v19, 4 }
 0x2ec   : > { %3394 = vst [vmem:[#allocation2 + $0x1a1] sm:$0xff] %v3320_v35  ;;  %3396 = vst [vmem:[#allocation2 + $0x1a3] sm:$0x40] %v3320_v35  ;;  %4442 = vmatmul.mubr.bf16.gmra.mrb[248].mxu0 %v4022_v59  ;;  %v3186_v26 = vmul.f32 %v9711_v27, %v3147_v5  ;;  %v3441_v59 = vld [vmem:[#allocation2 + $0x160] sm:$0xff]  ;;  %v4028_v62 = vsel %vm1162_vm7, %v4021_v21, %v4027_v42 }
 0x2ed   : > { %4449 = vmatprep.mubr.bf16.mxu0 %v4030_v53  ;;  %11431 = vst [vmem:[#allocation22_spill] sm:$0xff] %v9952_v19  ;;  %v2902_v25 = vpop.f32.mrb[236].mxu1  ;;  %v9957_v46 = vsel %vm982_vm0, %v11432_v0, %v3796_v17 }
 0x2ee   : > { %v3225_v12 = vadd.f32 %v9734_v47, %v3186_v26  ;;  %v3112_v49 = vadd.f32 %v9665_v56, %v2902_v25  ;;  %v4049_v31 = vrot.slane %v9957_v46, 4  ;;  %v2904_v52 = vpop.f32.mrb[237].mxu1 }
 0x2ef   : > { %v2905_v29 = vpop.f32.mrb[238].mxu1 }
 0x2f0   : > { %vm3257_vm9 = vcmp.ge.f32.partialorder %v3225_v12, 0.0  ;;  %v3289_v35 = vmul.f32 0.1, %v3225_v12  ;;  %v3148_v5 = vadd.f32 %v3112_v49, %v9235_v15  ;;  %v3442_v2 = vld [vmem:[#allocation2 + $0x168] sm:$0xff]  ;;  %v4050_v56 = vsel %vm1162_vm7, %v4043_v7, %v4049_v31  ;;  %v2906_v53 = vpop.f32.mrb[239].mxu1 }
 0x2f1   : > { %v9969_v26 = vpack.c.bf16 %v3442_v2, %v3441_v59  ;;  %7276 = vmatprep.mubr.bf16.mxu1 %v4050_v56  ;;  %v4036_v49 = vsel %vm1162_vm7, %v4029_v50, %v4035_v34  ;;  %v4033_v50 = vrot.slane %v9870_v63, 4 }
 0x2f2   : > { %v3321_v25 = vsel %vm3257_vm9, %v3225_v12, %v3289_v35  ;;  %v3187_v0 = vmul.f32 %v9711_v27, %v3148_v5  ;;  %v3443_v16 = vld [vmem:[#allocation2 + $0x170] sm:$0xff]  ;;  %v3444_v22 = vld [vmem:[#allocation2 + $0x178] sm:$0xff]  ;;  %v9979_v12 = vsel %vm706_vm3, %v3638_v61, %v3642_v6  ;;  %v3648_v27 = vshll.u32 %v9943_v10, 16 }
 0x2f3   : > { %3354 = vst [vmem:[#allocation2 + $0x181] sm:$0xff] %v3321_v25  ;;  %3371 = vst [vmem:[#allocation2 + $0x17f] sm:$0x2] %v3321_v25  ;;  %v3798_v15 = vrot.slane %v9969_v26, 1  ;;  %v9975_v52 = vpack.c.bf16 %v3444_v22, %v3443_v16  ;;  %v3644_v61 = vshrl.u32 %v9899_v13, 16  ;;  %v4034_v25 = vsel %vm1162_vm7, %v4027_v42, %v4033_v50  ;;  %v3448_v42 = vld [vmem:[#allocation2 + $0x198] sm:$0xff] }
 0x2f4   : > { %4450 = vmatmul.mubr.bf16.gmra.mrb[252].mxu0 %v4028_v62  ;;  %v3226_v7 = vadd.f32 %v9734_v47, %v3187_v0  ;;  %11433 = vst [vmem:[#allocation50_spill] sm:$0xff] %v9979_v12  ;;  %v4041_v47 = vrot.slane %v9979_v12, 4  ;;  %v3650_v53 = vrot.slane %v3648_v27, 1 }
 0x2f5   : > { %4457 = vmatprep.mubr.bf16.mxu0 %v4036_v49  ;;  %v9983_v21 = vsel %vm982_vm0, %v3796_v17, %v3798_v15  ;;  %v3800_v29 = vrot.slane %v9975_v52, 1  ;;  %v3646_v62 = vor.u32 %v3644_v61, %v3642_v6  ;;  %v3397_v49 = vld [vmem:[#allocation2] sm:$0xff] }
 0x2f6   : > { %vm3258_vm10 = vcmp.ge.f32.partialorder %v3226_v7, 0.0  ;;  %v3290_v35 = vmul.f32 0.1, %v3226_v7  ;;  %v4055_v5 = vrot.slane %v9983_v21, 4  ;;  %v4042_v16 = vsel %vm1162_vm7, %v4035_v34, %v4041_v47 }
 0x2f7   : > { %v9989_v59 = vsel %vm982_vm0, %v3798_v15, %v3800_v29  ;;  %v9999_v22 = vsel %vm706_vm3, %v3646_v62, %v3650_v53  ;;  %v4039_v15 = vrot.slane %v9894_v14, 4  ;;  %v3652_v34 = vshrl.u32 %v9943_v10, 16 }
 0x2f8   : > { %11434 = vst [vmem:[#allocation12_spill] sm:$0xff] %v9989_v59  ;;  %v3322_v2 = vsel %vm3258_vm10, %v3226_v7, %v3290_v35  ;;  %v4056_v56 = vsel %vm1162_vm7, %v4049_v31, %v4055_v5  ;;  %v4061_v17 = vrot.slane %v9989_v59, 4  ;;  %11435 = vst [vmem:[#allocation42_spill] sm:$0xff] %v9999_v22  ;;  %v3656_v31 = vshll.u32 %v9969_v26, 16  ;;  %v3398_v7 = vld [vmem:[#allocation2 + $0x8] sm:$0xff]  ;;  %v3449_v35 = vld [vmem:[#allocation2 + $0x1a0] sm:$0xff] }
 0x2f9   : > { %3355 = vst [vmem:[#allocation2 + $0x189] sm:$0xff] %v3322_v2  ;;  %3387 = vst [vmem:[#allocation2 + $0x18b] sm:$0x40] %v3322_v2  ;;  %7277 = vmatmul.mubr.bf16.gmra.mrb[20].mxu1 %v4056_v56  ;;  %v4047_v27 = vrot.slane %v9999_v22, 4  ;;  %v10009_v62 = vpack.c.bf16 %v3398_v7, %v3397_v49  ;;  %v3654_v14 = vor.u32 %v3652_v34, %v3650_v53 }
 0x2fa   : > { %v4062_v0 = vsel %vm1162_vm7, %v4055_v5, %v4061_v17  ;;  %v3450_v5 = vld [vmem:[#allocation2 + $0x1a8] sm:$0xff]  ;;  %v3445_v6 = vld [vmem:[#allocation2 + $0x180] sm:$0xff]  ;;  %v3658_v56 = vrot.slane %v3656_v31, 1 }
 0x2fb   : > { %7280 = vmatprep.mubr.bf16.mxu1 %v4062_v0  ;;  %v4048_v12 = vsel %vm1162_vm7, %v4041_v47, %v4047_v27  ;;  %v10014_v63 = vpack.c.bf16 %v3450_v5, %v3449_v35  ;;  %v3483_v53 = vshll.u32 %v10009_v62, 16  ;;  %v4045_v35 = vrot.slane %v9899_v13, 4 }
 0x2fc   : > { %4458 = vmatmul.mubr.bf16.gmra.mrb[0].mxu0 %v4034_v25  ;;  %v10018_v31 = vsel %vm706_vm3, %v3654_v14, %v3658_v56 }
 0x2fd   : > { %4465 = vmatprep.mubr.bf16.mxu0 %v4042_v16  ;;  %v4040_v16 = vsel %vm1162_vm7, %v4033_v50, %v4039_v15  ;;  %11438 = vst [vmem:[#allocation11_spill] sm:$0xff] %v10014_v63  ;;  %11439 = vst [vmem:[#allocation15_spill] sm:$0xff] %v10018_v31  ;;  %v11206_v14 = vrot.slane %v10014_v63, 1  ;;  %v4053_v5 = vrot.slane %v10018_v31, 4  ;;  %v3485_v34 = vrot.slane %v3483_v53, 1 }
 0x2fe   : > { %v3481_v31 = vshrl.u32 %v10009_v62, 16 }
 0x300   : > { %v3446_v61 = vld [vmem:[#allocation2 + $0x188] sm:$0xff]  ;;  %v3447_v2 = vld [vmem:[#allocation2 + $0x190] sm:$0xff] }
 0x301   : > { %v10005_v25 = vpack.c.bf16 %v3446_v61, %v3445_v6  ;;  %v10007_v0 = vpack.c.bf16 %v3448_v42, %v3447_v2  ;;  %v3664_v42 = vshll.u32 %v9975_v52, 16 }
 0x303   : > { %11436 = vst [vmem:[#allocation25_spill] sm:$0xff] %v10005_v25  ;;  %11437 = vst [vmem:[#allocation51_spill] sm:$0xff] %v10007_v0  ;;  %v3802_v22 = vrot.slane %v10005_v25, 1  ;;  %v3804_v19 = vrot.slane %v10007_v0, 1  ;;  %v3666_v61 = vrot.slane %v3664_v42, 1  ;;  %v3672_v42 = vshll.u32 %v10005_v25, 16 }
 0x304   : > { %4466 = vmatmul.mubr.bf16.gmra.mrb[4].mxu0 %v4040_v16  ;;  %v4046_v16 = vsel %vm1162_vm7, %v4039_v15, %v4045_v35 }
 0x305   : > { %4473 = vmatprep.mubr.bf16.mxu0 %v4048_v12  ;;  %v10022_v49 = vsel %vm982_vm0, %v3800_v29, %v3802_v22  ;;  %v10025_v50 = vsel %vm982_vm0, %v3802_v22, %v3804_v19  ;;  %v3660_v12 = vshrl.u32 %v9969_v26, 16  ;;  %v10039_v2 = vsel %vm982_vm0, %v3804_v19, %v11206_v14 }
 0x306   : > { %11440 = vst [vmem:[#allocation26_spill] sm:$0xff] %v10025_v50  ;;  %v4067_v47 = vrot.slane %v10022_v49, 4  ;;  %v4073_v7 = vrot.slane %v10025_v50, 4  ;;  %11441 = vst [vmem:[#allocation52_spill] sm:$0xff] %v10039_v2  ;;  %v4054_v50 = vsel %vm1162_vm7, %v4047_v27, %v4053_v5  ;;  %v4051_v19 = vrot.slane %v9943_v10, 4 }
 0x307   : > { %v3662_v22 = vor.u32 %v3660_v12, %v3658_v56  ;;  %v3668_v12 = vshrl.u32 %v9975_v52, 16  ;;  %v3674_v27 = vrot.slane %v3672_v42, 1 }
 0x308   : > { %v4068_v29 = vsel %vm1162_vm7, %v4061_v17, %v4067_v47  ;;  %v4074_v6 = vsel %vm1162_vm7, %v4067_v47, %v4073_v7  ;;  %v4079_v17 = vrot.slane %v10039_v2, 4  ;;  %v3486_v47 = vor.u32 %v3485_v34, %v3481_v31 }
 0x309   : > { %7281 = vmatmul.mubr.bf16.gmra.mrb[24].mxu1 %v4068_v29  ;;  %v10046_v56 = vsel %vm706_vm3, %v3662_v22, %v3666_v61  ;;  %v3676_v34 = vshrl.u32 %v10005_v25, 16 }
 0x30a   : > { %7284 = vmatprep.mubr.bf16.mxu1 %v4074_v6  ;;  %v4059_v53 = vrot.slane %v10046_v56, 4  ;;  %v4080_v15 = vsel %vm1162_vm7, %v4073_v7, %v4079_v17  ;;  %v3491_v29 = vsel %vm706_vm3, %v3486_v47, %v9307_v23  ;;  %v3670_v6 = vor.u32 %v3668_v12, %v3666_v61  ;;  %v7552_v23 = vld [vmem:[%s11031_s6 + $0x208] sm:$0xff]   ;;  %v7557_v47 = vld [vmem:[%s11031_s6 + $0x210] sm:$0xff]  }
 0x30b   : > { %v4057_v7 = vrot.slane %v9969_v26, 4  ;;  %v4063_v12 = vrot.slane %v9975_v52, 4 }
 0x30c   : > { %4474 = vmatmul.mubr.bf16.gmra.mrb[8].mxu0 %v4046_v16  ;;  %v4060_v31 = vsel %vm1162_vm7, %v4053_v5, %v4059_v53  ;;  %v10058_v22 = vsel %vm706_vm3, %v3670_v6, %v3674_v27  ;;  %v3680_v16 = vshll.u32 %v10007_v0, 16 }
 0x30d   : > { %4481 = vmatprep.mubr.bf16.mxu0 %v4054_v50  ;;  %v4052_v50 = vsel %vm1162_vm7, %v4045_v35, %v4051_v19  ;;  %v4065_v17 = vrot.slane %v10058_v22, 4  ;;  %v3678_v35 = vor.u32 %v3676_v34, %v3674_v27  ;;  %v4058_v5 = vsel %vm1162_vm7, %v4051_v19, %v4057_v7 }
 0x30e   : > { %v3682_v61 = vrot.slane %v3680_v16, 1  ;;  %v3688_v19 = vshll.u32 %v10014_v63, 16 }
 0x30f   : > { %v4066_v42 = vsel %vm1162_vm7, %v4059_v53, %v4065_v17  ;;  %v7562_v53 = vld [vmem:[%s11031_s6 + $0x218] sm:$0xff]  }
 0x311   : > { %7285 = vmatmul.mubr.bf16.gmra.mrb[28].mxu1 %v4080_v15  ;;  %v10076_v15 = vsel %vm706_vm3, %v3678_v35, %v3682_v61  ;;  %v3755_v35 = vrot.slane %v10009_v62, 1 }
 0x312   : > { %4923 = vmatprep.mubr.bf16.mxu1 %v3491_v29  ;;  %11442 = vst [vmem:[#allocation29_spill] sm:$0xff] %v10076_v15  ;;  %v4064_v29 = vsel %vm1162_vm7, %v4057_v7, %v4063_v12 }
 0x314   : > { %4482 = vmatmul.mubr.bf16.gmra.mrb[12].mxu0 %v4052_v50  ;;  %v10088_v50 = vrot.slane %v3688_v19, 1  ;;  %v11449_v19 = vld [vmem:[#allocation39_spill] sm:$0xff] }
 0x315   : > { %4489 = vmatprep.mubr.bf16.mxu0 %v4060_v31  ;;  %v7567_v31 = vld [vmem:[%s11031_s6 + $0x220] sm:$0xff]  }
 0x316   : > { %11443 = vst [vmem:[#allocation53_spill] sm:$0xff] %v10088_v50 }
 0x319   : > { %4924 = vmatmul.mubr.bf16.vlgmr.msra.gmra.mrb[32].mxu1 %v10009_v62  ;;  %v7548_v62 = vld [vmem:[%s11031_s6 + $0x180] sm:$0xff]  }
 0x31a   : > { %4931 = vmatprep.mubr.bf16.mxu1 %v9340_v38  ;;  %7353 = vmatpush3.bf16.msra.mxu1 %v9798_v39  ;;  %v3684_v38 = vshrl.u32 %v10007_v0, 16  ;;  %v4071_v39 = vrot.slane %v10076_v15, 4 }
 0x31b   : > { %7354 = vmatprep.subr.bf16.mxu1 %v7552_v23 }
 0x31c   : > { %4490 = vmatmul.mubr.bf16.gmra.mrb[16].mxu0 %v4058_v5  ;;  %v3686_v27 = vor.u32 %v3684_v38, %v3682_v61  ;;  %v4072_v6 = vsel %vm1162_vm7, %v4065_v17, %v4071_v39  ;;  %v11445_v5 = vld [vmem:[#allocation16_spill] sm:$0xff]  ;;  %v11448_v38 = vld [vmem:[#allocation19_spill] sm:$0xff] }
 0x31d   : > { %4497 = vmatprep.mubr.bf16.mxu0 %v4066_v42  ;;  %v11446_v61 = vld [vmem:[#allocation32_spill] sm:$0xff] }
 0x31e   : > { %7355 = vmatpush3.bf16.msra.mxu1 %v7552_v23  ;;  %v10096_v34 = vsel %vm706_vm3, %v3686_v27, %v10088_v50  ;;  %v4075_v23 = vrot.slane %v10007_v0, 4  ;;  %v7550_v27 = vld [vmem:[%s11031_s6 + $0x190] sm:$0xff]  }
 0x31f   : > { %7356 = vmatprep.subr.bf16.mxu1 %v7557_v47  ;;  %11444 = vst [vmem:[#allocation30_spill] sm:$0xff] %v10096_v34  ;;  %v4077_v7 = vrot.slane %v10096_v34, 4 }
 0x321   : > { %4932 = vmatmul.mubr.bf16.gmra.mrb[36].mxu1 %v9280_v20  ;;  %v4078_v17 = vsel %vm1162_vm7, %v4071_v39, %v4077_v7  ;;  %v11450_v39 = vld [vmem:[#allocation20_spill] sm:$0xff] }
 0x322   : > { %4939 = vmatprep.mubr.bf16.mxu1 %v9362_v57  ;;  %7357 = vmatpush3.bf16.msra.mxu1 %v7557_v47  ;;  %v4069_v57 = vrot.slane %v10005_v25, 4  ;;  %v11447_v47 = vrot.slane %v9280_v20, 1  ;;  %v7549_v20 = vld [vmem:[%s11031_s6 + $0x188] sm:$0xff]   ;;  %v11462_v25 = vld [vmem:[#allocation45_spill] sm:$0xff] }
 0x323   : > { %7358 = vmatprep.subr.bf16.mxu1 %v7562_v53 }
 0x324   : > { %4498 = vmatmul.mubr.bf16.gmra.mrb[20].mxu0 %v4064_v29  ;;  %v4070_v16 = vsel %vm1162_vm7, %v4063_v12, %v4069_v57  ;;  %v4076_v42 = vsel %vm1162_vm7, %v4069_v57, %v4075_v23  ;;  %v3757_v12 = vsel %vm982_vm0, %v3755_v35, %v11447_v47  ;;  %v11452_v29 = vld [vmem:[#allocation13_spill] sm:$0xff]  ;;  %v7553_v23 = vld [vmem:[%s11031_s6 + $0x1a0] sm:$0xff]   ;;  %v7554_v47 = vld [vmem:[%s11031_s6 + $0x1a8] sm:$0xff]  }
 0x325   : > { %4505 = vmatprep.mubr.bf16.mxu0 %v4072_v6  ;;  %v11453_v6 = vld [vmem:[#allocation24_spill] sm:$0xff]  ;;  %v7551_v57 = vld [vmem:[%s11031_s6 + $0x198] sm:$0xff]  }
 0x326   : > { %7359 = vmatpush3.bf16.msra.mxu1 %v7562_v53  ;;  %v11451_v53 = vld [vmem:[#allocation23_spill] sm:$0xff] }
 0x327   : > { %7360 = vmatprep.subr.bf16.mxu1 %v7567_v31 }
 0x329   : > { %4940 = vmatmul.mubr.bf16.gmra.mrb[40].mxu1 %v9270_v45  ;;  %v7568_v45 = vld [vmem:[%s11031_s6 + $0x228] sm:$0xff]  }
 0x32a   : > { %4947 = vmatprep.mubr.bf16.mxu1 %v9373_v30  ;;  %7361 = vmatpush3.bf16.msra.mxu1 %v7567_v31  ;;  %v11454_v31 = vld [vmem:[#allocation27_spill] sm:$0xff] }
 0x32b   : > { %7362 = vmatprep.subr.bf16.mxu1 %v7568_v45 }
 0x32c   : > { %4506 = vmatmul.mubr.bf16.gmra.mrb[24].mxu0 %v4070_v16 }
 0x32d   : > { %4513 = vmatprep.mubr.bf16.mxu0 %v4078_v17 }
 0x32e   : > { %7363 = vmatpush3.bf16.msra.mxu1 %v7568_v45  ;;  %v11456_v45 = vld [vmem:[#allocation35_spill] sm:$0xff] }
 0x331   : > { %4948 = vmatmul.mubr.bf16.gmra.mrb[44].mxu1 %v11445_v5 }
 0x332   : > { %4955 = vmatprep.mubr.bf16.mxu1 %v11446_v61 }
 0x334   : > { %4514 = vmatmul.mubr.bf16.gmra.mrb[28].mxu0 %v4076_v42  ;;  %v11455_v42 = vld [vmem:[#allocation28_spill] sm:$0xff] }
 0x335   : > { %7304 = vmatprep.mubr.bf16.mxu0 %v3757_v12  ;;  %v7569_v12 = vld [vmem:[%s11031_s6 + $0x230] sm:$0xff]  }
 0x336   : > { %7364 = vmatprep.subr.bf16.mxu1 %v7569_v12 }
 0x337   : > { %7365 = vmatpush3.bf16.msra.mxu1 %v7569_v12 }
 0x339   : > { %4956 = vmatmul.mubr.bf16.gmra.mrb[48].mxu1 %v11448_v38 }
 0x33a   : > { %4963 = vmatprep.mubr.bf16.mxu1 %v11449_v19 }
 0x33c   : > { %7305 = vmatmul.mubr.bf16.vlgmr.msra.gmra.mrb[32].mxu0 %v11450_v39 }
 0x33d   : > { %7308 = vmatprep.mubr.bf16.mxu0 %v11451_v53  ;;  %5535 = vmatpush1.bf16.msra.mxu0 %v7548_v62 }
 0x33e   : > { %5536 = vmatprep.subr.bf16.mxu0 %v11319_v60 }
 0x341   : > { %5537 = vmatpush1.bf16.msra.mxu0 %v7549_v20  ;;  %4964 = vmatmul.mubr.bf16.gmra.mrb[52].mxu1 %v9286_v4 }
 0x342   : > { %5538 = vmatprep.subr.bf16.mxu0 %v11319_v60  ;;  %4971 = vmatprep.mubr.bf16.mxu1 %v11452_v29 }
 0x344   : > { %7309 = vmatmul.mubr.bf16.gmra.mrb[36].mxu0 %v11453_v6 }
 0x345   : > { %7312 = vmatprep.mubr.bf16.mxu0 %v11454_v31  ;;  %5539 = vmatpush1.bf16.msra.mxu0 %v7550_v27 }
 0x346   : > { %5540 = vmatprep.subr.bf16.mxu0 %v11319_v60 }
 0x347   : > { %v7242_v7 = vpop.f32.mrb[240].mxu1 }
 0x348   : > { %v4556_v16 = vpop.f32.mrb[241].mxu1 }
 0x349   : > { %v7243_v17 = vpop.f32.mrb[242].mxu1  ;;  %5541 = vmatpush1.bf16.msra.mxu0 %v7551_v57  ;;  %4972 = vmatmul.mubr.bf16.gmra.mrb[56].mxu1 %v9350_v24  ;;  %v7555_v57 = vld [vmem:[%s11031_s6 + $0x1b0] sm:$0xff]  }
 0x34a   : > { %v4559_v35 = vpop.f32.mrb[243].mxu1  ;;  %5542 = vmatprep.subr.bf16.mxu0 %v11319_v60  ;;  %4979 = vmatprep.mubr.bf16.mxu1 %v9574_v18 }
 0x34c   : > { %7313 = vmatmul.mubr.bf16.gmra.mrb[40].mxu0 %v11455_v42 }
 0x34d   : > { %7316 = vmatprep.mubr.bf16.mxu0 %v11456_v45  ;;  %5543 = vmatpush1.bf16.msra.mxu0 %v7553_v23  ;;  %v11458_v23 = vld [vmem:[#allocation31_spill] sm:$0xff] }
 0x34e   : > { %5544 = vmatprep.subr.bf16.mxu0 %v11319_v60 }
 0x34f   : > { %v4331_v62 = vpop.f32.mrb[192].mxu0 }
 0x350   : > { %v10153_v39 = vadd.f32 %v4556_v16, %v4331_v62  ;;  %v4333_v53 = vpop.f32.mrb[193].mxu0  ;;  %v11460_v16 = vld [vmem:[#allocation46_spill] sm:$0xff] }
 0x351   : > { %v4334_v20 = vpop.f32.mrb[194].mxu0  ;;  %5545 = vmatpush1.bf16.msra.mxu0 %v7554_v47  ;;  %4980 = vmatmul.mubr.bf16.gmra.mrb[60].mxu1 %v11458_v23  ;;  %v7570_v47 = vld [vmem:[%s11031_s6 + $0x238] sm:$0xff]   ;;  %v11461_v53 = vld [vmem:[#allocation36_spill] sm:$0xff] }
 0x352   : > { %11457 = vst [vmem:[#allocation54_spill] sm:$0xff] %v10153_v39  ;;  %v7246_v27 = vpop.f32.mrb[244].mxu1  ;;  %v10159_v14 = vadd.f32 %v4559_v35, %v4334_v20  ;;  %v4336_v0 = vpop.f32.mrb[195].mxu0  ;;  %5546 = vmatprep.subr.bf16.mxu0 %v11319_v60  ;;  %4987 = vmatprep.mubr.bf16.mxu1 %v11460_v16 }
 0x353   : > { %v4572_v50 = vpop.f32.mrb[245].mxu1  ;;  %v7556_v0 = vld [vmem:[%s11031_s6 + $0x1b8] sm:$0xff]   ;;  %7366 = vmatprep.subr.bf16.mxu1 %v7570_v47 }
 0x354   : > { %11459 = vst [vmem:[#allocation33_spill] sm:$0xff] %v10159_v14  ;;  %v7247_v62 = vpop.f32.mrb[246].mxu1  ;;  %7317 = vmatmul.mubr.bf16.gmra.mrb[44].mxu0 %v11461_v53  ;;  %7367 = vmatpush3.bf16.msra.mxu1 %v7570_v47  ;;  %v11465_v47 = vld [vmem:[#allocation4_spill] sm:$0xff]  ;;  %v11479_v53 = vld [vmem:[#allocation9_spill] sm:$0xff] }
 0x355   : > { %v4575_v34 = vpop.f32.mrb[247].mxu1  ;;  %7320 = vmatprep.mubr.bf16.mxu0 %v11462_v25  ;;  %5547 = vmatpush1.bf16.msra.mxu0 %v7555_v57  ;;  %v7558_v57 = vld [vmem:[%s11031_s6 + $0x1c0] sm:$0xff]   ;;  %v11478_v25 = vld [vmem:[#allocation48_spill] sm:$0xff] }
 0x356   : > { %5548 = vmatprep.subr.bf16.mxu0 %v11319_v60 }
 0x357   : > { %v4339_v35 = vpop.f32.mrb[196].mxu0 }
 0x358   : > { %v10172_v12 = vadd.f32 %v7242_v7, %v4339_v35  ;;  %v4341_v20 = vpop.f32.mrb[197].mxu0 }
 0x359   : > { %v4342_v15 = vpop.f32.mrb[198].mxu0  ;;  %5549 = vmatpush1.bf16.msra.mxu0 %v7556_v0  ;;  %4988 = vmatmul.mubr.bf16.gmra.mrb[64].mxu1 %v9402_v8  ;;  %v11466_v0 = vld [vmem:[#allocation14_spill] sm:$0xff]  ;;  %v7559_v20 = vld [vmem:[%s11031_s6 + $0x1c8] sm:$0xff]  }
 0x35a   : > { %11463 = vst [vmem:[#allocation55_spill] sm:$0xff] %v10172_v12  ;;  %v10174_v63 = vpop.f32.mrb[248].mxu1  ;;  %v10180_v2 = vadd.f32 %v7243_v17, %v4342_v15  ;;  %v4344_v14 = vpop.f32.mrb[199].mxu0  ;;  %5550 = vmatprep.subr.bf16.mxu0 %v11319_v60  ;;  %4995 = vmatprep.mubr.bf16.mxu1 %v9675_v44  ;;  %v7560_v12 = vld [vmem:[%s11031_s6 + $0x1d0] sm:$0xff]  }
 0x35b   : > { %v4588_v39 = vpop.f32.mrb[249].mxu1 }
 0x35c   : > { %11464 = vst [vmem:[#allocation34_spill] sm:$0xff] %v10180_v2  ;;  %v10184_v7 = vpop.f32.mrb[250].mxu1  ;;  %7321 = vmatmul.mubr.bf16.gmra.mrb[48].mxu0 %v11465_v47  ;;  %v11468_v47 = vld [vmem:[#allocation40_spill] sm:$0xff] }
 0x35d   : > { %v4591_v35 = vpop.f32.mrb[251].mxu1  ;;  %7324 = vmatprep.mubr.bf16.mxu0 %v11466_v0  ;;  %5551 = vmatpush1.bf16.msra.mxu0 %v7558_v57 }
 0x35e   : > { %5552 = vmatprep.subr.bf16.mxu0 %v11319_v60 }
 0x35f   : > { %v4347_v14 = vpop.f32.mrb[200].mxu0 }
 0x360   : > { %v10192_v15 = vadd.f32 %v4572_v50, %v4347_v14  ;;  %v4349_v17 = vpop.f32.mrb[201].mxu0  ;;  %v11470_v50 = vld [vmem:[#allocation47_spill] sm:$0xff] }
 0x361   : > { %v4350_v2 = vpop.f32.mrb[202].mxu0  ;;  %5553 = vmatpush1.bf16.msra.mxu0 %v7559_v20  ;;  %4996 = vmatmul.mubr.bf16.gmra.mrb[68].mxu1 %v11468_v47  ;;  %v7561_v20 = vld [vmem:[%s11031_s6 + $0x1d8] sm:$0xff]  }
 0x362   : > { %11467 = vst [vmem:[#allocation10_spill] sm:$0xff] %v10192_v15  ;;  %v10198_v0 = vadd.f32 %v4575_v34, %v4350_v2  ;;  %v4352_v57 = vpop.f32.mrb[203].mxu0  ;;  %5554 = vmatprep.subr.bf16.mxu0 %v11319_v60  ;;  %5003 = vmatprep.mubr.bf16.mxu1 %v9739_v32 }
 0x363   : > { %v7563_v57 = vld [vmem:[%s11031_s6 + $0x1e0] sm:$0xff]  }
 0x364   : > { %11469 = vst [vmem:[#allocation37_spill] sm:$0xff] %v10198_v0  ;;  %7325 = vmatmul.mubr.bf16.gmra.mrb[52].mxu0 %v9683_v43  ;;  %v11472_v0 = vld [vmem:[#allocation3_spill] sm:$0xff] }
 0x365   : > { %7328 = vmatprep.mubr.bf16.mxu0 %v11470_v50  ;;  %5555 = vmatpush1.bf16.msra.mxu0 %v7560_v12  ;;  %v11474_v50 = vld [vmem:[#allocation18_spill] sm:$0xff] }
 0x366   : > { %5556 = vmatprep.subr.bf16.mxu0 %v11319_v60 }
 0x367   : > { %v4355_v14 = vpop.f32.mrb[204].mxu0 }
 0x368   : > { %v10208_v17 = vadd.f32 %v7246_v27, %v4355_v14  ;;  %v4357_v2 = vpop.f32.mrb[205].mxu0  ;;  %v11475_v14 = vld [vmem:[#allocation7_spill] sm:$0xff] }
 0x369   : > { %v4358_v34 = vpop.f32.mrb[206].mxu0  ;;  %5557 = vmatpush1.bf16.msra.mxu0 %v7561_v20  ;;  %5004 = vmatmul.mubr.bf16.gmra.mrb[72].mxu1 %v11472_v0  ;;  %v7564_v20 = vld [vmem:[%s11031_s6 + $0x1e8] sm:$0xff]  }
 0x36a   : > { %11471 = vst [vmem:[#allocation56_spill] sm:$0xff] %v10208_v17  ;;  %v10214_v15 = vadd.f32 %v7247_v62, %v4358_v34  ;;  %v4360_v12 = vpop.f32.mrb[207].mxu0  ;;  %5558 = vmatprep.subr.bf16.mxu0 %v11319_v60  ;;  %5011 = vmatprep.mubr.bf16.mxu1 %v11474_v50 }
 0x36c   : > { %11473 = vst [vmem:[#allocation38_spill] sm:$0xff] %v10214_v15  ;;  %7329 = vmatmul.mubr.bf16.gmra.mrb[56].mxu0 %v9754_v11 }
 0x36d   : > { %7332 = vmatprep.mubr.bf16.mxu0 %v11475_v14  ;;  %5559 = vmatpush1.bf16.msra.mxu0 %v7563_v57  ;;  %v7565_v14 = vld [vmem:[%s11031_s6 + $0x1f0] sm:$0xff]  }
 0x36e   : > { %v7254_v27 = vpop.f32.mrb[252].mxu1  ;;  %5560 = vmatprep.subr.bf16.mxu0 %v11319_v60 }
 0x36f   : > { %v4604_v2 = vpop.f32.mrb[253].mxu1  ;;  %v4363_v34 = vpop.f32.mrb[208].mxu0 }
 0x370   : > { %v7255_v62 = vpop.f32.mrb[254].mxu1  ;;  %v10224_v15 = vadd.f32 %v4588_v39, %v4363_v34  ;;  %v4365_v17 = vpop.f32.mrb[209].mxu0  ;;  %v7566_v39 = vld [vmem:[%s11031_s6 + $0x1f8] sm:$0xff]  }
 0x371   : > { %v4607_v12 = vpop.f32.mrb[255].mxu1  ;;  %v4366_v43 = vpop.f32.mrb[210].mxu0  ;;  %5561 = vmatpush1.bf16.msra.mxu0 %v7564_v20  ;;  %5012 = vmatmul.mubr.bf16.gmra.mrb[76].mxu1 %v9565_v58  ;;  %v11481_v20 = vld [vmem:[#allocation6_spill] sm:$0xff] }
 0x372   : > { %11476 = vst [vmem:[#allocation58_spill] sm:$0xff] %v10224_v15  ;;  %v10230_v57 = vadd.f32 %v4591_v35, %v4366_v43  ;;  %v4368_v11 = vpop.f32.mrb[211].mxu0  ;;  %5562 = vmatprep.subr.bf16.mxu0 %v11319_v60  ;;  %5019 = vmatprep.mubr.bf16.mxu1 %v11478_v25 }
 0x374   : > { %11477 = vst [vmem:[#allocation57_spill] sm:$0xff] %v10230_v57  ;;  %7333 = vmatmul.mubr.bf16.gmra.mrb[60].mxu0 %v11479_v53 }
 0x375   : > { %7336 = vmatprep.mubr.bf16.mxu0 %v9846_v9  ;;  %5563 = vmatpush1.bf16.msra.mxu0 %v7565_v14 }
 0x376   : > { %5564 = vmatprep.subr.bf16.mxu0 %v11319_v60 }
 0x377   : > { %v4371_v17 = vpop.f32.mrb[212].mxu0 }
 0x378   : > { %v10241_v43 = vadd.f32 %v10174_v63, %v4371_v17  ;;  %v4373_v11 = vpop.f32.mrb[213].mxu0 }
 0x379   : > { %v4374_v35 = vpop.f32.mrb[214].mxu0  ;;  %5565 = vmatpush1.bf16.msra.mxu0 %v7566_v39  ;;  %5020 = vmatmul.mubr.bf16.gmra.mrb[80].mxu1 %v11481_v20 }
 0x37a   : > { %11480 = vst [vmem:[#allocation41_spill] sm:$0xff] %v10241_v43  ;;  %v10245_v34 = vadd.f32 %v10184_v7, %v4374_v35  ;;  %v4376_v57 = vpop.f32.mrb[215].mxu0  ;;  %5027 = vmatprep.mubr.bf16.mxu1 %v9834_v51 }
 0x37c   : > { %11482 = vst [vmem:[#allocation16_spill] sm:$0xff] %v10245_v34  ;;  %7337 = vmatmul.mubr.bf16.gmra.mrb[64].mxu0 %v9884_v33 }
 0x37d   : > { %v7258_v14 = vpop.f32.mrb[0].mxu1  ;;  %7340 = vmatprep.mubr.bf16.mxu0 %v9908_v28 }
 0x37e   : > { %v4620_v60 = vpop.f32.mrb[1].mxu1 }
 0x37f   : > { %v7259_v15 = vpop.f32.mrb[2].mxu1  ;;  %v4379_v63 = vpop.f32.mrb[216].mxu0 }
 0x380   : > { %v4623_v17 = vpop.f32.mrb[3].mxu1  ;;  %v10250_v11 = vadd.f32 %v4604_v2, %v4379_v63  ;;  %v4381_v39 = vpop.f32.mrb[217].mxu0 }
 0x381   : > { %v4382_v43 = vpop.f32.mrb[218].mxu0  ;;  %5028 = vmatmul.mubr.bf16.gmra.mrb[84].mxu1 %v9706_v54 }
 0x382   : > { %11483 = vst [vmem:[#allocation32_spill] sm:$0xff] %v10250_v11  ;;  %v10253_v7 = vadd.f32 %v4607_v12, %v4382_v43  ;;  %v4384_v57 = vpop.f32.mrb[219].mxu0  ;;  %5035 = vmatprep.mubr.bf16.mxu1 %v9863_v40 }
 0x384   : > { %11484 = vst [vmem:[#allocation19_spill] sm:$0xff] %v10253_v7  ;;  %7341 = vmatmul.mubr.bf16.gmra.mrb[68].mxu0 %v9917_v3 }
 0x385   : > { %7344 = vmatprep.mubr.bf16.mxu0 %v9957_v46 }
 0x387   : > { %v4387_v35 = vpop.f32.mrb[220].mxu0 }
 0x388   : > { %v7262_v34 = vpop.f32.mrb[4].mxu1  ;;  %v10258_v28 = vadd.f32 %v7254_v27, %v4387_v35  ;;  %v4389_v33 = vpop.f32.mrb[221].mxu0 }
 0x389   : > { %v4636_v2 = vpop.f32.mrb[5].mxu1  ;;  %v4390_v63 = vpop.f32.mrb[222].mxu0  ;;  %5036 = vmatmul.mubr.bf16.gmra.mrb[88].mxu1 %v9724_v48 }
 0x38a   : > { %11485 = vst [vmem:[#allocation39_spill] sm:$0xff] %v10258_v28  ;;  %v7263_v39 = vpop.f32.mrb[6].mxu1  ;;  %v10261_v11 = vadd.f32 %v7255_v62, %v4390_v63  ;;  %v4392_v12 = vpop.f32.mrb[223].mxu0  ;;  %5043 = vmatprep.mubr.bf16.mxu1 %v9879_v36  ;;  %v11487_v62 = vld [vmem:[#allocation43_spill] sm:$0xff] }
 0x38b   : > { %v4639_v43 = vpop.f32.mrb[7].mxu1 }
 0x38c   : > { %11486 = vst [vmem:[#allocation20_spill] sm:$0xff] %v10261_v11  ;;  %7345 = vmatmul.mubr.bf16.gmra.mrb[72].mxu0 %v9983_v21 }
 0x38d   : > { %7348 = vmatprep.mubr.bf16.mxu0 %v9989_v59 }
 0x38f   : > { %v4395_v57 = vpop.f32.mrb[224].mxu0 }
 0x390   : > { %v10266_v7 = vadd.f32 %v4620_v60, %v4395_v57  ;;  %v4397_v27 = vpop.f32.mrb[225].mxu0 }
 0x391   : > { %v4398_v33 = vpop.f32.mrb[226].mxu0  ;;  %5044 = vmatmul.mubr.bf16.gmra.mrb[92].mxu1 %v9791_v41 }
 0x392   : > { %v10269_v35 = vadd.f32 %v4623_v17, %v4398_v33  ;;  %v4400_v28 = vpop.f32.mrb[227].mxu0  ;;  %5051 = vmatprep.mubr.bf16.mxu1 %v11487_v62 }
 0x394   : > { %7349 = vmatmul.mubr.bf16.gmra.mrb[76].mxu0 %v10022_v49 }
 0x395   : > { %5566 = vmatprep.mubr.bf16.mxu0 %v9373_v30 }
 0x397   : > { %v4403_v63 = vpop.f32.mrb[228].mxu0 }
 0x398   : > { %v10274_v12 = vadd.f32 %v7258_v14, %v4403_v63  ;;  %v4405_v11 = vpop.f32.mrb[229].mxu0 }
 0x399   : > { %v4406_v59 = vpop.f32.mrb[230].mxu0  ;;  %5052 = vmatmul.mubr.bf16.gmra.mrb[96].mxu1 %v9823_v55 }
 0x39a   : > { %11488 = vst [vmem:[#allocation23_spill] sm:$0xff] %v10274_v12  ;;  %v10277_v60 = vadd.f32 %v7259_v15, %v4406_v59  ;;  %v4408_v57 = vpop.f32.mrb[231].mxu0  ;;  %5059 = vmatprep.mubr.bf16.mxu1 %v9936_v1 }
 0x39b   : > { %v11492_v57 = vld [vmem:[#allocation22_spill] sm:$0xff] }
 0x39c   : > { %11489 = vst [vmem:[#allocation13_spill] sm:$0xff] %v10277_v60  ;;  %5567 = vmatmul.mubr.bf16.vlgmr.msra.gmra.mrb[80].mxu0 %v11445_v5  ;;  %v7266_v28 = vpop.f32.mrb[8].mxu1 }
 0x39d   : > { %5574 = vmatprep.mubr.bf16.mxu0 %v11446_v61  ;;  %v4652_v17 = vpop.f32.mrb[9].mxu1 }
 0x39e   : > { %v7267_v27 = vpop.f32.mrb[10].mxu1 }
 0x39f   : > { %v4411_v30 = vpop.f32.mrb[232].mxu0  ;;  %v4655_v33 = vpop.f32.mrb[11].mxu1 }
 0x3a0   : > { %v10282_v14 = vadd.f32 %v4636_v2, %v4411_v30  ;;  %v4413_v11 = vpop.f32.mrb[233].mxu0  ;;  %v11494_v2 = vld [vmem:[#allocation21_spill] sm:$0xff] }
 0x3a1   : > { %v4414_v63 = vpop.f32.mrb[234].mxu0  ;;  %5060 = vmatmul.mubr.bf16.gmra.mrb[100].mxu1 %v9829_v37 }
 0x3a2   : > { %11490 = vst [vmem:[#allocation24_spill] sm:$0xff] %v10282_v14  ;;  %v10285_v59 = vadd.f32 %v4639_v43, %v4414_v63  ;;  %v4416_v15 = vpop.f32.mrb[235].mxu0  ;;  %5067 = vmatprep.mubr.bf16.mxu1 %v11492_v57  ;;  %v11496_v14 = vld [vmem:[#allocation50_spill] sm:$0xff] }
 0x3a4   : > { %11491 = vst [vmem:[#allocation27_spill] sm:$0xff] %v10285_v59  ;;  %5575 = vmatmul.mubr.bf16.gmra.mrb[84].mxu0 %v11448_v38 }
 0x3a5   : > { %5582 = vmatprep.mubr.bf16.mxu0 %v11449_v19 }
 0x3a7   : > { %v4419_v5 = vpop.f32.mrb[236].mxu0 }
 0x3a8   : > { %v10290_v61 = vadd.f32 %v7262_v34, %v4419_v5  ;;  %v4421_v60 = vpop.f32.mrb[237].mxu0 }
 0x3a9   : > { %v4422_v12 = vpop.f32.mrb[238].mxu0  ;;  %5068 = vmatmul.mubr.bf16.gmra.mrb[104].mxu1 %v11494_v2 }
 0x3aa   : > { %11493 = vst [vmem:[#allocation28_spill] sm:$0xff] %v10290_v61  ;;  %v10293_v30 = vadd.f32 %v7263_v39, %v4422_v12  ;;  %v4424_v11 = vpop.f32.mrb[239].mxu0  ;;  %5075 = vmatprep.mubr.bf16.mxu1 %v11496_v14  ;;  %v11498_v61 = vld [vmem:[#allocation8_spill] sm:$0xff] }
 0x3ab   : > { %v11499_v11 = vld [vmem:[#allocation42_spill] sm:$0xff] }
 0x3ac   : > { %11495 = vst [vmem:[#allocation35_spill] sm:$0xff] %v10293_v30  ;;  %5583 = vmatmul.mubr.bf16.gmra.mrb[88].mxu0 %v9286_v4  ;;  %v7270_v43 = vpop.f32.mrb[12].mxu1 }
 0x3ad   : > { %5590 = vmatprep.mubr.bf16.mxu0 %v11452_v29  ;;  %v4668_v38 = vpop.f32.mrb[13].mxu1 }
 0x3ae   : > { %v7271_v63 = vpop.f32.mrb[14].mxu1 }
 0x3af   : > { %v4427_v19 = vpop.f32.mrb[240].mxu0  ;;  %v4671_v15 = vpop.f32.mrb[15].mxu1 }
 0x3b0   : > { %v10298_v34 = vadd.f32 %v4652_v17, %v4427_v19  ;;  %v4429_v60 = vpop.f32.mrb[241].mxu0 }
 0x3b1   : > { %v4430_v5 = vpop.f32.mrb[242].mxu0  ;;  %5076 = vmatmul.mubr.bf16.gmra.mrb[108].mxu1 %v11498_v61 }
 0x3b2   : > { %11497 = vst [vmem:[#allocation31_spill] sm:$0xff] %v10298_v34  ;;  %v10301_v39 = vadd.f32 %v4655_v33, %v4430_v5  ;;  %v4432_v12 = vpop.f32.mrb[243].mxu0  ;;  %5083 = vmatprep.mubr.bf16.mxu1 %v11499_v11 }
 0x3b3   : > { %v11501_v12 = vld [vmem:[#allocation15_spill] sm:$0xff] }
 0x3b4   : > { %5591 = vmatmul.mubr.bf16.gmra.mrb[92].mxu0 %v9350_v24 }
 0x3b5   : > { %5598 = vmatprep.mubr.bf16.mxu0 %v9574_v18 }
 0x3b7   : > { %v4435_v4 = vpop.f32.mrb[244].mxu0  ;;  %v7274_v29 = vpop.f32.mrb[16].mxu1 }
 0x3b8   : > { %v10306_v30 = vadd.f32 %v7266_v28, %v4435_v4  ;;  %v4437_v59 = vpop.f32.mrb[245].mxu0  ;;  %v4684_v17 = vpop.f32.mrb[17].mxu1 }
 0x3b9   : > { %v4438_v19 = vpop.f32.mrb[246].mxu0  ;;  %v7275_v60 = vpop.f32.mrb[18].mxu1  ;;  %5084 = vmatmul.mubr.bf16.gmra.mrb[112].mxu1 %v9899_v13 }
 0x3ba   : > { %11500 = vst [vmem:[#allocation46_spill] sm:$0xff] %v10306_v30  ;;  %v10309_v34 = vadd.f32 %v7267_v27, %v4438_v19  ;;  %v4440_v33 = vpop.f32.mrb[247].mxu0  ;;  %v4687_v5 = vpop.f32.mrb[19].mxu1  ;;  %5091 = vmatprep.mubr.bf16.mxu1 %v11501_v12 }
 0x3bc   : > { %5599 = vmatmul.mubr.bf16.gmra.mrb[96].mxu0 %v11458_v23 }
 0x3bd   : > { %5606 = vmatprep.mubr.bf16.mxu0 %v11460_v16 }
 0x3bf   : > { %v4443_v24 = vpop.f32.mrb[248].mxu0 }
 0x3c0   : > { %v10314_v18 = vadd.f32 %v4668_v38, %v4443_v24  ;;  %v4445_v28 = vpop.f32.mrb[249].mxu0 }
 0x3c1   : > { %v4446_v59 = vpop.f32.mrb[250].mxu0  ;;  %5092 = vmatmul.mubr.bf16.gmra.mrb[116].mxu1 %v9943_v10 }
 0x3c2   : > { %v10317_v4 = vadd.f32 %v4671_v15, %v4446_v59  ;;  %v4448_v30 = vpop.f32.mrb[251].mxu0  ;;  %5099 = vmatprep.mubr.bf16.mxu1 %v10046_v56 }
 0x3c4   : > { %5607 = vmatmul.mubr.bf16.gmra.mrb[100].mxu0 %v9402_v8 }
 0x3c5   : > { %5614 = vmatprep.mubr.bf16.mxu0 %v9675_v44 }
 0x3c7   : > { %v4451_v27 = vpop.f32.mrb[252].mxu0 }
 0x3c8   : > { %v10322_v23 = vadd.f32 %v7270_v43, %v4451_v27  ;;  %v4453_v16 = vpop.f32.mrb[253].mxu0 }
 0x3c9   : > { %v4454_v19 = vpop.f32.mrb[254].mxu0  ;;  %5100 = vmatmul.mubr.bf16.gmra.mrb[120].mxu1 %v9969_v26 }
 0x3ca   : > { %v10325_v38 = vadd.f32 %v7271_v63, %v4454_v19  ;;  %v4456_v33 = vpop.f32.mrb[255].mxu0  ;;  %5107 = vmatprep.mubr.bf16.mxu1 %v10058_v22 }
 0x3cc   : > { %5615 = vmatmul.mubr.bf16.gmra.mrb[104].mxu0 %v11468_v47  ;;  %v7278_v30 = vpop.f32.mrb[20].mxu1 }
 0x3cd   : > { %5622 = vmatprep.mubr.bf16.mxu0 %v9739_v32  ;;  %v4700_v8 = vpop.f32.mrb[21].mxu1 }
 0x3ce   : > { %v7279_v15 = vpop.f32.mrb[22].mxu1 }
 0x3cf   : > { %v4459_v44 = vpop.f32.mrb[0].mxu0  ;;  %v4703_v24 = vpop.f32.mrb[23].mxu1 }
 0x3d0   : > { %v10330_v43 = vadd.f32 %v4684_v17, %v4459_v44  ;;  %v4461_v28 = vpop.f32.mrb[1].mxu0 }
 0x3d1   : > { %v4462_v59 = vpop.f32.mrb[2].mxu0  ;;  %5108 = vmatmul.mubr.bf16.gmra.mrb[124].mxu1 %v9975_v52 }
 0x3d2   : > { %v10333_v63 = vadd.f32 %v4687_v5, %v4462_v59  ;;  %v4464_v27 = vpop.f32.mrb[3].mxu0  ;;  %7368 = vmatprep.mubr.bf16.mxu1 %v11453_v6 }
 0x3d3   : > { %v11502_v27 = vld [vmem:[#allocation36_spill] sm:$0xff] }
 0x3d4   : > { %5623 = vmatmul.mubr.bf16.gmra.mrb[108].mxu0 %v11472_v0 }
 0x3d5   : > { %5630 = vmatprep.mubr.bf16.mxu0 %v11474_v50 }
 0x3d7   : > { %v4467_v32 = vpop.f32.mrb[4].mxu0 }
 0x3d8   : > { %v10338_v47 = vadd.f32 %v7274_v29, %v4467_v32  ;;  %v4469_v16 = vpop.f32.mrb[5].mxu0 }
 0x3d9   : > { %v4470_v19 = vpop.f32.mrb[6].mxu0  ;;  %7369 = vmatmul.mubr.bf16.vlgmr.msra.gmra.mrb[128].mxu1 %v11454_v31 }
 0x3da   : > { %v10341_v17 = vadd.f32 %v7275_v60, %v4470_v19  ;;  %v4472_v33 = vpop.f32.mrb[7].mxu0  ;;  %7372 = vmatprep.mubr.bf16.mxu1 %v11455_v42 }
 0x3dc   : > { %5631 = vmatmul.mubr.bf16.gmra.mrb[112].mxu0 %v9565_v58  ;;  %v7282_v5 = vpop.f32.mrb[24].mxu1 }
 0x3dd   : > { %5638 = vmatprep.mubr.bf16.mxu0 %v11478_v25  ;;  %v4716_v6 = vpop.f32.mrb[25].mxu1 }
 0x3de   : > { %v7283_v0 = vpop.f32.mrb[26].mxu1 }
 0x3df   : > { %v4475_v50 = vpop.f32.mrb[8].mxu0  ;;  %v4719_v44 = vpop.f32.mrb[27].mxu1 }
 0x3e0   : > { %v10346_v29 = vadd.f32 %v4700_v8, %v4475_v50  ;;  %v4477_v28 = vpop.f32.mrb[9].mxu0 }
 0x3e1   : > { %v4478_v59 = vpop.f32.mrb[10].mxu0  ;;  %7373 = vmatmul.mubr.bf16.gmra.mrb[132].mxu1 %v11456_v45  ;;  %v11505_v28 = vld [vmem:[#allocation4_spill] sm:$0xff] }
 0x3e2   : > { %v10349_v31 = vadd.f32 %v4703_v24, %v4478_v59  ;;  %v4480_v60 = vpop.f32.mrb[11].mxu0  ;;  %7376 = vmatprep.mubr.bf16.mxu1 %v11502_v27  ;;  %v11503_v24 = vld [vmem:[#allocation45_spill] sm:$0xff] }
 0x3e4   : > { %5639 = vmatmul.mubr.bf16.gmra.mrb[116].mxu0 %v11481_v20  ;;  %v10353_v58 = vpop.f32.mrb[28].mxu1 }
 0x3e5   : > { %5646 = vmatprep.mubr.bf16.mxu0 %v9834_v51  ;;  %v4732_v25 = vpop.f32.mrb[29].mxu1  ;;  %v11506_v51 = vld [vmem:[#allocation54_spill] sm:$0xff] }
 0x3e6   : > { %v10356_v42 = vpop.f32.mrb[30].mxu1 }
 0x3e7   : > { %v4483_v8 = vpop.f32.mrb[12].mxu0  ;;  %v4735_v32 = vpop.f32.mrb[31].mxu1 }
 0x3e8   : > { %v10358_v16 = vadd.f32 %v7278_v30, %v4483_v8  ;;  %v4485_v19 = vpop.f32.mrb[13].mxu0  ;;  %v11507_v8 = vld [vmem:[#allocation33_spill] sm:$0xff] }
 0x3e9   : > { %v4486_v45 = vpop.f32.mrb[14].mxu0  ;;  %7377 = vmatmul.mubr.bf16.gmra.mrb[136].mxu1 %v11503_v24 }
 0x3ea   : > { %v10361_v33 = vadd.f32 %v7279_v15, %v4486_v45  ;;  %v4488_v50 = vpop.f32.mrb[15].mxu0  ;;  %7380 = vmatprep.mubr.bf16.mxu1 %v11505_v28  ;;  %v11509_v28 = vld [vmem:[#allocation14_spill] sm:$0xff] }
 0x3ec   : > { %11504 = vst [vmem:[#allocation40_spill] sm:$0xff] %v10361_v33  ;;  %5647 = vmatmul.mubr.bf16.gmra.mrb[120].mxu0 %v9706_v54  ;;  %v4925_v20 = vpop.f32.mrb[32].mxu1 }
 0x3ed   : > { %5654 = vmatprep.mubr.bf16.mxu0 %v9863_v40  ;;  %v10367_v59 = vadd.f32 %v4925_v20, %v11506_v51  ;;  %v4927_v60 = vpop.f32.mrb[33].mxu1  ;;  %v11510_v40 = vld [vmem:[#allocation17_spill] sm:$0xff]  ;;  %v11511_v51 = vld [vmem:[#allocation55_spill] sm:$0xff] }
 0x3ee   : > { %v4928_v30 = vpop.f32.mrb[34].mxu1 }
 0x3ef   : > { %v4491_v27 = vpop.f32.mrb[16].mxu0  ;;  %v10370_v19 = vadd.f32 %v4928_v30, %v11507_v8  ;;  %v4930_v24 = vpop.f32.mrb[35].mxu1 }
 0x3f0   : > { %v10372_v15 = vadd.f32 %v4716_v6, %v4491_v27  ;;  %v4493_v45 = vpop.f32.mrb[17].mxu0  ;;  %v11512_v27 = vld [vmem:[#allocation34_spill] sm:$0xff] }
 0x3f1   : > { %v4494_v50 = vpop.f32.mrb[18].mxu0  ;;  %7381 = vmatmul.mubr.bf16.gmra.mrb[140].mxu1 %v11509_v28 }
 0x3f2   : > { %11508 = vst [vmem:[#allocation3_spill] sm:$0xff] %v10372_v15  ;;  %v10375_v54 = vadd.f32 %v4719_v44, %v4494_v50  ;;  %v4496_v33 = vpop.f32.mrb[19].mxu0  ;;  %7384 = vmatprep.mubr.bf16.mxu1 %v11510_v40  ;;  %v11514_v40 = vld [vmem:[#allocation5_spill] sm:$0xff] }
 0x3f3   : > { %v11513_v33 = vld [vmem:[#allocation47_spill] sm:$0xff] }
 0x3f4   : > { %5655 = vmatmul.mubr.bf16.gmra.mrb[124].mxu0 %v9724_v48  ;;  %v4933_v20 = vpop.f32.mrb[36].mxu1 }
 0x3f5   : > { %5662 = vmatprep.mubr.bf16.mxu0 %v9879_v36  ;;  %v4934_v60 = vadd.f32 %v4933_v20, %v11511_v51  ;;  %v4935_v30 = vpop.f32.mrb[37].mxu1  ;;  %v11515_v20 = vld [vmem:[#allocation10_spill] sm:$0xff] }
 0x3f6   : > { %v4936_v8 = vpop.f32.mrb[38].mxu1 }
 0x3f7   : > { %v4499_v6 = vpop.f32.mrb[20].mxu0  ;;  %v4937_v24 = vadd.f32 %v4936_v8, %v11512_v27  ;;  %v4938_v45 = vpop.f32.mrb[39].mxu1 }
 0x3f8   : > { %v10382_v15 = vadd.f32 %v7282_v5, %v4499_v6  ;;  %v4501_v44 = vpop.f32.mrb[21].mxu0  ;;  %v11516_v6 = vld [vmem:[#allocation37_spill] sm:$0xff] }
 0x3f9   : > { %v4502_v50 = vpop.f32.mrb[22].mxu0  ;;  %7385 = vmatmul.mubr.bf16.gmra.mrb[144].mxu1 %v11513_v33  ;;  %v11517_v33 = vld [vmem:[#allocation7_spill] sm:$0xff] }
 0x3fa   : > { %v10385_v28 = vadd.f32 %v7283_v0, %v4502_v50  ;;  %v4504_v48 = vpop.f32.mrb[23].mxu0  ;;  %7388 = vmatprep.mubr.bf16.mxu1 %v11514_v40  ;;  %v11518_v40 = vld [vmem:[#allocation56_spill] sm:$0xff] }
 0x3fc   : > { %5663 = vmatmul.mubr.bf16.gmra.mrb[128].mxu0 %v9791_v41  ;;  %v4941_v36 = vpop.f32.mrb[40].mxu1 }
 0x3fd   : > { %5670 = vmatprep.mubr.bf16.mxu0 %v11487_v62  ;;  %v4942_v51 = vadd.f32 %v4941_v36, %v11515_v20  ;;  %v4943_v30 = vpop.f32.mrb[41].mxu1 }
 0x3fe   : > { %v4944_v8 = vpop.f32.mrb[42].mxu1 }
 0x3ff   : > { %v4507_v5 = vpop.f32.mrb[24].mxu0  ;;  %v4945_v27 = vadd.f32 %v4944_v8, %v11516_v6  ;;  %v4946_v45 = vpop.f32.mrb[43].mxu1  ;;  %v11519_v8 = vld [vmem:[#allocation38_spill] sm:$0xff] }
 0x400   : > { %v10392_v44 = vadd.f32 %v4732_v25, %v4507_v5  ;;  %v4509_v0 = vpop.f32.mrb[25].mxu0 }
 0x401   : > { %v4510_v50 = vpop.f32.mrb[26].mxu0  ;;  %7389 = vmatmul.mubr.bf16.gmra.mrb[148].mxu1 %v11517_v33  ;;  %v11521_v33 = vld [vmem:[#allocation58_spill] sm:$0xff] }
 0x402   : > { %v10395_v48 = vadd.f32 %v4735_v32, %v4510_v50  ;;  %v4512_v41 = vpop.f32.mrb[27].mxu0  ;;  %7392 = vmatprep.mubr.bf16.mxu1 %v11479_v53 }
 0x404   : > { %5671 = vmatmul.mubr.bf16.gmra.mrb[132].mxu0 %v9823_v55  ;;  %v4949_v62 = vpop.f32.mrb[44].mxu1 }
 0x405   : > { %5678 = vmatprep.mubr.bf16.mxu0 %v9936_v1  ;;  %v4950_v36 = vadd.f32 %v4949_v62, %v11518_v40  ;;  %v4951_v20 = vpop.f32.mrb[45].mxu1  ;;  %v11520_v1 = vld [vmem:[#allocation49_spill] sm:$0xff] }
 0x406   : > { %v4952_v30 = vpop.f32.mrb[46].mxu1  ;;  %v11522_v20 = vld [vmem:[#allocation57_spill] sm:$0xff] }
 0x407   : > { %v4515_v25 = vpop.f32.mrb[28].mxu0  ;;  %v4953_v5 = vadd.f32 %v4952_v30, %v11519_v8  ;;  %v4954_v6 = vpop.f32.mrb[47].mxu1 }
 0x408   : > { %v10403_v45 = vadd.f32 %v10353_v58, %v4515_v25  ;;  %v4517_v32 = vpop.f32.mrb[29].mxu0 }
 0x409   : > { %v4518_v0 = vpop.f32.mrb[30].mxu0  ;;  %7393 = vmatmul.mubr.bf16.gmra.mrb[152].mxu1 %v9846_v9  ;;  %v11523_v32 = vld [vmem:[#allocation44_spill] sm:$0xff] }
 0x40a   : > { %v10407_v55 = vadd.f32 %v10356_v42, %v4518_v0  ;;  %v4520_v53 = vpop.f32.mrb[31].mxu0  ;;  %7396 = vmatprep.mubr.bf16.mxu1 %v11520_v1 }
 0x40c   : > { %5679 = vmatmul.mubr.bf16.gmra.mrb[136].mxu0 %v9829_v37  ;;  %v4957_v50 = vpop.f32.mrb[48].mxu1 }
 0x40d   : > { %5686 = vmatprep.mubr.bf16.mxu0 %v11492_v57  ;;  %v4958_v41 = vadd.f32 %v4957_v50, %v11521_v33  ;;  %v4959_v62 = vpop.f32.mrb[49].mxu1 }
 0x40e   : > { %v4960_v58 = vpop.f32.mrb[50].mxu1  ;;  %v11525_v62 = vld [vmem:[#allocation16_spill] sm:$0xff] }
 0x40f   : > { %v7306_v40 = vpop.f32.mrb[32].mxu0  ;;  %v4961_v30 = vadd.f32 %v4960_v58, %v11522_v20  ;;  %v4962_v25 = vpop.f32.mrb[51].mxu1 }
 0x410   : > { %v10414_v9 = vadd.f32 %v7306_v40, %v4934_v60  ;;  %v5150_v42 = vpop.f32.mrb[33].mxu0  ;;  %v11524_v60 = vld [vmem:[#allocation41_spill] sm:$0xff] }
 0x411   : > { %v10417_v8 = vadd.f32 %v5150_v42, %v10367_v59  ;;  %v7307_v6 = vpop.f32.mrb[34].mxu0  ;;  %7397 = vmatmul.mubr.bf16.gmra.mrb[156].mxu1 %v11523_v32 }
 0x412   : > { %v10420_v37 = vadd.f32 %v7307_v6, %v4937_v24  ;;  %v5153_v57 = vpop.f32.mrb[35].mxu0  ;;  %7400 = vmatprep.mubr.bf16.mxu1 %v9917_v3 }
 0x413   : > { %v10424_v0 = vadd.f32 %v5153_v57, %v10370_v19 }
 0x414   : > { %5687 = vmatmul.mubr.bf16.gmra.mrb[140].mxu0 %v11494_v2  ;;  %v4965_v53 = vpop.f32.mrb[52].mxu1 }
 0x415   : > { %5694 = vmatprep.mubr.bf16.mxu0 %v11496_v14  ;;  %v4966_v1 = vadd.f32 %v4965_v53, %v11524_v60  ;;  %v4967_v59 = vpop.f32.mrb[53].mxu1  ;;  %v11527_v53 = vld [vmem:[#allocation19_spill] sm:$0xff] }
 0x416   : > { %v4968_v50 = vpop.f32.mrb[54].mxu1 }
 0x417   : > { %v7310_v33 = vpop.f32.mrb[36].mxu0  ;;  %v4969_v58 = vadd.f32 %v4968_v50, %v11525_v62  ;;  %v4970_v24 = vpop.f32.mrb[55].mxu1 }
 0x418   : > { %v10430_v40 = vadd.f32 %v7310_v33, %v4950_v36  ;;  %v5166_v20 = vpop.f32.mrb[37].mxu0  ;;  %v11526_v36 = vld [vmem:[#allocation32_spill] sm:$0xff] }
 0x419   : > { %v10432_v3 = vadd.f32 %v5166_v20, %v4942_v51  ;;  %v7311_v19 = vpop.f32.mrb[38].mxu0  ;;  %7401 = vmatmul.mubr.bf16.gmra.mrb[160].mxu1 %v9957_v46 }
 0x41a   : > { %v10435_v2 = vadd.f32 %v7311_v19, %v4953_v5  ;;  %v5169_v25 = vpop.f32.mrb[39].mxu0  ;;  %7404 = vmatprep.mubr.bf16.mxu1 %v9983_v21 }
 0x41b   : > { %v10438_v14 = vadd.f32 %v5169_v25, %v4945_v27  ;;  %v11528_v27 = vld [vmem:[#allocation12_spill] sm:$0xff] }
 0x41c   : > { %5695 = vmatmul.mubr.bf16.gmra.mrb[144].mxu0 %v11498_v61  ;;  %v4973_v42 = vpop.f32.mrb[56].mxu1 }
 0x41d   : > { %5702 = vmatprep.mubr.bf16.mxu0 %v11499_v11  ;;  %v4974_v6 = vadd.f32 %v4973_v42, %v11526_v36  ;;  %v4975_v32 = vpop.f32.mrb[57].mxu1  ;;  %v11530_v42 = vld [vmem:[#allocation20_spill] sm:$0xff] }
 0x41e   : > { %v4976_v51 = vpop.f32.mrb[58].mxu1 }
 0x41f   : > { %v7314_v57 = vpop.f32.mrb[40].mxu0  ;;  %v4977_v60 = vadd.f32 %v4976_v51, %v11527_v53  ;;  %v4978_v46 = vpop.f32.mrb[59].mxu1 }
 0x420   : > { %v10444_v5 = vadd.f32 %v7314_v57, %v4966_v1  ;;  %v5182_v59 = vpop.f32.mrb[41].mxu0  ;;  %v11529_v1 = vld [vmem:[#allocation39_spill] sm:$0xff]  ;;  %v11532_v46 = vld [vmem:[#allocation52_spill] sm:$0xff] }
 0x421   : > { %v10446_v50 = vadd.f32 %v5182_v59, %v4958_v41  ;;  %v7315_v21 = vpop.f32.mrb[42].mxu0  ;;  %7405 = vmatmul.mubr.bf16.gmra.mrb[164].mxu1 %v11528_v27  ;;  %v3451_v41 = vld [vmem:[#allocation2 + $0x1b0] sm:$0xff] }
 0x422   : > { %v10449_v61 = vadd.f32 %v7315_v21, %v4969_v58  ;;  %v5185_v33 = vpop.f32.mrb[43].mxu0  ;;  %7408 = vmatprep.mubr.bf16.mxu1 %v10022_v49  ;;  %v10462_v57 = vpack.c.bf16 %v3451_v41, %v3451_v41 }
 0x423   : > { %v10452_v11 = vadd.f32 %v5185_v33, %v4961_v30 }
 0x424   : > { %5703 = vmatmul.mubr.bf16.gmra.mrb[148].mxu0 %v9899_v13  ;;  %v4981_v62 = vpop.f32.mrb[60].mxu1  ;;  %v11531_v13 = vld [vmem:[#allocation26_spill] sm:$0xff] }
 0x425   : > { %5710 = vmatprep.mubr.bf16.mxu0 %v11501_v12  ;;  %v4982_v24 = vadd.f32 %v4981_v62, %v11529_v1  ;;  %v4983_v20 = vpop.f32.mrb[61].mxu1 }
 0x426   : > { %v4984_v19 = vpop.f32.mrb[62].mxu1 }
 0x427   : > { %v7318_v25 = vpop.f32.mrb[44].mxu0  ;;  %v4985_v36 = vadd.f32 %v4984_v19, %v11530_v42  ;;  %v4986_v58 = vpop.f32.mrb[63].mxu1  ;;  %v11533_v19 = vld [vmem:[#allocation11_spill] sm:$0xff] }
 0x428   : > { %v10458_v32 = vadd.f32 %v7318_v25, %v4982_v24  ;;  %v5198_v51 = vpop.f32.mrb[45].mxu0  ;;  %v11534_v25 = vrot.slane %v11533_v19, 1  ;;  %v11537_v58 = vld [vmem:[#allocation23_spill] sm:$0xff] }
 0x429   : > { %v10460_v49 = vadd.f32 %v5198_v51, %v4974_v6  ;;  %v7319_v30 = vpop.f32.mrb[46].mxu0  ;;  %7409 = vmatmul.mubr.bf16.gmra.mrb[168].mxu1 %v11531_v13  ;;  %v3808_v6 = vrot.slane %v10462_v57, 1 }
 0x42a   : > { %v10465_v12 = vadd.f32 %v7319_v30, %v4985_v36  ;;  %v5201_v53 = vpop.f32.mrb[47].mxu0  ;;  %7412 = vmatprep.mubr.bf16.mxu1 %v11532_v46  ;;  %v11538_v46 = vld [vmem:[#allocation13_spill] sm:$0xff] }
 0x42b   : > { %v10468_v59 = vadd.f32 %v5201_v53, %v4977_v60  ;;  %v3809_v60 = vsel %vm982_vm0, %v11534_v25, %v3808_v6  ;;  %vm6135_vm0 = vcmask 1040384  }
 0x42c   : > { %5711 = vmatmul.mubr.bf16.gmra.mrb[152].mxu0 %v9943_v10  ;;  %v4989_v21 = vpop.f32.mrb[64].mxu1 }
 0x42d   : > { %5718 = vmatprep.mubr.bf16.mxu0 %v10046_v56  ;;  %v4990_v27 = vadd.f32 %v4989_v21, %v10266_v7  ;;  %v4991_v33 = vpop.f32.mrb[65].mxu1 }
 0x42e   : > { %v4992_v62 = vpop.f32.mrb[66].mxu1 }
 0x42f   : > { %v7322_v1 = vpop.f32.mrb[48].mxu0  ;;  %v4993_v24 = vadd.f32 %v4992_v62, %v10269_v35  ;;  %v4994_v20 = vpop.f32.mrb[67].mxu1 }
 0x430   : > { %v5214_v41 = vpop.f32.mrb[49].mxu0  ;;  %v11540_v20 = vld [vmem:[#allocation29_spill] sm:$0xff] }
 0x431   : > { %v10478_v42 = vadd.f32 %v5214_v41, %v4990_v27  ;;  %v7323_v10 = vpop.f32.mrb[50].mxu0  ;;  %7413 = vmatmul.mubr.bf16.gmra.mrb[172].mxu1 %v3809_v60 }
 0x432   : > { %v5217_v56 = vpop.f32.mrb[51].mxu0 }
 0x433   : > { %11535 = vst [vmem:[#allocation18_spill] sm:$0xff] %v10478_v42  ;;  %v10480_v36 = vadd.f32 %v5217_v56, %v4993_v24  ;;  %v11551_v42 = vld [vmem:[#allocation51_spill] sm:$0xff] }
 0x434   : > { %5719 = vmatmul.mubr.bf16.gmra.mrb[156].mxu0 %v9969_v26  ;;  %v4997_v7 = vpop.f32.mrb[68].mxu1 }
 0x435   : > { %11536 = vst [vmem:[#allocation48_spill] sm:$0xff] %v10480_v36  ;;  %5726 = vmatprep.mubr.bf16.mxu0 %v10058_v22  ;;  %v4998_v35 = vadd.f32 %v4997_v7, %v11537_v58  ;;  %v4999_v51 = vpop.f32.mrb[69].mxu1  ;;  %v11541_v22 = vld [vmem:[#allocation24_spill] sm:$0xff]  ;;  %v11543_v7 = vld [vmem:[#allocation27_spill] sm:$0xff] }
 0x436   : > { %v5000_v30 = vpop.f32.mrb[70].mxu1 }
 0x437   : > { %v7326_v13 = vpop.f32.mrb[52].mxu0  ;;  %v10485_v53 = vadd.f32 %v7322_v1, %v4998_v35  ;;  %v5001_v21 = vadd.f32 %v5000_v30, %v11538_v46  ;;  %v5002_v6 = vpop.f32.mrb[71].mxu1 }
 0x438   : > { %v5230_v27 = vpop.f32.mrb[53].mxu0 }
 0x439   : > { %v7327_v33 = vpop.f32.mrb[54].mxu0  ;;  %v10488_v62 = vadd.f32 %v7323_v10, %v5001_v21  ;;  %v11545_v21 = vld [vmem:[#allocation25_spill] sm:$0xff] }
 0x43a   : > { %v5233_v24 = vpop.f32.mrb[55].mxu0 }
 0x43b   : > { %11539 = vst [vmem:[#allocation9_spill] sm:$0xff] %v10488_v62 }
 0x43c   : > { %5727 = vmatmul.mubr.bf16.gmra.mrb[160].mxu0 %v9975_v52  ;;  %v5005_v26 = vpop.f32.mrb[72].mxu1  ;;  %v3696_v52 = vshll.u32 %v10462_v57, 16 }
 0x43d   : > { %5734 = vmatprep.mubr.bf16.mxu0 %v11540_v20  ;;  %v5006_v41 = vadd.f32 %v5005_v26, %v11541_v22  ;;  %v5007_v25 = vpop.f32.mrb[73].mxu1  ;;  %v11546_v20 = vld [vmem:[#allocation30_spill] sm:$0xff]  ;;  %v11547_v26 = vld [vmem:[#allocation28_spill] sm:$0xff] }
 0x43e   : > { %v5008_v60 = vpop.f32.mrb[74].mxu1  ;;  %v3698_v36 = vrot.slane %v3696_v52, 1 }
 0x43f   : > { %v7330_v56 = vpop.f32.mrb[56].mxu0  ;;  %v10493_v1 = vadd.f32 %v5230_v27, %v5006_v41  ;;  %v5009_v58 = vadd.f32 %v5008_v60, %v11543_v7  ;;  %v5010_v35 = vpop.f32.mrb[75].mxu1  ;;  %v3692_v27 = vshrl.u32 %v11533_v19, 16 }
 0x440   : > { %v5246_v51 = vpop.f32.mrb[57].mxu0  ;;  %v11549_v35 = vld [vmem:[#allocation35_spill] sm:$0xff] }
 0x441   : > { %11542 = vst [vmem:[#allocation6_spill] sm:$0xff] %v10493_v1  ;;  %v7331_v30 = vpop.f32.mrb[58].mxu0  ;;  %v10496_v10 = vadd.f32 %v5233_v24, %v5009_v58  ;;  %v11550_v1 = vld [vmem:[#allocation53_spill] sm:$0xff] }
 0x442   : > { %v5249_v46 = vpop.f32.mrb[59].mxu0 }
 0x443   : > { %11544 = vst [vmem:[#allocation43_spill] sm:$0xff] %v10496_v10 }
 0x444   : > { %5735 = vmatmul.mubr.bf16.gmra.mrb[164].mxu0 %v11545_v21  ;;  %v5013_v6 = vpop.f32.mrb[76].mxu1  ;;  %v3694_v21 = vor.u32 %v3692_v27, %v11550_v1 }
 0x445   : > { %5742 = vmatprep.mubr.bf16.mxu0 %v11546_v20  ;;  %v5014_v22 = vadd.f32 %v5013_v6, %v11547_v26  ;;  %v5015_v25 = vpop.f32.mrb[77].mxu1 }
 0x446   : > { %v5016_v41 = vpop.f32.mrb[78].mxu1  ;;  %v3699_v6 = vsel %vm706_vm3, %v3694_v21, %v3698_v36  ;;  %v11552_v25 = vld [vmem:[#allocation31_spill] sm:$0xff]  ;;  %v11555_v36 = vld [vmem:[#allocation46_spill] sm:$0xff] }
 0x447   : > { %v7334_v60 = vpop.f32.mrb[60].mxu0  ;;  %v10503_v7 = vadd.f32 %v7326_v13, %v5014_v22  ;;  %v5017_v24 = vadd.f32 %v5016_v41, %v11549_v35  ;;  %v5018_v58 = vpop.f32.mrb[79].mxu1 }
 0x448   : > { %v5262_v10 = vpop.f32.mrb[61].mxu0 }
 0x449   : > { %11548 = vst [vmem:[#allocation22_spill] sm:$0xff] %v10503_v7  ;;  %v7335_v57 = vpop.f32.mrb[62].mxu0  ;;  %v10507_v62 = vadd.f32 %v7327_v33, %v5017_v24 }
 0x44a   : > { %v5265_v20 = vpop.f32.mrb[63].mxu0 }
 0x44c   : > { %5743 = vmatmul.mubr.bf16.gmra.mrb[168].mxu0 %v11551_v42  ;;  %v5021_v26 = vpop.f32.mrb[80].mxu1 }
 0x44d   : > { %5750 = vmatprep.mubr.bf16.mxu0 %v3699_v6  ;;  %v5022_v13 = vadd.f32 %v5021_v26, %v11552_v25  ;;  %v5023_v22 = vpop.f32.mrb[81].mxu1 }
 0x44e   : > { %v5024_v7 = vpop.f32.mrb[82].mxu1 }
 0x44f   : > { %v7338_v41 = vpop.f32.mrb[64].mxu0  ;;  %v10512_v35 = vadd.f32 %v5246_v51, %v5022_v13  ;;  %v5025_v1 = vadd.f32 %v5024_v7, %v10301_v39  ;;  %v5026_v52 = vpop.f32.mrb[83].mxu1 }
 0x450   : > { %v5278_v27 = vpop.f32.mrb[65].mxu0 }
 0x451   : > { %11553 = vst [vmem:[#allocation21_spill] sm:$0xff] %v10512_v35  ;;  %v7339_v33 = vpop.f32.mrb[66].mxu0  ;;  %v10515_v24 = vadd.f32 %v5249_v46, %v5025_v1 }
 0x452   : > { %v5281_v58 = vpop.f32.mrb[67].mxu0 }
 0x453   : > { %11554 = vst [vmem:[#allocation50_spill] sm:$0xff] %v10515_v24 }
 0x454   : > { %5751 = vmatmul.mubr.bf16.gmra.mrb[172].mxu0 %v11533_v19  ;;  %v5029_v42 = vpop.f32.mrb[84].mxu1 }
 0x455   : > { %v5030_v21 = vadd.f32 %v5029_v42, %v11555_v36  ;;  %v5031_v6 = vpop.f32.mrb[85].mxu1 }
 0x456   : > { %v5032_v26 = vpop.f32.mrb[86].mxu1 }
 0x457   : > { %v10519_v25 = vpop.f32.mrb[68].mxu0  ;;  %v10521_v22 = vadd.f32 %v7330_v56, %v5030_v21  ;;  %v5033_v51 = vadd.f32 %v5032_v26, %v10309_v34  ;;  %v5034_v39 = vpop.f32.mrb[87].mxu1 }
 0x458   : > { %v5294_v7 = vpop.f32.mrb[69].mxu0 }
 0x459   : > { %v10524_v13 = vpop.f32.mrb[70].mxu0  ;;  %v10526_v46 = vadd.f32 %v7331_v30, %v5033_v51 }
 0x45a   : > { %v5297_v1 = vpop.f32.mrb[71].mxu0 }
 0x45b   : > { %11556 = vst [vmem:[#allocation8_spill] sm:$0xff] %v10526_v46 }
 0x45c   : > { %v5037_v52 = vpop.f32.mrb[88].mxu1 }
 0x45d   : > { %v5038_v19 = vadd.f32 %v5037_v52, %v10314_v18  ;;  %v5039_v24 = vpop.f32.mrb[89].mxu1 }
 0x45e   : > { %v5040_v42 = vpop.f32.mrb[90].mxu1 }
 0x45f   : > { %v10529_v36 = vpop.f32.mrb[72].mxu0  ;;  %v10531_v6 = vadd.f32 %v5262_v10, %v5038_v19  ;;  %v5041_v56 = vadd.f32 %v5040_v42, %v10317_v4  ;;  %v5042_v21 = vpop.f32.mrb[91].mxu1 }
 0x460   : > { %v10534_v34 = vpop.f32.mrb[73].mxu0 }
 0x461   : > { %11557 = vst [vmem:[#allocation42_spill] sm:$0xff] %v10531_v6  ;;  %v10536_v26 = vpop.f32.mrb[74].mxu0  ;;  %v10538_v39 = vadd.f32 %v5265_v20, %v5041_v56 }
 0x462   : > { %v10540_v30 = vpop.f32.mrb[75].mxu0 }
 0x463   : > { %11558 = vst [vmem:[#allocation15_spill] sm:$0xff] %v10538_v39 }
 0x464   : > { %v5045_v51 = vpop.f32.mrb[92].mxu1 }
 0x465   : > { %v5046_v18 = vadd.f32 %v5045_v51, %v10322_v23  ;;  %v5047_v24 = vpop.f32.mrb[93].mxu1 }
 0x466   : > { %v5048_v52 = vpop.f32.mrb[94].mxu1 }
 0x467   : > { %v10543_v46 = vpop.f32.mrb[76].mxu0  ;;  %v10545_v10 = vadd.f32 %v7334_v60, %v5046_v18  ;;  %v5049_v4 = vadd.f32 %v5048_v52, %v10325_v38  ;;  %v5050_v19 = vpop.f32.mrb[95].mxu1 }
 0x468   : > { %v10548_v42 = vpop.f32.mrb[77].mxu0 }
 0x469   : > { %11559 = vst [vmem:[#allocation36_spill] sm:$0xff] %v10545_v10  ;;  %v10550_v21 = vpop.f32.mrb[78].mxu0  ;;  %v10552_v20 = vadd.f32 %v7335_v57, %v5049_v4 }
 0x46a   : > { %v10554_v56 = vpop.f32.mrb[79].mxu0 }
 0x46b   : > { %11560 = vst [vmem:[#allocation45_spill] sm:$0xff] %v10552_v20 }
 0x46c   : > { %v5053_v39 = vpop.f32.mrb[96].mxu1 }
 0x46d   : > { %v5054_v23 = vadd.f32 %v5053_v39, %v10330_v43  ;;  %v5055_v51 = vpop.f32.mrb[97].mxu1 }
 0x46e   : > { %v5056_v24 = vpop.f32.mrb[98].mxu1 }
 0x46f   : > { %v10557_v6 = vpop.f32.mrb[80].mxu0  ;;  %v10559_v60 = vadd.f32 %v5278_v27, %v5054_v23  ;;  %v5057_v38 = vadd.f32 %v5056_v24, %v10333_v63  ;;  %v5058_v18 = vpop.f32.mrb[99].mxu1 }
 0x470   : > { %v5570_v52 = vpop.f32.mrb[81].mxu0 }
 0x471   : > { %v10562_v19 = vpop.f32.mrb[82].mxu0  ;;  %v10564_v10 = vadd.f32 %v5281_v58, %v5057_v38 }
 0x472   : > { %v5573_v57 = vpop.f32.mrb[83].mxu0 }
 0x474   : > { %v5061_v4 = vpop.f32.mrb[100].mxu1 }
 0x475   : > { %v5062_v20 = vadd.f32 %v5061_v4, %v10338_v47  ;;  %v5063_v35 = vpop.f32.mrb[101].mxu1 }
 0x476   : > { %v5064_v43 = vpop.f32.mrb[102].mxu1 }
 0x477   : > { %v10567_v39 = vpop.f32.mrb[84].mxu0  ;;  %v10569_v51 = vadd.f32 %v7338_v41, %v5062_v20  ;;  %v5065_v27 = vadd.f32 %v5064_v43, %v10341_v17  ;;  %v5066_v23 = vpop.f32.mrb[103].mxu1 }
 0x478   : > { %v5578_v63 = vpop.f32.mrb[85].mxu0 }
 0x479   : > { %v10572_v24 = vpop.f32.mrb[86].mxu0  ;;  %v10574_v18 = vadd.f32 %v7339_v33, %v5065_v27 }
 0x47a   : > { %v5581_v58 = vpop.f32.mrb[87].mxu0 }
 0x47c   : > { %v5069_v38 = vpop.f32.mrb[104].mxu1 }
 0x47d   : > { %v5070_v52 = vadd.f32 %v5069_v38, %v10346_v29  ;;  %v5071_v57 = vpop.f32.mrb[105].mxu1 }
 0x47e   : > { %v5072_v47 = vpop.f32.mrb[106].mxu1 }
 0x47f   : > { %v10577_v35 = vpop.f32.mrb[88].mxu0  ;;  %v10579_v4 = vadd.f32 %v5294_v7, %v5070_v52  ;;  %v5073_v41 = vadd.f32 %v5072_v47, %v10349_v31  ;;  %v5074_v20 = vpop.f32.mrb[107].mxu1  ;;  %v11562_v7 = vld [vmem:[#allocation40_spill] sm:$0xff] }
 0x480   : > { %v5586_v17 = vpop.f32.mrb[89].mxu0 }
 0x481   : > { %v10582_v43 = vpop.f32.mrb[90].mxu0  ;;  %v10584_v23 = vadd.f32 %v5297_v1, %v5073_v41 }
 0x482   : > { %v5589_v33 = vpop.f32.mrb[91].mxu0 }
 0x483   : > { %11561 = vst [vmem:[#allocation4_spill] sm:$0xff] %v10584_v23  ;;  %v11563_v33 = vld [vmem:[#allocation3_spill] sm:$0xff] }
 0x484   : > { %v5077_v27 = vpop.f32.mrb[108].mxu1 }
 0x485   : > { %v5078_v63 = vadd.f32 %v5077_v27, %v10358_v16  ;;  %v5079_v58 = vpop.f32.mrb[109].mxu1 }
 0x486   : > { %v5080_v29 = vpop.f32.mrb[110].mxu1 }
 0x487   : > { %v10587_v38 = vpop.f32.mrb[92].mxu0  ;;  %v10590_v57 = vadd.f32 %v10519_v25, %v5078_v63  ;;  %v5081_v52 = vadd.f32 %v5080_v29, %v11562_v7  ;;  %v5082_v31 = vpop.f32.mrb[111].mxu1 }
 0x488   : > { %v5594_v47 = vpop.f32.mrb[93].mxu0 }
 0x489   : > { %v10593_v20 = vpop.f32.mrb[94].mxu0  ;;  %v10596_v1 = vadd.f32 %v10524_v13, %v5081_v52 }
 0x48a   : > { %v5597_v41 = vpop.f32.mrb[95].mxu0 }
 0x48c   : > { %v5085_v17 = vpop.f32.mrb[112].mxu1 }
 0x48d   : > { %v5086_v16 = vadd.f32 %v5085_v17, %v11563_v33  ;;  %v5087_v27 = vpop.f32.mrb[113].mxu1 }
 0x48e   : > { %v5088_v58 = vpop.f32.mrb[114].mxu1 }
 0x48f   : > { %v10599_v23 = vpop.f32.mrb[96].mxu0  ;;  %v10602_v25 = vadd.f32 %v10534_v34, %v5086_v16  ;;  %v5089_v63 = vadd.f32 %v5088_v58, %v10375_v54  ;;  %v5090_v29 = vpop.f32.mrb[115].mxu1 }
 0x490   : > { %v5602_v7 = vpop.f32.mrb[97].mxu0 }
 0x491   : > { %v10605_v31 = vpop.f32.mrb[98].mxu0  ;;  %v10608_v13 = vadd.f32 %v10540_v30, %v5089_v63 }
 0x492   : > { %v5605_v52 = vpop.f32.mrb[99].mxu0 }
 0x494   : > { %v5093_v47 = vpop.f32.mrb[116].mxu1 }
 0x495   : > { %v5094_v41 = vadd.f32 %v5093_v47, %v10382_v15  ;;  %v5095_v17 = vpop.f32.mrb[117].mxu1 }
 0x496   : > { %v5096_v33 = vpop.f32.mrb[118].mxu1 }
 0x497   : > { %v10611_v27 = vpop.f32.mrb[100].mxu0  ;;  %v10614_v34 = vadd.f32 %v10529_v36, %v5094_v41  ;;  %v5097_v54 = vadd.f32 %v5096_v33, %v10385_v28  ;;  %v5098_v16 = vpop.f32.mrb[119].mxu1 }
 0x498   : > { %v5610_v58 = vpop.f32.mrb[101].mxu0 }
 0x499   : > { %v10617_v29 = vpop.f32.mrb[102].mxu0  ;;  %v10620_v30 = vadd.f32 %v10536_v26, %v5097_v54 }
 0x49a   : > { %v5613_v63 = vpop.f32.mrb[103].mxu0 }
 0x49c   : > { %v5101_v7 = vpop.f32.mrb[120].mxu1 }
 0x49d   : > { %v5102_v15 = vadd.f32 %v5101_v7, %v10392_v44  ;;  %v5103_v52 = vpop.f32.mrb[121].mxu1 }
 0x49e   : > { %v5104_v47 = vpop.f32.mrb[122].mxu1 }
 0x49f   : > { %v10623_v17 = vpop.f32.mrb[104].mxu0  ;;  %v10626_v36 = vadd.f32 %v10548_v42, %v5102_v15  ;;  %v5105_v28 = vadd.f32 %v5104_v47, %v10395_v48  ;;  %v5106_v41 = vpop.f32.mrb[123].mxu1 }
 0x4a0   : > { %v5618_v33 = vpop.f32.mrb[105].mxu0 }
 0x4a1   : > { %v10629_v16 = vpop.f32.mrb[106].mxu0  ;;  %v10632_v26 = vadd.f32 %v10554_v56, %v5105_v28 }
 0x4a2   : > { %v5621_v54 = vpop.f32.mrb[107].mxu0 }
 0x4a3   : > { %11564 = vst [vmem:[#allocation54_spill] sm:$0xff] %v10632_v26  ;;  %v7580_v26 = vld [vmem:[%s7730_s13 + $0x28] sm:$0xff] }
 0x4a4   : > { %v5109_v58 = vpop.f32.mrb[124].mxu1 }
 0x4a5   : > { %v5110_v44 = vadd.f32 %v5109_v58, %v10403_v45  ;;  %v5111_v63 = vpop.f32.mrb[125].mxu1  ;;  %v10650_v58 = vld [vmem:[%s11032_s7] ss:$0 sm:$0xff] }
 0x4a6   : > { %v5112_v7 = vpop.f32.mrb[126].mxu1 }
 0x4a7   : > { %v10635_v52 = vpop.f32.mrb[108].mxu0  ;;  %v10638_v42 = vadd.f32 %v10543_v46, %v5110_v44  ;;  %v5113_v48 = vadd.f32 %v5112_v7, %v10407_v55  ;;  %v5114_v15 = vpop.f32.mrb[127].mxu1 }
 0x4a8   : > { %v5626_v47 = vpop.f32.mrb[109].mxu0 }
 0x4a9   : > { %11565 = vst [vmem:[#allocation33_spill] sm:$0xff] %v10638_v42  ;;  %v10641_v41 = vpop.f32.mrb[110].mxu0  ;;  %v10644_v56 = vadd.f32 %v10550_v21, %v5113_v48 }
 0x4aa   : > { %v5629_v28 = vpop.f32.mrb[111].mxu0 }
 0x4ab   : > { %11566 = vst [vmem:[#allocation14_spill] sm:$0xff] %v10644_v56  ;;  %v7579_v56 = vld [vmem:[%s7730_s13 + $0x20] sm:$0xff] }
 0x4ac   : > { %v7370_v33 = vpop.f32.mrb[128].mxu1 }
 0x4ad   : > { %v5802_v45 = vadd.f32 %v7370_v33, %v10567_v39  ;;  %v5793_v54 = vpop.f32.mrb[129].mxu1 }
 0x4ae   : > { %v5794_v55 = vadd.f32 %v5793_v54, %v10557_v6  ;;  %v7371_v46 = vpop.f32.mrb[130].mxu1 }
 0x4af   : > { %v10653_v44 = vpop.f32.mrb[112].mxu0  ;;  %v5986_v63 = vadd.f32 %v5802_v45, %v10414_v9  ;;  %v5805_v21 = vadd.f32 %v7371_v46, %v10572_v24  ;;  %v5796_v7 = vpop.f32.mrb[131].mxu1  ;;  %v10671_v46 = vld [vmem:[%s11033_s8] ss:$0 sm:$0xff] }
 0x4b0   : > { %v5634_v48 = vpop.f32.mrb[113].mxu0  ;;  %v5984_v39 = vadd.f32 %v5794_v55, %v10417_v8  ;;  %v5797_v15 = vadd.f32 %v5796_v7, %v10562_v19 }
 0x4b1   : > { %v10659_v47 = vpop.f32.mrb[114].mxu0  ;;  %v6041_v28 = vmul.f32 %v10650_v58, %v5986_v63  ;;  %v5987_v6 = vadd.f32 %v5805_v21, %v10420_v37 }
 0x4b2   : > { %v5637_v33 = vpop.f32.mrb[115].mxu0  ;;  %v6039_v54 = vmul.f32 %v10650_v58, %v5984_v39  ;;  %v5985_v9 = vadd.f32 %v5797_v15, %v10424_v0  ;;  %v7577_v0 = vld [vmem:[%s7730_s13 + $0x18] sm:$0xff] }
 0x4b3   : > { %v6042_v24 = vmul.f32 %v10650_v58, %v5987_v6  ;;  %v6139_v55 = vrot.slane %v6041_v28, 7 }
 0x4b4   : > { %v6136_v45 = vrot.slane %v6039_v54, 7  ;;  %v6040_v8 = vmul.f32 %v10650_v58, %v5985_v9  ;;  %v7374_v19 = vpop.f32.mrb[132].mxu1 }
 0x4b5   : > { %v6141_v37 = vrot.slane %v6042_v24, 7  ;;  %v5818_v63 = vadd.f32 %v7374_v19, %v10587_v38  ;;  %v5809_v21 = vpop.f32.mrb[133].mxu1  ;;  %v7578_v24 = vld [vmem:[%s7730_s13 + $0x30] sm:$0xff] }
 0x4b6   : > { %v6280_v7 = vadd.f32 %v7577_v0, %v6136_v45  ;;  %v6137_v48 = vrot.slane %v6040_v8, 7  ;;  %v5810_v39 = vadd.f32 %v5809_v21, %v10577_v35  ;;  %v7375_v15 = vpop.f32.mrb[134].mxu1 }
 0x4b7   : > { %v10676_v6 = vpop.f32.mrb[116].mxu0  ;;  %v6142_v28 = vsel %vm6135_vm0, %v6139_v55, %v6141_v37  ;;  %v5990_v38 = vadd.f32 %v5818_v63, %v10430_v40  ;;  %v5821_v33 = vadd.f32 %v7375_v15, %v10593_v20  ;;  %v5812_v54 = vpop.f32.mrb[135].mxu1 }
 0x4b8   : > { %v5642_v9 = vpop.f32.mrb[117].mxu0  ;;  %v6336_v35 = vadd.f32 %v10671_v46, %v6280_v7  ;;  %v6283_v8 = vadd.f32 %v7578_v24, %v6142_v28  ;;  %v6138_v19 = vsel %vm6135_vm0, %v6136_v45, %v6137_v48  ;;  %v6140_v21 = vsel %vm6135_vm0, %v6137_v48, %v6139_v55 }
 0x4b9   : > { %v10690_v0 = vpop.f32.mrb[118].mxu0  ;;  %v6281_v42 = vadd.f32 %v7579_v56, %v6138_v19  ;;  %v6282_v40 = vadd.f32 %v7580_v26, %v6140_v21  ;;  %v5988_v20 = vadd.f32 %v5810_v39, %v10432_v3  ;;  %v6045_v15 = vmul.f32 %v10650_v58, %v5990_v38 }
 0x4ba   : > { %v5645_v63 = vpop.f32.mrb[119].mxu0  ;;  %6385 = vst [vmem:[%s10681_s22 - $0x1] sm:$0xfe] %v6336_v35  ;;  %v6339_v7 = vadd.f32 %v10671_v46, %v6283_v8  ;;  %v5991_v45 = vadd.f32 %v5821_v33, %v10435_v2  ;;  %v5813_v55 = vadd.f32 %v5812_v54, %v10582_v43 }
 0x4bb   : > { %v6337_v48 = vadd.f32 %v10671_v46, %v6281_v42  ;;  %v6338_v56 = vadd.f32 %v10671_v46, %v6282_v40  ;;  %v6043_v28 = vmul.f32 %v10650_v58, %v5988_v20  ;;  %v6147_v43 = vrot.slane %v6045_v15, 7 }
 0x4bc   : > { %6388 = vst [vmem:[%s10681_s22 + $0x17] sm:$0xff] %v6339_v7  ;;  %v6046_v26 = vmul.f32 %v10650_v58, %v5991_v45  ;;  %v5989_v3 = vadd.f32 %v5813_v55, %v10438_v14  ;;  %v7378_v39 = vpop.f32.mrb[136].mxu1  ;;  %v7582_v45 = vld [vmem:[%s7730_s13 + $0x50] sm:$0xff] }
 0x4bd   : > { %6386 = vst [vmem:[%s10681_s22 + $0x7] sm:$0xff] %v6337_v48  ;;  %6387 = vst [vmem:[%s10681_s22 + $0xf] sm:$0xff] %v6338_v56  ;;  %v6143_v38 = vrot.slane %v6043_v28, 7  ;;  %v5834_v2 = vadd.f32 %v7378_v39, %v10611_v27  ;;  %v5825_v33 = vpop.f32.mrb[137].mxu1  ;;  %v7581_v27 = vld [vmem:[%s7730_s13 + $0x38] sm:$0xff]  ;;  %v7583_v39 = vld [vmem:[%s7730_s13 + $0x40] sm:$0xff] }
 0x4be   : > { %v6149_v54 = vrot.slane %v6046_v26, 7  ;;  %v6044_v42 = vmul.f32 %v10650_v58, %v5989_v3  ;;  %v5826_v9 = vadd.f32 %v5825_v33, %v10599_v23  ;;  %v7379_v35 = vpop.f32.mrb[138].mxu1  ;;  %v7584_v33 = vld [vmem:[%s7730_s13 + $0x48] sm:$0xff] }
 0x4bf   : > { %v10711_v24 = vpop.f32.mrb[120].mxu0  ;;  %v6144_v14 = vsel %vm6135_vm0, %v6141_v37, %v6143_v38  ;;  %v5994_v8 = vadd.f32 %v5834_v2, %v10444_v5  ;;  %v5837_v19 = vadd.f32 %v7379_v35, %v10617_v29  ;;  %v5828_v21 = vpop.f32.mrb[139].mxu1 }
 0x4c0   : > { %v5650_v40 = vpop.f32.mrb[121].mxu0  ;;  %v6284_v20 = vadd.f32 %v7581_v27, %v6144_v14  ;;  %v6150_v63 = vsel %vm6135_vm0, %v6147_v43, %v6149_v54  ;;  %v6145_v7 = vrot.slane %v6044_v42, 7  ;;  %v5992_v23 = vadd.f32 %v5826_v9, %v10446_v50 }
 0x4c1   : > { %v10719_v15 = vpop.f32.mrb[122].mxu0  ;;  %v6287_v37 = vadd.f32 %v7582_v45, %v6150_v63  ;;  %v6049_v5 = vmul.f32 %v10650_v58, %v5994_v8  ;;  %v5995_v29 = vadd.f32 %v5837_v19, %v10449_v61  ;;  %v5829_v55 = vadd.f32 %v5828_v21, %v10605_v31 }
 0x4c2   : > { %v5653_v48 = vpop.f32.mrb[123].mxu0  ;;  %v6340_v56 = vadd.f32 %v10671_v46, %v6284_v20  ;;  %v6146_v28 = vsel %vm6135_vm0, %v6143_v38, %v6145_v7  ;;  %v6148_v26 = vsel %vm6135_vm0, %v6145_v7, %v6147_v43  ;;  %v6047_v50 = vmul.f32 %v10650_v58, %v5992_v23  ;;  %v7585_v7 = vld [vmem:[%s7730_s13 + $0x58] sm:$0xff] }
 0x4c3   : > { %v6343_v3 = vadd.f32 %v10671_v46, %v6287_v37  ;;  %v6285_v2 = vadd.f32 %v7583_v39, %v6146_v28  ;;  %v6286_v42 = vadd.f32 %v7584_v33, %v6148_v26  ;;  %v6050_v31 = vmul.f32 %v10650_v58, %v5995_v29  ;;  %v7586_v28 = vld [vmem:[%s7730_s13 + $0x70] sm:$0xff]  ;;  %v7587_v33 = vld [vmem:[%s7730_s13 + $0x60] sm:$0xff] }
 0x4c4   : > { %6389 = vst [vmem:[%s10681_s22 + $0x1f] sm:$0xff] %v6340_v56  ;;  %v6151_v61 = vrot.slane %v6047_v50, 7  ;;  %v5993_v9 = vadd.f32 %v5829_v55, %v10452_v11  ;;  %v7382_v38 = vpop.f32.mrb[140].mxu1  ;;  %v6155_v14 = vrot.slane %v6049_v5, 7 }
 0x4c5   : > { %6392 = vst [vmem:[%s10681_s22 + $0x37] sm:$0xff] %v6343_v3  ;;  %v6341_v43 = vadd.f32 %v10671_v46, %v6285_v2  ;;  %v6342_v35 = vadd.f32 %v10671_v46, %v6286_v42  ;;  %v5850_v8 = vadd.f32 %v7382_v38, %v10635_v52  ;;  %v5841_v19 = vpop.f32.mrb[141].mxu1  ;;  %v6157_v40 = vrot.slane %v6050_v31, 7  ;;  %v7588_v31 = vld [vmem:[%s7730_s13 + $0x68] sm:$0xff] }
 0x4c6   : > { %v6152_v21 = vsel %vm6135_vm0, %v6149_v54, %v6151_v61  ;;  %v6048_v27 = vmul.f32 %v10650_v58, %v5993_v9  ;;  %v5842_v20 = vadd.f32 %v5841_v19, %v10623_v17  ;;  %v7383_v63 = vpop.f32.mrb[142].mxu1 }
 0x4c7   : > { %v10742_v11 = vpop.f32.mrb[124].mxu0  ;;  %6390 = vst [vmem:[%s10681_s22 + $0x27] sm:$0xff] %v6341_v43  ;;  %6391 = vst [vmem:[%s10681_s22 + $0x2f] sm:$0xff] %v6342_v35  ;;  %v6288_v23 = vadd.f32 %v7585_v7, %v6152_v21  ;;  %v5998_v45 = vadd.f32 %v5850_v8, %v10458_v32  ;;  %v5853_v52 = vadd.f32 %v7383_v63, %v10641_v41  ;;  %v5844_v37 = vpop.f32.mrb[143].mxu1 }
 0x4c8   : > { %v5658_v5 = vpop.f32.mrb[125].mxu0  ;;  %v6158_v54 = vsel %vm6135_vm0, %v6155_v14, %v6157_v40  ;;  %v6153_v29 = vrot.slane %v6048_v27, 7  ;;  %v5996_v17 = vadd.f32 %v5842_v20, %v10460_v49  ;;  %v5845_v55 = vadd.f32 %v5844_v37, %v10629_v16 }
 0x4c9   : > { %v10752_v48 = vpop.f32.mrb[126].mxu0  ;;  %v6344_v56 = vadd.f32 %v10671_v46, %v6288_v23  ;;  %v6291_v32 = vadd.f32 %v7586_v28, %v6158_v54  ;;  %v6053_v41 = vmul.f32 %v10650_v58, %v5998_v45  ;;  %v5999_v26 = vadd.f32 %v5853_v52, %v10465_v12  ;;  %v7589_v45 = vld [vmem:[%s7730_s13 + $0x78] sm:$0xff] }
 0x4ca   : > { %v5661_v50 = vpop.f32.mrb[127].mxu0  ;;  %v6154_v3 = vsel %vm6135_vm0, %v6151_v61, %v6153_v29  ;;  %v6156_v39 = vsel %vm6135_vm0, %v6153_v29, %v6155_v14  ;;  %v6051_v49 = vmul.f32 %v10650_v58, %v5996_v17  ;;  %v5997_v16 = vadd.f32 %v5845_v55, %v10468_v59  ;;  %v11567_v17 = vld [vmem:[#allocation18_spill] sm:$0xff] }
 0x4cb   : > { %6393 = vst [vmem:[%s10681_s22 + $0x3f] sm:$0xff] %v6344_v56  ;;  %v6347_v2 = vadd.f32 %v10671_v46, %v6291_v32  ;;  %v6289_v42 = vadd.f32 %v7587_v33, %v6154_v3  ;;  %v6290_v9 = vadd.f32 %v7588_v31, %v6156_v39  ;;  %v6054_v12 = vmul.f32 %v10650_v58, %v5999_v26  ;;  %v7590_v32 = vld [vmem:[%s7730_s13 + $0x90] sm:$0xff] }
 0x4cc   : > { %v6159_v38 = vrot.slane %v6051_v49, 7  ;;  %v6052_v61 = vmul.f32 %v10650_v58, %v5997_v16  ;;  %v7386_v43 = vpop.f32.mrb[144].mxu1  ;;  %v6163_v14 = vrot.slane %v6053_v41, 7  ;;  %v11568_v16 = vld [vmem:[#allocation9_spill] sm:$0xff] }
 0x4cd   : > { %6396 = vst [vmem:[%s10681_s22 + $0x57] sm:$0xff] %v6347_v2  ;;  %v6345_v35 = vadd.f32 %v10671_v46, %v6289_v42  ;;  %v6346_v59 = vadd.f32 %v10671_v46, %v6290_v9  ;;  %v5866_v8 = vadd.f32 %v7386_v43, %v10676_v6  ;;  %v5857_v19 = vpop.f32.mrb[145].mxu1  ;;  %v6165_v27 = vrot.slane %v6054_v12, 7 }
 0x4ce   : > { %v6160_v21 = vsel %vm6135_vm0, %v6157_v40, %v6159_v38  ;;  %v6161_v20 = vrot.slane %v6052_v61, 7  ;;  %v5858_v63 = vadd.f32 %v5857_v19, %v10653_v44  ;;  %v7387_v7 = vpop.f32.mrb[146].mxu1  ;;  %v11569_v61 = vld [vmem:[#allocation48_spill] sm:$0xff] }
 0x4cf   : > { %v10774_v23 = vpop.f32.mrb[128].mxu0  ;;  %6394 = vst [vmem:[%s10681_s22 + $0x47] sm:$0xff] %v6345_v35  ;;  %6395 = vst [vmem:[%s10681_s22 + $0x4f] sm:$0xff] %v6346_v59  ;;  %v6292_v52 = vadd.f32 %v7589_v45, %v6160_v21  ;;  %v6002_v37 = vadd.f32 %v5866_v8, %v10485_v53  ;;  %v5869_v6 = vadd.f32 %v7387_v7, %v10690_v0  ;;  %v5860_v5 = vpop.f32.mrb[147].mxu1  ;;  %v7591_v53 = vld [vmem:[%s7730_s13 + $0x80] sm:$0xff]  ;;  %v7592_v0 = vld [vmem:[%s7730_s13 + $0x88] sm:$0xff] }
 0x4d0   : > { %v5666_v40 = vpop.f32.mrb[129].mxu0  ;;  %v6166_v54 = vsel %vm6135_vm0, %v6163_v14, %v6165_v27  ;;  %v6162_v44 = vsel %vm6135_vm0, %v6159_v38, %v6161_v20  ;;  %v6164_v29 = vsel %vm6135_vm0, %v6161_v20, %v6163_v14  ;;  %v6000_v55 = vadd.f32 %v5858_v63, %v11567_v17  ;;  %v7593_v45 = vld [vmem:[%s7730_s13 + $0x98] sm:$0xff] }
 0x4d1   : > { %v10785_v56 = vpop.f32.mrb[130].mxu0  ;;  %v6348_v28 = vadd.f32 %v10671_v46, %v6292_v52  ;;  %v6295_v41 = vadd.f32 %v7590_v32, %v6166_v54  ;;  %v6293_v26 = vadd.f32 %v7591_v53, %v6162_v44  ;;  %v6294_v50 = vadd.f32 %v7592_v0, %v6164_v29  ;;  %v11571_v44 = vld [vmem:[#allocation6_spill] sm:$0xff] }
 0x4d2   : > { %v5669_v3 = vpop.f32.mrb[131].mxu0  ;;  %v6057_v39 = vmul.f32 %v10650_v58, %v6002_v37  ;;  %v6055_v49 = vmul.f32 %v10650_v58, %v6000_v55  ;;  %v6003_v2 = vadd.f32 %v5869_v6, %v11568_v16  ;;  %v5861_v33 = vadd.f32 %v5860_v5, %v10659_v47  ;;  %v11570_v37 = vld [vmem:[#allocation22_spill] sm:$0xff] }
 0x4d3   : > { %6397 = vst [vmem:[%s10681_s22 + $0x5f] sm:$0xff] %v6348_v28  ;;  %v6351_v42 = vadd.f32 %v10671_v46, %v6295_v41  ;;  %v6349_v31 = vadd.f32 %v10671_v46, %v6293_v26  ;;  %v6350_v9 = vadd.f32 %v10671_v46, %v6294_v50  ;;  %v7594_v28 = vld [vmem:[%s7730_s13 + $0xb0] sm:$0xff]  ;;  %v11572_v3 = vld [vmem:[#allocation43_spill] sm:$0xff] }
 0x4d4   : > { %v6167_v38 = vrot.slane %v6055_v49, 7  ;;  %v6058_v12 = vmul.f32 %v10650_v58, %v6003_v2  ;;  %v6001_v43 = vadd.f32 %v5861_v33, %v11569_v61  ;;  %v7390_v35 = vpop.f32.mrb[148].mxu1  ;;  %v6171_v59 = vrot.slane %v6057_v39, 7  ;;  %v7595_v49 = vld [vmem:[%s7730_s13 + $0xa0] sm:$0xff]  ;;  %v7596_v2 = vld [vmem:[%s7730_s13 + $0xa8] sm:$0xff] }
 0x4d5   : > { %6400 = vst [vmem:[%s10681_s22 + $0x77] sm:$0xff] %v6351_v42  ;;  %6398 = vst [vmem:[%s10681_s22 + $0x67] sm:$0xff] %v6349_v31  ;;  %v5882_v47 = vadd.f32 %v7390_v35, %v10742_v11  ;;  %v5873_v14 = vpop.f32.mrb[149].mxu1 }
 0x4d6   : > { %6399 = vst [vmem:[%s10681_s22 + $0x6f] sm:$0xff] %v6350_v9  ;;  %v6168_v8 = vsel %vm6135_vm0, %v6165_v27, %v6167_v38  ;;  %v6173_v19 = vrot.slane %v6058_v12, 7  ;;  %v6056_v21 = vmul.f32 %v10650_v58, %v6001_v43  ;;  %v5874_v20 = vadd.f32 %v5873_v14, %v10711_v24  ;;  %v7391_v63 = vpop.f32.mrb[150].mxu1 }
 0x4d7   : > { %v5672_v7 = vpop.f32.mrb[132].mxu0  ;;  %v6296_v52 = vadd.f32 %v7593_v45, %v6168_v8  ;;  %v6006_v6 = vadd.f32 %v5882_v47, %v11570_v37  ;;  %v5885_v5 = vadd.f32 %v7391_v63, %v10752_v48  ;;  %v5876_v40 = vpop.f32.mrb[151].mxu1  ;;  %v7597_v63 = vld [vmem:[%s7730_s13 + $0xb8] sm:$0xff] }
 0x4d8   : > { %v5674_v54 = vpop.f32.mrb[133].mxu0  ;;  %v6174_v11 = vsel %vm6135_vm0, %v6171_v59, %v6173_v19  ;;  %v6169_v27 = vrot.slane %v6056_v21, 7  ;;  %v6004_v29 = vadd.f32 %v5874_v20, %v11571_v44  ;;  %v5877_v17 = vadd.f32 %v5876_v40, %v10719_v15  ;;  %v11573_v40 = vld [vmem:[#allocation21_spill] sm:$0xff]  ;;  %v7598_v44 = vld [vmem:[%s7730_s13 + $0xd0] sm:$0xff] }
 0x4d9   : > { %v5675_v24 = vpop.f32.mrb[134].mxu0  ;;  %v6352_v55 = vadd.f32 %v10671_v46, %v6296_v52  ;;  %v6299_v32 = vadd.f32 %v7594_v28, %v6174_v11  ;;  %v6061_v41 = vmul.f32 %v10650_v58, %v6006_v6  ;;  %v6007_v48 = vadd.f32 %v5885_v5, %v10507_v62 }
 0x4da   : > { %v5677_v53 = vpop.f32.mrb[135].mxu0  ;;  %v6170_v26 = vsel %vm6135_vm0, %v6167_v38, %v6169_v27  ;;  %v6172_v0 = vsel %vm6135_vm0, %v6169_v27, %v6171_v59  ;;  %v6059_v50 = vmul.f32 %v10650_v58, %v6004_v29  ;;  %v6005_v15 = vadd.f32 %v5877_v17, %v11572_v3  ;;  %v7599_v17 = vld [vmem:[%s7730_s13 + $0xc0] sm:$0xff] }
 0x4db   : > { %6401 = vst [vmem:[%s10681_s22 + $0x7f] sm:$0xff] %v6352_v55  ;;  %v6355_v39 = vadd.f32 %v10671_v46, %v6299_v32  ;;  %v6297_v16 = vadd.f32 %v7595_v49, %v6170_v26  ;;  %v6298_v33 = vadd.f32 %v7596_v2, %v6172_v0  ;;  %v6062_v62 = vmul.f32 %v10650_v58, %v6007_v48  ;;  %v11574_v48 = vld [vmem:[#allocation8_spill] sm:$0xff]  ;;  %v11575_v49 = vld [vmem:[#allocation50_spill] sm:$0xff] }
 0x4dc   : > { %v6175_v42 = vrot.slane %v6059_v50, 7  ;;  %v6060_v31 = vmul.f32 %v10650_v58, %v6005_v15  ;;  %v7394_v9 = vpop.f32.mrb[152].mxu1  ;;  %v6179_v61 = vrot.slane %v6061_v41, 7 }
 0x4dd   : > { %6404 = vst [vmem:[%s10681_s22 + $0x97] sm:$0xff] %v6355_v39  ;;  %v6353_v38 = vadd.f32 %v10671_v46, %v6297_v16  ;;  %v6354_v12 = vadd.f32 %v10671_v46, %v6298_v33  ;;  %v5898_v43 = vadd.f32 %v7394_v9, %v5672_v7  ;;  %v5889_v35 = vpop.f32.mrb[153].mxu1  ;;  %v6181_v47 = vrot.slane %v6062_v62, 7 }
 0x4de   : > { %v6176_v59 = vsel %vm6135_vm0, %v6173_v19, %v6175_v42  ;;  %v6177_v14 = vrot.slane %v6060_v31, 7  ;;  %v5890_v8 = vadd.f32 %v5889_v35, %v10774_v23  ;;  %v7395_v21 = vpop.f32.mrb[154].mxu1 }
 0x4df   : > { %v5680_v20 = vpop.f32.mrb[136].mxu0  ;;  %6402 = vst [vmem:[%s10681_s22 + $0x87] sm:$0xff] %v6353_v38  ;;  %6403 = vst [vmem:[%s10681_s22 + $0x8f] sm:$0xff] %v6354_v12  ;;  %v6300_v45 = vadd.f32 %v7597_v63, %v6176_v59  ;;  %v6010_v52 = vadd.f32 %v5898_v43, %v10521_v22  ;;  %v5901_v37 = vadd.f32 %v7395_v21, %v5675_v24  ;;  %v5892_v7 = vpop.f32.mrb[155].mxu1  ;;  %v7600_v22 = vld [vmem:[%s7730_s13 + $0xc8] sm:$0xff]  ;;  %v11576_v63 = vld [vmem:[#allocation42_spill] sm:$0xff] }
 0x4e0   : > { %v5682_v6 = vpop.f32.mrb[137].mxu0  ;;  %v6182_v19 = vsel %vm6135_vm0, %v6179_v61, %v6181_v47  ;;  %v6178_v5 = vsel %vm6135_vm0, %v6175_v42, %v6177_v14  ;;  %v6180_v23 = vsel %vm6135_vm0, %v6177_v14, %v6179_v61  ;;  %v6008_v54 = vadd.f32 %v5890_v8, %v11573_v40  ;;  %v7601_v61 = vld [vmem:[%s7730_s13 + $0xd8] sm:$0xff] }
 0x4e1   : > { %v5683_v11 = vpop.f32.mrb[138].mxu0  ;;  %v6356_v27 = vadd.f32 %v10671_v46, %v6300_v45  ;;  %v6303_v29 = vadd.f32 %v7598_v44, %v6182_v19  ;;  %v6301_v55 = vadd.f32 %v7599_v17, %v6178_v5  ;;  %v6302_v24 = vadd.f32 %v7600_v22, %v6180_v23  ;;  %v11577_v6 = vld [vmem:[#allocation36_spill] sm:$0xff]  ;;  %v11578_v44 = vld [vmem:[#allocation15_spill] sm:$0xff]  ;;  %v7603_v17 = vld [vmem:[%s7730_s13 + $0xe0] sm:$0xff] }
 0x4e2   : > { %v5685_v28 = vpop.f32.mrb[139].mxu0  ;;  %v6065_v32 = vmul.f32 %v10650_v58, %v6010_v52  ;;  %v6063_v41 = vmul.f32 %v10650_v58, %v6008_v54  ;;  %v6011_v53 = vadd.f32 %v5901_v37, %v11574_v48  ;;  %v5893_v26 = vadd.f32 %v5892_v7, %v10785_v56  ;;  %v7604_v22 = vld [vmem:[%s7730_s13 + $0xe8] sm:$0xff]  ;;  %v11579_v48 = vld [vmem:[#allocation45_spill] sm:$0xff] }
 0x4e3   : > { %6405 = vst [vmem:[%s10681_s22 + $0x9f] sm:$0xff] %v6356_v27  ;;  %v6359_v0 = vadd.f32 %v10671_v46, %v6303_v29  ;;  %v6357_v50 = vadd.f32 %v10671_v46, %v6301_v55  ;;  %v6358_v3 = vadd.f32 %v10671_v46, %v6302_v24 }
 0x4e4   : > { %v6183_v15 = vrot.slane %v6063_v41, 7  ;;  %v6066_v39 = vmul.f32 %v10650_v58, %v6011_v53  ;;  %v6009_v16 = vadd.f32 %v5893_v26, %v11575_v49  ;;  %v7398_v2 = vpop.f32.mrb[156].mxu1  ;;  %v6187_v33 = vrot.slane %v6065_v32, 7 }
 0x4e5   : > { %6408 = vst [vmem:[%s10681_s22 + $0xb7] sm:$0xff] %v6359_v0  ;;  %6406 = vst [vmem:[%s10681_s22 + $0xa7] sm:$0xff] %v6357_v50  ;;  %v5905_v42 = vpop.f32.mrb[157].mxu1 }
 0x4e6   : > { %6407 = vst [vmem:[%s10681_s22 + $0xaf] sm:$0xff] %v6358_v3  ;;  %v6184_v56 = vsel %vm6135_vm0, %v6181_v47, %v6183_v15  ;;  %v6189_v62 = vrot.slane %v6066_v39, 7  ;;  %v6064_v31 = vmul.f32 %v10650_v58, %v6009_v16  ;;  %v5906_v9 = vadd.f32 %v5905_v42, %v5680_v20  ;;  %v7399_v38 = vpop.f32.mrb[158].mxu1  ;;  %v7602_v20 = vld [vmem:[%s7730_s13 + $0xf0] sm:$0xff]  ;;  %v7605_v42 = vld [vmem:[%s7730_s13 + $0xf8] sm:$0xff] }
 0x4e7   : > { %v5688_v12 = vpop.f32.mrb[140].mxu0  ;;  %v6304_v43 = vadd.f32 %v7601_v61, %v6184_v56  ;;  %v5908_v35 = vpop.f32.mrb[159].mxu1 }
 0x4e8   : > { %v5914_v59 = vadd.f32 %v7398_v2, %v5688_v12  ;;  %v5690_v14 = vpop.f32.mrb[141].mxu0  ;;  %v6190_v8 = vsel %vm6135_vm0, %v6187_v33, %v6189_v62  ;;  %v6185_v21 = vrot.slane %v6064_v31, 7  ;;  %v6012_v45 = vadd.f32 %v5906_v9, %v11576_v63 }
 0x4e9   : > { %v5909_v47 = vadd.f32 %v5908_v35, %v5683_v11  ;;  %v5691_v52 = vpop.f32.mrb[142].mxu0  ;;  %v6360_v37 = vadd.f32 %v10671_v46, %v6304_v43  ;;  %v6307_v7 = vadd.f32 %v7602_v20, %v6190_v8  ;;  %v7607_v8 = vld [vmem:[%s7730_s13 + $0x108] sm:$0xff] }
 0x4ea   : > { %v6014_v19 = vadd.f32 %v5914_v59, %v11577_v6  ;;  %v5917_v5 = vadd.f32 %v7399_v38, %v5691_v52  ;;  %v5693_v23 = vpop.f32.mrb[143].mxu0  ;;  %v6186_v40 = vsel %vm6135_vm0, %v6183_v15, %v6185_v21  ;;  %v6188_v54 = vsel %vm6135_vm0, %v6185_v21, %v6187_v33  ;;  %v7606_v59 = vld [vmem:[%s7730_s13 + $0x100] sm:$0xff] }
 0x4eb   : > { %v6067_v27 = vmul.f32 %v10650_v58, %v6012_v45  ;;  %v6013_v29 = vadd.f32 %v5909_v47, %v11578_v44  ;;  %6409 = vst [vmem:[%s10681_s22 + $0xbf] sm:$0xff] %v6360_v37  ;;  %v6363_v11 = vadd.f32 %v10671_v46, %v6307_v7  ;;  %v6305_v55 = vadd.f32 %v7603_v17, %v6186_v40  ;;  %v7608_v7 = vld [vmem:[%s7730_s13 + $0x110] sm:$0xff] }
 0x4ec   : > { %v6306_v24 = vadd.f32 %v7604_v22, %v6188_v54  ;;  %v6069_v28 = vmul.f32 %v10650_v58, %v6014_v19  ;;  %v6015_v53 = vadd.f32 %v5917_v5, %v11579_v48  ;;  %v7402_v26 = vpop.f32.mrb[160].mxu1  ;;  %v7609_v22 = vld [vmem:[%s7730_s13 + $0x118] sm:$0xff] }
 0x4ed   : > { %v6191_v32 = vrot.slane %v6067_v27, 7  ;;  %v6068_v41 = vmul.f32 %v10650_v58, %v6013_v29  ;;  %6412 = vst [vmem:[%s10681_s22 + $0xd7] sm:$0xff] %v6363_v11  ;;  %v6361_v0 = vadd.f32 %v10671_v46, %v6305_v55  ;;  %v5921_v15 = vpop.f32.mrb[161].mxu1 }
 0x4ee   : > { %v6362_v50 = vadd.f32 %v10671_v46, %v6306_v24  ;;  %v6195_v3 = vrot.slane %v6069_v28, 7  ;;  %v6070_v16 = vmul.f32 %v10650_v58, %v6015_v53  ;;  %v7403_v2 = vpop.f32.mrb[162].mxu1 }
 0x4ef   : > { %v6192_v39 = vsel %vm6135_vm0, %v6189_v62, %v6191_v32  ;;  %v6193_v49 = vrot.slane %v6068_v41, 7  ;;  %v5696_v33 = vpop.f32.mrb[144].mxu0  ;;  %6410 = vst [vmem:[%s10681_s22 + $0xc7] sm:$0xff] %v6361_v0  ;;  %v5924_v31 = vpop.f32.mrb[163].mxu1 }
 0x4f0   : > { %6411 = vst [vmem:[%s10681_s22 + $0xcf] sm:$0xff] %v6362_v50  ;;  %v6308_v56 = vadd.f32 %v7605_v42, %v6192_v39  ;;  %v5922_v9 = vadd.f32 %v5921_v15, %v5696_v33  ;;  %v5698_v38 = vpop.f32.mrb[145].mxu0  ;;  %v6197_v61 = vrot.slane %v6070_v16, 7 }
 0x4f1   : > { %v6194_v12 = vsel %vm6135_vm0, %v6191_v32, %v6193_v49  ;;  %v6196_v62 = vsel %vm6135_vm0, %v6193_v49, %v6195_v3  ;;  %v5699_v43 = vpop.f32.mrb[146].mxu0 }
 0x4f2   : > { %v6364_v35 = vadd.f32 %v10671_v46, %v6308_v56  ;;  %v6309_v14 = vadd.f32 %v7606_v59, %v6194_v12  ;;  %v6310_v21 = vadd.f32 %v7607_v8, %v6196_v62  ;;  %v6016_v63 = vadd.f32 %v5922_v9, %v10559_v60  ;;  %v5701_v45 = vpop.f32.mrb[147].mxu0  ;;  %v7611_v62 = vld [vmem:[%s7730_s13 + $0x128] sm:$0xff] }
 0x4f3   : > { %v6198_v47 = vsel %vm6135_vm0, %v6195_v3, %v6197_v61  ;;  %v5925_v52 = vadd.f32 %v5924_v31, %v5699_v43  ;;  %v7610_v3 = vld [vmem:[%s7730_s13 + $0x120] sm:$0xff] }
 0x4f4   : > { %6413 = vst [vmem:[%s10681_s22 + $0xdf] sm:$0xff] %v6364_v35  ;;  %v6365_v37 = vadd.f32 %v10671_v46, %v6309_v14  ;;  %v6366_v20 = vadd.f32 %v10671_v46, %v6310_v21  ;;  %v6311_v6 = vadd.f32 %v7608_v7, %v6198_v47  ;;  %v6071_v19 = vmul.f32 %v10650_v58, %v6016_v63  ;;  %v10898_v23 = vpop.f32.mrb[164].mxu1  ;;  %v7612_v63 = vld [vmem:[%s7730_s13 + $0x130] sm:$0xff] }
 0x4f5   : > { %v6017_v5 = vadd.f32 %v5925_v52, %v10564_v10  ;;  %v5937_v54 = vpop.f32.mrb[165].mxu1  ;;  %v11580_v52 = vld [vmem:[#allocation4_spill] sm:$0xff] }
 0x4f6   : > { %6414 = vst [vmem:[%s10681_s22 + $0xe7] sm:$0xff] %v6365_v37  ;;  %6415 = vst [vmem:[%s10681_s22 + $0xef] sm:$0xff] %v6366_v20  ;;  %v6367_v60 = vadd.f32 %v10671_v46, %v6311_v6  ;;  %v6199_v40 = vrot.slane %v6071_v19, 7  ;;  %v10904_v44 = vpop.f32.mrb[166].mxu1 }
 0x4f7   : > { %v6072_v27 = vmul.f32 %v10650_v58, %v6017_v5  ;;  %v5704_v29 = vpop.f32.mrb[148].mxu0  ;;  %v5940_v17 = vpop.f32.mrb[167].mxu1 }
 0x4f8   : > { %6416 = vst [vmem:[%s10681_s22 + $0xf7] sm:$0xff] %v6367_v60  ;;  %v6200_v11 = vsel %vm6135_vm0, %v6197_v61, %v6199_v40  ;;  %v5930_v10 = vadd.f32 %v7402_v26, %v5704_v29  ;;  %v5706_v55 = vpop.f32.mrb[149].mxu0 }
 0x4f9   : > { %v6312_v24 = vadd.f32 %v7609_v22, %v6200_v11  ;;  %v6201_v28 = vrot.slane %v6072_v27, 7  ;;  %v5707_v32 = vpop.f32.mrb[150].mxu0 }
 0x4fa   : > { %v6018_v41 = vadd.f32 %v5930_v10, %v10569_v51  ;;  %v5933_v48 = vadd.f32 %v7403_v2, %v5707_v32  ;;  %v5709_v53 = vpop.f32.mrb[151].mxu0 }
 0x4fb   : > { %v6368_v0 = vadd.f32 %v10671_v46, %v6312_v24  ;;  %v6202_v50 = vsel %vm6135_vm0, %v6199_v40, %v6201_v28 }
 0x4fc   : > { %v6313_v15 = vadd.f32 %v7610_v3, %v6202_v50  ;;  %v6073_v39 = vmul.f32 %v10650_v58, %v6018_v41  ;;  %v6019_v26 = vadd.f32 %v5933_v48, %v10574_v18  ;;  %v10916_v49 = vpop.f32.mrb[168].mxu1  ;;  %v7614_v48 = vld [vmem:[%s7730_s13 + $0x140] sm:$0xff] }
 0x4fd   : > { %6417 = vst [vmem:[%s10681_s22 + $0xff] sm:$0xff] %v6368_v0  ;;  %v5953_v33 = vpop.f32.mrb[169].mxu1 }
 0x4fe   : > { %v6369_v16 = vadd.f32 %v10671_v46, %v6313_v15  ;;  %v6203_v51 = vrot.slane %v6073_v39, 7  ;;  %v6074_v2 = vmul.f32 %v10650_v58, %v6019_v26  ;;  %v10920_v42 = vpop.f32.mrb[170].mxu1 }
 0x4ff   : > { %v5712_v56 = vpop.f32.mrb[152].mxu0  ;;  %v5956_v38 = vpop.f32.mrb[171].mxu1 }
 0x500   : > { %6418 = vst [vmem:[%s10681_s22 + $0x107] sm:$0xff] %v6369_v16  ;;  %v6204_v31 = vsel %vm6135_vm0, %v6201_v28, %v6203_v51  ;;  %v6205_v9 = vrot.slane %v6074_v2, 7  ;;  %v5938_v18 = vadd.f32 %v5937_v54, %v5712_v56  ;;  %v5714_v12 = vpop.f32.mrb[153].mxu0 }
 0x501   : > { %v6314_v61 = vadd.f32 %v7611_v62, %v6204_v31  ;;  %v5715_v43 = vpop.f32.mrb[154].mxu0  ;;  %v7616_v62 = vld [vmem:[%s7730_s13 + $0x150] sm:$0xff] }
 0x502   : > { %v6206_v35 = vsel %vm6135_vm0, %v6203_v51, %v6205_v9  ;;  %v6020_v59 = vadd.f32 %v5938_v18, %v10579_v4  ;;  %v5941_v14 = vadd.f32 %v5940_v17, %v5715_v43  ;;  %v5717_v8 = vpop.f32.mrb[155].mxu0  ;;  %v7613_v17 = vld [vmem:[%s7730_s13 + $0x138] sm:$0xff]  ;;  %v7615_v51 = vld [vmem:[%s7730_s13 + $0x148] sm:$0xff] }
 0x503   : > { %v6370_v21 = vadd.f32 %v10671_v46, %v6314_v61  ;;  %v6315_v45 = vadd.f32 %v7612_v63, %v6206_v35 }
 0x504   : > { %v6075_v47 = vmul.f32 %v10650_v58, %v6020_v59  ;;  %v6021_v37 = vadd.f32 %v5941_v14, %v11580_v52  ;;  %v10933_v7 = vpop.f32.mrb[172].mxu1 }
 0x505   : > { %6419 = vst [vmem:[%s10681_s22 + $0x10f] sm:$0xff] %v6370_v21  ;;  %v6371_v20 = vadd.f32 %v10671_v46, %v6315_v45  ;;  %v10936_v4 = vpop.f32.mrb[173].mxu1  ;;  %v7617_v45 = vld [vmem:[%s7730_s13 + $0x158] sm:$0xff] }
 0x506   : > { %v6207_v6 = vrot.slane %v6075_v47, 7  ;;  %v6076_v19 = vmul.f32 %v10650_v58, %v6021_v37  ;;  %v10939_v5 = vpop.f32.mrb[174].mxu1 }
 0x507   : > { %6420 = vst [vmem:[%s10681_s22 + $0x117] sm:$0xff] %v6371_v20  ;;  %v5720_v60 = vpop.f32.mrb[156].mxu0  ;;  %v10942_v27 = vpop.f32.mrb[175].mxu1 }
 0x508   : > { %v6208_v40 = vsel %vm6135_vm0, %v6205_v9, %v6207_v6  ;;  %v6209_v54 = vrot.slane %v6076_v19, 7  ;;  %v5946_v29 = vadd.f32 %v10898_v23, %v5720_v60  ;;  %v5722_v11 = vpop.f32.mrb[157].mxu0  ;;  %v7618_v60 = vld [vmem:[%s7730_s13 + $0x160] sm:$0xff] }
 0x509   : > { %v6316_v10 = vadd.f32 %v7613_v17, %v6208_v40  ;;  %v5723_v55 = vpop.f32.mrb[158].mxu0 }
 0x50a   : > { %v6210_v22 = vsel %vm6135_vm0, %v6207_v6, %v6209_v54  ;;  %v6022_v24 = vadd.f32 %v5946_v29, %v10590_v57  ;;  %v5949_v28 = vadd.f32 %v10904_v44, %v5723_v55  ;;  %v5725_v32 = vpop.f32.mrb[159].mxu0 }
 0x50b   : > { %v6372_v41 = vadd.f32 %v10671_v46, %v6316_v10  ;;  %v6317_v53 = vadd.f32 %v7614_v48, %v6210_v22 }
 0x50c   : > { %v6077_v0 = vmul.f32 %v10650_v58, %v6022_v24  ;;  %v6023_v23 = vadd.f32 %v5949_v28, %v10596_v1  ;;  %v7619_v24 = vld [vmem:[%s7730_s13 + $0x168] sm:$0xff] }
 0x50d   : > { %6421 = vst [vmem:[%s10681_s22 + $0x11f] sm:$0xff] %v6372_v41  ;;  %v6373_v50 = vadd.f32 %v10671_v46, %v6317_v53 }
 0x50e   : > { %v6211_v3 = vrot.slane %v6077_v0, 7  ;;  %v6078_v15 = vmul.f32 %v10650_v58, %v6023_v23  ;;  %v7620_v23 = vld [vmem:[%s7730_s13 + $0x170] sm:$0xff] }
 0x50f   : > { %6422 = vst [vmem:[%s10681_s22 + $0x127] sm:$0xff] %v6373_v50  ;;  %v5728_v57 = vpop.f32.mrb[160].mxu0 }
 0x510   : > { %v6212_v44 = vsel %vm6135_vm0, %v6209_v54, %v6211_v3  ;;  %v6213_v39 = vrot.slane %v6078_v15, 7  ;;  %v5954_v26 = vadd.f32 %v5953_v33, %v5728_v57  ;;  %v5730_v16 = vpop.f32.mrb[161].mxu0 }
 0x511   : > { %v6318_v2 = vadd.f32 %v7615_v51, %v6212_v44  ;;  %v5731_v56 = vpop.f32.mrb[162].mxu0 }
 0x512   : > { %v6214_v1 = vsel %vm6135_vm0, %v6211_v3, %v6213_v39  ;;  %v6024_v31 = vadd.f32 %v5954_v26, %v10602_v25  ;;  %v5957_v9 = vadd.f32 %v5956_v38, %v5731_v56  ;;  %v5733_v18 = vpop.f32.mrb[163].mxu0 }
 0x513   : > { %v6374_v12 = vadd.f32 %v10671_v46, %v6318_v2  ;;  %v6319_v61 = vadd.f32 %v7616_v62, %v6214_v1  ;;  %v7621_v2 = vld [vmem:[%s7730_s13 + $0x178] sm:$0xff] }
 0x514   : > { %v6079_v43 = vmul.f32 %v10650_v58, %v6024_v31  ;;  %v6025_v33 = vadd.f32 %v5957_v9, %v10608_v13  ;;  %v11582_v9 = vld [vmem:[#allocation33_spill] sm:$0xff] }
 0x515   : > { %6423 = vst [vmem:[%s10681_s22 + $0x12f] sm:$0xff] %v6374_v12  ;;  %v6375_v35 = vadd.f32 %v10671_v46, %v6319_v61 }
 0x516   : > { %v6215_v59 = vrot.slane %v6079_v43, 7  ;;  %v6080_v14 = vmul.f32 %v10650_v58, %v6025_v33  ;;  %v7622_v43 = vld [vmem:[%s7730_s13 + $0x180] sm:$0xff] }
 0x517   : > { %6424 = vst [vmem:[%s10681_s22 + $0x137] sm:$0xff] %v6375_v35  ;;  %v5736_v25 = vpop.f32.mrb[164].mxu0  ;;  %v11583_v35 = vld [vmem:[#allocation14_spill] sm:$0xff] }
 0x518   : > { %v6216_v38 = vsel %vm6135_vm0, %v6213_v39, %v6215_v59  ;;  %v6217_v8 = vrot.slane %v6080_v14, 7  ;;  %v5962_v21 = vadd.f32 %v10916_v49, %v5736_v25  ;;  %v5738_v63 = vpop.f32.mrb[165].mxu0 }
 0x519   : > { %v6320_v47 = vadd.f32 %v7617_v45, %v6216_v38  ;;  %v5739_v13 = vpop.f32.mrb[166].mxu0 }
 0x51a   : > { %v6218_v52 = vsel %vm6135_vm0, %v6215_v59, %v6217_v8  ;;  %v6026_v37 = vadd.f32 %v5962_v21, %v10614_v34  ;;  %v5965_v20 = vadd.f32 %v10920_v42, %v5739_v13  ;;  %v5741_v6 = vpop.f32.mrb[167].mxu0  ;;  %v7623_v21 = vld [vmem:[%s7730_s13 + $0x188] sm:$0xff] }
 0x51b   : > { %v6376_v19 = vadd.f32 %v10671_v46, %v6320_v47  ;;  %v6321_v40 = vadd.f32 %v7618_v60, %v6218_v52  ;;  %v7624_v47 = vld [vmem:[%s7730_s13 + $0x198] sm:$0xff] }
 0x51c   : > { %v6081_v54 = vmul.f32 %v10650_v58, %v6026_v37  ;;  %v6027_v49 = vadd.f32 %v5965_v20, %v10620_v30  ;;  %v7625_v37 = vld [vmem:[%s7730_s13 + $0x190] sm:$0xff] }
 0x51d   : > { %6425 = vst [vmem:[%s10681_s22 + $0x13f] sm:$0xff] %v6376_v19  ;;  %v6377_v29 = vadd.f32 %v10671_v46, %v6321_v40 }
 0x51e   : > { %v6219_v11 = vrot.slane %v6081_v54, 7  ;;  %v6082_v17 = vmul.f32 %v10650_v58, %v6027_v49 }
 0x51f   : > { %6426 = vst [vmem:[%s10681_s22 + $0x147] sm:$0xff] %v6377_v29  ;;  %v5744_v34 = vpop.f32.mrb[168].mxu0 }
 0x520   : > { %v6220_v42 = vsel %vm6135_vm0, %v6217_v8, %v6219_v11  ;;  %v6221_v10 = vrot.slane %v6082_v17, 7  ;;  %v5970_v55 = vadd.f32 %v10936_v4, %v5744_v34  ;;  %v5746_v22 = vpop.f32.mrb[169].mxu0  ;;  %v11581_v4 = vld [vmem:[#allocation54_spill] sm:$0xff] }
 0x521   : > { %v6322_v28 = vadd.f32 %v7619_v24, %v6220_v42  ;;  %v5747_v30 = vpop.f32.mrb[170].mxu0 }
 0x522   : > { %v6222_v32 = vsel %vm6135_vm0, %v6219_v11, %v6221_v10  ;;  %v6028_v41 = vadd.f32 %v5970_v55, %v10626_v36  ;;  %v5973_v48 = vadd.f32 %v10942_v27, %v5747_v30  ;;  %v5749_v53 = vpop.f32.mrb[171].mxu0 }
 0x523   : > { %v6378_v0 = vadd.f32 %v10671_v46, %v6322_v28  ;;  %v6323_v50 = vadd.f32 %v7620_v23, %v6222_v32 }
 0x524   : > { %v6083_v3 = vmul.f32 %v10650_v58, %v6028_v41  ;;  %v6029_v15 = vadd.f32 %v5973_v48, %v11581_v4 }
 0x525   : > { %6427 = vst [vmem:[%s10681_s22 + $0x14f] sm:$0xff] %v6378_v0  ;;  %v6379_v57 = vadd.f32 %v10671_v46, %v6323_v50 }
 0x526   : > { %v6223_v44 = vrot.slane %v6083_v3, 7  ;;  %v6084_v39 = vmul.f32 %v10650_v58, %v6029_v15 }
 0x527   : > { %6428 = vst [vmem:[%s10681_s22 + $0x157] sm:$0xff] %v6379_v57  ;;  %v5752_v36 = vpop.f32.mrb[172].mxu0 }
 0x528   : > { %v6224_v27 = vsel %vm6135_vm0, %v6221_v10, %v6223_v44  ;;  %v6225_v26 = vrot.slane %v6084_v39, 7  ;;  %v5978_v16 = vadd.f32 %v10933_v7, %v5752_v36  ;;  %v5754_v51 = vpop.f32.mrb[173].mxu0 }
 0x529   : > { %v6324_v56 = vadd.f32 %v7621_v2, %v6224_v27  ;;  %v5755_v1 = vpop.f32.mrb[174].mxu0 }
 0x52a   : > { %v6226_v31 = vsel %vm6135_vm0, %v6223_v44, %v6225_v26  ;;  %v6030_v18 = vadd.f32 %v5978_v16, %v11582_v9  ;;  %v5981_v12 = vadd.f32 %v10939_v5, %v5755_v1  ;;  %v5757_v62 = vpop.f32.mrb[175].mxu0 }
 0x52b   : > { %v6380_v61 = vadd.f32 %v10671_v46, %v6324_v56  ;;  %v6325_v33 = vadd.f32 %v7622_v43, %v6226_v31 }
 0x52c   : > { %v6085_v7 = vmul.f32 %v10650_v58, %v6030_v18  ;;  %v6031_v59 = vadd.f32 %v5981_v12, %v11583_v35 }
 0x52d   : > { %6429 = vst [vmem:[%s10681_s22 + $0x15f] sm:$0xff] %v6380_v61  ;;  %v6381_v14 = vadd.f32 %v10671_v46, %v6325_v33 }
 0x52e   : > { %v6227_v25 = vrot.slane %v6085_v7, 7  ;;  %v6086_v38 = vmul.f32 %v10650_v58, %v6031_v59 }
 0x52f   : > { %6430 = vst [vmem:[%s10681_s22 + $0x167] sm:$0xff] %v6381_v14 }
 0x530   : > { %v6228_v5 = vsel %vm6135_vm0, %v6225_v26, %v6227_v25  ;;  %v6229_v8 = vrot.slane %v6086_v38, 7 }
 0x531   : > { %v6326_v63 = vadd.f32 %v7623_v21, %v6228_v5 }
 0x532   : > { %v6230_v45 = vsel %vm6135_vm0, %v6227_v25, %v6229_v8  ;;  %v6328_v13 = vadd.f32 %v7624_v47, %v6229_v8 }
 0x533   : > { %v6382_v52 = vadd.f32 %v10671_v46, %v6326_v63  ;;  %v6327_v20 = vadd.f32 %v7625_v37, %v6230_v45 }
 0x534   : > { %v6384_v6 = vadd.f32 %v10671_v46, %v6328_v13 }
 0x535   : > { %6431 = vst [vmem:[%s10681_s22 + $0x16f] sm:$0xff] %v6382_v52  ;;  %v6383_v58 = vadd.f32 %v10671_v46, %v6327_v20 }
 0x536   : > { %6433 = vst [vmem:[%s10681_s22 + $0x17f] sm:$0x1] %v6384_v6 }
 0x537   : > { %6432 = vst [vmem:[%s10681_s22 + $0x177] sm:$0xff] %v6383_v58 }
 0x538 PF: > { %s19_s30 = sadd.s32 1, %s7632_s30  }
 0x539   : > { %p16_p4 = scmp.ge.s32.totalorder %s19_s30, 4  }
 0x53b   :  { %18 = sbr.rel (!%p16_p4) target bundleno = 1 (0x1), region = 92 }

</bundles_post_ra>
